<compile_context>
chip_gen: v7x
topology: tpu7x:2x2x1
jax: 0.10.0
libtpu: 0.0.40
codegen_flags: <defaults>
</compile_context>

<pallas_src>
import jax
import jax.numpy as jnp
from jax.experimental import pallas as pl
from jax.experimental.pallas import tpu as pltpu

EPS = 1e-5
LANE = 128


def _round_up(v, m):
    return ((v + m - 1) // m) * m


# ------------------------------ Pallas kernel ------------------------------ #

def _make_block_kernel(*, k1, ksc, stride, Ho, Wo, P, p1, p2, psc, wlpad,
                       cmid_p, cout_p, has_sc_conv):
    """Builds the fused BasicBlock kernel (all shape params are static ints)."""
    M = Ho * Wo

    def window(ref, h0, w0, s):
        """(Ho, Wo, C) shifted (optionally strided) window of a (1,H,W,C) ref."""
        if s == 1:
            v = ref[0, pl.ds(h0, Ho), pl.ds(w0, Wo), :]
        else:
            # TODO(synk): stride>1 uses strided in-kernel window reads; the
            # demo (stride=1) exercises only the contiguous path.
            v = ref[0, pl.ds(h0, Ho, s), pl.ds(w0, Wo, s), :]
        return v.reshape(M, v.shape[-1])

    def body(x_ref, w1_ref, b1_ref, w2_ref, b2_ref, wsc_ref, bsc_ref,
             o_ref, out1_ref):
        # ---- conv1 (stride) + folded BN1 (scale in w1, bias in init) + ReLU --
        acc1 = jnp.broadcast_to(b1_ref[...], (M, cmid_p)).astype(jnp.float32)
        for di in range(k1):
            for dj in range(k1):
                xw = window(x_ref, P - p1 + di, P - p1 + dj, stride)
                acc1 = acc1 + jnp.dot(xw, w1_ref[di, dj],
                                      preferred_element_type=jnp.float32)
        out1 = jnp.maximum(acc1, 0.0)

        # Keep out1 resident in VMEM, zero-padded to provide conv2's halo.
        # (Full re-zero each grid step: halo must be valid on every core.)
        out1_ref[...] = jnp.zeros(out1_ref.shape, out1_ref.dtype)
        out1_ref[pl.ds(p2, Ho), pl.ds(wlpad, Wo), :] = (
            out1.reshape(Ho, Wo, cmid_p).astype(out1_ref.dtype))

        # ---- conv2 (stride 1) + folded BN2 -------------------------------- #
        acc2 = jnp.broadcast_to(b2_ref[...], (M, cout_p)).astype(jnp.float32)
        for di in range(k1):
            for dj in range(k1):
                ow = out1_ref[pl.ds(di, Ho), pl.ds(wlpad - p2 + dj, Wo), :]
                acc2 = acc2 + jnp.dot(ow.reshape(M, cmid_p), w2_ref[di, dj],
                                      preferred_element_type=jnp.float32)

        # ---- shortcut ------------------------------------------------------ #
        if has_sc_conv:
            sc = jnp.broadcast_to(bsc_ref[...], (M, cout_p)).astype(jnp.float32)
            for di in range(ksc):
                for dj in range(ksc):
                    xw = window(x_ref, P - psc + di, P - psc + dj, stride)
                    sc = sc + jnp.dot(xw, wsc_ref[di, dj],
                                      preferred_element_type=jnp.float32)
        else:
            sc = window(x_ref, P, P, 1).astype(jnp.float32)

        out = jnp.maximum(acc2 + sc, 0.0)
        # TODO(synk): nn.Dropout(p=0.4) is identity in eval mode; training-mode
        # stochastic masking (pltpu.prng_*) is not applied here.
        o_ref[0] = out.reshape(Ho, Wo, cout_p).astype(o_ref.dtype)

    if has_sc_conv:
        def kernel(x_ref, w1_ref, b1_ref, w2_ref, b2_ref, wsc_ref, bsc_ref,
                   o_ref, out1_ref):
            body(x_ref, w1_ref, b1_ref, w2_ref, b2_ref, wsc_ref, bsc_ref,
                 o_ref, out1_ref)
    else:
        def kernel(x_ref, w1_ref, b1_ref, w2_ref, b2_ref, o_ref, out1_ref):
            body(x_ref, w1_ref, b1_ref, w2_ref, b2_ref, None, None,
                 o_ref, out1_ref)
    return kernel


# ------------------------------- Glue (JAX) -------------------------------- #

def fold_bn(gamma, beta, mean, var):
    scale = gamma / jnp.sqrt(var + EPS)
    bias = beta - mean * scale
    return scale, bias


def _prep_weight(w_oihw, scale, cin_p, cout_p):
    """(Cout,Cin,kh,kw) -> (kh,kw,Cin_p,Cout_p) bf16 with BN scale folded in."""
    cout, cin, _, _ = w_oihw.shape
    w = jnp.transpose(w_oihw, (2, 3, 1, 0)) * scale[None, None, None, :]
    w = jnp.pad(w, ((0, 0), (0, 0), (0, cin_p - cin), (0, cout_p - cout)))
    return w.astype(jnp.bfloat16)


def _prep_bias(bias, c_p):
    c = bias.shape[0]
    return jnp.pad(bias, (0, c_p - c)).reshape(1, c_p).astype(jnp.float32)


def basic_block_forward(x_nchw, params, stride):
    N, Cin, H, W = x_nchw.shape
    Cmid = params["w1"].shape[0]
    Cout = params["w2"].shape[0]
    k1 = params["w1"].shape[2]
    has_sc_conv = "w_sc" in params
    ksc = params["w_sc"].shape[2] if has_sc_conv else 1

    assert k1 % 2 == 1, "conv_kernel_size must be odd"
    p1 = k1 // 2            # conv1/conv2 padding (= int(k/2) in PyTorch)
    p2 = p1                 # conv2 padding
    psc = ksc // 2          # shortcut conv padding
    P = max(p1, psc)        # wrapper-side spatial zero padding of x

    Ho = (H + 2 * p1 - k1) // stride + 1
    Wo = (W + 2 * p1 - k1) // stride + 1
    if has_sc_conv:
        Hs = (H + 2 * psc - ksc) // stride + 1
        Ws = (W + 2 * psc - ksc) // stride + 1
        assert (Hs, Ws) == (Ho, Wo), "shortcut / main branch shapes must match"
    else:
        assert stride == 1 and Cin == Cout

    cin_p = _round_up(Cin, LANE)
    cmid_p = _round_up(Cmid, LANE)
    cout_p = _round_up(Cout, LANE)

    # Activations: NCHW -> NHWC, zero-pad spatial halo + channels, cast to bf16.
    x = jnp.transpose(x_nchw, (0, 2, 3, 1)).astype(jnp.float32)
    x = jnp.pad(x, ((0, 0), (P, P), (P, P), (0, cin_p - Cin))).astype(jnp.bfloat16)
    Hp, Wp = H + 2 * P, W + 2 * P

    s1, b1 = fold_bn(*params["bn1"])
    s2, b2 = fold_bn(*params["bn2"])
    w1 = _prep_weight(params["w1"], s1, cin_p, cmid_p)
    w2 = _prep_weight(params["w2"], s2, cmid_p, cout_p)
    b1 = _prep_bias(b1, cmid_p)
    b2 = _prep_bias(b2, cout_p)

    args = [x, w1, b1, w2, b2]
    in_specs = [
        pl.BlockSpec((1, Hp, Wp, cin_p), lambda n: (n, 0, 0, 0)),
        pl.BlockSpec((k1, k1, cin_p, cmid_p), lambda n: (0, 0, 0, 0)),
        pl.BlockSpec((1, cmid_p), lambda n: (0, 0)),
        pl.BlockSpec((k1, k1, cmid_p, cout_p), lambda n: (0, 0, 0, 0)),
        pl.BlockSpec((1, cout_p), lambda n: (0, 0)),
    ]
    sc_flops = 0
    wsc = None
    if has_sc_conv:
        ssc, bsc = fold_bn(*params["bn_sc"])
        wsc = _prep_weight(params["w_sc"], ssc, cin_p, cout_p)
        bsc = _prep_bias(bsc, cout_p)
        args += [wsc, bsc]
        in_specs += [
            pl.BlockSpec((ksc, ksc, cin_p, cout_p), lambda n: (0, 0, 0, 0)),
            pl.BlockSpec((1, cout_p), lambda n: (0, 0)),
        ]
        sc_flops = 2 * ksc * ksc * cin_p * cout_p

    # conv2's padded intermediate: W is left-padded to a multiple of 8 so the
    # interior store stays sublane-aligned; the extra zero columns are unread.
    wlpad = _round_up(p2, 8) if p2 > 0 else 0
    out1_scr = pltpu.VMEM((Ho + 2 * p2, wlpad + Wo + p2, cmid_p), jnp.bfloat16)

    kernel = _make_block_kernel(
        k1=k1, ksc=ksc, stride=stride, Ho=Ho, Wo=Wo, P=P, p1=p1, p2=p2,
        psc=psc, wlpad=wlpad, cmid_p=cmid_p, cout_p=cout_p,
        has_sc_conv=has_sc_conv)

    m_total = N * Ho * Wo
    flops = m_total * (2 * k1 * k1 * cin_p * cmid_p
                       + 2 * k1 * k1 * cmid_p * cout_p
                       + sc_flops)
    bytes_accessed = (x.size * 2 + w1.size * 2 + w2.size * 2
                      + (wsc.size * 2 if has_sc_conv else 0)
                      + (b1.size + b2.size) * 4
                      + N * Ho * Wo * cout_p * 4)

    out = pl.pallas_call(
        kernel,
        out_shape=jax.ShapeDtypeStruct((N, Ho, Wo, cout_p), jnp.float32),
        grid=(N,),
        in_specs=in_specs,
        out_specs=pl.BlockSpec((1, Ho, Wo, cout_p), lambda n: (n, 0, 0, 0)),
        scratch_shapes=[out1_scr],
        compiler_params=pltpu.CompilerParams(
            dimension_semantics=("parallel",),
            vmem_limit_bytes=32 * 1024 * 1024),
        cost_estimate=pl.CostEstimate(
            flops=flops, transcendentals=0, bytes_accessed=bytes_accessed),
    )(*args)

    # Drop channel padding, NHWC -> NCHW.
    return jnp.transpose(out[..., :Cout], (0, 3, 1, 2))


# --------------------------- Pure-JAX f32 reference ------------------------ #

def reference_forward(x_nchw, params, stride):
    def conv(x, w, s, pad):
        return jax.lax.conv_general_dilated(
            x, w, window_strides=(s, s), padding=[(pad, pad), (pad, pad)],
            dimension_numbers=("NCHW", "OIHW", "NCHW"))

    def bn(y, p):
        gamma, beta, mean, var = p
        scale = gamma / jnp.sqrt(var + EPS)
        bias = beta - mean * scale
        return y * scale[None, :, None, None] + bias[None, :, None, None]

    k1 = params["w1"].shape[2]
    out = jax.nn.relu(bn(conv(x_nchw, params["w1"], stride, k1 // 2), params["bn1"]))
    out = bn(conv(out, params["w2"], 1, k1 // 2), params["bn2"])
    if "w_sc" in params:
        ksc = params["w_sc"].shape[2]
        sc = bn(conv(x_nchw, params["w_sc"], stride, ksc // 2), params["bn_sc"])
    else:
        sc = x_nchw
    return jax.nn.relu(out + sc)


# ----------------------------- Parameter init ------------------------------ #

def make_params(key, in_planes, planes, stride, conv_k=3, shortcut_k=1):
    ks = jax.random.split(key, 20)

    def bn_init(k1, k2, k3, k4, c):
        gamma = 1.0 + 0.1 * jax.random.normal(k1, (c,), jnp.float32)
        beta = 0.1 * jax.random.normal(k2, (c,), jnp.float32)
        mean = 0.1 * jax.random.normal(k3, (c,), jnp.float32)
        var = jnp.abs(0.5 + 0.1 * jax.random.normal(k4, (c,), jnp.float32))
        return (gamma, beta, mean, var)

    params = {
        "w1": 0.1 * jax.random.normal(ks[0], (planes, in_planes, conv_k, conv_k), jnp.float32),
        "bn1": bn_init(ks[1], ks[2], ks[3], ks[4], planes),
        "w2": 0.1 * jax.random.normal(ks[5], (planes, planes, conv_k, conv_k), jnp.float32),
        "bn2": bn_init(ks[6], ks[7], ks[8], ks[9], planes),
    }
    if stride != 1 or in_planes != planes:
        params["w_sc"] = 0.1 * jax.random.normal(
            ks[10], (planes, in_planes, shortcut_k, shortcut_k), jnp.float32)
        params["bn_sc"] = bn_init(ks[11], ks[12], ks[13], ks[14], planes)
    return params


# ---------------------------------- Main ----------------------------------- #

if __name__ == "__main__":
    key = jax.random.PRNGKey(0)
    k_x, k_p = jax.random.split(key)

    # batch=2, in_planes=4, planes=8, spatial=16x16, stride=1
    # (in_planes != planes triggers the 1x1 conv + BN shortcut branch).
    in_planes, planes, stride = 4, 8, 1
    x = jax.random.normal(k_x, (2, in_planes, 16, 16), jnp.float32)   # NCHW
    params = make_params(k_p, in_planes, planes, stride)

    out = jax.block_until_ready(basic_block_forward(x, params, stride))
    ref = jax.block_until_ready(reference_forward(x, params, stride))

    assert out.shape == (2, planes, 16, 16), out.shape
    assert bool(jnp.all(out >= 0.0))                    # final ReLU
    assert bool(jnp.all(jnp.isfinite(out)))
    max_err = float(jnp.max(jnp.abs(out - ref)))
    tol = 5e-2 + 2e-2 * float(jnp.max(jnp.abs(ref)))    # bf16 MXU tolerance
    assert max_err < tol, f"mismatch vs f32 reference: {max_err} (tol {tol})"
    print("KERNEL_OK")
</pallas_src>

<mosaic_0001>
module attributes {stable_mosaic.version = 11 : i64} {
  func.func @kernel(%arg0: i32, %arg1: memref<1x18x18x128xbf16, #tpu.memory_space<vmem>>, %arg2: memref<3x3x128x128xbf16, #tpu.memory_space<vmem>>, %arg3: memref<1x128xf32, #tpu.memory_space<vmem>>, %arg4: memref<3x3x128x128xbf16, #tpu.memory_space<vmem>>, %arg5: memref<1x128xf32, #tpu.memory_space<vmem>>, %arg6: memref<1x1x128x128xbf16, #tpu.memory_space<vmem>>, %arg7: memref<1x128xf32, #tpu.memory_space<vmem>>, %arg8: memref<1x16x16x128xf32, #tpu.memory_space<vmem>>, %arg9: memref<18x25x128xbf16, #tpu.memory_space<vmem>>) attributes {dimension_semantics = [#tpu.dimension_semantics<parallel>], iteration_bounds = array<i64: 2>, scalar_prefetch = 0 : i64, scratch_operands = 1 : i64, tpu.core_type = #tpu.core_type<tc>, window_params = [{transform_indices = @transform_0, window_bounds = array<i64: 1, 18, 18, 128>}, {pipeline_mode = #tpu.pipeline_mode<synchronous>, transform_indices = @transform_1, window_bounds = array<i64: 3, 3, 128, 128>}, {pipeline_mode = #tpu.pipeline_mode<synchronous>, transform_indices = @transform_2, window_bounds = array<i64: 1, 128>}, {pipeline_mode = #tpu.pipeline_mode<synchronous>, transform_indices = @transform_3, window_bounds = array<i64: 3, 3, 128, 128>}, {pipeline_mode = #tpu.pipeline_mode<synchronous>, transform_indices = @transform_4, window_bounds = array<i64: 1, 128>}, {pipeline_mode = #tpu.pipeline_mode<synchronous>, transform_indices = @transform_5, window_bounds = array<i64: 1, 1, 128, 128>}, {pipeline_mode = #tpu.pipeline_mode<synchronous>, transform_indices = @transform_6, window_bounds = array<i64: 1, 128>}, {transform_indices = @transform_7, window_bounds = array<i64: 1, 16, 16, 128>}]} {
    %c0 = arith.constant 0 : index
    %c0_0 = arith.constant 0 : index
    %0 = vector.load %arg3[%c0, %c0_0] : memref<1x128xf32, #tpu.memory_space<vmem>>, vector<1x128xf32>
    %1 = vector.shape_cast %0 : vector<1x128xf32> to vector<1x128xf32>
    %2 = vector.broadcast %1 : vector<1x128xf32> to vector<256x128xf32>
    %c0_1 = arith.constant 0 : index
    %c0_2 = arith.constant 0 : index
    %c0_3 = arith.constant 0 : index
    %c0_4 = arith.constant 0 : index
    %3 = vector.load %arg1[%c0_1, %c0_2, %c0_3, %c0_4] : memref<1x18x18x128xbf16, #tpu.memory_space<vmem>>, vector<1x16x16x128xbf16>
    %4 = vector.shape_cast %3 : vector<1x16x16x128xbf16> to vector<16x16x128xbf16>
    %5 = vector.shape_cast %4 : vector<16x16x128xbf16> to vector<256x128xbf16>
    %c0_5 = arith.constant 0 : index
    %c0_6 = arith.constant 0 : index
    %c0_7 = arith.constant 0 : index
    %c0_8 = arith.constant 0 : index
    %6 = vector.load %arg2[%c0_5, %c0_6, %c0_7, %c0_8] : memref<3x3x128x128xbf16, #tpu.memory_space<vmem>>, vector<1x1x128x128xbf16>
    %7 = vector.shape_cast %6 : vector<1x1x128x128xbf16> to vector<128x128xbf16>
    %cst = arith.constant dense<0.000000e+00> : vector<256x128xf32>
    %8 = tpu.matmul %5, %7, %cst {dimension_numbers = #tpu.dot_dimension_numbers<[1], [0], [0], [1], [0, 0, 1, 1], [], []>} : vector<256x128xbf16>, vector<128x128xbf16>, vector<256x128xf32> -> vector<256x128xf32>
    %9 = arith.addf %2, %8 : vector<256x128xf32>
    %c0_9 = arith.constant 0 : index
    %c0_10 = arith.constant 0 : index
    %c1 = arith.constant 1 : index
    %c0_11 = arith.constant 0 : index
    %10 = vector.load %arg1[%c0_9, %c0_10, %c1, %c0_11] : memref<1x18x18x128xbf16, #tpu.memory_space<vmem>>, vector<1x16x16x128xbf16>
    %11 = vector.shape_cast %10 : vector<1x16x16x128xbf16> to vector<16x16x128xbf16>
    %12 = vector.shape_cast %11 : vector<16x16x128xbf16> to vector<256x128xbf16>
    %c0_12 = arith.constant 0 : index
    %c1_13 = arith.constant 1 : index
    %c0_14 = arith.constant 0 : index
    %c0_15 = arith.constant 0 : index
    %13 = vector.load %arg2[%c0_12, %c1_13, %c0_14, %c0_15] : memref<3x3x128x128xbf16, #tpu.memory_space<vmem>>, vector<1x1x128x128xbf16>
    %14 = vector.shape_cast %13 : vector<1x1x128x128xbf16> to vector<128x128xbf16>
    %cst_16 = arith.constant dense<0.000000e+00> : vector<256x128xf32>
    %15 = tpu.matmul %12, %14, %cst_16 {dimension_numbers = #tpu.dot_dimension_numbers<[1], [0], [0], [1], [0, 0, 1, 1], [], []>} : vector<256x128xbf16>, vector<128x128xbf16>, vector<256x128xf32> -> vector<256x128xf32>
    %16 = arith.addf %9, %15 : vector<256x128xf32>
    %c0_17 = arith.constant 0 : index
    %c0_18 = arith.constant 0 : index
    %c2 = arith.constant 2 : index
    %c0_19 = arith.constant 0 : index
    %17 = vector.load %arg1[%c0_17, %c0_18, %c2, %c0_19] : memref<1x18x18x128xbf16, #tpu.memory_space<vmem>>, vector<1x16x16x128xbf16>
    %18 = vector.shape_cast %17 : vector<1x16x16x128xbf16> to vector<16x16x128xbf16>
    %19 = vector.shape_cast %18 : vector<16x16x128xbf16> to vector<256x128xbf16>
    %c0_20 = arith.constant 0 : index
    %c2_21 = arith.constant 2 : index
    %c0_22 = arith.constant 0 : index
    %c0_23 = arith.constant 0 : index
    %20 = vector.load %arg2[%c0_20, %c2_21, %c0_22, %c0_23] : memref<3x3x128x128xbf16, #tpu.memory_space<vmem>>, vector<1x1x128x128xbf16>
    %21 = vector.shape_cast %20 : vector<1x1x128x128xbf16> to vector<128x128xbf16>
    %cst_24 = arith.constant dense<0.000000e+00> : vector<256x128xf32>
    %22 = tpu.matmul %19, %21, %cst_24 {dimension_numbers = #tpu.dot_dimension_numbers<[1], [0], [0], [1], [0, 0, 1, 1], [], []>} : vector<256x128xbf16>, vector<128x128xbf16>, vector<256x128xf32> -> vector<256x128xf32>
    %23 = arith.addf %16, %22 : vector<256x128xf32>
    %c0_25 = arith.constant 0 : index
    %c1_26 = arith.constant 1 : index
    %c0_27 = arith.constant 0 : index
    %c0_28 = arith.constant 0 : index
    %24 = vector.load %arg1[%c0_25, %c1_26, %c0_27, %c0_28] : memref<1x18x18x128xbf16, #tpu.memory_space<vmem>>, vector<1x16x16x128xbf16>
    %25 = vector.shape_cast %24 : vector<1x16x16x128xbf16> to vector<16x16x128xbf16>
    %26 = vector.shape_cast %25 : vector<16x16x128xbf16> to vector<256x128xbf16>
    %c1_29 = arith.constant 1 : index
    %c0_30 = arith.constant 0 : index
    %c0_31 = arith.constant 0 : index
    %c0_32 = arith.constant 0 : index
    %27 = vector.load %arg2[%c1_29, %c0_30, %c0_31, %c0_32] : memref<3x3x128x128xbf16, #tpu.memory_space<vmem>>, vector<1x1x128x128xbf16>
    %28 = vector.shape_cast %27 : vector<1x1x128x128xbf16> to vector<128x128xbf16>
    %cst_33 = arith.constant dense<0.000000e+00> : vector<256x128xf32>
    %29 = tpu.matmul %26, %28, %cst_33 {dimension_numbers = #tpu.dot_dimension_numbers<[1], [0], [0], [1], [0, 0, 1, 1], [], []>} : vector<256x128xbf16>, vector<128x128xbf16>, vector<256x128xf32> -> vector<256x128xf32>
    %30 = arith.addf %23, %29 : vector<256x128xf32>
    %c0_34 = arith.constant 0 : index
    %c1_35 = arith.constant 1 : index
    %c1_36 = arith.constant 1 : index
    %c0_37 = arith.constant 0 : index
    %31 = vector.load %arg1[%c0_34, %c1_35, %c1_36, %c0_37] : memref<1x18x18x128xbf16, #tpu.memory_space<vmem>>, vector<1x16x16x128xbf16>
    %32 = vector.shape_cast %31 : vector<1x16x16x128xbf16> to vector<16x16x128xbf16>
    %33 = vector.shape_cast %32 : vector<16x16x128xbf16> to vector<256x128xbf16>
    %c1_38 = arith.constant 1 : index
    %c1_39 = arith.constant 1 : index
    %c0_40 = arith.constant 0 : index
    %c0_41 = arith.constant 0 : index
    %34 = vector.load %arg2[%c1_38, %c1_39, %c0_40, %c0_41] : memref<3x3x128x128xbf16, #tpu.memory_space<vmem>>, vector<1x1x128x128xbf16>
    %35 = vector.shape_cast %34 : vector<1x1x128x128xbf16> to vector<128x128xbf16>
    %cst_42 = arith.constant dense<0.000000e+00> : vector<256x128xf32>
    %36 = tpu.matmul %33, %35, %cst_42 {dimension_numbers = #tpu.dot_dimension_numbers<[1], [0], [0], [1], [0, 0, 1, 1], [], []>} : vector<256x128xbf16>, vector<128x128xbf16>, vector<256x128xf32> -> vector<256x128xf32>
    %37 = arith.addf %30, %36 : vector<256x128xf32>
    %c0_43 = arith.constant 0 : index
    %c1_44 = arith.constant 1 : index
    %c2_45 = arith.constant 2 : index
    %c0_46 = arith.constant 0 : index
    %38 = vector.load %arg1[%c0_43, %c1_44, %c2_45, %c0_46] : memref<1x18x18x128xbf16, #tpu.memory_space<vmem>>, vector<1x16x16x128xbf16>
    %39 = vector.shape_cast %38 : vector<1x16x16x128xbf16> to vector<16x16x128xbf16>
    %40 = vector.shape_cast %39 : vector<16x16x128xbf16> to vector<256x128xbf16>
    %c1_47 = arith.constant 1 : index
    %c2_48 = arith.constant 2 : index
    %c0_49 = arith.constant 0 : index
    %c0_50 = arith.constant 0 : index
    %41 = vector.load %arg2[%c1_47, %c2_48, %c0_49, %c0_50] : memref<3x3x128x128xbf16, #tpu.memory_space<vmem>>, vector<1x1x128x128xbf16>
    %42 = vector.shape_cast %41 : vector<1x1x128x128xbf16> to vector<128x128xbf16>
    %cst_51 = arith.constant dense<0.000000e+00> : vector<256x128xf32>
    %43 = tpu.matmul %40, %42, %cst_51 {dimension_numbers = #tpu.dot_dimension_numbers<[1], [0], [0], [1], [0, 0, 1, 1], [], []>} : vector<256x128xbf16>, vector<128x128xbf16>, vector<256x128xf32> -> vector<256x128xf32>
    %44 = arith.addf %37, %43 : vector<256x128xf32>
    %c0_52 = arith.constant 0 : index
    %c2_53 = arith.constant 2 : index
    %c0_54 = arith.constant 0 : index
    %c0_55 = arith.constant 0 : index
    %45 = vector.load %arg1[%c0_52, %c2_53, %c0_54, %c0_55] : memref<1x18x18x128xbf16, #tpu.memory_space<vmem>>, vector<1x16x16x128xbf16>
    %46 = vector.shape_cast %45 : vector<1x16x16x128xbf16> to vector<16x16x128xbf16>
    %47 = vector.shape_cast %46 : vector<16x16x128xbf16> to vector<256x128xbf16>
    %c2_56 = arith.constant 2 : index
    %c0_57 = arith.constant 0 : index
    %c0_58 = arith.constant 0 : index
    %c0_59 = arith.constant 0 : index
    %48 = vector.load %arg2[%c2_56, %c0_57, %c0_58, %c0_59] : memref<3x3x128x128xbf16, #tpu.memory_space<vmem>>, vector<1x1x128x128xbf16>
    %49 = vector.shape_cast %48 : vector<1x1x128x128xbf16> to vector<128x128xbf16>
    %cst_60 = arith.constant dense<0.000000e+00> : vector<256x128xf32>
    %50 = tpu.matmul %47, %49, %cst_60 {dimension_numbers = #tpu.dot_dimension_numbers<[1], [0], [0], [1], [0, 0, 1, 1], [], []>} : vector<256x128xbf16>, vector<128x128xbf16>, vector<256x128xf32> -> vector<256x128xf32>
    %51 = arith.addf %44, %50 : vector<256x128xf32>
    %c0_61 = arith.constant 0 : index
    %c2_62 = arith.constant 2 : index
    %c1_63 = arith.constant 1 : index
    %c0_64 = arith.constant 0 : index
    %52 = vector.load %arg1[%c0_61, %c2_62, %c1_63, %c0_64] : memref<1x18x18x128xbf16, #tpu.memory_space<vmem>>, vector<1x16x16x128xbf16>
    %53 = vector.shape_cast %52 : vector<1x16x16x128xbf16> to vector<16x16x128xbf16>
    %54 = vector.shape_cast %53 : vector<16x16x128xbf16> to vector<256x128xbf16>
    %c2_65 = arith.constant 2 : index
    %c1_66 = arith.constant 1 : index
    %c0_67 = arith.constant 0 : index
    %c0_68 = arith.constant 0 : index
    %55 = vector.load %arg2[%c2_65, %c1_66, %c0_67, %c0_68] : memref<3x3x128x128xbf16, #tpu.memory_space<vmem>>, vector<1x1x128x128xbf16>
    %56 = vector.shape_cast %55 : vector<1x1x128x128xbf16> to vector<128x128xbf16>
    %cst_69 = arith.constant dense<0.000000e+00> : vector<256x128xf32>
    %57 = tpu.matmul %54, %56, %cst_69 {dimension_numbers = #tpu.dot_dimension_numbers<[1], [0], [0], [1], [0, 0, 1, 1], [], []>} : vector<256x128xbf16>, vector<128x128xbf16>, vector<256x128xf32> -> vector<256x128xf32>
    %58 = arith.addf %51, %57 : vector<256x128xf32>
    %c0_70 = arith.constant 0 : index
    %c2_71 = arith.constant 2 : index
    %c2_72 = arith.constant 2 : index
    %c0_73 = arith.constant 0 : index
    %59 = vector.load %arg1[%c0_70, %c2_71, %c2_72, %c0_73] : memref<1x18x18x128xbf16, #tpu.memory_space<vmem>>, vector<1x16x16x128xbf16>
    %60 = vector.shape_cast %59 : vector<1x16x16x128xbf16> to vector<16x16x128xbf16>
    %61 = vector.shape_cast %60 : vector<16x16x128xbf16> to vector<256x128xbf16>
    %c2_74 = arith.constant 2 : index
    %c2_75 = arith.constant 2 : index
    %c0_76 = arith.constant 0 : index
    %c0_77 = arith.constant 0 : index
    %62 = vector.load %arg2[%c2_74, %c2_75, %c0_76, %c0_77] : memref<3x3x128x128xbf16, #tpu.memory_space<vmem>>, vector<1x1x128x128xbf16>
    %63 = vector.shape_cast %62 : vector<1x1x128x128xbf16> to vector<128x128xbf16>
    %cst_78 = arith.constant dense<0.000000e+00> : vector<256x128xf32>
    %64 = tpu.matmul %61, %63, %cst_78 {dimension_numbers = #tpu.dot_dimension_numbers<[1], [0], [0], [1], [0, 0, 1, 1], [], []>} : vector<256x128xbf16>, vector<128x128xbf16>, vector<256x128xf32> -> vector<256x128xf32>
    %65 = arith.addf %58, %64 : vector<256x128xf32>
    %cst_79 = arith.constant 0.000000e+00 : f32
    %66 = vector.broadcast %cst_79 : f32 to vector<256x128xf32>
    %67 = arith.maximumf %65, %66 : vector<256x128xf32>
    %cst_80 = arith.constant 0.000000e+00 : bf16
    %68 = vector.broadcast %cst_80 : bf16 to vector<18x25x128xbf16>
    %c0_81 = arith.constant 0 : index
    %c0_82 = arith.constant 0 : index
    %c0_83 = arith.constant 0 : index
    %69 = vector.load %arg9[%c0_81, %c0_82, %c0_83] : memref<18x25x128xbf16, #tpu.memory_space<vmem>>, vector<18x25x128xbf16>
    tpu.vector_store %arg9[%c0_81, %c0_82, %c0_83], %68 {strides = array<i32>} : memref<18x25x128xbf16, #tpu.memory_space<vmem>>, vector<18x25x128xbf16>,
    %70 = vector.shape_cast %67 : vector<256x128xf32> to vector<16x16x128xf32>
    %71 = arith.truncf %70 : vector<16x16x128xf32> to vector<16x16x128xbf16>
    %c1_84 = arith.constant 1 : index
    %c8 = arith.constant 8 : index
    %c0_85 = arith.constant 0 : index
    %72 = vector.load %arg9[%c1_84, %c8, %c0_85] : memref<18x25x128xbf16, #tpu.memory_space<vmem>>, vector<16x16x128xbf16>
    tpu.vector_store %arg9[%c1_84, %c8, %c0_85], %71 {strides = array<i32>} : memref<18x25x128xbf16, #tpu.memory_space<vmem>>, vector<16x16x128xbf16>,
    %c0_86 = arith.constant 0 : index
    %c0_87 = arith.constant 0 : index
    %73 = vector.load %arg5[%c0_86, %c0_87] : memref<1x128xf32, #tpu.memory_space<vmem>>, vector<1x128xf32>
    %74 = vector.shape_cast %73 : vector<1x128xf32> to vector<1x128xf32>
    %75 = vector.broadcast %74 : vector<1x128xf32> to vector<256x128xf32>
    %c0_88 = arith.constant 0 : index
    %c7 = arith.constant 7 : index
    %c0_89 = arith.constant 0 : index
    %76 = vector.load %arg9[%c0_88, %c7, %c0_89] : memref<18x25x128xbf16, #tpu.memory_space<vmem>>, vector<16x16x128xbf16>
    %77 = vector.shape_cast %76 : vector<16x16x128xbf16> to vector<256x128xbf16>
    %c0_90 = arith.constant 0 : index
    %c0_91 = arith.constant 0 : index
    %c0_92 = arith.constant 0 : index
    %c0_93 = arith.constant 0 : index
    %78 = vector.load %arg4[%c0_90, %c0_91, %c0_92, %c0_93] : memref<3x3x128x128xbf16, #tpu.memory_space<vmem>>, vector<1x1x128x128xbf16>
    %79 = vector.shape_cast %78 : vector<1x1x128x128xbf16> to vector<128x128xbf16>
    %cst_94 = arith.constant dense<0.000000e+00> : vector<256x128xf32>
    %80 = tpu.matmul %77, %79, %cst_94 {dimension_numbers = #tpu.dot_dimension_numbers<[1], [0], [0], [1], [0, 0, 1, 1], [], []>} : vector<256x128xbf16>, vector<128x128xbf16>, vector<256x128xf32> -> vector<256x128xf32>
    %81 = arith.addf %75, %80 : vector<256x128xf32>
    %c0_95 = arith.constant 0 : index
    %c8_96 = arith.constant 8 : index
    %c0_97 = arith.constant 0 : index
    %82 = vector.load %arg9[%c0_95, %c8_96, %c0_97] : memref<18x25x128xbf16, #tpu.memory_space<vmem>>, vector<16x16x128xbf16>
    %83 = vector.shape_cast %82 : vector<16x16x128xbf16> to vector<256x128xbf16>
    %c0_98 = arith.constant 0 : index
    %c1_99 = arith.constant 1 : index
    %c0_100 = arith.constant 0 : index
    %c0_101 = arith.constant 0 : index
    %84 = vector.load %arg4[%c0_98, %c1_99, %c0_100, %c0_101] : memref<3x3x128x128xbf16, #tpu.memory_space<vmem>>, vector<1x1x128x128xbf16>
    %85 = vector.shape_cast %84 : vector<1x1x128x128xbf16> to vector<128x128xbf16>
    %cst_102 = arith.constant dense<0.000000e+00> : vector<256x128xf32>
    %86 = tpu.matmul %83, %85, %cst_102 {dimension_numbers = #tpu.dot_dimension_numbers<[1], [0], [0], [1], [0, 0, 1, 1], [], []>} : vector<256x128xbf16>, vector<128x128xbf16>, vector<256x128xf32> -> vector<256x128xf32>
    %87 = arith.addf %81, %86 : vector<256x128xf32>
    %c0_103 = arith.constant 0 : index
    %c9 = arith.constant 9 : index
    %c0_104 = arith.constant 0 : index
    %88 = vector.load %arg9[%c0_103, %c9, %c0_104] : memref<18x25x128xbf16, #tpu.memory_space<vmem>>, vector<16x16x128xbf16>
    %89 = vector.shape_cast %88 : vector<16x16x128xbf16> to vector<256x128xbf16>
    %c0_105 = arith.constant 0 : index
    %c2_106 = arith.constant 2 : index
    %c0_107 = arith.constant 0 : index
    %c0_108 = arith.constant 0 : index
    %90 = vector.load %arg4[%c0_105, %c2_106, %c0_107, %c0_108] : memref<3x3x128x128xbf16, #tpu.memory_space<vmem>>, vector<1x1x128x128xbf16>
    %91 = vector.shape_cast %90 : vector<1x1x128x128xbf16> to vector<128x128xbf16>
    %cst_109 = arith.constant dense<0.000000e+00> : vector<256x128xf32>
    %92 = tpu.matmul %89, %91, %cst_109 {dimension_numbers = #tpu.dot_dimension_numbers<[1], [0], [0], [1], [0, 0, 1, 1], [], []>} : vector<256x128xbf16>, vector<128x128xbf16>, vector<256x128xf32> -> vector<256x128xf32>
    %93 = arith.addf %87, %92 : vector<256x128xf32>
    %c1_110 = arith.constant 1 : index
    %c7_111 = arith.constant 7 : index
    %c0_112 = arith.constant 0 : index
    %94 = vector.load %arg9[%c1_110, %c7_111, %c0_112] : memref<18x25x128xbf16, #tpu.memory_space<vmem>>, vector<16x16x128xbf16>
    %95 = vector.shape_cast %94 : vector<16x16x128xbf16> to vector<256x128xbf16>
    %c1_113 = arith.constant 1 : index
    %c0_114 = arith.constant 0 : index
    %c0_115 = arith.constant 0 : index
    %c0_116 = arith.constant 0 : index
    %96 = vector.load %arg4[%c1_113, %c0_114, %c0_115, %c0_116] : memref<3x3x128x128xbf16, #tpu.memory_space<vmem>>, vector<1x1x128x128xbf16>
    %97 = vector.shape_cast %96 : vector<1x1x128x128xbf16> to vector<128x128xbf16>
    %cst_117 = arith.constant dense<0.000000e+00> : vector<256x128xf32>
    %98 = tpu.matmul %95, %97, %cst_117 {dimension_numbers = #tpu.dot_dimension_numbers<[1], [0], [0], [1], [0, 0, 1, 1], [], []>} : vector<256x128xbf16>, vector<128x128xbf16>, vector<256x128xf32> -> vector<256x128xf32>
    %99 = arith.addf %93, %98 : vector<256x128xf32>
    %c1_118 = arith.constant 1 : index
    %c8_119 = arith.constant 8 : index
    %c0_120 = arith.constant 0 : index
    %100 = vector.load %arg9[%c1_118, %c8_119, %c0_120] : memref<18x25x128xbf16, #tpu.memory_space<vmem>>, vector<16x16x128xbf16>
    %101 = vector.shape_cast %100 : vector<16x16x128xbf16> to vector<256x128xbf16>
    %c1_121 = arith.constant 1 : index
    %c1_122 = arith.constant 1 : index
    %c0_123 = arith.constant 0 : index
    %c0_124 = arith.constant 0 : index
    %102 = vector.load %arg4[%c1_121, %c1_122, %c0_123, %c0_124] : memref<3x3x128x128xbf16, #tpu.memory_space<vmem>>, vector<1x1x128x128xbf16>
    %103 = vector.shape_cast %102 : vector<1x1x128x128xbf16> to vector<128x128xbf16>
    %cst_125 = arith.constant dense<0.000000e+00> : vector<256x128xf32>
    %104 = tpu.matmul %101, %103, %cst_125 {dimension_numbers = #tpu.dot_dimension_numbers<[1], [0], [0], [1], [0, 0, 1, 1], [], []>} : vector<256x128xbf16>, vector<128x128xbf16>, vector<256x128xf32> -> vector<256x128xf32>
    %105 = arith.addf %99, %104 : vector<256x128xf32>
    %c1_126 = arith.constant 1 : index
    %c9_127 = arith.constant 9 : index
    %c0_128 = arith.constant 0 : index
    %106 = vector.load %arg9[%c1_126, %c9_127, %c0_128] : memref<18x25x128xbf16, #tpu.memory_space<vmem>>, vector<16x16x128xbf16>
    %107 = vector.shape_cast %106 : vector<16x16x128xbf16> to vector<256x128xbf16>
    %c1_129 = arith.constant 1 : index
    %c2_130 = arith.constant 2 : index
    %c0_131 = arith.constant 0 : index
    %c0_132 = arith.constant 0 : index
    %108 = vector.load %arg4[%c1_129, %c2_130, %c0_131, %c0_132] : memref<3x3x128x128xbf16, #tpu.memory_space<vmem>>, vector<1x1x128x128xbf16>
    %109 = vector.shape_cast %108 : vector<1x1x128x128xbf16> to vector<128x128xbf16>
    %cst_133 = arith.constant dense<0.000000e+00> : vector<256x128xf32>
    %110 = tpu.matmul %107, %109, %cst_133 {dimension_numbers = #tpu.dot_dimension_numbers<[1], [0], [0], [1], [0, 0, 1, 1], [], []>} : vector<256x128xbf16>, vector<128x128xbf16>, vector<256x128xf32> -> vector<256x128xf32>
    %111 = arith.addf %105, %110 : vector<256x128xf32>
    %c2_134 = arith.constant 2 : index
    %c7_135 = arith.constant 7 : index
    %c0_136 = arith.constant 0 : index
    %112 = vector.load %arg9[%c2_134, %c7_135, %c0_136] : memref<18x25x128xbf16, #tpu.memory_space<vmem>>, vector<16x16x128xbf16>
    %113 = vector.shape_cast %112 : vector<16x16x128xbf16> to vector<256x128xbf16>
    %c2_137 = arith.constant 2 : index
    %c0_138 = arith.constant 0 : index
    %c0_139 = arith.constant 0 : index
    %c0_140 = arith.constant 0 : index
    %114 = vector.load %arg4[%c2_137, %c0_138, %c0_139, %c0_140] : memref<3x3x128x128xbf16, #tpu.memory_space<vmem>>, vector<1x1x128x128xbf16>
    %115 = vector.shape_cast %114 : vector<1x1x128x128xbf16> to vector<128x128xbf16>
    %cst_141 = arith.constant dense<0.000000e+00> : vector<256x128xf32>
    %116 = tpu.matmul %113, %115, %cst_141 {dimension_numbers = #tpu.dot_dimension_numbers<[1], [0], [0], [1], [0, 0, 1, 1], [], []>} : vector<256x128xbf16>, vector<128x128xbf16>, vector<256x128xf32> -> vector<256x128xf32>
    %117 = arith.addf %111, %116 : vector<256x128xf32>
    %c2_142 = arith.constant 2 : index
    %c8_143 = arith.constant 8 : index
    %c0_144 = arith.constant 0 : index
    %118 = vector.load %arg9[%c2_142, %c8_143, %c0_144] : memref<18x25x128xbf16, #tpu.memory_space<vmem>>, vector<16x16x128xbf16>
    %119 = vector.shape_cast %118 : vector<16x16x128xbf16> to vector<256x128xbf16>
    %c2_145 = arith.constant 2 : index
    %c1_146 = arith.constant 1 : index
    %c0_147 = arith.constant 0 : index
    %c0_148 = arith.constant 0 : index
    %120 = vector.load %arg4[%c2_145, %c1_146, %c0_147, %c0_148] : memref<3x3x128x128xbf16, #tpu.memory_space<vmem>>, vector<1x1x128x128xbf16>
    %121 = vector.shape_cast %120 : vector<1x1x128x128xbf16> to vector<128x128xbf16>
    %cst_149 = arith.constant dense<0.000000e+00> : vector<256x128xf32>
    %122 = tpu.matmul %119, %121, %cst_149 {dimension_numbers = #tpu.dot_dimension_numbers<[1], [0], [0], [1], [0, 0, 1, 1], [], []>} : vector<256x128xbf16>, vector<128x128xbf16>, vector<256x128xf32> -> vector<256x128xf32>
    %123 = arith.addf %117, %122 : vector<256x128xf32>
    %c2_150 = arith.constant 2 : index
    %c9_151 = arith.constant 9 : index
    %c0_152 = arith.constant 0 : index
    %124 = vector.load %arg9[%c2_150, %c9_151, %c0_152] : memref<18x25x128xbf16, #tpu.memory_space<vmem>>, vector<16x16x128xbf16>
    %125 = vector.shape_cast %124 : vector<16x16x128xbf16> to vector<256x128xbf16>
    %c2_153 = arith.constant 2 : index
    %c2_154 = arith.constant 2 : index
    %c0_155 = arith.constant 0 : index
    %c0_156 = arith.constant 0 : index
    %126 = vector.load %arg4[%c2_153, %c2_154, %c0_155, %c0_156] : memref<3x3x128x128xbf16, #tpu.memory_space<vmem>>, vector<1x1x128x128xbf16>
    %127 = vector.shape_cast %126 : vector<1x1x128x128xbf16> to vector<128x128xbf16>
    %cst_157 = arith.constant dense<0.000000e+00> : vector<256x128xf32>
    %128 = tpu.matmul %125, %127, %cst_157 {dimension_numbers = #tpu.dot_dimension_numbers<[1], [0], [0], [1], [0, 0, 1, 1], [], []>} : vector<256x128xbf16>, vector<128x128xbf16>, vector<256x128xf32> -> vector<256x128xf32>
    %129 = arith.addf %123, %128 : vector<256x128xf32>
    %c0_158 = arith.constant 0 : index
    %c0_159 = arith.constant 0 : index
    %130 = vector.load %arg7[%c0_158, %c0_159] : memref<1x128xf32, #tpu.memory_space<vmem>>, vector<1x128xf32>
    %131 = vector.shape_cast %130 : vector<1x128xf32> to vector<1x128xf32>
    %132 = vector.broadcast %131 : vector<1x128xf32> to vector<256x128xf32>
    %c0_160 = arith.constant 0 : index
    %c1_161 = arith.constant 1 : index
    %c1_162 = arith.constant 1 : index
    %c0_163 = arith.constant 0 : index
    %133 = vector.load %arg1[%c0_160, %c1_161, %c1_162, %c0_163] : memref<1x18x18x128xbf16, #tpu.memory_space<vmem>>, vector<1x16x16x128xbf16>
    %134 = vector.shape_cast %133 : vector<1x16x16x128xbf16> to vector<16x16x128xbf16>
    %135 = vector.shape_cast %134 : vector<16x16x128xbf16> to vector<256x128xbf16>
    %c0_164 = arith.constant 0 : index
    %c0_165 = arith.constant 0 : index
    %c0_166 = arith.constant 0 : index
    %c0_167 = arith.constant 0 : index
    %136 = vector.load %arg6[%c0_164, %c0_165, %c0_166, %c0_167] : memref<1x1x128x128xbf16, #tpu.memory_space<vmem>>, vector<1x1x128x128xbf16>
    %137 = vector.shape_cast %136 : vector<1x1x128x128xbf16> to vector<128x128xbf16>
    %cst_168 = arith.constant dense<0.000000e+00> : vector<256x128xf32>
    %138 = tpu.matmul %135, %137, %cst_168 {dimension_numbers = #tpu.dot_dimension_numbers<[1], [0], [0], [1], [0, 0, 1, 1], [], []>} : vector<256x128xbf16>, vector<128x128xbf16>, vector<256x128xf32> -> vector<256x128xf32>
    %139 = arith.addf %132, %138 : vector<256x128xf32>
    %140 = arith.addf %129, %139 : vector<256x128xf32>
    %cst_169 = arith.constant 0.000000e+00 : f32
    %141 = vector.broadcast %cst_169 : f32 to vector<256x128xf32>
    %142 = arith.maximumf %140, %141 : vector<256x128xf32>
    %143 = vector.shape_cast %142 : vector<256x128xf32> to vector<16x16x128xf32>
    %c0_170 = arith.constant 0 : index
    %c0_171 = arith.constant 0 : index
    %c0_172 = arith.constant 0 : index
    %c0_173 = arith.constant 0 : index
    %144 = vector.load %arg8[%c0_170, %c0_171, %c0_172, %c0_173] : memref<1x16x16x128xf32, #tpu.memory_space<vmem>>, vector<1x16x16x128xf32>
    %145 = vector.shape_cast %144 : vector<1x16x16x128xf32> to vector<16x16x128xf32>
    %146 = vector.shape_cast %143 : vector<16x16x128xf32> to vector<1x16x16x128xf32>
    tpu.vector_store %arg8[%c0_170, %c0_171, %c0_172, %c0_173], %146 {strides = array<i32>} : memref<1x16x16x128xf32, #tpu.memory_space<vmem>>, vector<1x16x16x128xf32>,
    return
  }
  func.func @transform_0(%arg0: i32) -> (i32, i32, i32, i32) {
    %c0_i32 = arith.constant 0 : i32
    %c0_i32_0 = arith.constant 0 : i32
    %c0_i32_1 = arith.constant 0 : i32
    %c0_i32_2 = arith.constant 0 : i32
    return %arg0, %c0_i32, %c0_i32_0, %c0_i32_1 : i32, i32, i32, i32
  }
  func.func @transform_1(%arg0: i32) -> (i32, i32, i32, i32) {
    %c0_i32 = arith.constant 0 : i32
    %c0_i32_0 = arith.constant 0 : i32
    %c0_i32_1 = arith.constant 0 : i32
    %c0_i32_2 = arith.constant 0 : i32
    %c0_i32_3 = arith.constant 0 : i32
    return %c0_i32, %c0_i32_0, %c0_i32_1, %c0_i32_2 : i32, i32, i32, i32
  }
  func.func @transform_2(%arg0: i32) -> (i32, i32) {
    %c0_i32 = arith.constant 0 : i32
    %c0_i32_0 = arith.constant 0 : i32
    %c0_i32_1 = arith.constant 0 : i32
    return %c0_i32, %c0_i32_0 : i32, i32
  }
  func.func @transform_3(%arg0: i32) -> (i32, i32, i32, i32) {
    %c0_i32 = arith.constant 0 : i32
    %c0_i32_0 = arith.constant 0 : i32
    %c0_i32_1 = arith.constant 0 : i32
    %c0_i32_2 = arith.constant 0 : i32
    %c0_i32_3 = arith.constant 0 : i32
    return %c0_i32, %c0_i32_0, %c0_i32_1, %c0_i32_2 : i32, i32, i32, i32
  }
  func.func @transform_4(%arg0: i32) -> (i32, i32) {
    %c0_i32 = arith.constant 0 : i32
    %c0_i32_0 = arith.constant 0 : i32
    %c0_i32_1 = arith.constant 0 : i32
    return %c0_i32, %c0_i32_0 : i32, i32
  }
  func.func @transform_5(%arg0: i32) -> (i32, i32, i32, i32) {
    %c0_i32 = arith.constant 0 : i32
    %c0_i32_0 = arith.constant 0 : i32
    %c0_i32_1 = arith.constant 0 : i32
    %c0_i32_2 = arith.constant 0 : i32
    %c0_i32_3 = arith.constant 0 : i32
    return %c0_i32, %c0_i32_0, %c0_i32_1, %c0_i32_2 : i32, i32, i32, i32
  }
  func.func @transform_6(%arg0: i32) -> (i32, i32) {
    %c0_i32 = arith.constant 0 : i32
    %c0_i32_0 = arith.constant 0 : i32
    %c0_i32_1 = arith.constant 0 : i32
    return %c0_i32, %c0_i32_0 : i32, i32
  }
  func.func @transform_7(%arg0: i32) -> (i32, i32, i32, i32) {
    %c0_i32 = arith.constant 0 : i32
    %c0_i32_0 = arith.constant 0 : i32
    %c0_i32_1 = arith.constant 0 : i32
    %c0_i32_2 = arith.constant 0 : i32
    return %arg0, %c0_i32, %c0_i32_0, %c0_i32_1 : i32, i32, i32, i32
  }
}

</mosaic_0001>

<bundles_post_ra>
// kernel: tpu_custom_call.1
= control target key start
LH: loop header
LB: loop body
LE: loop exit
PB: predicated region body
PF: predicated region fallthrough
CT: control target
= control target key end

     0   :  { %12 = vsyncpa [#allocation4], 0  ;;  %s19439_s0 = inlined_call_operand.vmem [shape: bf16[2,18,18,128], index: 0, kind: input, shape index: {}]   ;;  %s19440_s1 = inlined_call_operand.vmem [shape: bf16[3,3,128,128], index: 1, kind: input, shape index: {}]   ;;  %s19441_s2 = inlined_call_operand.vmem [shape: f32[1,128], index: 2, kind: input, shape index: {}]   ;;  %s19442_s3 = inlined_call_operand.hbm [shape: bf16[3,3,128,128], index: 3, kind: input, shape index: {}]   ;;  %s19443_s4 = inlined_call_operand.vmem [shape: f32[1,128], index: 4, kind: input, shape index: {}]   ;;  %s19444_s5 = inlined_call_operand.vmem [shape: bf16[1,1,128,128], index: 5, kind: input, shape index: {}]   ;;  %s19445_s6 = inlined_call_operand.vmem [shape: f32[1,128], index: 6, kind: input, shape index: {}]   ;;  %s19446_s7 = inlined_call_operand.hbm [shape: f32[2,16,16,128], index: 7, kind: output, shape index: {}]  }
   0x1   :  { %13 = vsyncpa [#allocation5], 0 }
   0x2   :  { %15 = vsyncpa [#allocation5 + $0x1], 0  ;;  %s15471_s24 = smov 0   ;;  %s15473_s25 = smov 0  }
   0x3   :  { %s15475_s26 = smov 0   ;;  %s15477_s27 = smov 0  }
   0x4 LB: > { %s15492_s28 = sadd.s32 4294967295, %s15422_s27   ;;  %s11968_s29 = sadd.s32 4294967294, %s15422_s27   ;;  %s15422_s27 = sphi %s15477_s27, %s19768_s27   ;;  %s15418_s26 = sphi %s15475_s26, %s19767_s26   ;;  %s15414_s25 = sphi %s15473_s25, %s19766_s25   ;;  %s15410_s24 = sphi %s15471_s24, %s19765_s24  }
   0x5   : > { %s15496_s30 = sadd.s32 1, %s15422_s27   ;;  %s180_s8 = sadd.s32 1, %s15418_s26 }
   0x6   : > { %s177_s9 = ssub.s32 %s15422_s27, %s15496_s30  ;;  %p190_p0 = scmp.ne.s32.totalorder %s15418_s26, %s15414_s25 }
   0x7   : > { %p178_p1 = scmp.eq.s32.totalorder %s177_s9, 0  ;;  %p191_p2 = scmp.eq.s32.totalorder %s15492_s28, 1 }
   0x8   : > { %p196_p3 = scmp.ne.s32.totalorder %s15414_s25, %s15410_s24  ;;  %p197_p4 = scmp.eq.s32.totalorder %s11968_s29, 1 }
   0x9   : > { %s15507_s10 = scalar_select %p178_p1, %s15418_s26, %s180_s8  }
   0xa   : > { %p15509_p5 = por %p191_p2, %p190_p0  ;;  %p15513_p6 = por %p197_p4, %p196_p3 }
   0xb   : > { %p11969_p7 = scmp.ge.s32.totalorder %s15422_s27, 1  ;;  %p204_p8 = scmp.lt.s32.totalorder %s15422_s27, 3 }
   0xc   : > { %s19518_s11 = scalar_select %p15509_p5, 1, 0 }
   0xd   : > { %s19519_s12 = scalar_select %p15513_p6, 1, 0 }
   0xe   : > { %p19447_p9 = scmp.eq.s32.totalorder %s15492_s28, 0  ;;  %p15520_p10 = pnand %p11969_p7, %p204_p8 }
   0xf   : > { %s15424_s14 = smov [#allocation3]   ;;  %s15328_s19 = scalar_lea.hbm %s19442_s3, 9216 }
  0x10   : > { %s19520_s13 = scalar_select %p15520_p10, 1, 0 }
  0x11   : > { %s222_s15 = sshll.u32 %s15424_s14, 4  ;;  %p15000_p11 = pneg %p15520_p10  ;;  %s223_s15 = int_to_ptr.vmem [resolvable:$true] %s222_s15 }
  0x12   : > { %p15329_p13 = scmp.ne.s32.totalorder %s19442_s3, %s15328_s19  ;;  %p15335_p3 = scmp.lt.u32.totalorder %s15328_s19, %s19442_s3 }
  0x13   : > { %p15528_p12 = pnand %p19447_p9, %p15000_p11 }
  0x15   : > { %p15330_p0 = pneg %p15528_p12 }
  0x17   : > { %p15331_p1 = pnand %p15330_p0, %p15329_p13 }
  0x19   : > { %p15332_p2 = pneg %p15331_p1 }
  0x1b   : > { %p15337_p4 = pnand %p15335_p3, %p15332_p2 }
  0x1d   : > { %15340 = shalt.err (!%p15337_p4)
}
  0x1e   : > { %s15341_s29 = scalar_lea.vmem %s223_s15, 9216  ;;  %p15349_p9 = scmp.lt.s32.totalorder %s223_s15, %s223_s15 }
  0x1f   : > { %p15342_p7 = scmp.ne.s32.totalorder %s223_s15, %s15341_s29  ;;  %p15350_p6 = scmp.lt.s32.totalorder %s15341_s29, %s15341_s29 }
  0x21   : > { %p15344_p8 = pnand %p15342_p7, %p15330_p0  ;;  %p15351_p5 = por %p15350_p6, %p15349_p9 }
  0x23   : > { %p15345_p11 = pneg %p15344_p8 }
  0x25   : > { %p15352_p10 = pnand %p15351_p5, %p15345_p11 }
  0x27   : > { %15355 = shalt.err (!%p15352_p10)
}
  0x28   : > { %s15425_s8 = smov 64   ;;  %s15426_s9 = smov 4  }
  0x29   : > { %15003 = dma.hbm_to_vmem [thread:$0]  (!%p15528_p12), %s19442_s3, 9216, %s223_s15, [#allocation4], %s15425_s8, %s15425_s8, %s15426_s9  }
  0x2a   : > { %p19522_p13 = scmp.ne.s32.totalorder %s19520_s13, 0 }
  0x2c   : > { %255 = sbr.rel (%p19522_p13) target bundleno = 1710 (0x6ae), region = 48 }
  0x33   : > { %p19523_p1 = scmp.eq.s32.totalorder %s15492_s28, 0 }
  0x35   : > { %15401 = dma.done.wait (%p19523_p1), [#allocation4], 9216   ;;  %p19524_p0 = pmov %p19523_p1 }
  0x36   : > { %p287_p5 = scmp.lt.s32.totalorder %s15492_s28, 1  ;;  %v15049_v0 = vld [vmem:[%s19440_s1] sm:$0xff]   ;;  %v15050_v1 = vld [vmem:[%s19440_s1 + $0x8] sm:$0xff]   ;;  %v15051_v2 = vld [vmem:[%s19440_s1 + $0x10] sm:$0xff]   ;;  %vm733_vm0 = vsmask.f32 3328 }
  0x37   : > { %15403 = vsyncadd (%p19524_p0), [#allocation4], 4294958080  ;;  %13425 = vmatprep.subr.bf16.mxu0 %v15049_v0  ;;  %v15052_v3 = vld [vmem:[%s19440_s1 + $0x18] sm:$0xff]   ;;  %v15053_v5 = vld [vmem:[%s19440_s1 + $0x20] sm:$0xff]   ;;  %vm734_vm1 = vsmask.f32 7440 }
  0x38   : > { %s288_s18 = scalar_select %p287_p5, %s15492_s28, 1  ;;  %13426 = vmatpush3.bf16.msra.mxu0 %v15049_v0  ;;  %v15054_v6 = vld [vmem:[%s19440_s1 + $0x28] sm:$0xff]   ;;  %v15055_v7 = vld [vmem:[%s19440_s1 + $0x30] sm:$0xff]   ;;  %v15056_v8 = vld [vmem:[%s19440_s1 + $0x38] sm:$0xff]   ;;  %vm1506_vm3 = vcmask 1042432   ;;  %vm1507_vm4 = vcmask 1046532  }
  0x39   : > { %13427 = vmatprep.subr.bf16.mxu0 %v15050_v1  ;;  %v15059_v9 = vld [vmem:[%s19440_s1 + $0x40] sm:$0xff]   ;;  %v15062_v12 = vld [vmem:[%s19440_s1 + $0x48] sm:$0xff]   ;;  %v15065_v15 = vld [vmem:[%s19440_s1 + $0x50] sm:$0xff]   ;;  %vm5580_vm6 = vsmask.f32 4368  ;;  %vm5256_vm9 = vcmask 1040384  }
  0x3a   : > { %s14993_s13 = smul.u32 216, %s288_s18  ;;  %v15068_v24 = vld [vmem:[%s19440_s1 + $0x58] sm:$0xff]   ;;  %v15071_v35 = vld [vmem:[%s19440_s1 + $0x60] sm:$0xff]   ;;  %v15074_v55 = vld [vmem:[%s19440_s1 + $0x68] sm:$0xff]   ;;  %vm5257_vm7 = vsmask.f32 256 }
  0x3b   : > { %vm15640_vm2 = vmor %vm733_vm0, %vm734_vm1  ;;  %s284_s14 = sand.u32 1, %s15414_s25   ;;  %s12968_s16 = sshll.u32 %s15492_s28, 12 }
  0x3c   : > { %s15568_s8 = scalar_lea.vmem %s19439_s0, %s14993_s13  ;;  %13428 = vmatpush3.bf16.msra.mxu0 %v15050_v1  ;;  %vm15982_vm5 = vmor %vm1506_vm3, %vm1507_vm4  ;;  %s11974_s19 = sshll.u32 %s284_s14, 8 }
  0x3d   : > { %13429 = vmatprep.subr.bf16.mxu0 %v15051_v2  ;;  %v15057_v4 = vld [vmem:[%s15568_s8] sm:$0xff]   ;;  %v15058_v10 = vld [vmem:[%s15568_s8 + $0xc] sm:$0xff]   ;;  %v15060_v11 = vld [vmem:[%s15568_s8 + $0x18] sm:$0xff]   ;;  %s19303_s20 = scalar_lea.vmem [#allocation6], %s11974_s19  ;;  %s19389_s22 = scalar_lea.hbm %s19446_s7, %s12968_s16 }
  0x3e   : > { %13441 = vmatprep.mubr.bf16.mxu0 %v15057_v4  ;;  %v685_v13 = vld [vmem:[%s15568_s8] sm:$0xf]  ;;  %v686_v14 = vld [vmem:[%s15568_s8 + $0x4] sm:$0xf]  ;;  %v688_v18 = vld [vmem:[%s15568_s8 + $0xc] sm:$0xf] }
  0x3f   : > { %v737_v16 = vshrl.u32 %v685_v13, 16  ;;  %v740_v17 = vshll.u32 %v685_v13, 16  ;;  %v689_v19 = vld [vmem:[%s15568_s8 + $0x10] sm:$0xf]  ;;  %v15061_v20 = vld [vmem:[%s15568_s8 + $0x24] sm:$0xff]   ;;  %v746_v21 = vshll.u32 %v686_v14, 16  ;;  %vm17567_vm8 = vmor %vm5257_vm7, %vm5580_vm6 }
  0x40   : > { %13430 = vmatpush3.bf16.msra.mxu0 %v15051_v2  ;;  %v750_v22 = vshrl.u32 %v686_v14, 16  ;;  %v15063_v23 = vld [vmem:[%s15568_s8 + $0x30] sm:$0xff]   ;;  %v761_v25 = vshrl.u32 %v688_v18, 16  ;;  %v764_v26 = vshll.u32 %v688_v18, 16  ;;  %v770_v27 = vshll.u32 %v689_v19, 16  ;;  %v15064_v46 = vld [vmem:[%s15568_s8 + $0x3c] sm:$0xff]   ;;  %vm17579_vm10 = vmand %vm5256_vm9, %vm5257_vm7 }
  0x41   : > { %13431 = vmatprep.subr.bf16.mxu0 %v15052_v3  ;;  %v774_v28 = vshrl.u32 %v689_v19, 16  ;;  %v691_v29 = vld [vmem:[%s15568_s8 + $0x18] sm:$0xf]  ;;  %v739_v30 = vrot.slane %v737_v16, 4  ;;  %v742_v31 = vrot.slane %v740_v17, 5  ;;  %v15607_v32 = vrot.slane %v746_v21, 5 }
  0x42   : > { %v752_v33 = vrot.slane %v750_v22, 4  ;;  %v15610_v34 = vld [vmem:[%s15568_s8 + $0x1c] sm:$0xf]  ;;  %v687_v36 = vld [vmem:[%s15568_s8 + $0x8] sm:$0x1]  ;;  %v785_v37 = vshrl.u32 %v691_v29, 16 }
  0x43   : > { %v788_v38 = vshll.u32 %v691_v29, 16  ;;  %v690_v39 = vld [vmem:[%s15568_s8 + $0x14] sm:$0x1]  ;;  %v763_v40 = vrot.slane %v761_v25, 4  ;;  %v766_v41 = vrot.slane %v764_v26, 5  ;;  %v15617_v42 = vrot.slane %v770_v27, 5 }
  0x44   : > { %13432 = vmatpush3.bf16.msra.mxu0 %v15052_v3  ;;  %v776_v43 = vrot.slane %v774_v28, 4  ;;  %v794_v44 = vshll.u32 %v15610_v34, 16  ;;  %v798_v45 = vshrl.u32 %v15610_v34, 16  ;;  %v743_v47 = vor.u32 %v742_v31, %v739_v30  ;;  %v694_v50 = vld [vmem:[%s15568_s8 + $0x24] sm:$0xf]  ;;  %v15066_v51 = vld [vmem:[%s15568_s8 + $0x48] sm:$0xff]  }
  0x45   : > { %13433 = vmatprep.subr.bf16.mxu0 %v15053_v5  ;;  %v753_v48 = vor.u32 %v752_v33, %v15607_v32  ;;  %v756_v49 = vshll.u32 %v687_v36, 16  ;;  %v780_v52 = vshll.u32 %v690_v39, 16  ;;  %v787_v53 = vrot.slane %v785_v37, 4  ;;  %v15630_v58 = vld [vmem:[%s15568_s8 + $0x28] sm:$0xf]  ;;  %v15067_v18 = vld [vmem:[%s15568_s8 + $0x54] sm:$0xff]  }
  0x46   : > { %v790_v54 = vrot.slane %v788_v38, 5  ;;  %v767_v56 = vor.u32 %v766_v41, %v763_v40  ;;  %v777_v57 = vor.u32 %v776_v43, %v15617_v42  ;;  %v15632_v59 = vrot.slane %v794_v44, 5  ;;  %v697_v63 = vld [vmem:[%s15568_s8 + $0x30] sm:$0xf]  ;;  %v15636_v3 = vld [vmem:[%s15568_s8 + $0x20] sm:$0x1] }
  0x47   : > { %v800_v60 = vrot.slane %v798_v45, 4  ;;  %v809_v61 = vshrl.u32 %v694_v50, 16  ;;  %v812_v62 = vshll.u32 %v694_v50, 16  ;;  %v744_v0 = vrot.slane %v743_v47, 4  ;;  %v15069_v21 = vld [vmem:[%s15568_s8 + $0x60] sm:$0xff]   ;;  %v15080_v27 = vld [vmem:[%s19440_s1 + $0x78] sm:$0xff]  }
  0x48   : > { %13434 = vmatpush3.bf16.msra.mxu0 %v15053_v5  ;;  %v754_v1 = vrot.slane %v753_v48, 4  ;;  %v758_v2 = vrot.slane %v756_v49, 5  ;;  %v782_v5 = vrot.slane %v780_v52, 5  ;;  %v836_v13 = vshll.u32 %v697_v63, 16  ;;  %v15664_v26 = vld [vmem:[%s15568_s8 + $0x34] sm:$0xf] }
  0x49   : > { %13435 = vmatprep.subr.bf16.mxu0 %v15054_v6  ;;  %v801_v14 = vor.u32 %v800_v60, %v15632_v59  ;;  %v811_v16 = vrot.slane %v809_v61, 4  ;;  %v814_v17 = vrot.slane %v812_v62, 5  ;;  %v749_v19 = vsel %vm15640_vm2, %v744_v0, %v15607_v32  ;;  %v15675_v36 = vld [vmem:[%s15568_s8 + $0x38] sm:$0x1]  ;;  %v700_v37 = vld [vmem:[%s15568_s8 + $0x3c] sm:$0xf] }
  0x4a   : > { %v759_v22 = vsel %vm15640_vm2, %v754_v1, %v758_v2  ;;  %v838_v31 = vrot.slane %v836_v13, 5  ;;  %v842_v40 = vshll.u32 %v15664_v26, 16  ;;  %v15683_v41 = vld [vmem:[%s15568_s8 + $0x40] sm:$0xf]  ;;  %v15694_v47 = vld [vmem:[%s15568_s8 + $0x4c] sm:$0xf] }
  0x4b   : > { %v802_v32 = vrot.slane %v801_v14, 4  ;;  %v15678_v38 = vcombine.low %v749_v19, %v759_v22  ;;  %v15699_v48 = vld [vmem:[%s19440_s1 + $0x80] sm:$0xff]   ;;  %v852_v50 = vshll.u32 %v15675_v36, 16  ;;  %v860_v52 = vshll.u32 %v700_v37, 16  ;;  %v706_v0 = vld [vmem:[%s15568_s8 + $0x54] sm:$0xf] }
  0x4c   : > { %13436 = vmatpush3.bf16.msra.mxu0 %v15054_v6  ;;  %v791_v6 = vor.u32 %v790_v54, %v787_v53  ;;  %v15070_v53 = vld [vmem:[%s15568_s8 + $0x6c] sm:$0xff]   ;;  %v15072_v54 = vld [vmem:[%s15568_s8 + $0x78] sm:$0xff]   ;;  %v15712_v61 = vrot.slane %v842_v40, 5  ;;  %v709_v13 = vld [vmem:[%s15568_s8 + $0x60] sm:$0xf]  ;;  %v905_v22 = vshrl.u32 %v706_v0, 16 }
  0x4d   : > { %13437 = vmatprep.subr.bf16.mxu0 %v15055_v7  ;;  %s11894_s21 = sshll.u32 %s19303_s20, 4  ;;  %s19398_s28 = scalar_lea.sflag [#allocation5], %s284_s14  ;;  %s19391_s21 = int_to_ptr.vmem [resolvable:$true] %s11894_s21 }
  0x4e   : > { %s15356_s23 = scalar_lea.vmem %s19391_s21, 4096  ;;  %p19763_p9 = scmp.ne.s32.totalorder %s19518_s11, 0 }
  0x4f   : > { %p15357_p6 = scmp.ne.s32.totalorder %s19391_s21, %s15356_s23  ;;  %s15428_s29 = smov [#allocation6]  }
  0x50   : > { %13438 = vmatpush3.bf16.msra.mxu0 %v15055_v7  ;;  %v818_v7 = vshll.u32 %v15630_v58, 16 }
  0x51   : > { %13439 = vmatprep.subr.bf16.mxu0 %v15056_v8  ;;  %p15358_p10 = pnand %p15357_p6, %p19763_p9 }
  0x53   : > { %p15359_p12 = pneg %p15358_p10 }
  0x54   : > { %13440 = vmatpush3.bf16.msra.mxu0 %v15056_v8  ;;  %v822_v8 = vshrl.u32 %v15630_v58, 16 }
  0x55   : > { %13473 = vmatprep.subr.bf16.mxu0 %v15059_v9 }
  0x56   : > { %v824_v25 = vrot.slane %v822_v8, 4 }
  0x57   : > { %13442 = vmatmul.mubr.bf16.vlgmr.msra.gmra.mrb[0].mxu0 %v15058_v10  ;;  %v768_v10 = vrot.slane %v767_v56, 4 }
  0x58   : > { %13474 = vmatpush3.bf16.msra.mxu0 %v15059_v9  ;;  %13445 = vmatprep.mubr.bf16.mxu0 %v15060_v11  ;;  %v15077_v9 = vld [vmem:[%s19440_s1 + $0x70] sm:$0xff]   ;;  %v778_v11 = vrot.slane %v777_v57, 4  ;;  %v866_v57 = vshll.u32 %v15683_v41, 16 }
  0x59   : > { %13475 = vmatprep.subr.bf16.mxu0 %v15062_v12  ;;  %v773_v28 = vsel %vm15640_vm2, %v768_v10, %v15617_v42  ;;  %v703_v42 = vld [vmem:[%s15568_s8 + $0x48] sm:$0xf]  ;;  %v15728_v10 = vld [vmem:[%s15568_s8 + $0x44] sm:$0x1] }
  0x5a   : > { %v783_v29 = vsel %vm15640_vm2, %v778_v11, %v782_v5  ;;  %v881_v62 = vshrl.u32 %v703_v42, 16  ;;  %v890_v5 = vshll.u32 %v15694_v47, 16 }
  0x5b   : > { %v15686_v43 = vcombine.low %v773_v28, %v783_v29 }
  0x5c   : > { %13476 = vmatpush3.bf16.msra.mxu0 %v15062_v12  ;;  %v833_v12 = vshrl.u32 %v697_v63, 16  ;;  %v884_v63 = vshll.u32 %v703_v42, 16  ;;  %v883_v19 = vrot.slane %v881_v62, 4 }
  0x5d   : > { %13477 = vmatprep.subr.bf16.mxu0 %v15065_v15 }
  0x5e   : > { %v835_v30 = vrot.slane %v833_v12, 4  ;;  %v862_v12 = vrot.slane %v860_v52, 5  ;;  %v712_v52 = vld [vmem:[%s15568_s8 + $0x6c] sm:$0xf] }
  0x5f   : > { %13446 = vmatmul.mubr.bf16.gmra.mrb[4].mxu0 %v15061_v20  ;;  %v15656_v20 = vld [vmem:[%s15568_s8 + $0x2c] sm:$0x1] }
  0x60   : > { %13449 = vmatprep.mubr.bf16.mxu0 %v15063_v23  ;;  %13478 = vmatpush3.bf16.msra.mxu0 %v15065_v15  ;;  %v804_v15 = vshll.u32 %v15636_v3, 16  ;;  %v792_v23 = vrot.slane %v791_v6, 4  ;;  %v828_v39 = vshll.u32 %v15656_v20, 16  ;;  %v839_v49 = vor.u32 %v838_v31, %v835_v30 }
  0x61   : > { %13479 = vmatprep.subr.bf16.mxu0 %v15068_v24  ;;  %v894_v6 = vshrl.u32 %v15694_v47, 16  ;;  %v929_v31 = vshrl.u32 %v709_v13, 16 }
  0x62   : > { %v806_v33 = vrot.slane %v804_v15, 5  ;;  %v797_v44 = vsel %vm15640_vm2, %v792_v23, %v15632_v59  ;;  %v870_v59 = vshrl.u32 %v15683_v41, 16  ;;  %v15710_v60 = vrot.slane %v828_v39, 5 }
  0x63   : > { %v15723_v8 = vrot.slane %v839_v49, 4  ;;  %v908_v23 = vshll.u32 %v706_v0, 16  ;;  %v896_v28 = vrot.slane %v894_v6, 4  ;;  %v931_v62 = vrot.slane %v929_v31, 4 }
  0x64   : > { %13480 = vmatpush3.bf16.msra.mxu0 %v15068_v24  ;;  %v15661_v24 = vrot.slane %v818_v7, 5  ;;  %v15720_v7 = vld [vmem:[%s15568_s8 + $0x58] sm:$0xf] }
  0x65   : > { %13481 = vmatprep.subr.bf16.mxu0 %v15071_v35  ;;  %v914_v29 = vshll.u32 %v15720_v7, 16  ;;  %v918_v30 = vshrl.u32 %v15720_v7, 16  ;;  %v845_v31 = vsel %vm15640_vm2, %v15723_v8, %v15712_v61 }
  0x66   : > { %v825_v45 = vor.u32 %v824_v25, %v15661_v24  ;;  %v15743_v25 = vld [vmem:[%s15568_s8 + $0x50] sm:$0x1] }
  0x67   : > { %13450 = vmatmul.mubr.bf16.gmra.mrb[8].mxu0 %v15064_v46  ;;  %v846_v46 = vshrl.u32 %v15664_v26, 16  ;;  %v900_v49 = vshll.u32 %v15743_v25, 16 }
  0x68   : > { %13453 = vmatprep.mubr.bf16.mxu0 %v15066_v51  ;;  %13482 = vmatpush3.bf16.msra.mxu0 %v15071_v35  ;;  %v815_v35 = vor.u32 %v814_v17, %v811_v16  ;;  %v857_v51 = vshrl.u32 %v700_v37, 16  ;;  %v15715_v1 = vrot.slane %v825_v45, 4  ;;  %v15737_v16 = vrot.slane %v866_v57, 5  ;;  %v15073_v37 = vld [vmem:[%s15568_s8 + $0x84] sm:$0xff]   ;;  %v15075_v45 = vld [vmem:[%s15568_s8 + $0x90] sm:$0xff]  }
  0x69   : > { %13483 = vmatprep.subr.bf16.mxu0 %v15074_v55  ;;  %v848_v2 = vrot.slane %v846_v46, 4  ;;  %v872_v17 = vrot.slane %v870_v59, 4  ;;  %v920_v57 = vrot.slane %v918_v30, 4  ;;  %v15766_v59 = vld [vmem:[%s15568_s8 + $0x5c] sm:$0x1] }
  0x6a   : > { %v15706_v56 = vrot.slane %v815_v35, 4  ;;  %v859_v11 = vrot.slane %v857_v51, 4  ;;  %v910_v51 = vrot.slane %v908_v23, 5  ;;  %v15076_v30 = vld [vmem:[%s15568_s8 + $0x9c] sm:$0xff]  }
  0x6b   : > { %v849_v39 = vor.u32 %v848_v2, %v15712_v61  ;;  %v873_v42 = vor.u32 %v872_v17, %v15737_v16 }
  0x6c   : > { %13484 = vmatpush3.bf16.msra.mxu0 %v15074_v55  ;;  %v807_v55 = vsel %vm15640_vm2, %v802_v32, %v806_v33  ;;  %v821_v15 = vsel %vm15640_vm2, %v15706_v56, %v15661_v24  ;;  %v932_v32 = vshll.u32 %v709_v13, 16  ;;  %v863_v40 = vor.u32 %v862_v12, %v859_v11  ;;  %v15771_v11 = vld [vmem:[%s15568_s8 + $0x68] sm:$0x1]  ;;  %v721_v56 = vld [vmem:[%s15568_s8 + $0x90] sm:$0xf] }
  0x6d   : > { %13485 = vmatprep.subr.bf16.mxu0 %v15077_v9  ;;  %v15731_v14 = vcombine.low %v797_v44, %v807_v55  ;;  %v876_v44 = vshll.u32 %v15728_v10, 16  ;;  %v15763_v55 = vrot.slane %v914_v29, 5  ;;  %19528 = vst [vmem:[#allocation10_spill] sm:$0xff] %v15771_v11  ;;  %v953_v12 = vshrl.u32 %v712_v52, 16  ;;  %v15776_v29 = vld [vmem:[%s15568_s8 + $0x70] sm:$0xf] }
  0x6e   : > { %v864_v6 = vrot.slane %v863_v40, 4  ;;  %19529 = vst [vmem:[#allocation11_spill] sm:$0xff] %v15776_v29 }
  0x6f   : > { %13454 = vmatmul.mubr.bf16.gmra.mrb[12].mxu0 %v15067_v18  ;;  %v15740_v18 = vld [vmem:[%s15568_s8 + $0x64] sm:$0xf]  ;;  %v878_v13 = vrot.slane %v876_v44, 5  ;;  %v921_v23 = vor.u32 %v920_v57, %v15763_v55  ;;  %v955_v40 = vrot.slane %v953_v12, 4  ;;  %v715_v44 = vld [vmem:[%s15568_s8 + $0x78] sm:$0xf] }
  0x70   : > { %13457 = vmatprep.mubr.bf16.mxu0 %v15069_v21  ;;  %13486 = vmatpush3.bf16.msra.mxu0 %v15077_v9  ;;  %v15725_v9 = vrot.slane %v852_v50, 5  ;;  %19527 = vst [vmem:[#allocation9_spill] sm:$0xff] %v15740_v18  ;;  %v886_v21 = vrot.slane %v884_v63, 5  ;;  %v938_v33 = vshll.u32 %v15740_v18, 16  ;;  %v942_v35 = vshrl.u32 %v15740_v18, 16 }
  0x71   : > { %13487 = vmatprep.subr.bf16.mxu0 %v15080_v27  ;;  %v907_v50 = vrot.slane %v905_v22, 4  ;;  %v934_v63 = vrot.slane %v932_v32, 5 }
  0x72   : > { %v887_v46 = vor.u32 %v886_v21, %v883_v19  ;;  %v15768_v0 = vrot.slane %v938_v33, 5  ;;  %v944_v2 = vrot.slane %v942_v35, 4  ;;  %v902_v19 = vrot.slane %v900_v49, 5  ;;  %v15078_v49 = vld [vmem:[%s15568_s8 + $0xa8] sm:$0xff]  }
  0x73   : > { %v911_v22 = vor.u32 %v910_v51, %v907_v50  ;;  %v935_v32 = vor.u32 %v934_v63, %v931_v62  ;;  %v948_v35 = vshll.u32 %v15771_v11, 16  ;;  %v15807_v51 = vrot.slane %v921_v23, 4 }
  0x74   : > { %13488 = vmatpush3.bf16.msra.mxu0 %v15080_v27  ;;  %v15745_v27 = vrot.slane %v890_v5, 5  ;;  %v850_v5 = vrot.slane %v849_v39, 4  ;;  %v888_v17 = vrot.slane %v887_v46, 4  ;;  %v945_v33 = vor.u32 %v944_v2, %v15768_v0 }
  0x75   : > { %13521 = vmatprep.subr.bf16.mxu0 %v15699_v48  ;;  %v869_v39 = vsel %vm15640_vm2, %v864_v6, %v15737_v16  ;;  %v966_v46 = vshrl.u32 %v15776_v29, 16  ;;  %v15805_v50 = vrot.slane %v911_v22, 4  ;;  %v15818_v62 = vrot.slane %v948_v35, 5  ;;  %v724_v35 = vld [vmem:[%s15568_s8 + $0x9c] sm:$0xf] }
  0x76   : > { %v893_v8 = vsel %vm15640_vm2, %v888_v17, %v15745_v27  ;;  %v15816_v57 = vrot.slane %v945_v33, 4  ;;  %v977_v63 = vshrl.u32 %v715_v44, 16 }
  0x77   : > { %13458 = vmatmul.mubr.bf16.gmra.mrb[16].mxu0 %v15070_v53  ;;  %v831_v53 = vsel %vm15640_vm2, %v15715_v1, %v15710_v60  ;;  %v956_v60 = vshll.u32 %v712_v52, 16  ;;  %v874_v1 = vrot.slane %v873_v42, 4  ;;  %v968_v17 = vrot.slane %v966_v46, 4 }
  0x78   : > { %13461 = vmatprep.mubr.bf16.mxu0 %v15072_v54  ;;  %v897_v54 = vor.u32 %v896_v28, %v15745_v27  ;;  %v924_v28 = vshll.u32 %v15766_v59, 16  ;;  %v15814_v27 = vrot.slane %v935_v32, 4  ;;  %v15863_v32 = vld [vmem:[%s15568_s8 + $0x80] sm:$0x1]  ;;  %v979_v33 = vrot.slane %v977_v63, 4 }
  0x79   : > { %v958_v42 = vrot.slane %v956_v60, 5  ;;  %v879_v61 = vsel %vm15640_vm2, %v874_v1, %v878_v13  ;;  %v718_v60 = vld [vmem:[%s15568_s8 + $0x84] sm:$0xf]  ;;  %v15828_v1 = vcombine.low %v821_v15, %v831_v53  ;;  %v15848_v15 = vld [vmem:[%s15568_s8 + $0x94] sm:$0xf]  ;;  %19536 = vst [vmem:[#allocation18_spill] sm:$0xff] %v15863_v32 }
  0x7a   : > { %v898_v21 = vrot.slane %v897_v54, 4  ;;  %v15809_v52 = vrot.slane %v924_v28, 5  ;;  %v15812_v54 = vld [vmem:[%s15568_s8 + $0x74] sm:$0x1]  ;;  %v15838_v23 = vcombine.low %v869_v39, %v879_v61  ;;  %19535 = vst [vmem:[#allocation17_spill] sm:$0xff] %v15848_v15  ;;  %v1001_v46 = vshrl.u32 %v718_v60, 16 }
  0x7b   : > { %19531 = vst [vmem:[#allocation13_spill] sm:$0xff] %v15812_v54  ;;  %v959_v2 = vor.u32 %v958_v42, %v955_v40  ;;  %v15079_v61 = vld [vmem:[%s15568_s8 + $0xb4] sm:$0xff]   ;;  %v996_v24 = vshll.u32 %v15863_v32, 16  ;;  %v727_v53 = vld [vmem:[%s15568_s8 + $0xa8] sm:$0xf] }
  0x7c   : > { %v903_v16 = vsel %vm15640_vm2, %v898_v21, %v902_v19  ;;  %v972_v19 = vshll.u32 %v15812_v54, 16  ;;  %v15834_v21 = vld [vmem:[%s15568_s8 + $0x88] sm:$0xf]  ;;  %19533 = vst [vmem:[#allocation15_spill] sm:$0xff] %v15838_v23  ;;  %v15900_v32 = vld [vmem:[%s15568_s8 + $0xa4] sm:$0x1] }
  0x7d   : > { %19532 = vst [vmem:[#allocation14_spill] sm:$0xff] %v15834_v21  ;;  %v15840_v28 = vcombine.low %v893_v8, %v903_v16  ;;  %v1010_v16 = vshll.u32 %v15834_v21, 16  ;;  %v1014_v63 = vshrl.u32 %v15834_v21, 16  ;;  %v1003_v21 = vrot.slane %v1001_v46, 4  ;;  %v15917_v23 = vld [vmem:[%s15568_s8 + $0xb0] sm:$0x1] }
  0x7f   : > { %13462 = vmatmul.mubr.bf16.gmra.mrb[20].mxu0 %v15073_v37  ;;  %v855_v37 = vsel %vm15640_vm2, %v850_v5, %v15725_v9  ;;  %v15800_v9 = vld [vmem:[%s15568_s8 + $0x7c] sm:$0xf]  ;;  %v980_v5 = vshll.u32 %v715_v44, 16  ;;  %19534 = vst [vmem:[#allocation16_spill] sm:$0xff] %v15840_v28  ;;  %v15871_v44 = vld [vmem:[%s15568_s8 + $0xa0] sm:$0xf] }
  0x80   : > { %13465 = vmatprep.mubr.bf16.mxu0 %v15075_v45  ;;  %v962_v45 = vshll.u32 %v15776_v29, 16  ;;  %19530 = vst [vmem:[#allocation12_spill] sm:$0xff] %v15800_v9  ;;  %v986_v6 = vshll.u32 %v15800_v9, 16  ;;  %v990_v12 = vshrl.u32 %v15800_v9, 16  ;;  %v15836_v22 = vcombine.low %v845_v31, %v855_v37  ;;  %19537 = vst [vmem:[#allocation19_spill] sm:$0xff] %v15871_v44 }
  0x81   : > { %v15866_v37 = vrot.slane %v959_v2, 4  ;;  %v982_v39 = vrot.slane %v980_v5, 5  ;;  %v1025_v2 = vshrl.u32 %v721_v56, 16  ;;  %v1028_v5 = vshll.u32 %v721_v56, 16  ;;  %v15889_v56 = vld [vmem:[%s15568_s8 + $0x8c] sm:$0x1] }
  0x82   : > { %v15830_v13 = vrot.slane %v962_v45, 5  ;;  %v15868_v40 = vrot.slane %v986_v6, 5  ;;  %v992_v42 = vrot.slane %v990_v12, 4  ;;  %v15875_v45 = vrot.slane %v972_v19, 5  ;;  %v15892_v9 = vld [vmem:[%s15568_s8 + $0x98] sm:$0x1] }
  0x83   : > { %v1034_v6 = vshll.u32 %v15848_v15, 16  ;;  %v1038_v12 = vshrl.u32 %v15848_v15, 16  ;;  %v1052_v31 = vshll.u32 %v724_v35, 16  ;;  %v983_v19 = vor.u32 %v982_v39, %v979_v33  ;;  %v15905_v28 = vld [vmem:[%s15568_s8 + $0xac] sm:$0xf] }
  0x84   : > { %v969_v8 = vor.u32 %v968_v17, %v15830_v13  ;;  %v1062_v54 = vshrl.u32 %v15871_v44, 16  ;;  %v15897_v33 = vrot.slane %v1010_v16, 5  ;;  %v1016_v39 = vrot.slane %v1014_v63, 4 }
  0x85   : > { %v1030_v17 = vrot.slane %v1028_v5, 5  ;;  %v1040_v29 = vrot.slane %v1038_v12, 4  ;;  %v1073_v16 = vshrl.u32 %v727_v53, 16  ;;  %v1076_v63 = vshll.u32 %v727_v53, 16 }
  0x86   : > { %19538 = vst [vmem:[#allocation20_spill] sm:$0xff] %v15897_v33  ;;  %v1044_v18 = vshll.u32 %v15892_v9, 16 }
  0x87   : > { %13466 = vmatmul.mubr.bf16.gmra.mrb[24].mxu0 %v15076_v30  ;;  %v1049_v30 = vshrl.u32 %v724_v35, 16  ;;  %v1058_v35 = vshll.u32 %v15871_v44, 16  ;;  %v15907_v44 = vrot.slane %v969_v8, 4 }
  0x88   : > { %13469 = vmatprep.mubr.bf16.mxu0 %v15078_v49  ;;  %v1004_v49 = vshll.u32 %v718_v60, 16  ;;  %v993_v60 = vor.u32 %v992_v42, %v15868_v40  ;;  %v1027_v42 = vrot.slane %v1025_v2, 4  ;;  %v984_v2 = vrot.slane %v983_v19, 4 }
  0x89   : > { %v1051_v46 = vrot.slane %v1049_v30, 4  ;;  %v15911_v11 = vrot.slane %v1058_v35, 5  ;;  %v1017_v30 = vor.u32 %v1016_v39, %v15897_v33  ;;  %v1086_v35 = vshrl.u32 %v15905_v28, 16  ;;  %v730_v39 = vld [vmem:[%s15568_s8 + $0xb4] sm:$0xf] }
  0x8a   : > { %v1006_v15 = vrot.slane %v1004_v49, 5  ;;  %v1054_v49 = vrot.slane %v1052_v31, 5  ;;  %v994_v5 = vrot.slane %v993_v60, 4  ;;  %v1020_v31 = vshll.u32 %v15889_v56, 16 }
  0x8b   : > { %19539 = vst [vmem:[#allocation21_spill] sm:$0xff] %v15911_v11  ;;  %v1031_v53 = vor.u32 %v1030_v17, %v1027_v42  ;;  %v1082_v60 = vshll.u32 %v15905_v28, 16  ;;  %v975_v33 = vsel %vm15640_vm2, %v15907_v44, %v15875_v45  ;;  %v1092_v42 = vshll.u32 %v15917_v23, 16 }
  0x8c   : > { %v1007_v12 = vor.u32 %v1006_v15, %v1003_v21  ;;  %v1055_v19 = vor.u32 %v1054_v49, %v1051_v46  ;;  %v1075_v21 = vrot.slane %v1073_v16, 4  ;;  %v1078_v15 = vrot.slane %v1076_v63, 5  ;;  %v15938_v46 = vld [vmem:[%s15568_s8 + $0xb8] sm:$0xf] }
  0x8d   : > { %v1444_v49 = vld [vmem:[%s15568_s8 + $0x18] sm:$0xe]  ;;  %v15951_v45 = vrot.slane %v1017_v30, 4  ;;  %v15953_v16 = vrot.slane %v1020_v31, 5 }
  0x8e   : > { %v15949_v44 = vrot.slane %v1007_v12, 4  ;;  %v1445_v12 = vld [vmem:[%s15568_s8 + $0x24] sm:$0xe]  ;;  %v15084_v30 = vld [vmem:[%s19440_s1 + $0x98] sm:$0xff]  }
  0x8f   : > { %13470 = vmatmul.mubr.bf16.gmra.mrb[28].mxu0 %v15079_v61  ;;  %v15902_v61 = vrot.slane %v1034_v6, 5  ;;  %v1064_v6 = vrot.slane %v1062_v54, 4  ;;  %v1068_v54 = vshll.u32 %v15900_v32, 16 }
  0x90   : > { %13489 = vmatprep.mubr.bf16.mxu0 %v15678_v38  ;;  %v15909_v38 = vrot.slane %v996_v24, 5  ;;  %v15082_v24 = vld [vmem:[%s19440_s1 + $0x88] sm:$0xff]  }
  0x91   : > { %v1041_v8 = vor.u32 %v1040_v29, %v15902_v61  ;;  %v989_v29 = vsel %vm15640_vm2, %v984_v2, %v15868_v40  ;;  %v1065_v17 = vor.u32 %v1064_v6, %v15911_v11  ;;  %v15961_v2 = vrot.slane %v1055_v19, 4  ;;  %v1446_v19 = vld [vmem:[%s15568_s8 + $0x30] sm:$0xe] }
  0x92   : > { %v999_v40 = vsel %vm15640_vm2, %v994_v5, %v15909_v38  ;;  %v15963_v6 = vrot.slane %v1068_v54, 5  ;;  %v1079_v11 = vor.u32 %v1078_v15, %v1075_v21  ;;  %v15965_v38 = vrot.slane %v1082_v60, 5  ;;  %v1455_v21 = vld [vmem:[%s15568_s8 + $0x9c] sm:$0xe] }
  0x93   : > { %v15957_v63 = vrot.slane %v1041_v8, 4  ;;  %v15967_v5 = vrot.slane %v1086_v35, 4  ;;  %v15973_v31 = vrot.slane %v1065_v17, 4  ;;  %v1100_v8 = vshll.u32 %v730_v39, 16 }
  0x94   : > { %v12043_v60 = vrot.slane %v1444_v49, 9  ;;  %v1525_v35 = vrot.slane %v15610_v34, 5  ;;  %v19545_v34 = vsel %vm15640_vm2, %v15814_v27, %v15768_v0  ;;  %v1598_v54 = vrot.slane %v15892_v9, 5 }
  0x95   : > { %v1612_v9 = vrot.slane %v15917_v23, 5 }
  0x96   : > { %v16027_v0 = vsel %vm15982_vm5, %v12043_v60, %v1525_v35  ;;  %v1527_v27 = vrot.slane %v1525_v35, 4  ;;  %v12045_v60 = vrot.slane %v1446_v19, 9  ;;  %v1542_v35 = vrot.slane %v15675_v36, 5 }
  0x97   : > { %13490 = vmatmul.mubr.bf16.vlgmr.msra.gmra.mrb[0].mxu0 %v15686_v43  ;;  %v15083_v43 = vld [vmem:[%s19440_s1 + $0x90] sm:$0xff]   ;;  %v1546_v19 = vrot.slane %v15683_v41, 5 }
  0x98   : > { %13522 = vmatpush3.bf16.msra.mxu0 %v15699_v48  ;;  %13493 = vmatprep.mubr.bf16.mxu0 %v15731_v14  ;;  %v15955_v48 = vrot.slane %v1031_v53, 4  ;;  %v15959_v14 = vrot.slane %v1044_v18, 5  ;;  %v15975_v53 = vrot.slane %v1092_v42, 5  ;;  %v1097_v18 = vshrl.u32 %v730_v39, 16 }
  0x99   : > { %13523 = vmatprep.subr.bf16.mxu0 %v15082_v24  ;;  %v19543_v39 = vsel %vm15640_vm2, %v15805_v50, %v15763_v55  ;;  %v19544_v42 = vsel %vm15640_vm2, %v15816_v57, %v15818_v62  ;;  %v16018_v50 = vcombine.low %v989_v29, %v999_v40  ;;  %v1448_v62 = vld [vmem:[%s15568_s8 + $0x48] sm:$0xe]  ;;  %v1535_v29 = vrot.slane %v15656_v20, 5 }
  0x9a   : > { %v16009_v49 = vcombine.low %v19545_v34, %v19544_v42  ;;  %v16038_v40 = vrot.slane %v1097_v18, 4  ;;  %v16043_v42 = vrot.slane %v1100_v8, 5  ;;  %v15086_v18 = vld [vmem:[%s19440_s1 + $0xa8] sm:$0xff]   ;;  %v1549_v34 = vrot.slane %v15728_v10, 5 }
  0x9c   : > { %13524 = vmatpush3.bf16.msra.mxu0 %v15082_v24  ;;  %v19542_v24 = vsel %vm15640_vm2, %v15807_v51, %v15809_v52  ;;  %v19546_v51 = vsel %vm15640_vm2, %v15866_v37, %v15830_v13  ;;  %v1447_v52 = vld [vmem:[%s15568_s8 + $0x3c] sm:$0xe]  ;;  %v15085_v13 = vld [vmem:[%s19440_s1 + $0xa0] sm:$0xff]   ;;  %v1528_v37 = vrot.slane %v15636_v3, 5 }
  0x9d   : > { %13525 = vmatprep.subr.bf16.mxu0 %v15083_v43  ;;  %v15997_v17 = vcombine.low %v19543_v39, %v19542_v24  ;;  %v16016_v55 = vcombine.low %v19546_v51, %v975_v33  ;;  %v16021_v24 = vrot.slane %v1079_v11, 4  ;;  %v12044_v11 = vrot.slane %v1445_v12, 9  ;;  %v1449_v39 = vld [vmem:[%s15568_s8 + $0x54] sm:$0xe]  ;;  %v1450_v12 = vld [vmem:[%s15568_s8 + $0x60] sm:$0xe] }
  0x9e   : > { %v1532_v33 = vrot.slane %v15630_v58, 5  ;;  %v16047_v58 = vsel %vm15982_vm5, %v1527_v27, %v1528_v37  ;;  %v12047_v51 = vrot.slane %v1448_v62, 9  ;;  %v1553_v37 = vrot.slane %v15694_v47, 5  ;;  %v1453_v27 = vld [vmem:[%s15568_s8 + $0x84] sm:$0xe] }
  0x9f   : > { %13494 = vmatmul.mubr.bf16.gmra.mrb[4].mxu0 %v15828_v1  ;;  %v1539_v1 = vrot.slane %v15664_v26, 5  ;;  %v12048_v62 = vrot.slane %v1449_v39, 9 }
  0xa0   : > { %13497 = vmatprep.mubr.bf16.mxu0 %v15836_v22  ;;  %13526 = vmatpush3.bf16.msra.mxu0 %v15083_v43  ;;  %v16051_v3 = vsel %vm15982_vm5, %v12044_v11, %v1532_v33  ;;  %v1534_v20 = vrot.slane %v1532_v33, 4  ;;  %v12046_v43 = vrot.slane %v1447_v52, 9  ;;  %v1556_v11 = vrot.slane %v15743_v25, 5  ;;  %v1451_v33 = vld [vmem:[%s15568_s8 + $0x6c] sm:$0xe] }
  0xa1   : > { %13527 = vmatprep.subr.bf16.mxu0 %v15084_v30  ;;  %v16057_v26 = vsel %vm15982_vm5, %v12045_v60, %v1539_v1  ;;  %v1541_v36 = vrot.slane %v1539_v1, 4  ;;  %v16087_v60 = vsel %vm15982_vm5, %v12047_v51, %v1553_v37  ;;  %v1555_v47 = vrot.slane %v1553_v37, 4  ;;  %v19550_v51 = vld [vmem:[#allocation16_spill] sm:$0xff]  ;;  %v19554_v22 = vld [vmem:[#allocation18_spill] sm:$0xff] }
  0xa2   : > { %v16065_v8 = vsel %vm15982_vm5, %v1534_v20, %v1535_v29  ;;  %v16082_v10 = vsel %vm15982_vm5, %v12046_v43, %v1546_v19  ;;  %v1452_v29 = vld [vmem:[%s15568_s8 + $0x78] sm:$0xe]  ;;  %v1560_v25 = vrot.slane %v15720_v7, 5  ;;  %v1563_v1 = vrot.slane %v15766_v59, 5  ;;  %v19548_v43 = vld [vmem:[#allocation9_spill] sm:$0xff]  ;;  %v15087_v7 = vld [vmem:[%s19440_s1 + $0xb0] sm:$0xff]  }
  0xa3   : > { %v16073_v52 = vsel %vm15982_vm5, %v1541_v36, %v1542_v35  ;;  %v19547_v35 = vld [vmem:[#allocation15_spill] sm:$0xff]  ;;  %v12049_v36 = vrot.slane %v1450_v12, 9  ;;  %v1567_v39 = vrot.slane %v19548_v43, 5  ;;  %v12050_v43 = vrot.slane %v1451_v33, 9 }
  0xa4   : > { %13528 = vmatpush3.bf16.msra.mxu0 %v15084_v30  ;;  %v1548_v30 = vrot.slane %v1546_v19, 4  ;;  %v19549_v19 = vld [vmem:[#allocation10_spill] sm:$0xff]  ;;  %v16111_v12 = vsel %vm15982_vm5, %v12048_v62, %v1560_v25  ;;  %v1562_v37 = vrot.slane %v1560_v25, 4  ;;  %v19551_v62 = vld [vmem:[#allocation11_spill] sm:$0xff]  ;;  %v12051_v59 = vrot.slane %v1452_v29, 9 }
  0xa5   : > { %13529 = vmatprep.subr.bf16.mxu0 %v15085_v13  ;;  %v1570_v41 = vrot.slane %v19549_v19, 5  ;;  %v1454_v19 = vld [vmem:[%s15568_s8 + $0x90] sm:$0xe]  ;;  %v1584_v57 = vrot.slane %v19554_v22, 5 }
  0xa6   : > { %v16094_v20 = vsel %vm15982_vm5, %v1548_v30, %v1549_v34  ;;  %v16107_v34 = vsel %vm15982_vm5, %v1555_v47, %v1556_v11  ;;  %v16117_v30 = vsel %vm15982_vm5, %v12049_v36, %v1567_v39  ;;  %v16122_v11 = vsel %vm15982_vm5, %v1562_v37, %v1563_v1 }
  0xa7   : > { %13498 = vmatmul.mubr.bf16.gmra.mrb[8].mxu0 %v19547_v35  ;;  %v1569_v35 = vrot.slane %v1567_v39, 4  ;;  %v1574_v47 = vrot.slane %v19551_v62, 5  ;;  %v19553_v39 = vld [vmem:[#allocation12_spill] sm:$0xff]  ;;  %v12052_v62 = vrot.slane %v1453_v27, 9  ;;  %v1591_v1 = vrot.slane %v15889_v56, 5 }
  0xa8   : > { %13501 = vmatprep.mubr.bf16.mxu0 %v19550_v51  ;;  %13530 = vmatpush3.bf16.msra.mxu0 %v15085_v13  ;;  %v19552_v51 = vld [vmem:[#allocation13_spill] sm:$0xff]  ;;  %v1581_v33 = vrot.slane %v19553_v39, 5  ;;  %v12053_v27 = vrot.slane %v1454_v19, 9 }
  0xa9   : > { %13531 = vmatprep.subr.bf16.mxu0 %v15086_v18  ;;  %v1577_v25 = vrot.slane %v19552_v51, 5  ;;  %v16130_v36 = vsel %vm15982_vm5, %v1569_v35, %v1570_v41  ;;  %v16139_v37 = vsel %vm15982_vm5, %v12050_v43, %v1574_v47  ;;  %v1576_v29 = vrot.slane %v1574_v47, 4  ;;  %v1456_v51 = vld [vmem:[%s15568_s8 + $0xa8] sm:$0xe]  ;;  %v15088_v41 = vld [vmem:[%s19440_s1 + $0xb8] sm:$0xff]   ;;  %v19556_v47 = vld [vmem:[#allocation17_spill] sm:$0xff] }
  0xaa   : > { %v16147_v22 = vsel %vm15982_vm5, %v12051_v59, %v1581_v33  ;;  %v19555_v35 = vld [vmem:[#allocation14_spill] sm:$0xff]  ;;  %v1595_v13 = vrot.slane %v19556_v47, 5  ;;  %v1609_v47 = vrot.slane %v15905_v28, 5 }
  0xab   : > { %v1588_v39 = vrot.slane %v19555_v35, 5  ;;  %v16153_v43 = vsel %vm15982_vm5, %v1576_v29, %v1577_v25  ;;  %v12054_v29 = vrot.slane %v1455_v21, 9  ;;  %v1457_v35 = vld [vmem:[%s15568_s8 + $0xb4] sm:$0xe]  ;;  %v19558_v21 = vld [vmem:[#allocation20_spill] sm:$0xff] }
  0xac   : > { %13532 = vmatpush3.bf16.msra.mxu0 %v15086_v18  ;;  %v1583_v18 = vrot.slane %v1581_v33, 4  ;;  %v12082_v59 = vcombine.low %v16139_v37, %v16153_v43  ;;  %v1597_v19 = vrot.slane %v1595_v13, 4  ;;  %v1013_v23 = vsel %vm15640_vm2, %v15949_v44, %v19558_v21  ;;  %v12173_v43 = vld [vmem:[%s15568_s8 + $0x1c] sm:$0xf] }
  0xad   : > { %13533 = vmatprep.subr.bf16.mxu0 %v15087_v7  ;;  %v16166_v56 = vsel %vm15982_vm5, %v12052_v62, %v1588_v39  ;;  %v1590_v25 = vrot.slane %v1588_v39, 4  ;;  %v16180_v62 = vld [vmem:[%s19440_s1 + $0xc0] sm:$0xff]   ;;  %v1605_v39 = vrot.slane %v15900_v32, 5  ;;  %v19559_v44 = vshll.u32 %v15938_v46, 16 }
  0xae   : > { %v16162_v33 = vsel %vm15982_vm5, %v1583_v18, %v1584_v57  ;;  %v732_v57 = vld [vmem:[%s15568_s8 + $0xbc] sm:$0x1] }
  0xaf   : > { %13502 = vmatmul.mubr.bf16.gmra.mrb[12].mxu0 %v15997_v17  ;;  %v16173_v17 = vsel %vm15982_vm5, %v12053_v27, %v1595_v13  ;;  %v12055_v27 = vrot.slane %v1456_v51, 9  ;;  %v16192_v13 = vsel %vm15982_vm5, %v1597_v19, %v1598_v54  ;;  %v12056_v51 = vrot.slane %v1457_v35, 9 }
  0xb0   : > { %13505 = vmatprep.mubr.bf16.mxu0 %v16009_v49  ;;  %13534 = vmatpush3.bf16.msra.mxu0 %v15087_v7  ;;  %v16184_v49 = vsel %vm15982_vm5, %v1590_v25, %v1591_v1  ;;  %v19557_v7 = vld [vmem:[#allocation19_spill] sm:$0xff]  ;;  %v12085_v1 = vcombine.low %v16173_v17, %v16192_v13  ;;  %v1611_v54 = vrot.slane %v1609_v47, 4  ;;  %v1616_v19 = vrot.slane %v15938_v46, 5 }
  0xb1   : > { %13535 = vmatprep.subr.bf16.mxu0 %v15088_v41  ;;  %v1602_v18 = vrot.slane %v19557_v7, 5  ;;  %v16204_v7 = vsel %vm15982_vm5, %v12055_v27, %v1609_v47  ;;  %v1619_v28 = vrot.slane %v732_v57, 5  ;;  %v1108_v21 = vrot.slane %v19559_v44, 5 }
  0xb2   : > { %v16220_v35 = vsel %vm15982_vm5, %v1611_v54, %v1612_v9  ;;  %v1618_v27 = vrot.slane %v1616_v19, 4  ;;  %v1023_v9 = vsel %vm15640_vm2, %v15951_v45, %v15953_v16  ;;  %v15297_v54 = vld [vmem:[%s15568_s8 + $0x4] sm:$0xf]  ;;  %v1047_v45 = vsel %vm15640_vm2, %v15957_v63, %v15959_v14 }
  0xb3   : > { %v16200_v25 = vsel %vm15982_vm5, %v12054_v29, %v1602_v18  ;;  %v1604_v32 = vrot.slane %v1602_v18, 4  ;;  %v16224_v18 = vsel %vm15982_vm5, %v12056_v51, %v1616_v19  ;;  %v1511_v19 = vrot.slane %v15297_v54, 5  ;;  %v19562_v63 = vld [vmem:[#allocation21_spill] sm:$0xff] }
  0xb4   : > { %13536 = vmatpush3.bf16.msra.mxu0 %v15088_v41  ;;  %v12087_v41 = vcombine.low %v16204_v7, %v16220_v35  ;;  %v1061_v14 = vsel %vm15640_vm2, %v15961_v2, %v19562_v63  ;;  %v1443_v2 = vld [vmem:[%s15568_s8 + $0xc] sm:$0xe]  ;;  %v19564_v63 = vcombine.low %v16051_v3, %v16065_v8  ;;  %v19566_v3 = vcombine.low %v16082_v10, %v16094_v20  ;;  %v15095_v8 = vld [vmem:[%s19440_s1 + $0xf0] sm:$0xff]   ;;  %v16336_v20 = vld [vmem:[%s19440_s1 + $0x100] sm:$0xff]  }
  0xb5   : > { %13569 = vmatprep.subr.bf16.mxu0 %v16180_v62  ;;  %v16214_v29 = vsel %vm15982_vm5, %v1604_v32, %v1605_v39  ;;  %v19560_v39 = vshrl.u32 %v15938_v46, 16  ;;  %v1116_v32 = vshll.u32 %v732_v57, 16  ;;  %v16244_v46 = vsel %vm15982_vm5, %v1618_v27, %v1619_v28 }
  0xb6   : > { %v12088_v16 = vcombine.low %v16224_v18, %v16244_v46  ;;  %v12028_v57 = vcombine.low %v1013_v23, %v1023_v9  ;;  %v1103_v28 = vor.u32 %v16043_v42, %v16038_v40  ;;  %v1071_v40 = vsel %vm15640_vm2, %v15973_v31, %v15963_v6 }
  0xb7   : > { %13506 = vmatmul.mubr.bf16.gmra.mrb[16].mxu0 %v16016_v55  ;;  %v1112_v47 = vrot.slane %v19560_v39, 4  ;;  %v19561_v55 = vor.u32 %v15967_v5, %v15965_v38  ;;  %v1442_v5 = vld [vmem:[%s15568_s8] sm:$0xe]  ;;  %v1118_v39 = vrot.slane %v1116_v32, 5  ;;  %v12030_v9 = vcombine.low %v1061_v14, %v1071_v40  ;;  %v12172_v14 = vld [vmem:[%s15568_s8 + $0x18] sm:$0xf] }
  0xb8   : > { %13509 = vmatprep.mubr.bf16.mxu0 %v16018_v50  ;;  %v1037_v50 = vsel %vm15640_vm2, %v15955_v48, %v15902_v61  ;;  %v1513_v61 = vrot.slane %v1511_v19, 4  ;;  %v15298_v48 = vld [vmem:[%s15568_s8 + $0x8] sm:$0x1]  ;;  %v1104_v42 = vrot.slane %v1103_v28, 4  ;;  %v15300_v28 = vld [vmem:[%s15568_s8 + $0x14] sm:$0x1]  ;;  %v19568_v10 = vcombine.low %v16111_v12, %v16122_v11 }
  0xb9   : > { %v1090_v51 = vrot.slane %v19561_v55, 4  ;;  %v12029_v44 = vcombine.low %v1037_v50, %v1047_v45  ;;  %v1113_v27 = vor.u32 %v1112_v47, %v1108_v21  ;;  %v12041_v55 = vrot.slane %v1442_v5, 9  ;;  %v15299_v45 = vld [vmem:[%s15568_s8 + $0x10] sm:$0xf] }
  0xba   : > { %v1514_v54 = vrot.slane %v15298_v48, 5  ;;  %v1085_v47 = vsel %vm15640_vm2, %v16021_v24, %v15965_v38  ;;  %v1109_v6 = vsel %vm15640_vm2, %v1104_v42, %v1108_v21  ;;  %v1518_v5 = vrot.slane %v15299_v45, 5 }
  0xbb   : > { %v1114_v23 = vrot.slane %v1113_v27, 4  ;;  %v1095_v32 = vsel %vm15640_vm2, %v1090_v51, %v15975_v53  ;;  %v1512_v38 = vsel %vm15982_vm5, %v12041_v55, %v1511_v19  ;;  %v1521_v27 = vrot.slane %v15300_v28, 5  ;;  %v15090_v19 = vld [vmem:[%s19440_s1 + $0xc8] sm:$0xff]  }
  0xbc   : > { %v12031_v50 = vcombine.low %v1085_v47, %v1095_v32  ;;  %v1515_v53 = vsel %vm15982_vm5, %v1513_v61, %v1514_v54  ;;  %v19563_v55 = vcombine.low %v16027_v0, %v16047_v58  ;;  %v15091_v61 = vld [vmem:[%s19440_s1 + $0xd0] sm:$0xff]   ;;  %v15092_v54 = vld [vmem:[%s19440_s1 + $0xd8] sm:$0xff]   ;;  %v15093_v0 = vld [vmem:[%s19440_s1 + $0xe0] sm:$0xff]   ;;  %v19570_v12 = vcombine.low %v16147_v22, %v16162_v33 }
  0xbd   : > { %v1119_v31 = vsel %vm15640_vm2, %v1114_v23, %v1118_v39  ;;  %v12073_v51 = vcombine.low %v1512_v38, %v1515_v53  ;;  %v15094_v58 = vld [vmem:[%s19440_s1 + $0xe8] sm:$0xff]   ;;  %v19571_v37 = vcombine.low %v16166_v56, %v16184_v49  ;;  %v2403_v22 = vshrl.u32 %v12172_v14, 16  ;;  %v12175_v33 = vld [vmem:[%s15568_s8 + $0x24] sm:$0xf]  ;;  %v12179_v56 = vld [vmem:[%s15568_s8 + $0x34] sm:$0xf] }
  0xbe   : > { %v12032_v24 = vcombine.low %v1109_v6, %v1119_v31  ;;  %v12176_v32 = vld [vmem:[%s15568_s8 + $0x28] sm:$0xf]  ;;  %v12171_v6 = vld [vmem:[%s15568_s8 + $0x14] sm:$0x1]  ;;  %v2412_v45 = vshll.u32 %v12173_v43, 16  ;;  %v2427_v38 = vshrl.u32 %v12175_v33, 16 }
  0xbf   : > { %13510 = vmatmul.mubr.bf16.gmra.mrb[20].mxu0 %v12028_v57  ;;  %v12042_v57 = vrot.slane %v1443_v2, 9  ;;  %v12178_v2 = vld [vmem:[%s15568_s8 + $0x30] sm:$0xf]  ;;  %v12174_v49 = vld [vmem:[%s15568_s8 + $0x20] sm:$0x1]  ;;  %v2430_v53 = vshll.u32 %v12175_v33, 16 }
  0xc0   : > { %13513 = vmatprep.mubr.bf16.mxu0 %v12029_v44  ;;  %v1520_v44 = vrot.slane %v1518_v5, 4  ;;  %v2451_v17 = vshrl.u32 %v12178_v2, 16  ;;  %v2454_v13 = vshll.u32 %v12178_v2, 16  ;;  %v2398_v28 = vshll.u32 %v12171_v6, 16  ;;  %v12183_v6 = vld [vmem:[%s15568_s8 + $0x44] sm:$0x1] }
  0xc1   : > { %v1519_v21 = vsel %vm15982_vm5, %v12042_v57, %v1518_v5  ;;  %v2416_v5 = vshrl.u32 %v12173_v43, 16  ;;  %v2405_v57 = vrot.slane %v2403_v22, 4 }
  0xc2   : > { %v1522_v39 = vsel %vm15982_vm5, %v1520_v44, %v1521_v27  ;;  %v2460_v27 = vshll.u32 %v12179_v56, 16 }
  0xc3   : > { %v12074_v48 = vcombine.low %v1519_v21, %v1522_v39  ;;  %v2464_v21 = vshrl.u32 %v12179_v56, 16 }
  0xc7   : > { %13514 = vmatmul.mubr.bf16.gmra.mrb[24].mxu0 %v12030_v9 }
  0xc8   : > { %13517 = vmatprep.mubr.bf16.mxu0 %v12031_v50 }
  0xcf   : > { %13518 = vmatmul.mubr.bf16.gmra.mrb[28].mxu0 %v12032_v24  ;;  %v2436_v24 = vshll.u32 %v12176_v32, 16 }
  0xd0   : > { %13537 = vmatprep.mubr.bf16.mxu0 %v12073_v51  ;;  %v2440_v51 = vshrl.u32 %v12176_v32, 16  ;;  %v12184_v32 = vld [vmem:[%s15568_s8 + $0x48] sm:$0xf] }
  0xd7   : > { %13538 = vmatmul.mubr.bf16.vlgmr.msra.gmra.mrb[0].mxu0 %v12074_v48  ;;  %v16366_v48 = vrot.slane %v2412_v45, 5 }
  0xd8   : > { %13570 = vmatpush3.bf16.msra.mxu0 %v16180_v62  ;;  %13541 = vmatprep.mubr.bf16.mxu0 %v19563_v55  ;;  %v19565_v62 = vcombine.low %v16057_v26, %v16073_v52  ;;  %v19567_v26 = vcombine.low %v16087_v60, %v16107_v34  ;;  %v15096_v52 = vld [vmem:[%s19440_s1 + $0xf8] sm:$0xff]   ;;  %v19569_v60 = vcombine.low %v16117_v30, %v16130_v36  ;;  %v12169_v34 = vld [vmem:[%s15568_s8 + $0xc] sm:$0xf]  ;;  %v12170_v30 = vld [vmem:[%s15568_s8 + $0x10] sm:$0xf]  ;;  %v2422_v55 = vshll.u32 %v12174_v49, 16 }
  0xd9   : > { %13571 = vmatprep.subr.bf16.mxu0 %v15090_v19  ;;  %v2379_v11 = vshrl.u32 %v12169_v34, 16  ;;  %v2382_v36 = vshll.u32 %v12169_v34, 16  ;;  %v2388_v40 = vshll.u32 %v12170_v30, 16  ;;  %v2392_v42 = vshrl.u32 %v12170_v30, 16  ;;  %v15100_v49 = vld [vmem:[%s15568_s8 + $0x24] sm:$0xff]  }
  0xdb   : > { %v2381_v23 = vrot.slane %v2379_v11, 4  ;;  %v2384_v47 = vrot.slane %v2382_v36, 5  ;;  %v16357_v9 = vrot.slane %v2388_v40, 5  ;;  %v2394_v50 = vrot.slane %v2392_v42, 4  ;;  %v15097_v36 = vld [vmem:[%s15568_s8 + $0xc] sm:$0xff]  }
  0xdc   : > { %13572 = vmatpush3.bf16.msra.mxu0 %v15090_v19  ;;  %v2418_v19 = vrot.slane %v2416_v5, 4 }
  0xdd   : > { %13573 = vmatprep.subr.bf16.mxu0 %v15091_v61  ;;  %v2385_v31 = vor.u32 %v2384_v47, %v2381_v23 }
  0xde   : > { %v2419_v30 = vor.u32 %v2418_v19, %v16366_v48 }
  0xdf   : > { %13542 = vmatmul.mubr.bf16.gmra.mrb[4].mxu0 %v19564_v63  ;;  %v16364_v39 = vrot.slane %v2385_v31, 4  ;;  %v2429_v63 = vrot.slane %v2427_v38, 4 }
  0xe0   : > { %13545 = vmatprep.mubr.bf16.mxu0 %v19565_v62  ;;  %13574 = vmatpush3.bf16.msra.mxu0 %v15091_v61  ;;  %v19572_v61 = vcombine.low %v16200_v25, %v16214_v29  ;;  %v2432_v62 = vrot.slane %v2430_v53, 5  ;;  %v12182_v29 = vld [vmem:[%s15568_s8 + $0x40] sm:$0xf]  ;;  %v16395_v22 = vrot.slane %v2419_v30, 4  ;;  %v2499_v53 = vshrl.u32 %v12184_v32, 16 }
  0xe1   : > { %13575 = vmatprep.subr.bf16.mxu0 %v15092_v54  ;;  %v2484_v23 = vshll.u32 %v12182_v29, 16  ;;  %v2488_v47 = vshrl.u32 %v12182_v29, 16  ;;  %v15111_v29 = vld [vmem:[%s19440_s1 + $0x120] sm:$0xff]  }
  0xe2   : > { %v2433_v11 = vor.u32 %v2432_v62, %v2429_v63 }
  0xe3   : > { %v16412_v5 = vrot.slane %v2484_v23, 5  ;;  %v2490_v56 = vrot.slane %v2488_v47, 4  ;;  %v15104_v23 = vld [vmem:[%s15568_s8 + $0x48] sm:$0xff]  }
  0xe4   : > { %13576 = vmatpush3.bf16.msra.mxu0 %v15092_v54  ;;  %v12177_v54 = vld [vmem:[%s15568_s8 + $0x2c] sm:$0x1]  ;;  %v16399_v33 = vrot.slane %v2433_v11, 4 }
  0xe5   : > { %13577 = vmatprep.subr.bf16.mxu0 %v15093_v0 }
  0xe7   : > { %13546 = vmatmul.mubr.bf16.gmra.mrb[8].mxu0 %v19566_v3  ;;  %v12180_v3 = vld [vmem:[%s15568_s8 + $0x38] sm:$0x1] }
  0xe8   : > { %13549 = vmatprep.mubr.bf16.mxu0 %v19567_v26  ;;  %13578 = vmatpush3.bf16.msra.mxu0 %v15093_v0  ;;  %v16372_v0 = vrot.slane %v2436_v24, 5  ;;  %v2453_v26 = vrot.slane %v2451_v17, 4  ;;  %v2470_v42 = vshll.u32 %v12180_v3, 16  ;;  %v15102_v24 = vld [vmem:[%s19440_s1 + $0x108] sm:$0xff]  }
  0xe9   : > { %13579 = vmatprep.subr.bf16.mxu0 %v15094_v58 }
  0xea   : > { %v16410_v45 = vrot.slane %v2470_v42, 5 }
  0xec   : > { %13580 = vmatpush3.bf16.msra.mxu0 %v15094_v58  ;;  %v2442_v58 = vrot.slane %v2440_v51, 4  ;;  %v2494_v51 = vshll.u32 %v12183_v6, 16  ;;  %v12189_v6 = vld [vmem:[%s15568_s8 + $0x5c] sm:$0x1] }
  0xed   : > { %13581 = vmatprep.subr.bf16.mxu0 %v15095_v8 }
  0xee   : > { %v2443_v7 = vor.u32 %v2442_v58, %v16372_v0  ;;  %v16430_v19 = vrot.slane %v2494_v51, 5 }
  0xef   : > { %13550 = vmatmul.mubr.bf16.gmra.mrb[12].mxu0 %v19568_v10  ;;  %v2466_v10 = vrot.slane %v2464_v21, 4 }
  0xf0   : > { %13553 = vmatprep.mubr.bf16.mxu0 %v19569_v60  ;;  %13582 = vmatpush3.bf16.msra.mxu0 %v15095_v8  ;;  %v2456_v8 = vrot.slane %v2454_v13, 5  ;;  %v12181_v60 = vld [vmem:[%s15568_s8 + $0x3c] sm:$0xf]  ;;  %v12186_v13 = vld [vmem:[%s15568_s8 + $0x50] sm:$0x1] }
  0xf1   : > { %13583 = vmatprep.subr.bf16.mxu0 %v15096_v52  ;;  %v2475_v35 = vshrl.u32 %v12181_v60, 16  ;;  %v2518_v3 = vshll.u32 %v12186_v13, 16  ;;  %v3188_v42 = vrot.slane %v12186_v13, 5 }
  0xf2   : > { %v2457_v40 = vor.u32 %v2456_v8, %v2453_v26 }
  0xf3   : > { %v2477_v18 = vrot.slane %v2475_v35, 4 }
  0xf4   : > { %13584 = vmatpush3.bf16.msra.mxu0 %v15096_v52  ;;  %v16378_v52 = vrot.slane %v2460_v27, 5  ;;  %v16408_v31 = vrot.slane %v2457_v40, 4  ;;  %v15105_v27 = vld [vmem:[%s19440_s1 + $0x110] sm:$0xff]  }
  0xf5   : > { %13617 = vmatprep.subr.bf16.mxu0 %v16336_v20 }
  0xf7   : > { %13554 = vmatmul.mubr.bf16.gmra.mrb[16].mxu0 %v12082_v59  ;;  %v2406_v59 = vshll.u32 %v12172_v14, 16  ;;  %v2478_v14 = vshll.u32 %v12181_v60, 16  ;;  %v12188_v60 = vld [vmem:[%s15568_s8 + $0x58] sm:$0xf] }
  0xf8   : > { %13557 = vmatprep.mubr.bf16.mxu0 %v19570_v12  ;;  %v16384_v12 = vrot.slane %v2398_v28, 5  ;;  %v12187_v28 = vld [vmem:[%s15568_s8 + $0x54] sm:$0xf]  ;;  %v2532_v35 = vshll.u32 %v12188_v60, 16 }
  0xf9   : > { %v2408_v44 = vrot.slane %v2406_v59, 5  ;;  %v16397_v59 = vrot.slane %v2422_v55, 5  ;;  %v2480_v46 = vrot.slane %v2478_v14, 5  ;;  %v2501_v55 = vrot.slane %v2499_v53, 4  ;;  %v12262_v14 = vld [vmem:[%s15568_s8 + $0x48] sm:$0xe] }
  0xfa   : > { %v2523_v26 = vshrl.u32 %v12187_v28, 16  ;;  %v2526_v8 = vshll.u32 %v12187_v28, 16  ;;  %v2542_v28 = vshll.u32 %v12189_v6, 16  ;;  %v12266_v6 = vld [vmem:[%s15568_s8 + $0x78] sm:$0xe] }
  0xfb   : > { %v2409_v25 = vor.u32 %v2408_v44, %v2405_v57  ;;  %v12185_v57 = vld [vmem:[%s15568_s8 + $0x4c] sm:$0xf]  ;;  %v2502_v44 = vshll.u32 %v12184_v32, 16  ;;  %v2481_v17 = vor.u32 %v2480_v46, %v2477_v18  ;;  %v15106_v32 = vld [vmem:[%s15568_s8 + $0x54] sm:$0xff]   ;;  %v2536_v18 = vshrl.u32 %v12188_v60, 16 }
  0xfc   : > { %v2512_v58 = vshrl.u32 %v12185_v57, 16  ;;  %v3185_v40 = vrot.slane %v12185_v57, 5  ;;  %v12190_v46 = vld [vmem:[%s15568_s8 + $0x60] sm:$0xf] }
  0xfd   : > { %v16393_v43 = vrot.slane %v2409_v25, 4  ;;  %v16428_v21 = vrot.slane %v2481_v17, 4  ;;  %v2504_v62 = vrot.slane %v2502_v44, 5  ;;  %v15117_v17 = vld [vmem:[%s19440_s1 + $0x130] sm:$0xff]  }
  0xfe   : > { %v2514_v11 = vrot.slane %v2512_v58, 4 }
  0xff   : > { %13558 = vmatmul.mubr.bf16.gmra.mrb[20].mxu0 %v19571_v37  ;;  %v2467_v37 = vor.u32 %v2466_v10, %v16378_v52  ;;  %v15108_v10 = vld [vmem:[%s19440_s1 + $0x118] sm:$0xff]   ;;  %v2505_v25 = vor.u32 %v2504_v62, %v2501_v55  ;;  %v2547_v55 = vshrl.u32 %v12190_v46, 16  ;;  %v12264_v62 = vld [vmem:[%s15568_s8 + $0x60] sm:$0xe] }
 0x100   : > { %13561 = vmatprep.mubr.bf16.mxu0 %v12085_v1  ;;  %v2395_v1 = vor.u32 %v2394_v50, %v16357_v9  ;;  %v16402_v50 = vrot.slane %v2443_v7, 4  ;;  %v2525_v7 = vrot.slane %v2523_v26, 4 }
 0x101   : > { %v16415_v38 = vrot.slane %v2467_v37, 4  ;;  %v16449_v47 = vrot.slane %v2505_v25, 4  ;;  %v12278_v37 = vrot.slane %v12262_v14, 9  ;;  %v16507_v14 = vrot.slane %v2542_v28, 5 }
 0x102   : > { %v16382_v34 = vrot.slane %v2395_v1, 4  ;;  %v2491_v1 = vor.u32 %v2490_v56, %v16412_v5  ;;  %v15114_v56 = vld [vmem:[%s19440_s1 + $0x128] sm:$0xff]  }
 0x103   : > { %v16460_v53 = vsel %vm15982_vm5, %v12278_v37, %v3185_v40 }
 0x104   : > { %v16433_v63 = vrot.slane %v2491_v1, 4  ;;  %19573 = vst [vmem:[#allocation15_spill] sm:$0xff] %v16460_v53  ;;  %v16476_v1 = vrot.slane %v2532_v35, 5  ;;  %v16505_v35 = vld [vmem:[%s19440_s1 + $0x140] sm:$0xff]  }
 0x107   : > { %13562 = vmatmul.mubr.bf16.gmra.mrb[24].mxu0 %v19572_v61  ;;  %v2508_v61 = vshll.u32 %v12185_v57, 16  ;;  %v16467_v57 = vld [vmem:[%s15568_s8 + $0x64] sm:$0xf] }
 0x108   : > { %13565 = vmatprep.mubr.bf16.mxu0 %v12087_v41  ;;  %v2446_v41 = vshll.u32 %v12177_v54, 16  ;;  %v15101_v54 = vld [vmem:[%s15568_s8 + $0x30] sm:$0xff]   ;;  %v3199_v58 = vrot.slane %v16467_v57, 5  ;;  %v2556_v60 = vshll.u32 %v16467_v57, 16 }
 0x109   : > { %v16443_v30 = vrot.slane %v2508_v61, 5  ;;  %v2538_v61 = vrot.slane %v2536_v18, 4 }
 0x10a   : > { %v16404_v2 = vrot.slane %v2446_v41, 5  ;;  %v2528_v41 = vrot.slane %v2526_v8, 5  ;;  %v12280_v8 = vrot.slane %v12264_v62, 9  ;;  %v3201_v25 = vrot.slane %v3199_v58, 4  ;;  %v16537_v62 = vld [vmem:[%s15568_s8 + $0x8c] sm:$0x1] }
 0x10c   : > { %v2529_v51 = vor.u32 %v2528_v41, %v2525_v7 }
 0x10e   : > { %v16485_v26 = vrot.slane %v2529_v51, 4  ;;  %v15112_v51 = vld [vmem:[%s15568_s8 + $0x84] sm:$0xff]  }
 0x10f   : > { %13566 = vmatmul.mubr.bf16.gmra.mrb[28].mxu0 %v12088_v16  ;;  %v15098_v16 = vld [vmem:[%s15568_s8 + $0x18] sm:$0xff]  }
 0x110   : > { %13585 = vmatprep.mubr.bf16.mxu0 %v15097_v36  ;;  %v16445_v36 = vrot.slane %v2518_v3, 5 }
 0x117   : > { %13586 = vmatmul.mubr.bf16.vlgmr.msra.gmra.mrb[0].mxu0 %v15098_v16  ;;  %v3187_v16 = vrot.slane %v3185_v40, 4  ;;  %v16509_v40 = vrot.slane %v2547_v55, 4  ;;  %v2539_v55 = vor.u32 %v2538_v61, %v16476_v1  ;;  %v12267_v61 = vld [vmem:[%s15568_s8 + $0x84] sm:$0xe] }
 0x118   : > { %13618 = vmatpush3.bf16.msra.mxu0 %v16336_v20  ;;  %13589 = vmatprep.mubr.bf16.mxu0 %v15100_v49  ;;  %v15103_v20 = vld [vmem:[%s15568_s8 + $0x3c] sm:$0xff]   ;;  %v2515_v49 = vor.u32 %v2514_v11, %v16443_v30  ;;  %v16494_v11 = vsel %vm15982_vm5, %v12280_v8, %v3199_v58  ;;  %v16550_v8 = vld [vmem:[%s15568_s8 + $0x98] sm:$0x1] }
 0x119   : > { %13619 = vmatprep.subr.bf16.mxu0 %v15102_v24  ;;  %19575 = vst [vmem:[#allocation10_spill] sm:$0xff] %v16494_v11 }
 0x11a   : > { %v16474_v13 = vrot.slane %v2515_v49, 4  ;;  %v12282_v49 = vrot.slane %v12266_v6, 9  ;;  %v12268_v6 = vld [vmem:[%s15568_s8 + $0x90] sm:$0xe] }
 0x11c   : > { %13620 = vmatpush3.bf16.msra.mxu0 %v15102_v24  ;;  %v16464_v24 = vsel %vm15982_vm5, %v3187_v16, %v3188_v42  ;;  %v16512_v42 = vld [vmem:[%s15568_s8 + $0x7c] sm:$0xf] }
 0x11d   : > { %13621 = vmatprep.subr.bf16.mxu0 %v15105_v27  ;;  %19574 = vst [vmem:[#allocation9_spill] sm:$0xff] %v16464_v24  ;;  %v3213_v18 = vrot.slane %v16512_v42, 5  ;;  %v15110_v16 = vld [vmem:[%s15568_s8 + $0x78] sm:$0xff]  }
 0x11f   : > { %13590 = vmatmul.mubr.bf16.gmra.mrb[4].mxu0 %v15101_v54  ;;  %v2550_v54 = vshll.u32 %v12190_v46, 16  ;;  %v3215_v28 = vrot.slane %v3213_v18, 4 }
 0x120   : > { %13593 = vmatprep.mubr.bf16.mxu0 %v15103_v20  ;;  %13622 = vmatpush3.bf16.msra.mxu0 %v15105_v27  ;;  %v16479_v27 = vld [vmem:[%s15568_s8 + $0x68] sm:$0x1]  ;;  %v15107_v20 = vld [vmem:[%s15568_s8 + $0x60] sm:$0xff]  }
 0x121   : > { %13623 = vmatprep.subr.bf16.mxu0 %v15108_v10  ;;  %v3202_v3 = vrot.slane %v16479_v27, 5  ;;  %v16517_v37 = vrot.slane %v2550_v54, 5  ;;  %v16534_v54 = vld [vmem:[%s15568_s8 + $0x88] sm:$0xf] }
 0x123   : > { %v16498_v7 = vsel %vm15982_vm5, %v3201_v25, %v3202_v3  ;;  %v16545_v3 = vld [vmem:[%s15568_s8 + $0x94] sm:$0xf]  ;;  %v16555_v25 = vrot.slane %v2539_v55, 4 }
 0x124   : > { %13624 = vmatpush3.bf16.msra.mxu0 %v15108_v10  ;;  %v15109_v10 = vld [vmem:[%s15568_s8 + $0x6c] sm:$0xff]   ;;  %19576 = vst [vmem:[#allocation16_spill] sm:$0xff] %v16498_v7 }
 0x125   : > { %13625 = vmatprep.subr.bf16.mxu0 %v15111_v29 }
 0x127   : > { %13594 = vmatmul.mubr.bf16.gmra.mrb[8].mxu0 %v15104_v23  ;;  %v16515_v23 = vld [vmem:[%s15568_s8 + $0x80] sm:$0x1] }
 0x128   : > { %13597 = vmatprep.mubr.bf16.mxu0 %v15106_v32  ;;  %13626 = vmatpush3.bf16.msra.mxu0 %v15111_v29  ;;  %v15120_v29 = vld [vmem:[%s19440_s1 + $0x138] sm:$0xff]   ;;  %v2560_v32 = vshrl.u32 %v16467_v57, 16  ;;  %v3216_v46 = vrot.slane %v16515_v23, 5  ;;  %v16530_v57 = vsel %vm15982_vm5, %v12282_v49, %v3213_v18  ;;  %v3227_v18 = vrot.slane %v16545_v3, 5 }
 0x129   : > { %13627 = vmatprep.subr.bf16.mxu0 %v15114_v56  ;;  %19577 = vst [vmem:[#allocation11_spill] sm:$0xff] %v16530_v57 }
 0x12a   : > { %v16541_v58 = vsel %vm15982_vm5, %v3215_v28, %v3216_v46  ;;  %v3230_v46 = vrot.slane %v16550_v8, 5  ;;  %v12284_v28 = vrot.slane %v12268_v6, 9  ;;  %v16562_v41 = vrot.slane %v2560_v32, 4  ;;  %v16580_v6 = vld [vmem:[%s15568_s8 + $0xa0] sm:$0xf] }
 0x12b   : > { %19578 = vst [vmem:[#allocation13_spill] sm:$0xff] %v16541_v58  ;;  %v3229_v55 = vrot.slane %v3227_v18, 4  ;;  %v16583_v32 = vld [vmem:[%s15568_s8 + $0xa4] sm:$0x1]  ;;  %v16592_v58 = vld [vmem:[%s15568_s8 + $0xac] sm:$0xf] }
 0x12c   : > { %13628 = vmatpush3.bf16.msra.mxu0 %v15114_v56  ;;  %v16524_v56 = vrot.slane %v2556_v60, 5  ;;  %v3223_v60 = vrot.slane %v16537_v62, 5  ;;  %19582 = vst [vmem:[#allocation17_spill] sm:$0xff] %v16583_v32  ;;  %19584 = vst [vmem:[#allocation20_spill] sm:$0xff] %v16592_v58  ;;  %v3237_v57 = vrot.slane %v16583_v32, 5  ;;  %v15119_v32 = vld [vmem:[%s15568_s8 + $0xc0] sm:$0xff]  }
 0x12d   : > { %13629 = vmatprep.subr.bf16.mxu0 %v15117_v17 }
 0x12f   : > { %13598 = vmatmul.mubr.bf16.gmra.mrb[12].mxu0 %v15107_v20  ;;  %v15115_v20 = vld [vmem:[%s15568_s8 + $0x9c] sm:$0xff]  }
 0x130   : > { %13601 = vmatprep.mubr.bf16.mxu0 %v15109_v10  ;;  %13630 = vmatpush3.bf16.msra.mxu0 %v15117_v17  ;;  %v3220_v10 = vrot.slane %v16534_v54, 5  ;;  %v16577_v17 = vsel %vm15982_vm5, %v12284_v28, %v3227_v18  ;;  %v16597_v18 = vld [vmem:[%s15568_s8 + $0xb0] sm:$0x1]  ;;  %v3234_v28 = vrot.slane %v16580_v6, 5 }
 0x131   : > { %13631 = vmatprep.subr.bf16.mxu0 %v15120_v29  ;;  %19581 = vst [vmem:[#allocation14_spill] sm:$0xff] %v16577_v17  ;;  %19585 = vst [vmem:[#allocation21_spill] sm:$0xff] %v16597_v18 }
 0x132   : > { %v3222_v49 = vrot.slane %v3220_v10, 4 }
 0x134   : > { %13632 = vmatpush3.bf16.msra.mxu0 %v15120_v29  ;;  %v12283_v29 = vrot.slane %v12267_v61, 9  ;;  %v16569_v61 = vld [vmem:[%s15568_s8 + $0x6c] sm:$0xf]  ;;  %v16573_v44 = vsel %vm15982_vm5, %v3222_v49, %v3223_v60  ;;  %v12269_v49 = vld [vmem:[%s15568_s8 + $0x9c] sm:$0xe] }
 0x135   : > { %13665 = vmatprep.subr.bf16.mxu0 %v16505_v35  ;;  %19580 = vst [vmem:[#allocation18_spill] sm:$0xff] %v16573_v44  ;;  %v3241_v44 = vrot.slane %v16592_v58, 5  ;;  %v15116_v60 = vld [vmem:[%s15568_s8 + $0xa8] sm:$0xff]   ;;  %v2574_v7 = vshll.u32 %v16569_v61, 16 }
 0x137   : > { %13602 = vmatmul.mubr.bf16.gmra.mrb[16].mxu0 %v15110_v16  ;;  %v15113_v16 = vld [vmem:[%s15568_s8 + $0x90] sm:$0xff]   ;;  %v3243_v11 = vrot.slane %v3241_v44, 4 }
 0x138   : > { %13605 = vmatprep.mubr.bf16.mxu0 %v15112_v51  ;;  %v16566_v51 = vsel %vm15982_vm5, %v12283_v29, %v3220_v10  ;;  %v16589_v29 = vsel %vm15982_vm5, %v3229_v55, %v3230_v46  ;;  %v2571_v46 = vshrl.u32 %v16569_v61, 16  ;;  %v12285_v55 = vrot.slane %v12269_v49, 9  ;;  %v12270_v10 = vld [vmem:[%s15568_s8 + $0xa8] sm:$0xe]  ;;  %v16614_v49 = vld [vmem:[%s15568_s8 + $0x70] sm:$0xf] }
 0x139   : > { %19579 = vst [vmem:[#allocation12_spill] sm:$0xff] %v16566_v51  ;;  %19583 = vst [vmem:[#allocation19_spill] sm:$0xff] %v16589_v29  ;;  %v3236_v29 = vrot.slane %v3234_v28, 4  ;;  %v12286_v17 = vrot.slane %v12270_v10, 9  ;;  %v15118_v51 = vld [vmem:[%s15568_s8 + $0xb4] sm:$0xff]   ;;  %v2580_v61 = vshll.u32 %v16614_v49, 16 }
 0x13a   : > { %v16625_v10 = vld [vmem:[%s15568_s8 + $0xb8] sm:$0xf] }
 0x13b   : > { %v16618_v24 = vsel %vm15982_vm5, %v3236_v29, %v3237_v57  ;;  %v16622_v53 = vsel %vm15982_vm5, %v12286_v17, %v3241_v44  ;;  %v16642_v44 = vld [vmem:[%s15568_s8 + $0xc8] sm:$0x1]  ;;  %v12271_v17 = vld [vmem:[%s15568_s8 + $0xb4] sm:$0xe]  ;;  %v3248_v29 = vrot.slane %v16625_v10, 5  ;;  %v2401_v57 = vsel %vm15640_vm2, %v16382_v34, %v16384_v12 }
 0x13c   : > { %19587 = vst [vmem:[#allocation23_spill] sm:$0xff] %v16618_v24  ;;  %19588 = vst [vmem:[#allocation24_spill] sm:$0xff] %v16622_v53  ;;  %v12287_v24 = vrot.slane %v12271_v17, 9  ;;  %v2584_v17 = vshrl.u32 %v16614_v49, 16  ;;  %v12196_v53 = vld [vmem:[%s15568_s8 + $0x78] sm:$0xf] }
 0x13d   : > { %19592 = vst [vmem:[#allocation28_spill] sm:$0xff] %v16642_v44 }
 0x13f   : > { %13606 = vmatmul.mubr.bf16.gmra.mrb[20].mxu0 %v15113_v16  ;;  %v3244_v16 = vrot.slane %v16597_v18, 5  ;;  %v16628_v18 = vld [vmem:[%s15568_s8 + $0xbc] sm:$0x1] }
 0x140   : > { %13609 = vmatprep.mubr.bf16.mxu0 %v15115_v20  ;;  %v16611_v20 = vsel %vm15982_vm5, %v12285_v55, %v3234_v28  ;;  %19589 = vst [vmem:[#allocation25_spill] sm:$0xff] %v16628_v18  ;;  %v16637_v55 = vld [vmem:[%s15568_s8 + $0xc4] sm:$0xf]  ;;  %v3251_v58 = vrot.slane %v16628_v18, 5  ;;  %v16664_v18 = vsel %vm15982_vm5, %v12287_v24, %v3248_v29 }
 0x141   : > { %19586 = vst [vmem:[#allocation22_spill] sm:$0xff] %v16611_v20  ;;  %v16634_v28 = vsel %vm15982_vm5, %v3243_v11, %v3244_v16  ;;  %19591 = vst [vmem:[#allocation27_spill] sm:$0xff] %v16637_v55  ;;  %v12272_v11 = vld [vmem:[%s15568_s8 + $0xc0] sm:$0xe]  ;;  %v3255_v16 = vrot.slane %v16637_v55, 5  ;;  %v3258_v20 = vrot.slane %v16642_v44, 5 }
 0x142   : > { %19590 = vst [vmem:[#allocation26_spill] sm:$0xff] %v16634_v28  ;;  %v12288_v28 = vrot.slane %v12272_v11, 9  ;;  %v2576_v11 = vrot.slane %v2574_v7, 5  ;;  %v2449_v7 = vsel %vm15640_vm2, %v16402_v50, %v16404_v2  ;;  %v16714_v50 = vrot.slane %v2580_v61, 5  ;;  %v16732_v61 = vld [vmem:[%s15568_s8 + $0x74] sm:$0x1] }
 0x143   : > { %v3257_v44 = vrot.slane %v3255_v16, 4  ;;  %v2586_v2 = vrot.slane %v2584_v17, 4  ;;  %v15124_v17 = vld [vmem:[%s19440_s1 + $0x158] sm:$0xff]  }
 0x145   : > { %v16678_v12 = vsel %vm15982_vm5, %v3257_v44, %v3258_v20  ;;  %v2425_v20 = vsel %vm15640_vm2, %v16395_v22, %v16397_v59  ;;  %v2608_v44 = vshrl.u32 %v16512_v42, 16  ;;  %v2463_v59 = vsel %vm15640_vm2, %v16408_v31, %v16378_v52 }
 0x147   : > { %13610 = vmatmul.mubr.bf16.gmra.mrb[24].mxu0 %v15116_v60  ;;  %v2391_v60 = vsel %vm15640_vm2, %v16364_v39, %v16357_v9  ;;  %v16672_v9 = vsel %vm15982_vm5, %v12288_v28, %v3255_v16  ;;  %v2415_v28 = vsel %vm15640_vm2, %v16393_v43, %v16366_v48  ;;  %v15122_v43 = vld [vmem:[%s19440_s1 + $0x148] sm:$0xff]   ;;  %v2610_v31 = vrot.slane %v2608_v44, 4  ;;  %v12199_v16 = vld [vmem:[%s15568_s8 + $0x84] sm:$0xf] }
 0x148   : > { %13613 = vmatprep.mubr.bf16.mxu0 %v15118_v51  ;;  %v3250_v51 = vrot.slane %v3248_v29, 4  ;;  %v12233_v39 = vcombine.low %v2391_v60, %v2401_v57  ;;  %v12320_v24 = vcombine.low %v16672_v9, %v16678_v12  ;;  %v2573_v29 = vrot.slane %v2571_v46, 4  ;;  %v15143_v9 = vld [vmem:[%s15568_s8 + $0x48] sm:$0xff]   ;;  %v16968_v12 = vld [vmem:[%s15568_s8 + $0x58] sm:$0xf] }
 0x149   : > { %v2604_v57 = vshll.u32 %v16512_v42, 16  ;;  %v12234_v48 = vcombine.low %v2415_v28, %v2425_v20  ;;  %v2563_v46 = vor.u32 %v16562_v41, %v16524_v56  ;;  %v12202_v28 = vld [vmem:[%s15568_s8 + $0x90] sm:$0xf] }
 0x14a   : > { %v16668_v55 = vsel %vm15982_vm5, %v3250_v51, %v3251_v58  ;;  %v2595_v58 = vshrl.u32 %v12196_v53, 16  ;;  %v2598_v51 = vshll.u32 %v12196_v53, 16  ;;  %v2439_v53 = vsel %vm15640_vm2, %v16399_v33, %v16372_v0  ;;  %v15123_v33 = vld [vmem:[%s19440_s1 + $0x150] sm:$0xff]  }
 0x14b   : > { %v12319_v34 = vcombine.low %v16664_v18, %v16668_v55  ;;  %v12235_v22 = vcombine.low %v2439_v53, %v2449_v7  ;;  %v2473_v0 = vsel %vm15640_vm2, %v16415_v38, %v16410_v45  ;;  %v16717_v52 = vrot.slane %v2604_v57, 5  ;;  %v15145_v18 = vld [vmem:[%s19440_s1 + $0x1d0] sm:$0xff]   ;;  %v15141_v55 = vld [vmem:[%s15568_s8 + $0x3c] sm:$0xff]  }
 0x14c   : > { %v2597_v42 = vrot.slane %v2595_v58, 4  ;;  %v2487_v45 = vsel %vm15640_vm2, %v16428_v21, %v16412_v5  ;;  %v2497_v38 = vsel %vm15640_vm2, %v16433_v63, %v16430_v19  ;;  %v12236_v60 = vcombine.low %v2463_v59, %v2473_v0 }
 0x14d   : > { %v12237_v5 = vcombine.low %v2487_v45, %v2497_v38  ;;  %v2511_v21 = vsel %vm15640_vm2, %v16449_v47, %v16443_v30  ;;  %v2521_v19 = vsel %vm15640_vm2, %v16474_v13, %v16445_v36  ;;  %v2535_v63 = vsel %vm15640_vm2, %v16485_v26, %v16476_v1 }
 0x14e   : > { %v2577_v41 = vor.u32 %v2576_v11, %v2573_v29  ;;  %v19593_v30 = vshll.u32 %v16479_v27, 16  ;;  %v2587_v36 = vor.u32 %v2586_v2, %v16714_v50  ;;  %v2590_v13 = vshll.u32 %v16732_v61, 16  ;;  %v15125_v11 = vld [vmem:[%s19440_s1 + $0x160] sm:$0xff]  }
 0x14f   : > { %13614 = vmatmul.mubr.bf16.gmra.mrb[28].mxu0 %v15119_v32  ;;  %v2600_v32 = vrot.slane %v2598_v51, 5  ;;  %v2619_v58 = vshrl.u32 %v12199_v16, 16  ;;  %v2622_v51 = vshll.u32 %v12199_v16, 16  ;;  %v2628_v1 = vshll.u32 %v16534_v54, 16 }
 0x150   : > { %13633 = vmatprep.mubr.bf16.mxu0 %v12233_v39  ;;  %v2564_v39 = vrot.slane %v2563_v46, 4  ;;  %v2568_v47 = vrot.slane %v19593_v30, 5  ;;  %v2632_v26 = vshrl.u32 %v16534_v54, 16  ;;  %v2611_v27 = vor.u32 %v2610_v31, %v16717_v52  ;;  %v15126_v31 = vld [vmem:[%s19440_s1 + $0x168] sm:$0xff]  }
 0x151   : > { %v2614_v29 = vshll.u32 %v16515_v23, 16  ;;  %v12238_v20 = vcombine.low %v2511_v21, %v2521_v19  ;;  %v2588_v53 = vrot.slane %v2587_v36, 4  ;;  %v2592_v7 = vrot.slane %v2590_v13, 5 }
 0x152   : > { %v2569_v54 = vsel %vm15640_vm2, %v2564_v39, %v2568_v47  ;;  %v16772_v23 = vrot.slane %v2628_v1, 5  ;;  %v2634_v59 = vrot.slane %v2632_v26, 4  ;;  %v2643_v0 = vshrl.u32 %v12202_v28, 16 }
 0x153   : > { %v2652_v45 = vshll.u32 %v16545_v3, 16  ;;  %v2656_v38 = vshrl.u32 %v16545_v3, 16  ;;  %v2593_v16 = vsel %vm15640_vm2, %v2588_v53, %v2592_v7  ;;  %v19595_v7 = vld [vmem:[#allocation20_spill] sm:$0xff] }
 0x154   : > { %v2635_v21 = vor.u32 %v2634_v59, %v16772_v23  ;;  %v2645_v19 = vrot.slane %v2643_v0, 4 }
 0x156   : > { %v2636_v1 = vrot.slane %v2635_v21, 4 }
 0x157   : > { %13634 = vmatmul.mubr.bf16.vlgmr.msra.gmra.mrb[0].mxu0 %v12234_v48  ;;  %v2621_v48 = vrot.slane %v2619_v58, 4 }
 0x158   : > { %13666 = vmatpush3.bf16.msra.mxu0 %v16505_v35  ;;  %13637 = vmatprep.mubr.bf16.mxu0 %v12235_v22  ;;  %v2553_v35 = vor.u32 %v16517_v37, %v16509_v40  ;;  %v2545_v40 = vsel %vm15640_vm2, %v16555_v25, %v16507_v14  ;;  %v2578_v14 = vrot.slane %v2577_v41, 4  ;;  %v2601_v25 = vor.u32 %v2600_v32, %v2597_v42  ;;  %v12205_v22 = vld [vmem:[%s15568_s8 + $0x9c] sm:$0xf] }
 0x159   : > { %13667 = vmatprep.subr.bf16.mxu0 %v15122_v43  ;;  %v12239_v57 = vcombine.low %v2535_v63, %v2545_v40  ;;  %v2616_v32 = vrot.slane %v2614_v29, 5  ;;  %v2670_v46 = vshll.u32 %v12205_v22, 16  ;;  %v16796_v40 = vrot.slane %v2652_v45, 5 }
 0x15a   : > { %v2554_v37 = vrot.slane %v2553_v35, 4  ;;  %v2583_v2 = vsel %vm15640_vm2, %v2578_v14, %v16714_v50  ;;  %v2602_v42 = vrot.slane %v2601_v25, 4  ;;  %v2667_v35 = vshrl.u32 %v12205_v22, 16 }
 0x15b   : > { %v2638_v50 = vshll.u32 %v16537_v62, 16  ;;  %v2672_v30 = vrot.slane %v2670_v46, 5  ;;  %v12241_v47 = vcombine.low %v2583_v2, %v2593_v16  ;;  %v2662_v14 = vshll.u32 %v16550_v8, 16 }
 0x15c   : > { %13668 = vmatpush3.bf16.msra.mxu0 %v15122_v43  ;;  %v2559_v44 = vsel %vm15640_vm2, %v2554_v37, %v16524_v56  ;;  %v2624_v43 = vrot.slane %v2622_v51, 5  ;;  %v2612_v56 = vrot.slane %v2611_v27, 4  ;;  %v2607_v41 = vsel %vm15640_vm2, %v2602_v42, %v16717_v52  ;;  %v12208_v52 = vld [vmem:[%s15568_s8 + $0xa8] sm:$0xf]  ;;  %v15128_v27 = vld [vmem:[%s19440_s1 + $0x178] sm:$0xff]  }
 0x15d   : > { %13669 = vmatprep.subr.bf16.mxu0 %v15123_v33  ;;  %v12240_v63 = vcombine.low %v2559_v44, %v2569_v54  ;;  %v2658_v37 = vrot.slane %v2656_v38, 4  ;;  %v2669_v39 = vrot.slane %v2667_v35, 4  ;;  %v2640_v36 = vrot.slane %v2638_v50, 5  ;;  %v12211_v44 = vld [vmem:[%s15568_s8 + $0xb4] sm:$0xf] }
 0x15e   : > { %v2617_v62 = vsel %vm15640_vm2, %v2612_v56, %v2616_v32  ;;  %v2694_v53 = vshll.u32 %v12208_v52, 16  ;;  %v2700_v8 = vshll.u32 %v19595_v7, 16  ;;  %v2664_v0 = vrot.slane %v2662_v14, 5  ;;  %v16821_v32 = vld [vmem:[%s19440_s1 + $0x180] sm:$0xff]  }
 0x15f   : > { %13638 = vmatmul.mubr.bf16.gmra.mrb[4].mxu0 %v12236_v60  ;;  %v2676_v60 = vshll.u32 %v16580_v6, 16  ;;  %v12242_v25 = vcombine.low %v2607_v41, %v2617_v62  ;;  %v2659_v29 = vor.u32 %v2658_v37, %v16796_v40  ;;  %v2641_v22 = vsel %vm15640_vm2, %v2636_v1, %v2640_v36  ;;  %v19596_v41 = vld [vmem:[#allocation21_spill] sm:$0xff] }
 0x160   : > { %13641 = vmatprep.mubr.bf16.mxu0 %v12237_v5  ;;  %13670 = vmatpush3.bf16.msra.mxu0 %v15123_v33  ;;  %v2646_v33 = vshll.u32 %v12202_v28, 16  ;;  %v2625_v5 = vor.u32 %v2624_v43, %v2621_v48  ;;  %v19594_v28 = vld [vmem:[#allocation17_spill] sm:$0xff]  ;;  %v2704_v48 = vshrl.u32 %v19595_v7, 16  ;;  %v2718_v2 = vshll.u32 %v12211_v44, 16 }
 0x161   : > { %13671 = vmatprep.subr.bf16.mxu0 %v15124_v17  ;;  %v16798_v13 = vrot.slane %v2676_v60, 5  ;;  %v2724_v42 = vshll.u32 %v16625_v10, 16  ;;  %v2728_v56 = vshrl.u32 %v16625_v10, 16  ;;  %v2696_v46 = vrot.slane %v2694_v53, 5 }
 0x162   : > { %v2648_v3 = vrot.slane %v2646_v33, 5  ;;  %v2626_v51 = vrot.slane %v2625_v5, 4  ;;  %v2715_v33 = vshrl.u32 %v12211_v44, 16  ;;  %v2702_v16 = vrot.slane %v2700_v8, 5 }
 0x163   : > { %v2706_v50 = vrot.slane %v2704_v48, 4  ;;  %v2720_v5 = vrot.slane %v2718_v2, 5  ;;  %v2726_v10 = vrot.slane %v2724_v42, 5  ;;  %v2730_v21 = vrot.slane %v2728_v56, 4  ;;  %v15301_v42 = vld [vmem:[%s15568_s8 + $0x10] sm:$0xf] }
 0x164   : > { %13672 = vmatpush3.bf16.msra.mxu0 %v15124_v17  ;;  %v2680_v17 = vshrl.u32 %v16580_v6, 16  ;;  %v15127_v6 = vld [vmem:[%s19440_s1 + $0x170] sm:$0xff]   ;;  %v2649_v26 = vor.u32 %v2648_v3, %v2645_v19  ;;  %v2631_v43 = vsel %vm15640_vm2, %v2626_v51, %v16772_v23  ;;  %v2660_v23 = vrot.slane %v2659_v29, 4  ;;  %v12214_v19 = vld [vmem:[%s15568_s8 + $0xc0] sm:$0xf] }
 0x165   : > { %13673 = vmatprep.subr.bf16.mxu0 %v15125_v11  ;;  %v12243_v60 = vcombine.low %v2631_v43, %v2641_v22  ;;  %v2710_v62 = vshll.u32 %v19596_v41, 16  ;;  %v2742_v36 = vshll.u32 %v12214_v19, 16  ;;  %v2731_v1 = vor.u32 %v2730_v21, %v2726_v10  ;;  %v15303_v21 = vld [vmem:[%s15568_s8 + $0x1c] sm:$0xf]  ;;  %v12258_v41 = vld [vmem:[%s15568_s8 + $0x18] sm:$0xe] }
 0x166   : > { %v2682_v58 = vrot.slane %v2680_v17, 4  ;;  %v2650_v59 = vrot.slane %v2649_v26, 4  ;;  %v2717_v17 = vrot.slane %v2715_v33, 4  ;;  %v19598_v26 = vld [vmem:[#allocation25_spill] sm:$0xff]  ;;  %v3150_v56 = vrot.slane %v15301_v42, 5 }
 0x167   : > { %13642 = vmatmul.mubr.bf16.gmra.mrb[8].mxu0 %v12238_v20  ;;  %v2686_v20 = vshll.u32 %v19594_v28, 16  ;;  %v2734_v14 = vshll.u32 %v19598_v26, 16  ;;  %v2732_v53 = vrot.slane %v2731_v1, 4  ;;  %v15306_v1 = vld [vmem:[%s15568_s8 + $0x2c] sm:$0x1] }
 0x168   : > { %13645 = vmatprep.mubr.bf16.mxu0 %v12239_v57  ;;  %13674 = vmatpush3.bf16.msra.mxu0 %v15125_v11  ;;  %v2673_v11 = vor.u32 %v2672_v30, %v2669_v39  ;;  %v2691_v57 = vshrl.u32 %v12208_v52, 16  ;;  %v2683_v54 = vor.u32 %v2682_v58, %v16798_v13  ;;  %v2655_v3 = vsel %vm15640_vm2, %v2650_v59, %v16796_v40  ;;  %v19597_v58 = vld [vmem:[#allocation27_spill] sm:$0xff]  ;;  %v19599_v59 = vld [vmem:[#allocation28_spill] sm:$0xff] }
 0x169   : > { %13675 = vmatprep.subr.bf16.mxu0 %v15126_v31  ;;  %v2688_v45 = vrot.slane %v2686_v20, 5  ;;  %v2707_v30 = vor.u32 %v2706_v50, %v2702_v16  ;;  %v2748_v40 = vshll.u32 %v19597_v58, 16  ;;  %v2752_v52 = vshrl.u32 %v19597_v58, 16  ;;  %v15305_v58 = vld [vmem:[%s15568_s8 + $0x20] sm:$0x1] }
 0x16a   : > { %v2693_v38 = vrot.slane %v2691_v57, 4  ;;  %v2684_v35 = vrot.slane %v2683_v54, 4  ;;  %v2721_v51 = vor.u32 %v2720_v5, %v2717_v17  ;;  %v2744_v20 = vrot.slane %v2742_v36, 5 }
 0x16b   : > { %v2750_v57 = vrot.slane %v2748_v40, 5  ;;  %v2754_v44 = vrot.slane %v2752_v52, 4  ;;  %v2736_v7 = vrot.slane %v2734_v14, 5  ;;  %v3152_v50 = vrot.slane %v3150_v56, 4 }
 0x16c   : > { %13676 = vmatpush3.bf16.msra.mxu0 %v15126_v31  ;;  %v2674_v31 = vrot.slane %v2673_v11, 4  ;;  %v2689_v37 = vsel %vm15640_vm2, %v2684_v35, %v2688_v45  ;;  %v2697_v39 = vor.u32 %v2696_v46, %v2693_v38  ;;  %v2712_v11 = vrot.slane %v2710_v62, 5  ;;  %v15304_v62 = vld [vmem:[%s15568_s8 + $0x28] sm:$0xf] }
 0x16d   : > { %13677 = vmatprep.subr.bf16.mxu0 %v15127_v6  ;;  %v2722_v54 = vrot.slane %v2721_v51, 4  ;;  %v2755_v22 = vor.u32 %v2754_v44, %v2750_v57  ;;  %v2737_v2 = vsel %vm15640_vm2, %v2732_v53, %v2736_v7  ;;  %v3160_v40 = vrot.slane %v15305_v58, 5  ;;  %v12261_v44 = vld [vmem:[%s15568_s8 + $0x3c] sm:$0xe] }
 0x16e   : > { %v2698_v29 = vrot.slane %v2697_v39, 4  ;;  %v3167_v26 = vrot.slane %v15306_v1, 5  ;;  %v19603_v1 = vld [vmem:[#allocation10_spill] sm:$0xff] }
 0x16f   : > { %13646 = vmatmul.mubr.bf16.gmra.mrb[12].mxu0 %v12240_v63  ;;  %v2665_v63 = vsel %vm15640_vm2, %v2660_v23, %v2664_v0  ;;  %v2758_v0 = vshll.u32 %v19599_v59, 16  ;;  %v2727_v33 = vsel %vm15640_vm2, %v2722_v54, %v2726_v10  ;;  %v12257_v23 = vld [vmem:[%s15568_s8 + $0xc] sm:$0xe]  ;;  %v2756_v35 = vrot.slane %v2755_v22, 4 }
 0x170   : > { %13649 = vmatprep.mubr.bf16.mxu0 %v12241_v47  ;;  %13678 = vmatpush3.bf16.msra.mxu0 %v15127_v6  ;;  %v2679_v6 = vsel %vm15640_vm2, %v2674_v31, %v16798_v13  ;;  %v2739_v47 = vshrl.u32 %v12214_v19, 16  ;;  %v2708_v13 = vrot.slane %v2707_v30, 4  ;;  %v2703_v8 = vsel %vm15640_vm2, %v2698_v29, %v2702_v16  ;;  %v15130_v22 = vld [vmem:[%s19440_s1 + $0x188] sm:$0xff]  }
 0x171   : > { %13679 = vmatprep.subr.bf16.mxu0 %v15128_v27  ;;  %v12247_v45 = vcombine.low %v2727_v33, %v2737_v2  ;;  %v2760_v46 = vrot.slane %v2758_v0, 5  ;;  %v12273_v16 = vrot.slane %v12257_v23, 9  ;;  %v3157_v19 = vrot.slane %v15303_v21, 5  ;;  %v15310_v33 = vld [vmem:[%s15568_s8 + $0x44] sm:$0x1] }
 0x172   : > { %v2741_v28 = vrot.slane %v2739_v47, 4  ;;  %v2713_v48 = vsel %vm15640_vm2, %v2708_v13, %v2712_v11  ;;  %v12274_v47 = vrot.slane %v12258_v41, 9  ;;  %v12277_v59 = vrot.slane %v12261_v44, 9  ;;  %v12265_v41 = vld [vmem:[%s15568_s8 + $0x6c] sm:$0xe]  ;;  %v19613_v44 = vld [vmem:[#allocation19_spill] sm:$0xff] }
 0x173   : > { %v12246_v31 = vcombine.low %v2703_v8, %v2713_v48  ;;  %v2761_v10 = vsel %vm15640_vm2, %v2756_v35, %v2760_v46  ;;  %v3159_v36 = vrot.slane %v3157_v19, 4  ;;  %v15309_v48 = vld [vmem:[%s15568_s8 + $0x38] sm:$0x1]  ;;  %v3181_v2 = vrot.slane %v15310_v33, 5  ;;  %v12263_v35 = vld [vmem:[%s15568_s8 + $0x54] sm:$0xe] }
 0x174   : > { %13680 = vmatpush3.bf16.msra.mxu0 %v15128_v27  ;;  %v12245_v27 = vcombine.low %v2679_v6, %v2689_v37  ;;  %v2745_v43 = vor.u32 %v2744_v20, %v2741_v28  ;;  %v3164_v6 = vrot.slane %v15304_v62, 5  ;;  %v12259_v37 = vld [vmem:[%s15568_s8 + $0x24] sm:$0xe]  ;;  %v3158_v14 = vsel %vm15982_vm5, %v12274_v47, %v3157_v19  ;;  %v12260_v28 = vld [vmem:[%s15568_s8 + $0x30] sm:$0xe] }
 0x175   : > { %13713 = vmatprep.subr.bf16.mxu0 %v16821_v32  ;;  %v12275_v52 = vrot.slane %v12259_v37, 9  ;;  %v15308_v20 = vld [vmem:[%s15568_s8 + $0x40] sm:$0xf]  ;;  %v12276_v7 = vrot.slane %v12260_v28, 9  ;;  %v19600_v47 = vld [vmem:[#allocation15_spill] sm:$0xff]  ;;  %v19610_v28 = vld [vmem:[#allocation18_spill] sm:$0xff] }
 0x176   : > { %v2746_v38 = vrot.slane %v2745_v43, 4  ;;  %v3166_v51 = vrot.slane %v3164_v6, 4  ;;  %v3174_v43 = vrot.slane %v15309_v48, 5  ;;  %v19618_v48 = vld [vmem:[#allocation24_spill] sm:$0xff]  ;;  %v15140_v33 = vld [vmem:[%s15568_s8 + $0x30] sm:$0xff]  }
 0x177   : > { %13650 = vmatmul.mubr.bf16.gmra.mrb[16].mxu0 %v12242_v25  ;;  %v12244_v25 = vcombine.low %v2655_v3, %v2665_v63  ;;  %v3151_v3 = vsel %vm15982_vm5, %v12273_v16, %v3150_v56  ;;  %v3165_v13 = vsel %vm15982_vm5, %v12275_v52, %v3164_v6  ;;  %v12281_v6 = vrot.slane %v12265_v41, 9 }
 0x178   : > { %13653 = vmatprep.mubr.bf16.mxu0 %v12243_v60  ;;  %v15302_v60 = vld [vmem:[%s15568_s8 + $0x14] sm:$0x1]  ;;  %v2751_v5 = vsel %vm15640_vm2, %v2746_v38, %v2750_v57  ;;  %v3168_v11 = vsel %vm15982_vm5, %v3166_v51, %v3167_v26  ;;  %v3178_v57 = vrot.slane %v15308_v20, 5  ;;  %v15136_v51 = vld [vmem:[%s19440_s1 + $0x1b8] sm:$0xff]  }
 0x179   : > { %v3153_v17 = vrot.slane %v15302_v60, 5  ;;  %v12248_v39 = vcombine.low %v2751_v5, %v2761_v10  ;;  %v12307_v53 = vcombine.low %v3165_v13, %v3168_v11  ;;  %v15132_v10 = vld [vmem:[%s19440_s1 + $0x198] sm:$0xff]  }
 0x17a   : > { %v3180_v0 = vrot.slane %v3178_v57, 4  ;;  %v3179_v23 = vsel %vm15982_vm5, %v12277_v59, %v3178_v57  ;;  %v19604_v26 = vld [vmem:[#allocation16_spill] sm:$0xff]  ;;  %v19612_v57 = vld [vmem:[#allocation14_spill] sm:$0xff] }
 0x17b   : > { %v3154_v63 = vsel %vm15982_vm5, %v3152_v50, %v3153_v17  ;;  %v12279_v50 = vrot.slane %v12263_v35, 9  ;;  %v15312_v17 = vld [vmem:[%s15568_s8 + $0x5c] sm:$0x1]  ;;  %v15144_v35 = vld [vmem:[%s15568_s8 + $0x54] sm:$0xff]  }
 0x17c   : > { %v12305_v30 = vcombine.low %v3151_v3, %v3154_v63  ;;  %v3195_v5 = vrot.slane %v15312_v17, 5  ;;  %v3206_v3 = vrot.slane %v16614_v49, 5  ;;  %v15133_v63 = vld [vmem:[%s19440_s1 + $0x1a0] sm:$0xff]   ;;  %v19609_v11 = vld [vmem:[#allocation12_spill] sm:$0xff] }
 0x17d   : > { %v19611_v20 = vcombine.low %v19609_v11, %v19610_v28  ;;  %v15137_v59 = vld [vmem:[%s15568_s8 + $0x18] sm:$0xff]  }
 0x17e   : > { %v3208_v37 = vrot.slane %v3206_v3, 4  ;;  %v3207_v49 = vsel %vm15982_vm5, %v12281_v6, %v3206_v3  ;;  %v17002_v6 = vld [vmem:[%s15568_s8 + $0x70] sm:$0xf]  ;;  %v15149_v28 = vld [vmem:[%s15568_s8 + $0x78] sm:$0xff]  }
 0x17f   : > { %13654 = vmatmul.mubr.bf16.gmra.mrb[20].mxu0 %v12244_v25  ;;  %v3161_v25 = vsel %vm15982_vm5, %v3159_v36, %v3160_v40  ;;  %v19601_v36 = vld [vmem:[#allocation9_spill] sm:$0xff] }
 0x180   : > { %13657 = vmatprep.mubr.bf16.mxu0 %v12245_v27  ;;  %v15307_v27 = vld [vmem:[%s15568_s8 + $0x34] sm:$0xf]  ;;  %v12306_v54 = vcombine.low %v3158_v14, %v3161_v25  ;;  %v19602_v58 = vcombine.low %v19600_v47, %v19601_v36  ;;  %v19605_v14 = vcombine.low %v19603_v1, %v19604_v26  ;;  %v15139_v25 = vld [vmem:[%s19440_s1 + $0x1c0] sm:$0xff]   ;;  %v4838_v47 = vrot.slane %v17002_v6, 5 }
 0x181   : > { %v3171_v29 = vrot.slane %v15307_v27, 5  ;;  %v19606_v27 = vld [vmem:[#allocation11_spill] sm:$0xff] }
 0x182   : > { %v4840_v26 = vrot.slane %v4838_v47, 4 }
 0x183   : > { %v3173_v8 = vrot.slane %v3171_v29, 4  ;;  %v3172_v42 = vsel %vm15982_vm5, %v12276_v7, %v3171_v29  ;;  %v19607_v29 = vld [vmem:[#allocation13_spill] sm:$0xff]  ;;  %v19616_v7 = vld [vmem:[#allocation23_spill] sm:$0xff] }
 0x184   : > { %v19608_v13 = vcombine.low %v19606_v27, %v19607_v29 }
 0x185   : > { %v3175_v56 = vsel %vm15982_vm5, %v3173_v8, %v3174_v43  ;;  %v19619_v43 = vld [vmem:[#allocation26_spill] sm:$0xff] }
 0x186   : > { %v12308_v46 = vcombine.low %v3172_v42, %v3175_v56  ;;  %v12494_v42 = vld [vmem:[%s15568_s8 + $0x54] sm:$0xe]  ;;  %v4824_v56 = vrot.slane %v16968_v12, 5 }
 0x187   : > { %13658 = vmatmul.mubr.bf16.gmra.mrb[24].mxu0 %v12246_v31  ;;  %v3182_v31 = vsel %vm15982_vm5, %v3180_v0, %v3181_v2  ;;  %v15138_v0 = vld [vmem:[%s15568_s8 + $0x24] sm:$0xff]  }
 0x188   : > { %13661 = vmatprep.mubr.bf16.mxu0 %v12247_v45  ;;  %v15131_v45 = vld [vmem:[%s19440_s1 + $0x190] sm:$0xff]   ;;  %v12309_v16 = vcombine.low %v3179_v23, %v3182_v31  ;;  %v15142_v2 = vld [vmem:[%s19440_s1 + $0x1c8] sm:$0xff]   ;;  %v15151_v31 = vld [vmem:[%s19440_s1 + $0x1e0] sm:$0xff]  }
 0x18f   : > { %13662 = vmatmul.mubr.bf16.gmra.mrb[28].mxu0 %v12248_v39  ;;  %v3209_v39 = vrot.slane %v16732_v61, 5  ;;  %v15135_v61 = vld [vmem:[%s19440_s1 + $0x1b0] sm:$0xff]  }
 0x190   : > { %13681 = vmatprep.mubr.bf16.mxu0 %v12305_v30  ;;  %v15134_v30 = vld [vmem:[%s19440_s1 + $0x1a8] sm:$0xff]  }
 0x191   : > { %v3210_v40 = vsel %vm15982_vm5, %v3208_v37, %v3209_v39  ;;  %v17005_v37 = vld [vmem:[%s15568_s8 + $0x74] sm:$0x1]  ;;  %v17008_v39 = vld [vmem:[%s15568_s8 + $0x28] sm:$0xf] }
 0x192   : > { %v12313_v52 = vcombine.low %v3207_v49, %v3210_v40  ;;  %v4841_v36 = vrot.slane %v17005_v37, 5  ;;  %v4051_v29 = vshll.u32 %v17008_v39, 16 }
 0x197   : > { %13682 = vmatmul.mubr.bf16.vlgmr.msra.gmra.mrb[0].mxu0 %v12306_v54  ;;  %v19614_v54 = vcombine.low %v19612_v57, %v19613_v44  ;;  %v15160_v57 = vld [vmem:[%s19440_s1 + $0x1f8] sm:$0xff]   ;;  %v17037_v44 = vld [vmem:[%s15568_s8 + $0x2c] sm:$0x1] }
 0x198   : > { %13714 = vmatpush3.bf16.msra.mxu0 %v16821_v32  ;;  %13685 = vmatprep.mubr.bf16.mxu0 %v12307_v53  ;;  %v15311_v32 = vld [vmem:[%s15568_s8 + $0x58] sm:$0xf]  ;;  %v19615_v53 = vld [vmem:[#allocation22_spill] sm:$0xff] }
 0x199   : > { %13715 = vmatprep.subr.bf16.mxu0 %v15130_v22  ;;  %v3192_v38 = vrot.slane %v15311_v32, 5  ;;  %v19617_v8 = vcombine.low %v19615_v53, %v19616_v7  ;;  %v12401_v32 = vld [vmem:[%s15568_s8 + $0x18] sm:$0xf] }
 0x19b   : > { %v3194_v60 = vrot.slane %v3192_v38, 4  ;;  %v3193_v21 = vsel %vm15982_vm5, %v12279_v50, %v3192_v38  ;;  %v4826_v38 = vrot.slane %v4824_v56, 4 }
 0x19c   : > { %13716 = vmatpush3.bf16.msra.mxu0 %v15130_v22  ;;  %v19620_v22 = vcombine.low %v19618_v48, %v19619_v43 }
 0x19d   : > { %13717 = vmatprep.subr.bf16.mxu0 %v15131_v45  ;;  %v3196_v19 = vsel %vm15982_vm5, %v3194_v60, %v3195_v5  ;;  %v15146_v60 = vld [vmem:[%s15568_s8 + $0x60] sm:$0xff]   ;;  %v15154_v5 = vld [vmem:[%s19440_s1 + $0x1e8] sm:$0xff]  }
 0x19e   : > { %v12311_v62 = vcombine.low %v3193_v21, %v3196_v19  ;;  %v4021_v21 = vshll.u32 %v12401_v32, 16 }
 0x19f   : > { %13686 = vmatmul.mubr.bf16.gmra.mrb[4].mxu0 %v12308_v46  ;;  %v16982_v46 = vld [vmem:[%s15568_s8 + $0x1c] sm:$0xf] }
 0x1a0   : > { %13689 = vmatprep.mubr.bf16.mxu0 %v12309_v16  ;;  %13718 = vmatpush3.bf16.msra.mxu0 %v15131_v45  ;;  %v12510_v45 = vrot.slane %v12494_v42, 9  ;;  %v12404_v16 = vld [vmem:[%s15568_s8 + $0x24] sm:$0xf]  ;;  %v4027_v3 = vshll.u32 %v16982_v46, 16  ;;  %v4023_v40 = vrot.slane %v4021_v21, 5 }
 0x1a1   : > { %13719 = vmatprep.subr.bf16.mxu0 %v15132_v10  ;;  %v4042_v41 = vshrl.u32 %v12404_v16, 16  ;;  %v17059_v42 = vld [vmem:[%s19440_s1 + $0x200] sm:$0xff]  }
 0x1a2   : > { %v16987_v50 = vsel %vm15982_vm5, %v12510_v45, %v4824_v56  ;;  %v17062_v56 = vld [vmem:[%s15568_s8 + $0x34] sm:$0xf] }
 0x1a3   : > { %19621 = vst [vmem:[#allocation17_spill] sm:$0xff] %v16987_v50  ;;  %v4044_v1 = vrot.slane %v4042_v41, 4  ;;  %v4147_v50 = vshll.u32 %v16968_v12, 16 }
 0x1a4   : > { %13720 = vmatpush3.bf16.msra.mxu0 %v15132_v10  ;;  %v4018_v10 = vshrl.u32 %v12401_v32, 16 }
 0x1a5   : > { %13721 = vmatprep.subr.bf16.mxu0 %v15133_v63 }
 0x1a6   : > { %v4020_v49 = vrot.slane %v4018_v10, 4 }
 0x1a7   : > { %13690 = vmatmul.mubr.bf16.gmra.mrb[8].mxu0 %v19602_v58  ;;  %v15157_v58 = vld [vmem:[%s19440_s1 + $0x1f0] sm:$0xff]  }
 0x1a8   : > { %13693 = vmatprep.mubr.bf16.mxu0 %v12311_v62  ;;  %13722 = vmatpush3.bf16.msra.mxu0 %v15133_v63  ;;  %v4031_v63 = vshrl.u32 %v16982_v46, 16  ;;  %v4045_v62 = vshll.u32 %v12404_v16, 16  ;;  %v4024_v7 = vor.u32 %v4023_v40, %v4020_v49  ;;  %v15150_v16 = vld [vmem:[%s15568_s8 + $0x84] sm:$0xff]  }
 0x1a9   : > { %13723 = vmatprep.subr.bf16.mxu0 %v15134_v30 }
 0x1aa   : > { %v4047_v27 = vrot.slane %v4045_v62, 5  ;;  %v17064_v45 = vrot.slane %v4024_v7, 4  ;;  %v4075_v62 = vshll.u32 %v17062_v56, 16 }
 0x1ac   : > { %13724 = vmatpush3.bf16.msra.mxu0 %v15134_v30  ;;  %v12496_v30 = vld [vmem:[%s15568_s8 + $0x6c] sm:$0xe]  ;;  %v4048_v43 = vor.u32 %v4047_v27, %v4044_v1  ;;  %v17105_v1 = vld [vmem:[%s15568_s8 + $0x98] sm:$0x1]  ;;  %v12499_v27 = vld [vmem:[%s15568_s8 + $0x90] sm:$0xe] }
 0x1ad   : > { %13725 = vmatprep.subr.bf16.mxu0 %v15135_v61 }
 0x1af   : > { %13694 = vmatmul.mubr.bf16.gmra.mrb[12].mxu0 %v19605_v14  ;;  %v15147_v14 = vld [vmem:[%s15568_s8 + $0x6c] sm:$0xff]  }
 0x1b0   : > { %13697 = vmatprep.mubr.bf16.mxu0 %v12313_v52  ;;  %13726 = vmatpush3.bf16.msra.mxu0 %v15135_v61  ;;  %v12512_v61 = vrot.slane %v12496_v30, 9  ;;  %v17016_v52 = vrot.slane %v4027_v3, 5  ;;  %v15152_v3 = vld [vmem:[%s15568_s8 + $0x90] sm:$0xff]  }
 0x1b1   : > { %13727 = vmatprep.subr.bf16.mxu0 %v15136_v51 }
 0x1b2   : > { %v17026_v11 = vsel %vm15982_vm5, %v12512_v61, %v4838_v47  ;;  %v17099_v61 = vld [vmem:[%s15568_s8 + $0x38] sm:$0x1] }
 0x1b3   : > { %19623 = vst [vmem:[#allocation21_spill] sm:$0xff] %v17026_v11 }
 0x1b4   : > { %13728 = vmatpush3.bf16.msra.mxu0 %v15136_v51  ;;  %v4033_v51 = vrot.slane %v4031_v63, 4 }
 0x1b5   : > { %13761 = vmatprep.subr.bf16.mxu0 %v15139_v25 }
 0x1b7   : > { %13698 = vmatmul.mubr.bf16.gmra.mrb[16].mxu0 %v19608_v13  ;;  %v4055_v13 = vshrl.u32 %v17008_v39, 16 }
 0x1b8   : > { %13701 = vmatprep.mubr.bf16.mxu0 %v19611_v20  ;;  %v17031_v20 = vsel %vm15982_vm5, %v4840_v26, %v4841_v36  ;;  %v4079_v36 = vshrl.u32 %v17062_v56, 16  ;;  %v17108_v26 = vld [vmem:[%s15568_s8 + $0xa0] sm:$0xf] }
 0x1b9   : > { %19624 = vst [vmem:[#allocation27_spill] sm:$0xff] %v17031_v20  ;;  %v4866_v7 = vrot.slane %v17108_v26, 5 }
 0x1bf   : > { %13702 = vmatmul.mubr.bf16.gmra.mrb[20].mxu0 %v19614_v54  ;;  %v12407_v54 = vld [vmem:[%s15568_s8 + $0x30] sm:$0xf] }
 0x1c0   : > { %13705 = vmatprep.mubr.bf16.mxu0 %v19617_v8  ;;  %v4034_v8 = vor.u32 %v4033_v51, %v17016_v52  ;;  %v17102_v51 = vld [vmem:[%s15568_s8 + $0x94] sm:$0xf] }
 0x1c2   : > { %v17066_v32 = vrot.slane %v4034_v8, 4 }
 0x1c7   : > { %13706 = vmatmul.mubr.bf16.gmra.mrb[24].mxu0 %v19620_v22  ;;  %v17044_v22 = vrot.slane %v4051_v29, 5  ;;  %v4859_v29 = vrot.slane %v17102_v51, 5 }
 0x1c8   : > { %13709 = vmatprep.mubr.bf16.mxu0 %v12319_v34  ;;  %v15148_v34 = vld [vmem:[%s19440_s1 + $0x1d8] sm:$0xff]  }
 0x1cf   : > { %13710 = vmatmul.mubr.bf16.gmra.mrb[28].mxu0 %v12320_v24  ;;  %v16971_v24 = vld [vmem:[%s15568_s8 + $0x5c] sm:$0x1] }
 0x1d0   : > { %13729 = vmatprep.mubr.bf16.mxu0 %v15137_v59  ;;  %v4827_v23 = vrot.slane %v16971_v24, 5  ;;  %v4057_v59 = vrot.slane %v4055_v13, 4  ;;  %v4862_v13 = vrot.slane %v17105_v1, 5 }
 0x1d2   : > { %v16992_v17 = vsel %vm15982_vm5, %v4826_v38, %v4827_v23  ;;  %v4069_v23 = vshll.u32 %v12407_v54, 16  ;;  %v12410_v38 = vld [vmem:[%s15568_s8 + $0x3c] sm:$0xf]  ;;  %v4058_v10 = vor.u32 %v4057_v59, %v17044_v22  ;;  %v4861_v59 = vrot.slane %v4859_v29, 4 }
 0x1d3   : > { %19622 = vst [vmem:[#allocation20_spill] sm:$0xff] %v16992_v17  ;;  %v4090_v49 = vshrl.u32 %v12410_v38, 16  ;;  %v15159_v17 = vld [vmem:[%s15568_s8 + $0xcc] sm:$0xff]  }
 0x1d4   : > { %v17090_v47 = vrot.slane %v4069_v23, 5  ;;  %v4868_v23 = vrot.slane %v4866_v7, 4 }
 0x1d7   : > { %13730 = vmatmul.mubr.bf16.vlgmr.msra.gmra.mrb[0].mxu0 %v15138_v0  ;;  %v17047_v0 = vld [vmem:[%s15568_s8 + $0x88] sm:$0xf] }
 0x1d8   : > { %13762 = vmatpush3.bf16.msra.mxu0 %v15139_v25  ;;  %13733 = vmatprep.mubr.bf16.mxu0 %v15140_v33  ;;  %v17020_v25 = vld [vmem:[%s15568_s8 + $0x20] sm:$0x1]  ;;  %v17050_v33 = vld [vmem:[%s15568_s8 + $0x8c] sm:$0x1] }
 0x1d9   : > { %13763 = vmatprep.subr.bf16.mxu0 %v15142_v2  ;;  %v4037_v48 = vshll.u32 %v17020_v25, 16 }
 0x1dc   : > { %13764 = vmatpush3.bf16.msra.mxu0 %v15142_v2  ;;  %v4061_v2 = vshll.u32 %v17037_v44, 16 }
 0x1dd   : > { %13765 = vmatprep.subr.bf16.mxu0 %v15145_v18 }
 0x1de   : > { %v17080_v63 = vrot.slane %v4061_v2, 5 }
 0x1df   : > { %13734 = vmatmul.mubr.bf16.gmra.mrb[4].mxu0 %v15141_v55  ;;  %v12498_v55 = vld [vmem:[%s15568_s8 + $0x84] sm:$0xe] }
 0x1e0   : > { %13737 = vmatprep.mubr.bf16.mxu0 %v15143_v9  ;;  %13766 = vmatpush3.bf16.msra.mxu0 %v15145_v18  ;;  %v4066_v18 = vshrl.u32 %v12407_v54, 16  ;;  %v4852_v9 = vrot.slane %v17047_v0, 5  ;;  %v12500_v54 = vld [vmem:[%s15568_s8 + $0x9c] sm:$0xe] }
 0x1e1   : > { %13767 = vmatprep.subr.bf16.mxu0 %v15148_v34  ;;  %v12516_v2 = vrot.slane %v12500_v54, 9 }
 0x1e2   : > { %v17082_v41 = vrot.slane %v4066_v18, 4 }
 0x1e4   : > { %13768 = vmatpush3.bf16.msra.mxu0 %v15148_v34  ;;  %v4855_v34 = vrot.slane %v17050_v33, 5  ;;  %v4072_v18 = vor.u32 %v17090_v47, %v17082_v41  ;;  %v17144_v41 = vrot.slane %v4090_v49, 4 }
 0x1e5   : > { %13769 = vmatprep.subr.bf16.mxu0 %v15151_v31 }
 0x1e7   : > { %13738 = vmatmul.mubr.bf16.gmra.mrb[8].mxu0 %v15144_v35  ;;  %v4854_v35 = vrot.slane %v4852_v9, 4 }
 0x1e8   : > { %13741 = vmatprep.mubr.bf16.mxu0 %v15146_v60  ;;  %13770 = vmatpush3.bf16.msra.mxu0 %v15151_v31  ;;  %v12514_v31 = vrot.slane %v12498_v55, 9  ;;  %v17070_v60 = vrot.slane %v4037_v48, 5  ;;  %v17119_v48 = vrot.slane %v4058_v10, 4  ;;  %v17124_v55 = vrot.slane %v4075_v62, 5 }
 0x1e9   : > { %13771 = vmatprep.subr.bf16.mxu0 %v15154_v5  ;;  %v17087_v30 = vsel %vm15982_vm5, %v4854_v35, %v4855_v34  ;;  %v4085_v35 = vshll.u32 %v17099_v61, 16  ;;  %v17141_v10 = vsel %vm15982_vm5, %v12516_v2, %v4866_v7 }
 0x1ea   : > { %v17077_v21 = vsel %vm15982_vm5, %v12514_v31, %v4852_v9  ;;  %19626 = vst [vmem:[#allocation28_spill] sm:$0xff] %v17087_v30  ;;  %v17127_v9 = vld [vmem:[%s15568_s8 + $0x44] sm:$0x1]  ;;  %v15153_v31 = vld [vmem:[%s15568_s8 + $0x9c] sm:$0xff]   ;;  %19629 = vst [vmem:[#allocation10_spill] sm:$0xff] %v17141_v10  ;;  %v4040_v54 = vsel %vm15640_vm2, %v17066_v32, %v17070_v60 }
 0x1eb   : > { %19625 = vst [vmem:[#allocation25_spill] sm:$0xff] %v17077_v21  ;;  %v17188_v32 = vld [vmem:[%s15568_s8 + $0xbc] sm:$0x1]  ;;  %v12501_v60 = vld [vmem:[%s15568_s8 + $0xa8] sm:$0xe]  ;;  %v17201_v19 = vrot.slane %v4085_v35, 5 }
 0x1ec   : > { %13772 = vmatpush3.bf16.msra.mxu0 %v15154_v5  ;;  %v17072_v5 = vrot.slane %v4048_v43, 4  ;;  %v4883_v47 = vrot.slane %v17188_v32, 5 }
 0x1ed   : > { %13773 = vmatprep.subr.bf16.mxu0 %v15157_v58 }
 0x1ee   : > { %v4054_v7 = vsel %vm15640_vm2, %v17072_v5, %v17044_v22 }
 0x1ef   : > { %13742 = vmatmul.mubr.bf16.gmra.mrb[12].mxu0 %v15147_v14  ;;  %v17111_v14 = vld [vmem:[%s15568_s8 + $0xa4] sm:$0x1] }
 0x1f0   : > { %13745 = vmatprep.mubr.bf16.mxu0 %v15149_v28  ;;  %13774 = vmatpush3.bf16.msra.mxu0 %v15157_v58  ;;  %v17094_v58 = vld [vmem:[%s15568_s8 + $0x40] sm:$0xf]  ;;  %v4093_v28 = vshll.u32 %v12410_v38, 16  ;;  %v4869_v8 = vrot.slane %v17111_v14, 5  ;;  %v4081_v38 = vrot.slane %v4079_v36, 4 }
 0x1f1   : > { %13775 = vmatprep.subr.bf16.mxu0 %v15160_v57  ;;  %v4099_v43 = vshll.u32 %v17094_v58, 16 }
 0x1f2   : > { %v17146_v62 = vrot.slane %v4093_v28, 5  ;;  %v17152_v36 = vsel %vm15982_vm5, %v4868_v23, %v4869_v8  ;;  %v4030_v28 = vsel %vm15640_vm2, %v17064_v45, %v17016_v52  ;;  %v17174_v8 = vld [vmem:[%s15568_s8 + $0xac] sm:$0xf]  ;;  %v4064_v52 = vsel %vm15640_vm2, %v17119_v48, %v17080_v63 }
 0x1f3   : > { %19630 = vst [vmem:[#allocation16_spill] sm:$0xff] %v17152_v36  ;;  %v4082_v45 = vor.u32 %v4081_v38, %v17124_v55  ;;  %v4873_v22 = vrot.slane %v17174_v8, 5  ;;  %v12517_v23 = vrot.slane %v12501_v60, 9  ;;  %v17196_v63 = vrot.slane %v4072_v18, 4  ;;  %v17199_v48 = vld [vmem:[%s15568_s8 + $0x4c] sm:$0xf] }
 0x1f4   : > { %13776 = vmatpush3.bf16.msra.mxu0 %v15160_v57  ;;  %v12515_v57 = vrot.slane %v12499_v27, 9  ;;  %v17154_v27 = vrot.slane %v4099_v43, 5  ;;  %v17177_v43 = vld [vmem:[%s15568_s8 + $0xb0] sm:$0x1]  ;;  %v17206_v36 = vld [vmem:[%s15568_s8 + $0x54] sm:$0xf]  ;;  %v17242_v30 = vcombine.low %v4054_v7, %v4064_v52 }
 0x1f5   : > { %13809 = vmatprep.subr.bf16.mxu0 %v17059_v42  ;;  %v4876_v5 = vrot.slane %v17177_v43, 5  ;;  %v4875_v40 = vrot.slane %v4873_v22, 4  ;;  %v17210_v60 = vsel %vm15982_vm5, %v12517_v23, %v4873_v22  ;;  %v17213_v18 = vrot.slane %v4082_v45, 4  ;;  %v12503_v7 = vld [vmem:[%s15568_s8 + $0xc0] sm:$0xe] }
 0x1f6   : > { %v17131_v34 = vsel %vm15982_vm5, %v12515_v57, %v4859_v29  ;;  %v4103_v29 = vshrl.u32 %v17094_v58, 16  ;;  %v12413_v57 = vld [vmem:[%s15568_s8 + $0x48] sm:$0xf]  ;;  %19631 = vst [vmem:[#allocation11_spill] sm:$0xff] %v17210_v60  ;;  %v4123_v23 = vshll.u32 %v17199_v48, 16  ;;  %v4141_v11 = vshll.u32 %v17206_v36, 16 }
 0x1f7   : > { %13746 = vmatmul.mubr.bf16.gmra.mrb[16].mxu0 %v15150_v16  ;;  %19627 = vst [vmem:[#allocation15_spill] sm:$0xff] %v17131_v34  ;;  %v17137_v16 = vsel %vm15982_vm5, %v4861_v59, %v4862_v13  ;;  %v4109_v13 = vshll.u32 %v17127_v9, 16  ;;  %v17180_v59 = vld [vmem:[%s15568_s8 + $0xb8] sm:$0xf]  ;;  %v4114_v2 = vshrl.u32 %v12413_v57, 16  ;;  %v4117_v38 = vshll.u32 %v12413_v57, 16 }
 0x1f8   : > { %13749 = vmatprep.mubr.bf16.mxu0 %v15152_v3  ;;  %19628 = vst [vmem:[#allocation9_spill] sm:$0xff] %v17137_v16  ;;  %v15155_v3 = vld [vmem:[%s15568_s8 + $0xa8] sm:$0xff]   ;;  %v4880_v49 = vrot.slane %v17180_v59, 5  ;;  %v15156_v16 = vld [vmem:[%s15568_s8 + $0xb4] sm:$0xff]   ;;  %v17219_v57 = vsel %vm15982_vm5, %v4875_v40, %v4876_v5  ;;  %v17236_v40 = vld [vmem:[%s15568_s8 + $0x50] sm:$0x1] }
 0x1f9   : > { %v17215_v34 = vrot.slane %v4109_v13, 5  ;;  %19632 = vst [vmem:[#allocation13_spill] sm:$0xff] %v17219_v57  ;;  %v17226_v22 = vrot.slane %v4114_v2, 4  ;;  %19635 = vst [vmem:[#allocation14_spill] sm:$0xff] %v17236_v40  ;;  %v4119_v5 = vrot.slane %v4117_v38, 5  ;;  %v4096_v13 = vor.u32 %v17146_v62, %v17144_v41 }
 0x1fa   : > { %v4882_v10 = vrot.slane %v4880_v49, 4  ;;  %v17253_v57 = vld [vmem:[%s15568_s8 + $0xd0] sm:$0xf]  ;;  %v4078_v38 = vsel %vm15640_vm2, %v17196_v63, %v17124_v55  ;;  %v17267_v52 = vrot.slane %v4123_v23, 5  ;;  %v12504_v2 = vld [vmem:[%s15568_s8 + $0xcc] sm:$0xe] }
 0x1fb   : > { %v12520_v21 = vrot.slane %v12504_v2, 9  ;;  %v4120_v20 = vor.u32 %v4119_v5, %v17226_v22 }
 0x1fc   : > { %v17233_v45 = vsel %vm15982_vm5, %v4882_v10, %v4883_v47  ;;  %v17247_v10 = vld [vmem:[%s15568_s8 + $0xc4] sm:$0xf]  ;;  %v17250_v47 = vld [vmem:[%s15568_s8 + $0xc8] sm:$0x1] }
 0x1fd   : > { %19634 = vst [vmem:[#allocation18_spill] sm:$0xff] %v17233_v45  ;;  %v4887_v41 = vrot.slane %v17247_v10, 5  ;;  %v4890_v62 = vrot.slane %v17250_v47, 5  ;;  %v4894_v45 = vrot.slane %v17253_v57, 5  ;;  %v19660_v15 = vld [vmem:[#allocation11_spill] sm:$0xff] }
 0x1ff   : > { %13750 = vmatmul.mubr.bf16.gmra.mrb[20].mxu0 %v15153_v31  ;;  %v12502_v31 = vld [vmem:[%s15568_s8 + $0xb4] sm:$0xe]  ;;  %v4889_v60 = vrot.slane %v4887_v41, 4 }
 0x200   : > { %13753 = vmatprep.mubr.bf16.mxu0 %v15155_v3  ;;  %v12518_v53 = vrot.slane %v12502_v31, 9  ;;  %v17203_v3 = vrot.slane %v4103_v29, 4  ;;  %v15158_v29 = vld [vmem:[%s15568_s8 + $0xc0] sm:$0xff]   ;;  %v12465_v31 = vcombine.low %v4030_v28, %v4040_v54  ;;  %v17262_v54 = vld [vmem:[%s15568_s8 + $0xd4] sm:$0x1] }
 0x201   : > { %v4897_v55 = vrot.slane %v17262_v54, 5  ;;  %v17288_v2 = vsel %vm15982_vm5, %v4889_v60, %v4890_v62 }
 0x202   : > { %v17223_v35 = vsel %vm15982_vm5, %v12518_v53, %v4880_v49  ;;  %v4127_v53 = vshrl.u32 %v17199_v48, 16  ;;  %v4138_v49 = vshrl.u32 %v17206_v36, 16  ;;  %v4106_v28 = vor.u32 %v17203_v3, %v17154_v27  ;;  %19637 = vst [vmem:[#allocation22_spill] sm:$0xff] %v17288_v2 }
 0x203   : > { %19633 = vst [vmem:[#allocation12_spill] sm:$0xff] %v17223_v35  ;;  %v4133_v3 = vshll.u32 %v17236_v40, 16  ;;  %v12419_v35 = vld [vmem:[%s15568_s8 + $0x60] sm:$0xf]  ;;  %v17292_v36 = vsel %vm15982_vm5, %v12520_v21, %v4894_v45  ;;  %v17300_v40 = vrot.slane %v4096_v13, 4 }
 0x204   : > { %v4129_v63 = vrot.slane %v4127_v53, 4  ;;  %v4151_v53 = vshrl.u32 %v16968_v12, 16  ;;  %19638 = vst [vmem:[#allocation23_spill] sm:$0xff] %v17292_v36  ;;  %v4162_v22 = vshrl.u32 %v12419_v35, 16  ;;  %v4165_v5 = vshll.u32 %v12419_v35, 16  ;;  %v17318_v21 = vld [vmem:[#allocation3] sm:$0xff]  }
 0x205   : > { %v4088_v35 = vsel %vm15640_vm2, %v17213_v18, %v17201_v19  ;;  %v4140_v62 = vrot.slane %v4138_v49, 4  ;;  %v12422_v13 = vld [vmem:[%s15568_s8 + $0x6c] sm:$0xf]  ;;  %v4157_v19 = vshll.u32 %v16971_v24, 16  ;;  %v17322_v18 = vld [vmem:[%s15568_s8 + $0x68] sm:$0x1]  ;;  %14337 = vmatprep.subr.bf16.mxu1 %v17318_v21 }
 0x206   : > { %v4130_v12 = vor.u32 %v4129_v63, %v17267_v52  ;;  %v17314_v63 = vrot.slane %v4133_v3, 5  ;;  %v4153_v2 = vrot.slane %v4151_v53, 4  ;;  %19640 = vst [vmem:[#allocation26_spill] sm:$0xff] %v17322_v18  ;;  %v4164_v49 = vrot.slane %v4162_v22, 4  ;;  %14345 = vmatpush3.bf16.msra.mxu1 %v17318_v21 }
 0x207   : > { %13754 = vmatmul.mubr.bf16.gmra.mrb[24].mxu0 %v15156_v16  ;;  %v12519_v16 = vrot.slane %v12503_v7, 9  ;;  %v4896_v7 = vrot.slane %v4894_v45, 4  ;;  %v17310_v45 = vrot.slane %v4106_v28, 4  ;;  %v4167_v28 = vrot.slane %v4165_v5, 5 }
 0x208   : > { %13757 = vmatprep.mubr.bf16.mxu0 %v15158_v29  ;;  %v17277_v29 = vld [vmem:[%s15568_s8 + $0x64] sm:$0xf]  ;;  %v12467_v36 = vcombine.low %v4078_v38, %v4088_v35  ;;  %v4186_v3 = vshrl.u32 %v12422_v13, 16  ;;  %v4199_v24 = vshrl.u32 %v17002_v6, 16  ;;  %v4102_v38 = vsel %vm15640_vm2, %v17300_v40, %v17154_v27  ;;  %v17345_v35 = vld [vmem:[%s15568_s8 + $0x7c] sm:$0xf] }
 0x209   : > { %v17281_v23 = vsel %vm15982_vm5, %v12519_v16, %v4887_v41  ;;  %v17298_v16 = vsel %vm15982_vm5, %v4896_v7, %v4897_v55  ;;  %v4171_v60 = vshll.u32 %v17277_v29, 16  ;;  %v4175_v55 = vshrl.u32 %v17277_v29, 16  ;;  %19641 = vst [vmem:[#allocation29_spill] sm:$0xff] %v17345_v35  ;;  %v15162_v27 = vld [vmem:[%s19440_s1 + $0x208] sm:$0xff]  }
 0x20a   : > { %19636 = vst [vmem:[#allocation19_spill] sm:$0xff] %v17281_v23  ;;  %19639 = vst [vmem:[#allocation24_spill] sm:$0xff] %v17298_v16  ;;  %v4143_v7 = vrot.slane %v4141_v11, 5  ;;  %v17316_v41 = vrot.slane %v4147_v50, 5  ;;  %v4121_v16 = vrot.slane %v4120_v20, 4  ;;  %v4131_v23 = vrot.slane %v4130_v12, 4 }
 0x20b   : > { %v12425_v11 = vld [vmem:[%s15568_s8 + $0x78] sm:$0xf]  ;;  %v17327_v50 = vld [vmem:[#allocation3 + $0x8] sm:$0xff]   ;;  %v4177_v53 = vrot.slane %v4175_v55, 4  ;;  %v4195_v20 = vshll.u32 %v17002_v6, 16  ;;  %v4112_v22 = vsel %vm15640_vm2, %v17310_v45, %v17215_v34  ;;  %v4181_v6 = vshll.u32 %v17322_v18, 16 }
 0x20c   : > { %v4144_v5 = vor.u32 %v4143_v7, %v4140_v62  ;;  %v4154_v12 = vor.u32 %v4153_v2, %v17316_v41  ;;  %14338 = vmatprep.subr.bf16.mxu1 %v17327_v50  ;;  %v4210_v55 = vshrl.u32 %v12425_v11, 16  ;;  %v4126_v34 = vsel %vm15640_vm2, %v4121_v16, %v17267_v52 }
 0x20d   : > { %v4136_v40 = vsel %vm15640_vm2, %v4131_v23, %v17314_v63  ;;  %v17356_v2 = vrot.slane %v4157_v19, 5  ;;  %v4188_v45 = vrot.slane %v4186_v3, 4  ;;  %14346 = vmatpush3.bf16.msra.mxu1 %v17327_v50  ;;  %v4219_v16 = vshll.u32 %v17345_v35, 16 }
 0x20e   : > { %v4145_v18 = vrot.slane %v4144_v5, 4  ;;  %v4155_v52 = vrot.slane %v4154_v12, 4  ;;  %v4223_v23 = vshrl.u32 %v17345_v35, 16  ;;  %v4183_v19 = vrot.slane %v4181_v6, 5 }
 0x20f   : > { %13758 = vmatmul.mubr.bf16.gmra.mrb[28].mxu0 %v15159_v17  ;;  %v17324_v17 = vrot.slane %v4171_v60, 5  ;;  %v4168_v60 = vor.u32 %v4167_v28, %v4164_v49  ;;  %v17359_v49 = vrot.slane %v4195_v20, 5  ;;  %v4201_v28 = vrot.slane %v4199_v24, 4 }
 0x210   : > { %13777 = vmatprep.mubr.bf16.mxu0 %v12465_v31  ;;  %v4189_v31 = vshll.u32 %v12422_v13, 16  ;;  %v4213_v13 = vshll.u32 %v12425_v11, 16  ;;  %v12428_v11 = vld [vmem:[%s15568_s8 + $0x84] sm:$0xf]  ;;  %v4212_v3 = vrot.slane %v4210_v55, 4  ;;  %v4243_v24 = vshll.u32 %v17047_v0, 16 }
 0x211   : > { %v4178_v62 = vor.u32 %v4177_v53, %v17324_v17  ;;  %v4169_v63 = vrot.slane %v4168_v60, 4  ;;  %v4234_v20 = vshrl.u32 %v12428_v11, 16  ;;  %v4247_v5 = vshrl.u32 %v17047_v0, 16 }
 0x212   : > { %v4191_v7 = vrot.slane %v4189_v31, 5  ;;  %v4215_v53 = vrot.slane %v4213_v13, 5  ;;  %v15163_v31 = vld [vmem:[%s19440_s1 + $0x210] sm:$0xff]   ;;  %v4205_v60 = vshll.u32 %v17005_v37, 16  ;;  %v12468_v6 = vcombine.low %v4102_v38, %v4112_v22  ;;  %v15164_v22 = vld [vmem:[%s19440_s1 + $0x218] sm:$0xff]  }
 0x213   : > { %v4179_v12 = vrot.slane %v4178_v62, 4  ;;  %v12469_v55 = vcombine.low %v4126_v34, %v4136_v40  ;;  %v17374_v13 = vrot.slane %v4219_v16, 5  ;;  %v4225_v35 = vrot.slane %v4223_v23, 4  ;;  %v17386_v62 = vld [vmem:[%s15568_s8 + $0x80] sm:$0x1] }
 0x214   : > { %v4160_v0 = vsel %vm15640_vm2, %v4155_v52, %v17356_v2  ;;  %v4216_v37 = vor.u32 %v4215_v53, %v4212_v3  ;;  %v12431_v38 = vld [vmem:[%s15568_s8 + $0x90] sm:$0xf]  ;;  %v4229_v52 = vshll.u32 %v17386_v62, 16  ;;  %v4271_v3 = vshrl.u32 %v17102_v51, 16 }
 0x215   : > { %v4184_v40 = vsel %vm15640_vm2, %v4179_v12, %v4183_v19  ;;  %v4258_v16 = vshrl.u32 %v12431_v38, 16  ;;  %v4261_v23 = vshll.u32 %v12431_v38, 16 }
 0x216   : > { %v4217_v19 = vrot.slane %v4216_v37, 4  ;;  %v4273_v37 = vrot.slane %v4271_v3, 4 }
 0x217   : > { %13778 = vmatmul.mubr.bf16.vlgmr.msra.gmra.mrb[0].mxu0 %v17242_v30  ;;  %v4237_v30 = vshll.u32 %v12428_v11, 16  ;;  %v4150_v11 = vsel %vm15640_vm2, %v4145_v18, %v17316_v41  ;;  %v17392_v41 = vrot.slane %v4243_v24, 5  ;;  %v4249_v18 = vrot.slane %v4247_v5, 4  ;;  %v12434_v24 = vld [vmem:[%s15568_s8 + $0x9c] sm:$0xf] }
 0x218   : > { %13810 = vmatpush3.bf16.msra.mxu0 %v17059_v42  ;;  %13781 = vmatprep.mubr.bf16.mxu0 %v12467_v36  ;;  %v4192_v42 = vor.u32 %v4191_v7, %v4188_v45  ;;  %v4202_v36 = vor.u32 %v4201_v28, %v17359_v49  ;;  %v4174_v45 = vsel %vm15640_vm2, %v4169_v63, %v17324_v17  ;;  %v4207_v17 = vrot.slane %v4205_v60, 5 }
 0x219   : > { %13811 = vmatprep.subr.bf16.mxu0 %v15162_v27  ;;  %v4239_v34 = vrot.slane %v4237_v30, 5  ;;  %v4226_v28 = vor.u32 %v4225_v35, %v17374_v13  ;;  %v4267_v63 = vshll.u32 %v17102_v51, 16  ;;  %v4253_v30 = vshll.u32 %v17050_v33, 16  ;;  %v15165_v35 = vld [vmem:[%s19440_s1 + $0x220] sm:$0xff]  }
 0x21a   : > { %v4193_v2 = vrot.slane %v4192_v42, 4  ;;  %v4203_v7 = vrot.slane %v4202_v36, 4  ;;  %v12470_v5 = vcombine.low %v4150_v11, %v4160_v0  ;;  %v12471_v12 = vcombine.low %v4174_v45, %v4184_v40 }
 0x21b   : > { %v4227_v42 = vrot.slane %v4226_v28, 4  ;;  %v4231_v36 = vrot.slane %v4229_v52, 5  ;;  %v4260_v60 = vrot.slane %v4258_v16, 4  ;;  %v17412_v33 = vrot.slane %v4267_v63, 5 }
 0x21c   : > { %13812 = vmatpush3.bf16.msra.mxu0 %v15162_v27  ;;  %v4236_v27 = vrot.slane %v4234_v20, 4  ;;  %v4250_v20 = vor.u32 %v4249_v18, %v17392_v41  ;;  %v4208_v51 = vsel %vm15640_vm2, %v4203_v7, %v4207_v17  ;;  %v4282_v38 = vshrl.u32 %v12434_v24, 16 }
 0x21d   : > { %13813 = vmatprep.subr.bf16.mxu0 %v15163_v31  ;;  %v4222_v11 = vsel %vm15640_vm2, %v4217_v19, %v17374_v13  ;;  %v4255_v45 = vrot.slane %v4253_v30, 5  ;;  %v4291_v18 = vshll.u32 %v17108_v26, 16  ;;  %v4232_v7 = vsel %vm15640_vm2, %v4227_v42, %v4231_v36 }
 0x21e   : > { %v4240_v53 = vor.u32 %v4239_v34, %v4236_v27  ;;  %v4285_v27 = vshll.u32 %v12434_v24, 16  ;;  %v15166_v34 = vld [vmem:[%s19440_s1 + $0x228] sm:$0xff]   ;;  %v4277_v13 = vshll.u32 %v17105_v1, 16  ;;  %v4315_v17 = vshll.u32 %v17174_v8, 16 }
 0x21f   : > { %13782 = vmatmul.mubr.bf16.gmra.mrb[4].mxu0 %v12468_v6  ;;  %v4263_v6 = vrot.slane %v4261_v23, 5  ;;  %v4319_v28 = vshrl.u32 %v17174_v8, 16  ;;  %v4274_v16 = vor.u32 %v4273_v37, %v17412_v33  ;;  %v4284_v23 = vrot.slane %v4282_v38, 4  ;;  %v15167_v8 = vld [vmem:[%s19440_s1 + $0x230] sm:$0xff]  }
 0x220   : > { %13785 = vmatprep.mubr.bf16.mxu0 %v12469_v55  ;;  %13814 = vmatpush3.bf16.msra.mxu0 %v15163_v31  ;;  %v4198_v31 = vsel %vm15640_vm2, %v4193_v2, %v17359_v49  ;;  %v12437_v55 = vld [vmem:[%s15568_s8 + $0xa8] sm:$0xf]  ;;  %v4241_v0 = vrot.slane %v4240_v53, 4  ;;  %v4251_v49 = vrot.slane %v4250_v20, 4  ;;  %v17436_v19 = vrot.slane %v4291_v18, 5 }
 0x221   : > { %13815 = vmatprep.subr.bf16.mxu0 %v15164_v22  ;;  %v4306_v40 = vshrl.u32 %v12437_v55, 16  ;;  %v4309_v2 = vshll.u32 %v12437_v55, 16  ;;  %v4264_v52 = vor.u32 %v4263_v6, %v4260_v60  ;;  %v12472_v63 = vcombine.low %v4198_v31, %v4208_v51  ;;  %v15168_v6 = vld [vmem:[%s19440_s1 + $0x238] sm:$0xff]  }
 0x222   : > { %v4246_v3 = vsel %vm15640_vm2, %v4241_v0, %v17392_v41  ;;  %v4256_v1 = vsel %vm15640_vm2, %v4251_v49, %v4255_v45  ;;  %v4279_v24 = vrot.slane %v4277_v13, 5  ;;  %v12440_v41 = vld [vmem:[%s15568_s8 + $0xb4] sm:$0xf]  ;;  %v4275_v51 = vrot.slane %v4274_v16, 4 }
 0x223   : > { %v4308_v20 = vrot.slane %v4306_v40, 4  ;;  %v4311_v30 = vrot.slane %v4309_v2, 5  ;;  %v4265_v31 = vrot.slane %v4264_v52, 4  ;;  %v4301_v36 = vshll.u32 %v17111_v14, 16 }
 0x224   : > { %13816 = vmatpush3.bf16.msra.mxu0 %v15164_v22  ;;  %v4295_v22 = vshrl.u32 %v17108_v26, 16  ;;  %v4287_v26 = vrot.slane %v4285_v27, 5  ;;  %v12474_v60 = vcombine.low %v4246_v3, %v4256_v1  ;;  %v4325_v38 = vshll.u32 %v17177_v43, 16 }
 0x225   : > { %13817 = vmatprep.subr.bf16.mxu0 %v15165_v35  ;;  %v4312_v37 = vor.u32 %v4311_v30, %v4308_v20  ;;  %v4330_v27 = vshrl.u32 %v12440_v41, 16  ;;  %v4333_v49 = vshll.u32 %v12440_v41, 16  ;;  %v4339_v14 = vshll.u32 %v17180_v59, 16  ;;  %v12446_v20 = vld [vmem:[%s15568_s8 + $0xcc] sm:$0xf] }
 0x226   : > { %v4297_v53 = vrot.slane %v4295_v22, 4  ;;  %v4288_v42 = vor.u32 %v4287_v26, %v4284_v23  ;;  %v4343_v45 = vshrl.u32 %v17180_v59, 16  ;;  %v4280_v18 = vsel %vm15640_vm2, %v4275_v51, %v4279_v24 }
 0x227   : > { %13786 = vmatmul.mubr.bf16.gmra.mrb[8].mxu0 %v12470_v5  ;;  %v17438_v5 = vrot.slane %v4315_v17, 5  ;;  %v4303_v43 = vrot.slane %v4301_v36, 5  ;;  %v4367_v13 = vshrl.u32 %v17247_v10, 16  ;;  %v4313_v17 = vrot.slane %v4312_v37, 4 }
 0x228   : > { %13789 = vmatprep.mubr.bf16.mxu0 %v12471_v12  ;;  %13818 = vmatpush3.bf16.msra.mxu0 %v15165_v35  ;;  %v12473_v35 = vcombine.low %v4222_v11, %v4232_v7  ;;  %v4321_v12 = vrot.slane %v4319_v28, 4  ;;  %v4298_v55 = vor.u32 %v4297_v53, %v17436_v19  ;;  %v12443_v11 = vld [vmem:[%s15568_s8 + $0xc0] sm:$0xf]  ;;  %v4289_v22 = vrot.slane %v4288_v42, 4 }
 0x229   : > { %13819 = vmatprep.subr.bf16.mxu0 %v15166_v34  ;;  %v4354_v40 = vshrl.u32 %v12443_v11, 16  ;;  %v4357_v2 = vshll.u32 %v12443_v11, 16  ;;  %v4363_v7 = vshll.u32 %v17247_v10, 16  ;;  %v4327_v28 = vrot.slane %v4325_v38, 5 }
 0x22a   : > { %v4322_v0 = vor.u32 %v4321_v12, %v17438_v5  ;;  %v4299_v59 = vrot.slane %v4298_v55, 4  ;;  %v4332_v52 = vrot.slane %v4330_v27, 4  ;;  %v4341_v23 = vrot.slane %v4339_v14, 5 }
 0x22b   : > { %v4345_v26 = vrot.slane %v4343_v45, 4  ;;  %v4356_v3 = vrot.slane %v4354_v40, 4  ;;  %v4359_v1 = vrot.slane %v4357_v2, 5  ;;  %v4369_v53 = vrot.slane %v4367_v13, 4 }
 0x22c   : > { %13820 = vmatpush3.bf16.msra.mxu0 %v15166_v34  ;;  %v4270_v34 = vsel %vm15640_vm2, %v4265_v31, %v17412_v33  ;;  %v4323_v16 = vrot.slane %v4322_v0, 4  ;;  %v4335_v33 = vrot.slane %v4333_v49, 5  ;;  %v4294_v10 = vsel %vm15640_vm2, %v4289_v22, %v17436_v19 }
 0x22d   : > { %13821 = vmatprep.subr.bf16.mxu0 %v15167_v8  ;;  %v4304_v30 = vsel %vm15640_vm2, %v4299_v59, %v4303_v43  ;;  %v4318_v24 = vsel %vm15640_vm2, %v4313_v17, %v17438_v5  ;;  %v4346_v31 = vor.u32 %v4345_v26, %v4341_v23  ;;  %v4378_v51 = vshrl.u32 %v12446_v20, 16  ;;  %v12489_v59 = vld [vmem:[%s15568_s8 + $0x18] sm:$0xe] }
 0x22e   : > { %v4328_v12 = vsel %vm15640_vm2, %v4323_v16, %v4327_v28  ;;  %v4336_v41 = vor.u32 %v4335_v33, %v4332_v52  ;;  %v4381_v42 = vshll.u32 %v12446_v20, 16  ;;  %v4387_v19 = vshll.u32 %v17253_v57, 16 }
 0x22f   : > { %13790 = vmatmul.mubr.bf16.gmra.mrb[12].mxu0 %v12472_v63  ;;  %v12475_v63 = vcombine.low %v4270_v34, %v4280_v18  ;;  %v4391_v36 = vshrl.u32 %v17253_v57, 16  ;;  %v12477_v37 = vcombine.low %v4318_v24, %v4328_v12  ;;  %v4347_v5 = vrot.slane %v4346_v31, 4 }
 0x230   : > { %13793 = vmatprep.mubr.bf16.mxu0 %v12473_v35  ;;  %13822 = vmatpush3.bf16.msra.mxu0 %v15167_v8  ;;  %v4365_v8 = vrot.slane %v4363_v7, 5  ;;  %v4349_v35 = vshll.u32 %v17188_v32, 16  ;;  %v4373_v32 = vshll.u32 %v17250_v47, 16  ;;  %v4337_v38 = vrot.slane %v4336_v41, 4 }
 0x231   : > { %13823 = vmatprep.subr.bf16.mxu0 %v15168_v6  ;;  %v4380_v11 = vrot.slane %v4378_v51, 4  ;;  %v4383_v0 = vrot.slane %v4381_v42, 5  ;;  %v4389_v49 = vrot.slane %v4387_v19, 5  ;;  %v4393_v14 = vrot.slane %v4391_v36, 4  ;;  %v12492_v36 = vld [vmem:[%s15568_s8 + $0x3c] sm:$0xe] }
 0x232   : > { %v4370_v55 = vor.u32 %v4369_v53, %v4365_v8  ;;  %v4351_v27 = vrot.slane %v4349_v35, 5  ;;  %v4375_v18 = vrot.slane %v4373_v32, 5  ;;  %v4342_v57 = vsel %vm15640_vm2, %v4337_v38, %v4341_v23  ;;  %v12490_v53 = vld [vmem:[%s15568_s8 + $0x24] sm:$0xe] }
 0x233   : > { %v4384_v22 = vor.u32 %v4383_v0, %v4380_v11  ;;  %v4394_v43 = vor.u32 %v4393_v14, %v4389_v49  ;;  %v4397_v40 = vshll.u32 %v17262_v54, 16  ;;  %v4789_v13 = vrot.slane %v16982_v46, 5 }
 0x234   : > { %13824 = vmatpush3.bf16.msra.mxu0 %v15168_v6  ;;  %v4360_v6 = vor.u32 %v4359_v1, %v4356_v3  ;;  %v4371_v34 = vrot.slane %v4370_v55, 4  ;;  %v4352_v47 = vsel %vm15640_vm2, %v4347_v5, %v4351_v27  ;;  %v12505_v23 = vrot.slane %v12489_v59, 9 }
 0x235   : > { %13857 = vmatprep.subr.bf16.mxu0 %v17318_v21  ;;  %v12478_v17 = vcombine.low %v4342_v57, %v4352_v47  ;;  %v4385_v52 = vrot.slane %v4384_v22, 4  ;;  %v4395_v16 = vrot.slane %v4394_v43, 4  ;;  %v4399_v33 = vrot.slane %v4397_v40, 5  ;;  %v19643_v22 = vld [vmem:[#allocation26_spill] sm:$0xff] }
 0x236   : > { %v4361_v45 = vrot.slane %v4360_v6, 4  ;;  %v4376_v7 = vsel %vm15640_vm2, %v4371_v34, %v4375_v18  ;;  %v4791_v26 = vrot.slane %v4789_v13, 4  ;;  %v4792_v54 = vrot.slane %v17020_v25, 5  ;;  %v12491_v25 = vld [vmem:[%s15568_s8 + $0x30] sm:$0xe] }
 0x237   : > { %13794 = vmatmul.mubr.bf16.gmra.mrb[16].mxu0 %v12474_v60  ;;  %v12476_v60 = vcombine.low %v4294_v10, %v4304_v30  ;;  %v4400_v46 = vsel %vm15640_vm2, %v4395_v16, %v4399_v33  ;;  %v4796_v3 = vrot.slane %v17008_v39, 5  ;;  %v4790_v1 = vsel %vm15982_vm5, %v12505_v23, %v4789_v13 }
 0x238   : > { %13797 = vmatprep.mubr.bf16.mxu0 %v12475_v63  ;;  %v4366_v2 = vsel %vm15640_vm2, %v4361_v45, %v4365_v8  ;;  %v4390_v63 = vsel %vm15640_vm2, %v4385_v52, %v4389_v49  ;;  %v4793_v8 = vsel %vm15982_vm5, %v4791_v26, %v4792_v54  ;;  %v4803_v20 = vrot.slane %v17062_v56, 5  ;;  %v12495_v45 = vld [vmem:[%s15568_s8 + $0x60] sm:$0xe]  ;;  %v19646_v52 = vld [vmem:[#allocation20_spill] sm:$0xff] }
 0x239   : > { %v12479_v28 = vcombine.low %v4366_v2, %v4376_v7  ;;  %v12480_v10 = vcombine.low %v4390_v63, %v4400_v46  ;;  %v12537_v30 = vcombine.low %v4790_v1, %v4793_v8  ;;  %v12506_v35 = vrot.slane %v12490_v53, 9  ;;  %v12497_v7 = vld [vmem:[%s15568_s8 + $0x78] sm:$0xe]  ;;  %v19648_v54 = vld [vmem:[#allocation21_spill] sm:$0xff]  ;;  %v19649_v63 = vld [vmem:[#allocation27_spill] sm:$0xff] }
 0x23a   : > { %v4798_v24 = vrot.slane %v4796_v3, 4  ;;  %v4799_v12 = vrot.slane %v17037_v44, 5  ;;  %v12507_v41 = vrot.slane %v12491_v25, 9  ;;  %v4805_v39 = vrot.slane %v4803_v20, 4  ;;  %v19652_v1 = vld [vmem:[#allocation28_spill] sm:$0xff]  ;;  %v19654_v8 = vld [vmem:[#allocation15_spill] sm:$0xff] }
 0x23b   : > { %v4806_v31 = vrot.slane %v17099_v61, 5  ;;  %v4797_v51 = vsel %vm15982_vm5, %v12506_v35, %v4796_v3  ;;  %v4810_v42 = vrot.slane %v17094_v58, 5  ;;  %v4817_v6 = vrot.slane %v17199_v48, 5  ;;  %v12493_v61 = vld [vmem:[%s15568_s8 + $0x48] sm:$0xe]  ;;  %v19651_v3 = vld [vmem:[#allocation25_spill] sm:$0xff] }
 0x23c   : > { %v4800_v56 = vsel %vm15982_vm5, %v4798_v24, %v4799_v12  ;;  %v4804_v19 = vsel %vm15982_vm5, %v12507_v41, %v4803_v20  ;;  %v4813_v38 = vrot.slane %v17127_v9, 5  ;;  %v12509_v5 = vrot.slane %v12493_v61, 9  ;;  %v19642_v58 = vld [vmem:[#allocation14_spill] sm:$0xff]  ;;  %v19655_v53 = vld [vmem:[#allocation9_spill] sm:$0xff]  ;;  %v19663_v12 = vld [vmem:[#allocation12_spill] sm:$0xff] }
 0x23d   : > { %v4807_v44 = vsel %vm15982_vm5, %v4805_v39, %v4806_v31  ;;  %v12538_v55 = vcombine.low %v4797_v51, %v4800_v56  ;;  %v4819_v27 = vrot.slane %v4817_v6, 4  ;;  %v4820_v11 = vrot.slane %v19642_v58, 5  ;;  %v19657_v25 = vld [vmem:[#allocation10_spill] sm:$0xff]  ;;  %v19661_v35 = vld [vmem:[#allocation13_spill] sm:$0xff]  ;;  %v19666_v31 = vld [vmem:[#allocation19_spill] sm:$0xff] }
 0x23e   : > { %v12539_v32 = vcombine.low %v4804_v19, %v4807_v44  ;;  %v4818_v49 = vsel %vm15982_vm5, %v12509_v5, %v4817_v6  ;;  %v4831_v14 = vrot.slane %v17277_v29, 5  ;;  %v12511_v57 = vrot.slane %v12495_v45, 9  ;;  %v19644_v29 = vld [vmem:[#allocation29_spill] sm:$0xff]  ;;  %v19664_v41 = vld [vmem:[#allocation18_spill] sm:$0xff]  ;;  %v19670_v19 = vld [vmem:[#allocation24_spill] sm:$0xff] }
 0x23f   : > { %13798 = vmatmul.mubr.bf16.gmra.mrb[20].mxu0 %v12476_v60  ;;  %v12508_v60 = vrot.slane %v12492_v36, 9  ;;  %v4821_v9 = vsel %vm15982_vm5, %v4819_v27, %v4820_v11  ;;  %v4845_v2 = vrot.slane %v19644_v29, 5  ;;  %v12513_v59 = vrot.slane %v12497_v7, 9  ;;  %v19667_v51 = vld [vmem:[#allocation22_spill] sm:$0xff]  ;;  %v15171_v36 = vld [vmem:[#allocation3 + $0x10] sm:$0xff]   ;;  %v15172_v61 = vld [vmem:[#allocation3 + $0x18] sm:$0xff]  }
 0x240   : > { %13801 = vmatprep.mubr.bf16.mxu0 %v12477_v37  ;;  %v4812_v37 = vrot.slane %v4810_v42, 4  ;;  %v12541_v18 = vcombine.low %v4818_v49, %v4821_v9  ;;  %v4833_v47 = vrot.slane %v4831_v14, 4  ;;  %v4832_v43 = vsel %vm15982_vm5, %v12511_v57, %v4831_v14  ;;  %14339 = vmatprep.subr.bf16.mxu1 %v15171_v36  ;;  %v15176_v14 = vld [vmem:[#allocation3 + $0x38] sm:$0xff]  }
 0x241   : > { %v4811_v0 = vsel %vm15982_vm5, %v12508_v60, %v4810_v42  ;;  %v4846_v33 = vsel %vm15982_vm5, %v12513_v59, %v4845_v2  ;;  %v19650_v46 = vcombine.low %v19648_v54, %v19649_v63  ;;  %v19656_v20 = vcombine.low %v19654_v8, %v19655_v53  ;;  %v19669_v42 = vld [vmem:[#allocation23_spill] sm:$0xff]  ;;  %14347 = vmatpush3.bf16.msra.mxu1 %v15171_v36  ;;  %v5307_v54 = vld [vmem:[#allocation2 + $0x8c] sm:$0x1]  ;;  %v5301_v63 = vld [vmem:[#allocation2 + $0x7c] sm:$0x1] }
 0x242   : > { %v4814_v48 = vsel %vm15982_vm5, %v4812_v37, %v4813_v38  ;;  %v19662_v24 = vcombine.low %v19660_v15, %v19661_v35  ;;  %v19665_v39 = vcombine.low %v19663_v12, %v19664_v41  ;;  %v19668_v56 = vcombine.low %v19666_v31, %v19667_v51  ;;  %14340 = vmatprep.subr.bf16.mxu1 %v15172_v61  ;;  %v15175_v38 = vld [vmem:[#allocation3 + $0x30] sm:$0xff]   ;;  %v17608_v35 = vld [vmem:[%s19441_s2] ss:$0 sm:$0xff] }
 0x243   : > { %v12540_v34 = vcombine.low %v4811_v0, %v4814_v48  ;;  %v19671_v44 = vcombine.low %v19669_v42, %v19670_v19  ;;  %v15427_v6 = vmov 0   ;;  %v19674_v29 = vmov 0 }
 0x244   : > { %5269 = vst [vmem:[#allocation2 + $0x24] sm:$0xf] %v15427_v6  ;;  %5253 = vst [vmem:[#allocation2] sm:$0xf] %v15427_v6  ;;  %v19675_v29 = vsel %vm17579_vm10, 4294967295, %v19674_v29 }
 0x245   : > { %5254 = vst [vmem:[#allocation2 + $0x4] sm:$0xf] %v15427_v6  ;;  %5255 = vst [vmem:[#allocation2 + $0x8] sm:$0xf] %v15427_v6  ;;  %14348 = vmatpush3.bf16.msra.mxu1 %v15172_v61 }
 0x246   : > { %5262 = vst [vmem:[#allocation2 + $0x10] sm:$0xf] %v15427_v6  ;;  %5263 = vst [vmem:[#allocation2 + $0x14] sm:$0xf] %v15427_v6 }
 0x247   : > { %13802 = vmatmul.mubr.bf16.gmra.mrb[24].mxu0 %v12478_v17  ;;  %v4847_v17 = vrot.slane %v4845_v2, 4  ;;  %5264 = vst [vmem:[#allocation2 + $0x18] sm:$0xf] %v15427_v6  ;;  %5268 = vst [vmem:[#allocation2 + $0x20] sm:$0xf] %v15427_v6 }
 0x248   : > { %13805 = vmatprep.mubr.bf16.mxu0 %v12479_v28  ;;  %v19645_v28 = vld [vmem:[#allocation17_spill] sm:$0xff]  ;;  %5270 = vst [vmem:[#allocation2 + $0x28] sm:$0xf] %v15427_v6  ;;  %5274 = vst [vmem:[#allocation2 + $0x30] sm:$0xf] %v15427_v6 }
 0x249   : > { %v19647_v16 = vcombine.low %v19645_v28, %v19646_v52  ;;  %5275 = vst [vmem:[#allocation2 + $0x34] sm:$0xf] %v15427_v6  ;;  %5276 = vst [vmem:[#allocation2 + $0x38] sm:$0xf] %v15427_v6  ;;  %v5265_v2 = vld [vmem:[#allocation2 + $0x1c] sm:$0x1] }
 0x24a   : > { %5280 = vst [vmem:[#allocation2 + $0x40] sm:$0xf] %v15427_v6  ;;  %5281 = vst [vmem:[#allocation2 + $0x44] sm:$0xf] %v15427_v6  ;;  %v5266_v7 = vsel %vm17579_vm10, 0, %v5265_v2 }
 0x24b   : > { %5282 = vst [vmem:[#allocation2 + $0x48] sm:$0xf] %v15427_v6  ;;  %5286 = vst [vmem:[#allocation2 + $0x50] sm:$0xf] %v15427_v6  ;;  %v5532_v58 = vld [vmem:[#allocation2] sm:$0x8] }
 0x24c   : > { %5287 = vst [vmem:[#allocation2 + $0x54] sm:$0xf] %v15427_v6  ;;  %5288 = vst [vmem:[#allocation2 + $0x58] sm:$0xf] %v15427_v6  ;;  %v5533_v60 = vld [vmem:[#allocation2 + $0x4] sm:$0xf] }
 0x24d   : > { %5292 = vst [vmem:[#allocation2 + $0x60] sm:$0xf] %v15427_v6  ;;  %5293 = vst [vmem:[#allocation2 + $0x64] sm:$0xf] %v15427_v6  ;;  %v5534_v37 = vld [vmem:[#allocation2 + $0x8] sm:$0xf] }
 0x24e   : > { %5294 = vst [vmem:[#allocation2 + $0x68] sm:$0xf] %v15427_v6  ;;  %5298 = vst [vmem:[#allocation2 + $0x70] sm:$0xf] %v15427_v6  ;;  %v5588_v5 = vshrl.u32 %v5533_v60, 16  ;;  %v5597_v27 = vshrl.u32 %v5534_v37, 16 }
 0x24f   : > { %13806 = vmatmul.mubr.bf16.gmra.mrb[28].mxu0 %v12480_v10  ;;  %v19658_v10 = vld [vmem:[#allocation16_spill] sm:$0xff]  ;;  %5299 = vst [vmem:[#allocation2 + $0x74] sm:$0xf] %v15427_v6  ;;  %5300 = vst [vmem:[#allocation2 + $0x78] sm:$0xf] %v15427_v6  ;;  %v5583_v11 = vshrl.u32 %v5532_v58, 16 }
 0x250   : > { %13825 = vmatprep.mubr.bf16.mxu0 %v12537_v30  ;;  %v19659_v30 = vcombine.low %v19657_v25, %v19658_v10  ;;  %5304 = vst [vmem:[#allocation2 + $0x80] sm:$0xf] %v15427_v6  ;;  %5305 = vst [vmem:[#allocation2 + $0x84] sm:$0xf] %v15427_v6  ;;  %v5590_v0 = vrot.slane %v5588_v5, 7  ;;  %v5591_v48 = vshll.u32 %v5533_v60, 16 }
 0x251   : > { %5306 = vst [vmem:[#allocation2 + $0x88] sm:$0xf] %v15427_v6  ;;  %5310 = vst [vmem:[#allocation2 + $0x90] sm:$0xf] %v15427_v6  ;;  %v5599_v49 = vrot.slane %v5597_v27, 7  ;;  %v5600_v9 = vshll.u32 %v5534_v37, 16 }
 0x252   : > { %5311 = vst [vmem:[#allocation2 + $0x94] sm:$0xf] %v15427_v6  ;;  %5312 = vst [vmem:[#allocation2 + $0x98] sm:$0xf] %v15427_v6  ;;  %v12594_v45 = vrot.slane %v5583_v11, 11 }
 0x253   : > { %5316 = vst [vmem:[#allocation2 + $0xa0] sm:$0xf] %v15427_v6  ;;  %5317 = vst [vmem:[#allocation2 + $0xa4] sm:$0xf] %v15427_v6  ;;  %v5538_v25 = vld [vmem:[#allocation2 + $0x20] sm:$0x8] }
 0x254   : > { %5318 = vst [vmem:[#allocation2 + $0xa8] sm:$0xf] %v15427_v6  ;;  %5322 = vst [vmem:[#allocation2 + $0xb0] sm:$0xf] %v15427_v6  ;;  %v5331_v10 = vld [vmem:[#allocation2 + $0xcc] sm:$0x1] }
 0x255   : > { %5323 = vst [vmem:[#allocation2 + $0xb4] sm:$0xf] %v15427_v6  ;;  %5324 = vst [vmem:[#allocation2 + $0xb8] sm:$0xf] %v15427_v6  ;;  %v5332_v15 = vsel %vm17579_vm10, 0, %v5331_v10  ;;  %v5627_v12 = vshrl.u32 %v5538_v25, 16 }
 0x256   : > { %5328 = vst [vmem:[#allocation2 + $0xc0] sm:$0xf] %v15427_v6  ;;  %5329 = vst [vmem:[#allocation2 + $0xc4] sm:$0xf] %v15427_v6  ;;  %v5541_v51 = vld [vmem:[#allocation2 + $0x30] sm:$0x8] }
 0x257   : > { %13826 = vmatmul.mubr.bf16.vlgmr.msra.gmra.mrb[0].mxu0 %v12538_v55  ;;  %5330 = vst [vmem:[#allocation2 + $0xc8] sm:$0xf] %v15427_v6  ;;  %5334 = vst [vmem:[#allocation2 + $0xd0] sm:$0xf] %v15427_v6  ;;  %v15173_v55 = vld [vmem:[#allocation3 + $0x20] sm:$0xff]   ;;  %v5649_v5 = vshrl.u32 %v5541_v51, 16 }
 0x258   : > { %13829 = vmatprep.mubr.bf16.mxu0 %v12539_v32  ;;  %13858 = vmatpush3.bf16.msra.mxu0 %v17318_v21  ;;  %v4834_v21 = vrot.slane %v19643_v22, 5  ;;  %5335 = vst [vmem:[#allocation2 + $0xd4] sm:$0xf] %v15427_v6  ;;  %5336 = vst [vmem:[#allocation2 + $0xd8] sm:$0xf] %v15427_v6  ;;  %v15174_v32 = vld [vmem:[#allocation3 + $0x28] sm:$0xff]  }
 0x259   : > { %13859 = vmatprep.subr.bf16.mxu0 %v17327_v50  ;;  %5340 = vst [vmem:[#allocation2 + $0xe0] sm:$0xf] %v15427_v6  ;;  %5341 = vst [vmem:[#allocation2 + $0xe4] sm:$0xf] %v15427_v6  ;;  %14341 = vmatprep.subr.bf16.mxu1 %v15173_v55  ;;  %v5556_v58 = vld [vmem:[#allocation2 + $0x80] sm:$0x8] }
 0x25a   : > { %v4835_v40 = vsel %vm15982_vm5, %v4833_v47, %v4834_v21  ;;  %5342 = vst [vmem:[#allocation2 + $0xe8] sm:$0xf] %v15427_v6  ;;  %5346 = vst [vmem:[#allocation2 + $0xf0] sm:$0xf] %v15427_v6  ;;  %14349 = vmatpush3.bf16.msra.mxu1 %v15173_v55  ;;  %v5602_v47 = vor.u32 %v5600_v9, %v5599_v49  ;;  %v5553_v49 = vld [vmem:[#allocation2 + $0x70] sm:$0x8] }
 0x25b   : > { %v12543_v13 = vcombine.low %v4832_v43, %v4835_v40  ;;  %5347 = vst [vmem:[#allocation2 + $0xf4] sm:$0xf] %v15427_v6  ;;  %5348 = vst [vmem:[#allocation2 + $0xf8] sm:$0xf] %v15427_v6  ;;  %14342 = vmatprep.subr.bf16.mxu1 %v15174_v32  ;;  %v17575_v40 = vld [vmem:[#allocation3 + $0x40] sm:$0xff]  }
 0x25c   : > { %13860 = vmatpush3.bf16.msra.mxu0 %v17327_v50  ;;  %v4848_v50 = vrot.slane %v17386_v62, 5  ;;  %v19653_v62 = vcombine.low %v19651_v3, %v19652_v1  ;;  %5352 = vst [vmem:[#allocation2 + $0x100] sm:$0xf] %v15427_v6  ;;  %5353 = vst [vmem:[#allocation2 + $0x104] sm:$0xf] %v15427_v6  ;;  %v5302_v3 = vsel %vm17579_vm10, 0, %v5301_v63 }
 0x25d   : > { %13861 = vmatprep.subr.bf16.mxu0 %v15171_v36  ;;  %5354 = vst [vmem:[#allocation2 + $0x108] sm:$0xf] %v15427_v6  ;;  %5358 = vst [vmem:[#allocation2 + $0x110] sm:$0xf] %v15427_v6  ;;  %v5319_v1 = vld [vmem:[#allocation2 + $0xac] sm:$0x1] }
 0x25e   : > { %v4849_v23 = vsel %vm15982_vm5, %v4847_v17, %v4848_v50  ;;  %5359 = vst [vmem:[#allocation2 + $0x114] sm:$0xf] %v15427_v6  ;;  %5360 = vst [vmem:[#allocation2 + $0x118] sm:$0xf] %v15427_v6  ;;  %14350 = vmatpush3.bf16.msra.mxu1 %v15174_v32  ;;  %v5283_v17 = vld [vmem:[#allocation2 + $0x4c] sm:$0x1] }
 0x25f   : > { %13830 = vmatmul.mubr.bf16.gmra.mrb[4].mxu0 %v12540_v34  ;;  %v12545_v26 = vcombine.low %v4846_v33, %v4849_v23  ;;  %14343 = vmatprep.subr.bf16.mxu1 %v15175_v38  ;;  %v5593_v34 = vor.u32 %v5591_v48, %v5590_v0  ;;  %19676 = vst [vmem:[#allocation14_spill] sm:$0xff] %v19675_v29  ;;  %5267 = vst [vmem:[#allocation2 + $0x1c] sm:$0x1] %v5266_v7  ;;  %v5277_v50 = vld [vmem:[#allocation2 + $0x3c] sm:$0x1]  ;;  %v5284_v28 = vsel %vm17579_vm10, 0, %v5283_v17 }
 0x260   : > { %13833 = vmatprep.mubr.bf16.mxu0 %v12541_v18  ;;  %13862 = vmatpush3.bf16.msra.mxu0 %v15171_v36  ;;  %v5595_v18 = vrot.slane %v5590_v0, 4  ;;  %v5278_v52 = vsel %vm17579_vm10, 0, %v5277_v50  ;;  %5285 = vst [vmem:[#allocation2 + $0x4c] sm:$0x1] %v5284_v28  ;;  %v5289_v33 = vld [vmem:[#allocation2 + $0x5c] sm:$0x1] }
 0x261   : > { %13863 = vmatprep.subr.bf16.mxu0 %v15172_v61  ;;  %v5594_v22 = vsel %vm17567_vm8, %v12594_v45, %v5593_v34  ;;  %5279 = vst [vmem:[#allocation2 + $0x3c] sm:$0x1] %v5278_v52  ;;  %5303 = vst [vmem:[#allocation2 + $0x7c] sm:$0x1] %v5302_v3  ;;  %v5320_v8 = vsel %vm17579_vm10, 0, %v5319_v1  ;;  %v5759_v17 = vshrl.u32 %v5556_v58, 16 }
 0x262   : > { %14351 = vmatpush3.bf16.msra.mxu1 %v15175_v38  ;;  %v5603_v21 = vsel %vm17567_vm8, %v5595_v18, %v5602_v47  ;;  %5321 = vst [vmem:[#allocation2 + $0xac] sm:$0x1] %v5320_v8  ;;  %5333 = vst [vmem:[#allocation2 + $0xcc] sm:$0x1] %v5332_v15  ;;  %v5343_v9 = vld [vmem:[#allocation2 + $0xec] sm:$0x1] }
 0x263   : > { %14344 = vmatprep.subr.bf16.mxu1 %v15176_v14  ;;  %v12610_v43 = vcombine.low %v5594_v22, %v5603_v21  ;;  %v5562_v34 = vld [vmem:[#allocation2 + $0xa0] sm:$0x8]  ;;  %v5337_v18 = vld [vmem:[#allocation2 + $0xdc] sm:$0x1]  ;;  %v5344_v47 = vsel %vm17579_vm10, 0, %v5343_v9 }
 0x264   : > { %13864 = vmatpush3.bf16.msra.mxu0 %v15172_v61  ;;  %v5568_v2 = vld [vmem:[#allocation2 + $0xc0] sm:$0x8]  ;;  %v5338_v7 = vsel %vm17579_vm10, 0, %v5337_v18  ;;  %5345 = vst [vmem:[#allocation2 + $0xec] sm:$0x1] %v5344_v47 }
 0x265   : > { %13865 = vmatprep.subr.bf16.mxu0 %v15173_v55  ;;  %v5565_v50 = vld [vmem:[#allocation2 + $0xb0] sm:$0x8]  ;;  %v5574_v28 = vld [vmem:[#allocation2 + $0xe0] sm:$0x8]  ;;  %5339 = vst [vmem:[#allocation2 + $0xdc] sm:$0x1] %v5338_v7 }
 0x266   : > { %14352 = vmatpush3.bf16.msra.mxu1 %v15176_v14  ;;  %v5825_v25 = vshrl.u32 %v5565_v50, 16  ;;  %v5891_v10 = vshrl.u32 %v5574_v28, 16 }
 0x267   : > { %13834 = vmatmul.mubr.bf16.gmra.mrb[8].mxu0 %v19647_v16  ;;  %13905 = vmatprep.subr.bf16.mxu1 %v17575_v40  ;;  %v5295_v16 = vld [vmem:[#allocation2 + $0x6c] sm:$0x1] }
 0x268   : > { %13837 = vmatprep.mubr.bf16.mxu0 %v12543_v13  ;;  %13866 = vmatpush3.bf16.msra.mxu0 %v15173_v55  ;;  %v5271_v13 = vld [vmem:[#allocation2 + $0x2c] sm:$0x1]  ;;  %v5296_v23 = vsel %vm17579_vm10, 0, %v5295_v16  ;;  %v17616_v55 = vrot.slane %v5627_v12, 11  ;;  %v17635_v12 = vrot.slane %v5759_v17, 11 }
 0x269   : > { %13867 = vmatprep.subr.bf16.mxu0 %v15174_v32  ;;  %v5272_v59 = vsel %vm17579_vm10, 0, %v5271_v13  ;;  %5297 = vst [vmem:[#allocation2 + $0x6c] sm:$0x1] %v5296_v23  ;;  %v5737_v23 = vshrl.u32 %v5553_v49, 16 }
 0x26a   : > { %5273 = vst [vmem:[#allocation2 + $0x2c] sm:$0x1] %v5272_v59 }
 0x26b   : > { %v17638_v51 = vrot.slane %v5737_v23, 11 }
 0x26c   : > { %13868 = vmatpush3.bf16.msra.mxu0 %v15174_v32 }
 0x26d   : > { %13869 = vmatprep.subr.bf16.mxu0 %v15175_v38 }
 0x26f   : > { %13838 = vmatmul.mubr.bf16.gmra.mrb[12].mxu0 %v19650_v46  ;;  %v5308_v46 = vsel %vm17579_vm10, 0, %v5307_v54  ;;  %v5571_v54 = vld [vmem:[#allocation2 + $0xd0] sm:$0x8] }
 0x270   : > { %13841 = vmatprep.mubr.bf16.mxu0 %v12545_v26  ;;  %13870 = vmatpush3.bf16.msra.mxu0 %v15175_v38  ;;  %v5290_v26 = vsel %vm17579_vm10, 0, %v5289_v33  ;;  %5309 = vst [vmem:[#allocation2 + $0x8c] sm:$0x1] %v5308_v46  ;;  %v17626_v33 = vrot.slane %v5649_v5, 11  ;;  %v17652_v5 = vrot.slane %v5891_v10, 11 }
 0x271   : > { %13871 = vmatprep.subr.bf16.mxu0 %v15176_v14  ;;  %5291 = vst [vmem:[#allocation2 + $0x5c] sm:$0x1] %v5290_v26  ;;  %v5803_v26 = vshrl.u32 %v5562_v34, 16 }
 0x274   : > { %13872 = vmatpush3.bf16.msra.mxu0 %v15176_v14 }
 0x277   : > { %13842 = vmatmul.mubr.bf16.gmra.mrb[16].mxu0 %v19653_v62  ;;  %v5313_v62 = vld [vmem:[#allocation2 + $0x9c] sm:$0x1] }
 0x278   : > { %13845 = vmatprep.mubr.bf16.mxu0 %v19656_v20  ;;  %v5314_v53 = vsel %vm17579_vm10, 0, %v5313_v62  ;;  %v5535_v20 = vld [vmem:[#allocation2 + $0x10] sm:$0x8]  ;;  %v5847_v62 = vshrl.u32 %v5568_v2, 16 }
 0x279   : > { %5315 = vst [vmem:[#allocation2 + $0x9c] sm:$0x1] %v5314_v53 }
 0x27f   : > { %13846 = vmatmul.mubr.bf16.gmra.mrb[20].mxu0 %v19659_v30  ;;  %v5325_v30 = vld [vmem:[#allocation2 + $0xbc] sm:$0x1] }
 0x280   : > { %13849 = vmatprep.mubr.bf16.mxu0 %v19662_v24  ;;  %v5605_v24 = vshrl.u32 %v5535_v20, 16  ;;  %v5326_v41 = vsel %vm17579_vm10, 0, %v5325_v30 }
 0x281   : > { %5327 = vst [vmem:[#allocation2 + $0xbc] sm:$0x1] %v5326_v41  ;;  %v5869_v41 = vshrl.u32 %v5571_v54, 16 }
 0x282   : > { %v17614_v61 = vrot.slane %v5605_v24, 11 }
 0x287   : > { %13850 = vmatmul.mubr.bf16.gmra.mrb[24].mxu0 %v19665_v39  ;;  %v5544_v39 = vld [vmem:[#allocation2 + $0x40] sm:$0x8] }
 0x288   : > { %13853 = vmatprep.mubr.bf16.mxu0 %v19668_v56  ;;  %v5550_v56 = vld [vmem:[#allocation2 + $0x60] sm:$0x8]  ;;  %v5671_v32 = vshrl.u32 %v5544_v39, 16 }
 0x289   : > { %v5715_v27 = vshrl.u32 %v5550_v56, 16  ;;  %v17640_v56 = vrot.slane %v5803_v26, 11 }
 0x28a   : > { %v17624_v59 = vrot.slane %v5671_v32, 11 }
 0x28b   : > { %v17629_v3 = vrot.slane %v5715_v27, 11 }
 0x28f   : > { %13854 = vmatmul.mubr.bf16.gmra.mrb[28].mxu0 %v19671_v44  ;;  %v5547_v44 = vld [vmem:[#allocation2 + $0x50] sm:$0x8] }
 0x290   : > { %13873 = vmatprep.mubr.bf16.mxu0 %v12610_v43  ;;  %v5693_v48 = vshrl.u32 %v5547_v44, 16  ;;  %v5559_v43 = vld [vmem:[#allocation2 + $0x90] sm:$0x8] }
 0x291   : > { %v5781_v1 = vshrl.u32 %v5559_v43, 16 }
 0x292   : > { %v17632_v20 = vrot.slane %v5693_v48, 11 }
 0x32a   : > { %v13827_v31 = vpop.f32.mrb[0].mxu0 }
 0x32b   : > { %v14353_v42 = vadd.f32 %v13827_v31, %v17608_v35  ;;  %v5062_v19 = vpop.f32.mrb[1].mxu0 }
 0x32c   : > { %v14354_v36 = vadd.f32 %v17608_v35, %v5062_v19  ;;  %v13828_v6 = vpop.f32.mrb[2].mxu0 }
 0x32d   : > { %v5223_v60 = vmax.f32 %v14353_v42, 0.0  ;;  %v14355_v37 = vadd.f32 %v13828_v6, %v17608_v35  ;;  %v5065_v38 = vpop.f32.mrb[3].mxu0  ;;  %v17642_v42 = vld [vmem:[#allocation2 + $0xf0] sm:$0x8]  ;;  %v17646_v6 = vrot.slane %v5847_v62, 11 }
 0x32e   : > { %v5221_v11 = vmax.f32 %v14354_v36, 0.0  ;;  %v14356_v0 = vadd.f32 %v17608_v35, %v5065_v38  ;;  %v17644_v36 = vrot.slane %v5781_v1, 11  ;;  %v17650_v38 = vrot.slane %v5825_v25, 11 }
 0x32f   : > { %v12938_v14 = vpack.c.bf16 %v5223_v60, %v5223_v60  ;;  %v5224_v45 = vmax.f32 %v14355_v37, 0.0  ;;  %v5913_v48 = vshrl.u32 %v17642_v42, 16 }
 0x330   : > { %v12936_v22 = vpack.c.bf16 %v5221_v11, %v5221_v11  ;;  %v5222_v21 = vmax.f32 %v14356_v0, 0.0  ;;  %v17657_v0 = vrot.slane %v5869_v41, 11 }
 0x331   : > { %5495 = vst [vmem:[#allocation2 + $0x24] sm:$0xf] %v12938_v14  ;;  %v12939_v13 = vpack.c.bf16 %v5224_v45, %v5224_v45 }
 0x332   : > { %5493 = vst [vmem:[#allocation2 + $0x14] sm:$0xf] %v12936_v22  ;;  %v12937_v52 = vpack.c.bf16 %v5222_v21, %v5222_v21  ;;  %v13831_v16 = vpop.f32.mrb[4].mxu0 }
 0x333   : > { %5496 = vst [vmem:[#allocation2 + $0x28] sm:$0xf] %v12939_v13  ;;  %v14357_v63 = vadd.f32 %v13831_v16, %v17608_v35  ;;  %v5078_v46 = vpop.f32.mrb[5].mxu0 }
 0x334   : > { %5494 = vst [vmem:[#allocation2 + $0x18] sm:$0xf] %v12937_v52  ;;  %v14358_v8 = vadd.f32 %v17608_v35, %v5078_v46  ;;  %v13832_v53 = vpop.f32.mrb[6].mxu0 }
 0x335   : > { %v5227_v30 = vmax.f32 %v14357_v63, 0.0  ;;  %v14359_v15 = vadd.f32 %v13832_v53, %v17608_v35  ;;  %v5081_v24 = vpop.f32.mrb[7].mxu0 }
 0x336   : > { %v5225_v39 = vmax.f32 %v14358_v8, 0.0  ;;  %v14360_v31 = vadd.f32 %v17608_v35, %v5081_v24 }
 0x337   : > { %v12942_v19 = vpack.c.bf16 %v5227_v30, %v5227_v30  ;;  %v5228_v44 = vmax.f32 %v14359_v15, 0.0 }
 0x338   : > { %v12940_v32 = vpack.c.bf16 %v5225_v39, %v5225_v39  ;;  %v5226_v60 = vmax.f32 %v14360_v31, 0.0  ;;  %v17648_v37 = vld [vmem:[#allocation2 + $0x24] sm:$0xf] }
 0x339   : > { %5499 = vst [vmem:[#allocation2 + $0x44] sm:$0xf] %v12942_v19  ;;  %v12943_v27 = vpack.c.bf16 %v5228_v44, %v5228_v44  ;;  %v17654_v58 = vld [vmem:[#allocation2 + $0x14] sm:$0xf]  ;;  %v5632_v11 = vshrl.u32 %v17648_v37, 16  ;;  %v5635_v18 = vshll.u32 %v17648_v37, 16 }
 0x33a   : > { %5497 = vst [vmem:[#allocation2 + $0x34] sm:$0xf] %v12940_v32  ;;  %v12941_v49 = vpack.c.bf16 %v5226_v60, %v5226_v60  ;;  %v13835_v9 = vpop.f32.mrb[8].mxu0  ;;  %v5610_v14 = vshrl.u32 %v17654_v58, 16  ;;  %v5613_v45 = vshll.u32 %v17654_v58, 16 }
 0x33b   : > { %v17662_v34 = vld [vmem:[#allocation2 + $0x28] sm:$0xf]  ;;  %5500 = vst [vmem:[#allocation2 + $0x48] sm:$0xf] %v12943_v27  ;;  %v14361_v47 = vadd.f32 %v13835_v9, %v17608_v35  ;;  %v5094_v22 = vpop.f32.mrb[9].mxu0  ;;  %v5634_v43 = vrot.slane %v5632_v11, 7 }
 0x33c   : > { %v17666_v21 = vld [vmem:[#allocation2 + $0x18] sm:$0xf]  ;;  %v5641_v2 = vshrl.u32 %v17662_v34, 16  ;;  %v5644_v7 = vshll.u32 %v17662_v34, 16  ;;  %5498 = vst [vmem:[#allocation2 + $0x38] sm:$0xf] %v12941_v49  ;;  %v14362_v13 = vadd.f32 %v17608_v35, %v5094_v22 }
 0x33d   : > { %v13836_v17 = vpop.f32.mrb[10].mxu0  ;;  %v5612_v50 = vrot.slane %v5610_v14, 7  ;;  %v5619_v28 = vshrl.u32 %v17666_v21, 16  ;;  %v5622_v52 = vshll.u32 %v17666_v21, 16  ;;  %v5231_v16 = vmax.f32 %v14361_v47, 0.0 }
 0x33e   : > { %v14363_v23 = vadd.f32 %v13836_v17, %v17608_v35  ;;  %v5097_v26 = vpop.f32.mrb[11].mxu0  ;;  %v5637_v54 = vor.u32 %v5635_v18, %v5634_v43  ;;  %v5639_v63 = vrot.slane %v5634_v43, 4  ;;  %v5229_v46 = vmax.f32 %v14362_v13, 0.0 }
 0x33f   : > { %v14364_v1 = vadd.f32 %v17608_v35, %v5097_v26  ;;  %v5615_v62 = vor.u32 %v5613_v45, %v5612_v50  ;;  %v5617_v8 = vrot.slane %v5612_v50, 4  ;;  %v12946_v53 = vpack.c.bf16 %v5231_v16, %v5231_v16 }
 0x340   : > { %v5232_v25 = vmax.f32 %v14363_v23, 0.0  ;;  %v5621_v10 = vrot.slane %v5619_v28, 7  ;;  %v5638_v30 = vsel %vm17567_vm8, %v17616_v55, %v5637_v54  ;;  %v12944_v15 = vpack.c.bf16 %v5229_v46, %v5229_v46  ;;  %v17681_v31 = vld [vmem:[#allocation2 + $0x44] sm:$0xf] }
 0x341   : > { %v5230_v24 = vmax.f32 %v14364_v1, 0.0  ;;  %v5616_v41 = vsel %vm17567_vm8, %v17614_v61, %v5615_v62  ;;  %v5643_v39 = vrot.slane %v5641_v2, 7  ;;  %5503 = vst [vmem:[#allocation2 + $0x64] sm:$0xf] %v12946_v53  ;;  %v17683_v32 = vld [vmem:[#allocation2 + $0x34] sm:$0xf] }
 0x342   : > { %v12947_v19 = vpack.c.bf16 %v5232_v25, %v5232_v25  ;;  %v5624_v44 = vor.u32 %v5622_v52, %v5621_v10  ;;  %v5676_v60 = vshrl.u32 %v17681_v31, 16  ;;  %v5679_v27 = vshll.u32 %v17681_v31, 16  ;;  %5501 = vst [vmem:[#allocation2 + $0x54] sm:$0xf] %v12944_v15  ;;  %v13839_v11 = vpop.f32.mrb[12].mxu0 }
 0x343   : > { %v12945_v55 = vpack.c.bf16 %v5230_v24, %v5230_v24  ;;  %v5646_v49 = vor.u32 %v5644_v7, %v5643_v39  ;;  %v5654_v9 = vshrl.u32 %v17683_v32, 16  ;;  %v5657_v61 = vshll.u32 %v17683_v32, 16  ;;  %v17689_v14 = vld [vmem:[#allocation2 + $0x48] sm:$0xf]  ;;  %v5110_v18 = vpop.f32.mrb[13].mxu0 }
 0x344   : > { %5504 = vst [vmem:[#allocation2 + $0x68] sm:$0xf] %v12947_v19  ;;  %v14365_v45 = vadd.f32 %v13839_v11, %v17608_v35  ;;  %v5625_v47 = vsel %vm17567_vm8, %v5617_v8, %v5624_v44  ;;  %v17694_v22 = vld [vmem:[#allocation2 + $0x38] sm:$0xf]  ;;  %v17696_v43 = vrot.slane %v5676_v60, 7  ;;  %v5685_v2 = vshrl.u32 %v17689_v14, 16 }
 0x345   : > { %5502 = vst [vmem:[#allocation2 + $0x58] sm:$0xf] %v12945_v55  ;;  %v14366_v7 = vadd.f32 %v17608_v35, %v5110_v18  ;;  %v13840_v13 = vpop.f32.mrb[14].mxu0  ;;  %v12611_v17 = vcombine.low %v5616_v41, %v5625_v47  ;;  %v5647_v50 = vsel %vm17567_vm8, %v5639_v63, %v5646_v49  ;;  %v5656_v28 = vrot.slane %v5654_v9, 7 }
 0x346   : > { %v5235_v52 = vmax.f32 %v14365_v45, 0.0  ;;  %v14367_v16 = vadd.f32 %v13840_v13, %v17608_v35  ;;  %v5113_v23 = vpop.f32.mrb[15].mxu0  ;;  %v12612_v26 = vcombine.low %v5638_v30, %v5647_v50  ;;  %v5663_v54 = vshrl.u32 %v17694_v22, 16 }
 0x347   : > { %v5233_v46 = vmax.f32 %v14366_v7, 0.0  ;;  %v14368_v1 = vadd.f32 %v17608_v35, %v5113_v23  ;;  %13874 = vmatmul.mubr.bf16.vlgmr.msra.gmra.mrb[32].mxu0 %v12611_v17  ;;  %v5659_v62 = vor.u32 %v5657_v61, %v5656_v28  ;;  %v5661_v8 = vrot.slane %v5656_v28, 4 }
 0x348   : > { %v12950_v53 = vpack.c.bf16 %v5235_v52, %v5235_v52  ;;  %v5236_v25 = vmax.f32 %v14367_v16, 0.0  ;;  %13877 = vmatprep.mubr.bf16.mxu0 %v12612_v26  ;;  %v5665_v10 = vrot.slane %v5663_v54, 7  ;;  %v5666_v63 = vshll.u32 %v17694_v22, 16  ;;  %v17710_v39 = vld [vmem:[#allocation2 + $0x64] sm:$0xf] }
 0x349   : > { %v12948_v15 = vpack.c.bf16 %v5233_v46, %v5233_v46  ;;  %v5234_v24 = vmax.f32 %v14368_v1, 0.0  ;;  %v5660_v30 = vsel %vm17567_vm8, %v17626_v33, %v5659_v62  ;;  %v5681_v41 = vor.u32 %v5679_v27, %v17696_v43  ;;  %v17713_v11 = vld [vmem:[#allocation2 + $0x54] sm:$0xf] }
 0x34a   : > { %5507 = vst [vmem:[#allocation2 + $0x84] sm:$0xf] %v12950_v53  ;;  %v12951_v19 = vpack.c.bf16 %v5236_v25, %v5236_v25  ;;  %v5668_v44 = vor.u32 %v5666_v63, %v5665_v10  ;;  %v5683_v60 = vrot.slane %v17696_v43, 4  ;;  %v5687_v55 = vrot.slane %v5685_v2, 7  ;;  %v13843_v9 = vpop.f32.mrb[16].mxu0 }
 0x34b   : > { %5505 = vst [vmem:[#allocation2 + $0x74] sm:$0xf] %v12948_v15  ;;  %v12949_v49 = vpack.c.bf16 %v5234_v24, %v5234_v24  ;;  %v5682_v61 = vsel %vm17567_vm8, %v17624_v59, %v5681_v41  ;;  %v5688_v33 = vshll.u32 %v17689_v14, 16  ;;  %v5698_v27 = vshrl.u32 %v17713_v11, 16  ;;  %v5126_v18 = vpop.f32.mrb[17].mxu0 }
 0x34c   : > { %5508 = vst [vmem:[#allocation2 + $0x88] sm:$0xf] %v12951_v19  ;;  %v14369_v45 = vadd.f32 %v13843_v9, %v17608_v35  ;;  %v5669_v47 = vsel %vm17567_vm8, %v5661_v8, %v5668_v44  ;;  %v17723_v43 = vld [vmem:[#allocation2 + $0x58] sm:$0xf]  ;;  %v5701_v2 = vshll.u32 %v17713_v11, 16  ;;  %v5720_v7 = vshrl.u32 %v17710_v39, 16 }
 0x34d   : > { %5506 = vst [vmem:[#allocation2 + $0x78] sm:$0xf] %v12949_v49  ;;  %v14370_v59 = vadd.f32 %v17608_v35, %v5126_v18  ;;  %v13844_v13 = vpop.f32.mrb[18].mxu0  ;;  %v12613_v17 = vcombine.low %v5660_v30, %v5669_v47  ;;  %v5690_v50 = vor.u32 %v5688_v33, %v5687_v55  ;;  %v5700_v28 = vrot.slane %v5698_v27, 7  ;;  %v17734_v53 = vld [vmem:[#allocation2 + $0x68] sm:$0xf] }
 0x34e   : > { %v5239_v52 = vmax.f32 %v14369_v45, 0.0  ;;  %v14371_v16 = vadd.f32 %v13844_v13, %v17608_v35  ;;  %v5129_v23 = vpop.f32.mrb[19].mxu0  ;;  %v5707_v26 = vshrl.u32 %v17723_v43, 16  ;;  %v5710_v54 = vshll.u32 %v17723_v43, 16 }
 0x34f   : > { %v5237_v46 = vmax.f32 %v14370_v59, 0.0  ;;  %v14372_v1 = vadd.f32 %v17608_v35, %v5129_v23  ;;  %13878 = vmatmul.mubr.bf16.gmra.mrb[36].mxu0 %v12613_v17  ;;  %v5691_v62 = vsel %vm17567_vm8, %v5683_v60, %v5690_v50  ;;  %v5703_v8 = vor.u32 %v5701_v2, %v5700_v28 }
 0x350   : > { %v12954_v25 = vpack.c.bf16 %v5239_v52, %v5239_v52  ;;  %v5240_v10 = vmax.f32 %v14371_v16, 0.0  ;;  %v12614_v63 = vcombine.low %v5682_v61, %v5691_v62  ;;  %v5705_v15 = vrot.slane %v5700_v28, 4 }
 0x351   : > { %v12952_v24 = vpack.c.bf16 %v5237_v46, %v5237_v46  ;;  %v5238_v30 = vmax.f32 %v14372_v1, 0.0  ;;  %v5704_v41 = vsel %vm17567_vm8, %v17632_v20, %v5703_v8  ;;  %v5709_v19 = vrot.slane %v5707_v26, 7  ;;  %v17739_v44 = vld [vmem:[#allocation2 + $0x84] sm:$0xf] }
 0x352   : > { %5511 = vst [vmem:[#allocation2 + $0xa4] sm:$0xf] %v12954_v25  ;;  %v12955_v55 = vpack.c.bf16 %v5240_v10, %v5240_v10  ;;  %13881 = vmatprep.mubr.bf16.mxu0 %v12614_v63  ;;  %v5722_v60 = vrot.slane %v5720_v7, 7  ;;  %v5723_v49 = vshll.u32 %v17710_v39, 16  ;;  %v5729_v9 = vshrl.u32 %v17734_v53, 16  ;;  %v13847_v33 = vpop.f32.mrb[20].mxu0 }
 0x353   : > { %5509 = vst [vmem:[#allocation2 + $0x94] sm:$0xf] %v12952_v24  ;;  %v12953_v61 = vpack.c.bf16 %v5238_v30, %v5238_v30  ;;  %v5712_v27 = vor.u32 %v5710_v54, %v5709_v19  ;;  %v5732_v45 = vshll.u32 %v17734_v53, 16  ;;  %v5764_v18 = vshrl.u32 %v17739_v44, 16  ;;  %v5142_v47 = vpop.f32.mrb[21].mxu0 }
 0x354   : > { %5512 = vst [vmem:[#allocation2 + $0xa8] sm:$0xf] %v12955_v55  ;;  %v14373_v20 = vadd.f32 %v13847_v33, %v17608_v35  ;;  %v5725_v2 = vor.u32 %v5723_v49, %v5722_v60  ;;  %v5727_v59 = vrot.slane %v5722_v60, 4  ;;  %v5731_v13 = vrot.slane %v5729_v9, 7  ;;  %v13848_v17 = vpop.f32.mrb[22].mxu0 }
 0x355   : > { %5510 = vst [vmem:[#allocation2 + $0x98] sm:$0xf] %v12953_v61  ;;  %v14374_v7 = vadd.f32 %v17608_v35, %v5142_v47  ;;  %v5713_v50 = vsel %vm17567_vm8, %v5705_v15, %v5712_v27  ;;  %v17749_v28 = vld [vmem:[#allocation2 + $0x88] sm:$0xf]  ;;  %v5766_v52 = vrot.slane %v5764_v18, 7  ;;  %v5767_v16 = vshll.u32 %v17739_v44, 16 }
 0x356   : > { %v5243_v23 = vmax.f32 %v14373_v20, 0.0  ;;  %v14375_v26 = vadd.f32 %v13848_v17, %v17608_v35  ;;  %v5145_v54 = vpop.f32.mrb[23].mxu0  ;;  %v12615_v46 = vcombine.low %v5704_v41, %v5713_v50  ;;  %v5726_v1 = vsel %vm17567_vm8, %v17629_v3, %v5725_v2  ;;  %v17757_v63 = vld [vmem:[#allocation2 + $0x74] sm:$0xf]  ;;  %v17760_v55 = vld [vmem:[#allocation2 + $0x78] sm:$0xf] }
 0x357   : > { %v5241_v62 = vmax.f32 %v14374_v7, 0.0  ;;  %v14376_v8 = vadd.f32 %v17608_v35, %v5145_v54  ;;  %v5734_v25 = vor.u32 %v5732_v45, %v5731_v13  ;;  %v5769_v10 = vor.u32 %v5767_v16, %v5766_v52 }
 0x358   : > { %v12958_v15 = vpack.c.bf16 %v5243_v23, %v5243_v23  ;;  %v5244_v24 = vmax.f32 %v14375_v26, 0.0  ;;  %13882 = vmatmul.mubr.bf16.gmra.mrb[40].mxu0 %v12615_v46  ;;  %v5771_v30 = vrot.slane %v5766_v52, 4  ;;  %v5773_v19 = vshrl.u32 %v17749_v28, 16 }
 0x359   : > { %v12956_v41 = vpack.c.bf16 %v5241_v62, %v5241_v62  ;;  %v5242_v60 = vmax.f32 %v14376_v8, 0.0  ;;  %v5735_v3 = vsel %vm17567_vm8, %v5727_v59, %v5734_v25  ;;  %v5770_v49 = vsel %vm17567_vm8, %v17635_v12, %v5769_v10 }
 0x35a   : > { %5515 = vst [vmem:[#allocation2 + $0xc4] sm:$0xf] %v12958_v15  ;;  %v12959_v9 = vpack.c.bf16 %v5244_v24, %v5244_v24  ;;  %v12616_v61 = vcombine.low %v5726_v1, %v5735_v3  ;;  %v5775_v33 = vrot.slane %v5773_v19, 7  ;;  %v5776_v27 = vshll.u32 %v17749_v28, 16  ;;  %v17768_v45 = vld [vmem:[#allocation2 + $0x94] sm:$0xf] }
 0x35b   : > { %5513 = vst [vmem:[#allocation2 + $0xb4] sm:$0xf] %v12956_v41  ;;  %v12957_v18 = vpack.c.bf16 %v5242_v60, %v5242_v60  ;;  %v13851_v20 = vpop.f32.mrb[24].mxu0  ;;  %v5742_v47 = vshrl.u32 %v17757_v63, 16  ;;  %v5745_v2 = vshll.u32 %v17757_v63, 16  ;;  %v5751_v59 = vshrl.u32 %v17760_v55, 16 }
 0x35c   : > { %5516 = vst [vmem:[#allocation2 + $0xc8] sm:$0xf] %v12959_v9  ;;  %13885 = vmatprep.mubr.bf16.mxu0 %v12616_v61  ;;  %v14377_v12 = vadd.f32 %v13851_v20, %v17608_v35  ;;  %v5158_v13 = vpop.f32.mrb[25].mxu0  ;;  %v5778_v7 = vor.u32 %v5776_v27, %v5775_v33  ;;  %v5754_v17 = vshll.u32 %v17760_v55, 16  ;;  %v5786_v50 = vshrl.u32 %v17768_v45, 16 }
 0x35d   : > { %5514 = vst [vmem:[#allocation2 + $0xb8] sm:$0xf] %v12957_v18  ;;  %v14378_v52 = vadd.f32 %v17608_v35, %v5158_v13  ;;  %v13852_v16 = vpop.f32.mrb[26].mxu0  ;;  %v5744_v23 = vrot.slane %v5742_v47, 7  ;;  %v5753_v26 = vrot.slane %v5751_v59, 7  ;;  %v5789_v54 = vshll.u32 %v17768_v45, 16 }
 0x35e   : > { %v5247_v46 = vmax.f32 %v14377_v12, 0.0  ;;  %v14379_v1 = vadd.f32 %v13852_v16, %v17608_v35  ;;  %v5779_v62 = vsel %vm17567_vm8, %v5771_v30, %v5778_v7  ;;  %v5161_v8 = vpop.f32.mrb[27].mxu0  ;;  %v5788_v25 = vrot.slane %v5786_v50, 7  ;;  %v17782_v41 = vld [vmem:[#allocation2 + $0x98] sm:$0xf] }
 0x35f   : > { %v5245_v10 = vmax.f32 %v14378_v52, 0.0  ;;  %v12618_v15 = vcombine.low %v5770_v49, %v5779_v62  ;;  %v14380_v24 = vadd.f32 %v17608_v35, %v5161_v8  ;;  %v5747_v19 = vor.u32 %v5745_v2, %v5744_v23  ;;  %v17787_v20 = vld [vmem:[#allocation2 + $0xa4] sm:$0xf]  ;;  %v17792_v12 = vld [vmem:[#allocation2 + $0xa8] sm:$0xf] }
 0x360   : > { %v12962_v60 = vpack.c.bf16 %v5247_v46, %v5247_v46  ;;  %v5248_v3 = vmax.f32 %v14379_v1, 0.0  ;;  %v5749_v9 = vrot.slane %v5744_v23, 4  ;;  %v5756_v61 = vor.u32 %v5754_v17, %v5753_v26 }
 0x361   : > { %v12960_v33 = vpack.c.bf16 %v5245_v10, %v5245_v10  ;;  %13889 = vmatprep.mubr.bf16.mxu1 %v12618_v15  ;;  %v5246_v27 = vmax.f32 %v14380_v24, 0.0  ;;  %v5748_v30 = vsel %vm17567_vm8, %v17638_v51, %v5747_v19  ;;  %v5791_v18 = vor.u32 %v5789_v54, %v5788_v25 }
 0x362   : > { %5519 = vst [vmem:[#allocation2 + $0xe4] sm:$0xf] %v12962_v60  ;;  %v12963_v49 = vpack.c.bf16 %v5248_v3, %v5248_v3  ;;  %v5757_v47 = vsel %vm17567_vm8, %v5749_v9, %v5756_v61  ;;  %v5793_v2 = vrot.slane %v5788_v25, 4  ;;  %v5795_v59 = vshrl.u32 %v17782_v41, 16  ;;  %v17794_v13 = vld [vmem:[#allocation2 + $0xb4] sm:$0xf] }
 0x363   : > { %5517 = vst [vmem:[#allocation2 + $0xd4] sm:$0xf] %v12960_v33  ;;  %v12961_v7 = vpack.c.bf16 %v5246_v27, %v5246_v27  ;;  %v12617_v17 = vcombine.low %v5748_v30, %v5757_v47  ;;  %v13855_v50 = vpop.f32.mrb[28].mxu0  ;;  %v5792_v51 = vsel %vm17567_vm8, %v17644_v36, %v5791_v18  ;;  %v5798_v52 = vshll.u32 %v17782_v41, 16 }
 0x364   : > { %5520 = vst [vmem:[#allocation2 + $0xe8] sm:$0xf] %v12963_v49  ;;  %v14381_v16 = vadd.f32 %v13855_v50, %v17608_v35  ;;  %v5174_v23 = vpop.f32.mrb[29].mxu0  ;;  %v5797_v26 = vrot.slane %v5795_v59, 7  ;;  %v5808_v54 = vshrl.u32 %v17787_v20, 16  ;;  %v5811_v46 = vshll.u32 %v17787_v20, 16 }
 0x365   : > { %5518 = vst [vmem:[#allocation2 + $0xd8] sm:$0xf] %v12961_v7  ;;  %13886 = vmatmul.mubr.bf16.gmra.mrb[44].mxu0 %v12617_v17  ;;  %v14382_v1 = vadd.f32 %v17608_v35, %v5174_v23  ;;  %v13856_v62 = vpop.f32.mrb[30].mxu0  ;;  %v5817_v8 = vshrl.u32 %v17792_v12, 16  ;;  %v5820_v36 = vshll.u32 %v17792_v12, 16  ;;  %v5830_v25 = vshrl.u32 %v17794_v13, 16 }
 0x366   : > { %v5251_v10 = vmax.f32 %v14381_v16, 0.0  ;;  %v14383_v15 = vadd.f32 %v13856_v62, %v17608_v35  ;;  %v5177_v24 = vpop.f32.mrb[31].mxu0  ;;  %v5800_v19 = vor.u32 %v5798_v52, %v5797_v26  ;;  %v5810_v60 = vrot.slane %v5808_v54, 7  ;;  %v17811_v47 = vld [vmem:[#allocation2 + $0xb8] sm:$0xf]  ;;  %v15178_v16 = vld [vmem:[#allocation3 + $0x48] sm:$0xff]  }
 0x367   : > { %v5249_v3 = vmax.f32 %v14382_v1, 0.0  ;;  %v14384_v9 = vadd.f32 %v17608_v35, %v5177_v24  ;;  %v5819_v61 = vrot.slane %v5817_v8, 7  ;;  %v5832_v33 = vrot.slane %v5830_v25, 7  ;;  %v17813_v52 = vld [vmem:[#allocation2 + $0xc4] sm:$0xf] }
 0x368   : > { %v12966_v27 = vpack.c.bf16 %v5251_v10, %v5251_v10  ;;  %v5252_v30 = vmax.f32 %v14383_v15, 0.0  ;;  %v5801_v18 = vsel %vm17567_vm8, %v5793_v2, %v5800_v19  ;;  %v5813_v49 = vor.u32 %v5811_v46, %v5810_v60  ;;  %v17819_v2 = vld [vmem:[#allocation2 + $0xc8] sm:$0xf] }
 0x369   : > { %v12964_v59 = vpack.c.bf16 %v5249_v3, %v5249_v3  ;;  %v5250_v7 = vmax.f32 %v14384_v9, 0.0  ;;  %v12619_v17 = vcombine.low %v5792_v51, %v5801_v18  ;;  %v5815_v50 = vrot.slane %v5810_v60, 4  ;;  %v15179_v60 = vld [vmem:[#allocation3 + $0x50] sm:$0xff]  }
 0x36a   : > { %5523 = vst [vmem:[#allocation2 + $0x104] sm:$0xf] %v12966_v27  ;;  %v12967_v23 = vpack.c.bf16 %v5252_v30, %v5252_v30  ;;  %v5814_v35 = vsel %vm17567_vm8, %v17640_v56, %v5813_v49  ;;  %v5822_v26 = vor.u32 %v5820_v36, %v5819_v61  ;;  %v5833_v54 = vshll.u32 %v17794_v13, 16  ;;  %v17823_v8 = vld [vmem:[#allocation2 + $0xd4] sm:$0xf] }
 0x36b   : > { %5521 = vst [vmem:[#allocation2 + $0xf4] sm:$0xf] %v12964_v59  ;;  %v12965_v46 = vpack.c.bf16 %v5250_v7, %v5250_v7  ;;  %13890 = vmatmul.mubr.bf16.vlgmr.msra.gmra.mrb[0].mxu1 %v12619_v17  ;;  %v5837_v1 = vrot.slane %v5832_v33, 4  ;;  %v5839_v51 = vshrl.u32 %v17811_v47, 16  ;;  %v5842_v62 = vshll.u32 %v17811_v47, 16 }
 0x36c   : > { %5524 = vst [vmem:[#allocation2 + $0x108] sm:$0xf] %v12967_v23  ;;  %v5823_v25 = vsel %vm17567_vm8, %v5815_v50, %v5822_v26  ;;  %13906 = vmatpush3.bf16.msra.mxu1 %v17575_v40  ;;  %v5835_v56 = vor.u32 %v5833_v54, %v5832_v33  ;;  %v5852_v36 = vshrl.u32 %v17813_v52, 16  ;;  %v5855_v10 = vshll.u32 %v17813_v52, 16  ;;  %v17830_v15 = vld [vmem:[#allocation2 + $0xd8] sm:$0xf] }
 0x36d   : > { %5522 = vst [vmem:[#allocation2 + $0xf8] sm:$0xf] %v12965_v46  ;;  %v12620_v24 = vcombine.low %v5814_v35, %v5823_v25  ;;  %13907 = vmatprep.subr.bf16.mxu1 %v15178_v16  ;;  %v5841_v19 = vrot.slane %v5839_v51, 7  ;;  %v5861_v3 = vshrl.u32 %v17819_v2, 16  ;;  %v5864_v9 = vshll.u32 %v17819_v2, 16  ;;  %v15180_v25 = vld [vmem:[#allocation3 + $0x58] sm:$0xff]  }
 0x36e   : > { %v17834_v61 = vld [vmem:[#allocation2 + $0xe4] sm:$0xf]  ;;  %v5836_v40 = vsel %vm17567_vm8, %v17650_v38, %v5835_v56  ;;  %v5854_v33 = vrot.slane %v5852_v36, 7  ;;  %v5874_v27 = vshrl.u32 %v17823_v8, 16  ;;  %v5877_v30 = vshll.u32 %v17823_v8, 16 }
 0x36f   : > { %13893 = vmatprep.mubr.bf16.mxu1 %v12620_v24  ;;  %v5844_v18 = vor.u32 %v5842_v62, %v5841_v19  ;;  %v5863_v49 = vrot.slane %v5861_v3, 7  ;;  %v5883_v59 = vshrl.u32 %v17830_v15, 16  ;;  %v5886_v7 = vshll.u32 %v17830_v15, 16  ;;  %v17843_v35 = vld [vmem:[#allocation2 + $0xe8] sm:$0xf] }
 0x370   : > { %13908 = vmatpush3.bf16.msra.mxu1 %v15178_v16  ;;  %v5857_v17 = vor.u32 %v5855_v10, %v5854_v33  ;;  %v5859_v50 = vrot.slane %v5854_v33, 4  ;;  %v5876_v23 = vrot.slane %v5874_v27, 7  ;;  %v5896_v38 = vshrl.u32 %v17834_v61, 16 }
 0x371   : > { %v5845_v26 = vsel %vm17567_vm8, %v5837_v1, %v5844_v18  ;;  %13909 = vmatprep.subr.bf16.mxu1 %v15179_v60  ;;  %v5866_v54 = vor.u32 %v5864_v9, %v5863_v49  ;;  %v5885_v46 = vrot.slane %v5883_v59, 7  ;;  %v5899_v51 = vshll.u32 %v17834_v61, 16 }
 0x372   : > { %v12621_v62 = vcombine.low %v5836_v40, %v5845_v26  ;;  %v5858_v16 = vsel %vm17567_vm8, %v17646_v6, %v5857_v17  ;;  %v5879_v56 = vor.u32 %v5877_v30, %v5876_v23  ;;  %v5881_v36 = vrot.slane %v5876_v23, 4  ;;  %v17852_v10 = vld [vmem:[#allocation2 + $0xf4] sm:$0xf] }
 0x373   : > { %v5867_v24 = vsel %vm17567_vm8, %v5859_v50, %v5866_v54  ;;  %v5888_v19 = vor.u32 %v5886_v7, %v5885_v46  ;;  %v5898_v1 = vrot.slane %v5896_v38, 7  ;;  %v5905_v3 = vshrl.u32 %v17843_v35, 16  ;;  %v15181_v7 = vld [vmem:[#allocation3 + $0x60] sm:$0xff]  }
 0x374   : > { %13894 = vmatmul.mubr.bf16.gmra.mrb[4].mxu1 %v12621_v62  ;;  %v12622_v9 = vcombine.low %v5858_v16, %v5867_v24  ;;  %v5880_v40 = vsel %vm17567_vm8, %v17657_v0, %v5879_v56  ;;  %v17860_v33 = vld [vmem:[#allocation2 + $0xf8] sm:$0xf]  ;;  %v12609_v6 = vrot.slane %v5913_v48, 11  ;;  %v5918_v27 = vshrl.u32 %v17852_v10, 16  ;;  %v15182_v56 = vld [vmem:[#allocation3 + $0x68] sm:$0xff]  }
 0x375   : > { %13910 = vmatpush3.bf16.msra.mxu1 %v15179_v60  ;;  %v5889_v30 = vsel %vm17567_vm8, %v5881_v36, %v5888_v19  ;;  %v5901_v18 = vor.u32 %v5899_v51, %v5898_v1  ;;  %v5907_v49 = vrot.slane %v5905_v3, 7  ;;  %v5908_v59 = vshll.u32 %v17843_v35, 16  ;;  %v15314_v3 = vld [vmem:[#allocation2 + $0x8] sm:$0xf] }
 0x376   : > { %13897 = vmatprep.mubr.bf16.mxu1 %v12622_v9  ;;  %13911 = vmatprep.subr.bf16.mxu1 %v15180_v25  ;;  %v5903_v17 = vrot.slane %v5898_v1, 4  ;;  %v5920_v0 = vrot.slane %v5918_v27, 7  ;;  %v5921_v50 = vshll.u32 %v17852_v10, 16  ;;  %v5927_v42 = vshrl.u32 %v17860_v33, 16  ;;  %v15313_v1 = vld [vmem:[#allocation2 + $0x4] sm:$0xf] }
 0x377   : > { %v12623_v48 = vcombine.low %v5880_v40, %v5889_v30  ;;  %v5902_v60 = vsel %vm17567_vm8, %v17652_v5, %v5901_v18  ;;  %v5910_v23 = vor.u32 %v5908_v59, %v5907_v49  ;;  %v12635_v38 = vcombine.low %v17654_v58, %v17666_v21  ;;  %v15184_v40 = vld [vmem:[#allocation3 + $0x78] sm:$0xff]   ;;  %v15187_v27 = vld [vmem:[#allocation3 + $0x80] sm:$0xff]   ;;  %v15190_v30 = vld [vmem:[#allocation3 + $0x88] sm:$0xff]  }
 0x378   : > { %v5923_v26 = vor.u32 %v5921_v50, %v5920_v0  ;;  %v5929_v54 = vrot.slane %v5927_v42, 7  ;;  %v5930_v46 = vshll.u32 %v17860_v33, 16  ;;  %v12636_v51 = vcombine.low %v17648_v37, %v17662_v34  ;;  %v5259_v34 = vld [vmem:[#allocation2 + $0xc] sm:$0x1]  ;;  %v15196_v18 = vld [vmem:[#allocation3 + $0x98] sm:$0xff]   ;;  %v15199_v49 = vld [vmem:[#allocation3 + $0xa0] sm:$0xff]  }
 0x379   : > { %13912 = vmatpush3.bf16.msra.mxu1 %v15180_v25  ;;  %v5911_v62 = vsel %vm17567_vm8, %v5903_v17, %v5910_v23  ;;  %v12637_v16 = vcombine.low %v17683_v32, %v17694_v22  ;;  %v12638_v5 = vcombine.low %v17681_v31, %v17689_v14  ;;  %v12639_v58 = vcombine.low %v17713_v11, %v17723_v43  ;;  %v15202_v59 = vld [vmem:[#allocation3 + $0xa8] sm:$0xff]   ;;  %v15208_v17 = vld [vmem:[#allocation3 + $0xb8] sm:$0xff]   ;;  %v6609_v50 = vld [vmem:[#allocation2 + $0x4] sm:$0xf] }
 0x37a   : > { %13913 = vmatprep.subr.bf16.mxu1 %v15181_v7  ;;  %v12624_v21 = vcombine.low %v5902_v60, %v5911_v62  ;;  %v5925_v36 = vrot.slane %v5920_v0, 4  ;;  %v5932_v24 = vor.u32 %v5930_v46, %v5929_v54  ;;  %v12640_v37 = vcombine.low %v17710_v39, %v17734_v53  ;;  %v17912_v0 = vld [vmem:[#allocation3 + $0xc0] sm:$0xff]   ;;  %v6610_v42 = vld [vmem:[#allocation2 + $0x8] sm:$0xf]  ;;  %v6617_v60 = vld [vmem:[#allocation2 + $0x2c] sm:$0x1] }
 0x37b   : > { %v12641_v25 = vcombine.low %v17757_v63, %v17760_v55  ;;  %v12642_v32 = vcombine.low %v17739_v44, %v17749_v28  ;;  %v12643_v31 = vcombine.low %v17768_v45, %v17782_v41  ;;  %v12644_v14 = vcombine.low %v17787_v20, %v17792_v12  ;;  %v15183_v63 = vld [vmem:[#allocation3 + $0x70] sm:$0xff]   ;;  %v6613_v46 = vld [vmem:[#allocation2 + $0x18] sm:$0xf] }
 0x37c   : > { %13898 = vmatmul.mubr.bf16.gmra.mrb[8].mxu1 %v12623_v48  ;;  %v12645_v22 = vcombine.low %v17794_v13, %v17811_v47  ;;  %v12646_v39 = vcombine.low %v17813_v52, %v17819_v2  ;;  %v12647_v11 = vcombine.low %v17823_v8, %v17830_v15  ;;  %v5933_v43 = vsel %vm17567_vm8, %v5925_v36, %v5932_v24  ;;  %v6614_v48 = vld [vmem:[#allocation2 + $0x1c] sm:$0x1]  ;;  %v6612_v20 = vld [vmem:[#allocation2 + $0x14] sm:$0xf] }
 0x37d   : > { %13901 = vmatprep.mubr.bf16.mxu1 %v12624_v21  ;;  %13914 = vmatpush3.bf16.msra.mxu1 %v15181_v7  ;;  %v12648_v53 = vcombine.low %v17834_v61, %v17843_v35  ;;  %v12649_v44 = vcombine.low %v17852_v10, %v17860_v33  ;;  %v5260_v28 = vsel %vm17579_vm10, 0, %v5259_v34  ;;  %v5924_v55 = vsel %vm17567_vm8, %v12609_v6, %v5923_v26  ;;  %v15193_v6 = vld [vmem:[#allocation3 + $0x90] sm:$0xff]   ;;  %v5349_v21 = vld [vmem:[#allocation2 + $0xfc] sm:$0x1] }
 0x37e   : > { %13915 = vmatprep.subr.bf16.mxu1 %v15182_v56  ;;  %5261 = vst [vmem:[#allocation2 + $0xc] sm:$0x1] %v5260_v28  ;;  %v12625_v19 = vcombine.low %v5924_v55, %v5933_v43  ;;  %v12634_v9 = vcombine.low %v15313_v1, %v15314_v3  ;;  %v15205_v7 = vld [vmem:[#allocation3 + $0xb0] sm:$0xff]   ;;  %v6658_v23 = vshrl.u32 %v6609_v50, 16  ;;  %v6667_v26 = vshll.u32 %v6610_v42, 16 }
 0x37f   : > { %v6671_v54 = vshrl.u32 %v6610_v42, 16  ;;  %v6725_v62 = vshll.u32 %v6617_v60, 16  ;;  %v6691_v24 = vshll.u32 %v6613_v46, 16  ;;  %v6626_v34 = vld [vmem:[#allocation2 + $0x5c] sm:$0x1]  ;;  %v5350_v43 = vsel %vm17579_vm10, 0, %v5349_v21 }
 0x380   : > { %v17921_v41 = vrot.slane %v6667_v26, 5  ;;  %v6682_v28 = vshrl.u32 %v6612_v20, 16  ;;  %v6616_v55 = vld [vmem:[#allocation2 + $0x28] sm:$0xf]  ;;  %5351 = vst [vmem:[#allocation2 + $0xfc] sm:$0x1] %v5350_v43 }
 0x381   : > { %13916 = vmatpush3.bf16.msra.mxu1 %v15182_v56  ;;  %v6660_v56 = vrot.slane %v6658_v23, 4  ;;  %v6673_v36 = vrot.slane %v6671_v54, 4  ;;  %v6797_v3 = vshll.u32 %v6626_v34, 16  ;;  %v6719_v52 = vshrl.u32 %v6616_v55, 16  ;;  %v6641_v23 = vld [vmem:[#allocation2 + $0xac] sm:$0x1] }
 0x382   : > { %13917 = vmatprep.subr.bf16.mxu1 %v15183_v63  ;;  %v6622_v21 = vld [vmem:[#allocation2 + $0x48] sm:$0xf] }
 0x383   : > { %v6674_v47 = vor.u32 %v6673_v36, %v17921_v41  ;;  %v6763_v61 = vshll.u32 %v6622_v21, 16  ;;  %v6767_v35 = vshrl.u32 %v6622_v21, 16 }
 0x384   : > { %13902 = vmatmul.mubr.bf16.gmra.mrb[12].mxu1 %v12625_v19  ;;  %v17933_v19 = vrot.slane %v6725_v62, 5 }
 0x385   : > { %13918 = vmatpush3.bf16.msra.mxu1 %v15183_v63  ;;  %13921 = vmatprep.mubr.bf16.mxu1 %v12634_v9  ;;  %v6611_v12 = vld [vmem:[#allocation2 + $0xc] sm:$0x1]  ;;  %v6685_v63 = vshll.u32 %v6612_v20, 16  ;;  %v17936_v9 = vrot.slane %v6691_v24, 5  ;;  %v6675_v42 = vrot.slane %v6674_v47, 4 }
 0x386   : > { %13919 = vmatprep.subr.bf16.mxu1 %v15184_v40 }
 0x389   : > { %13920 = vmatpush3.bf16.msra.mxu1 %v15184_v40 }
 0x38a   : > { %13953 = vmatprep.subr.bf16.mxu1 %v15187_v27 }
 0x38c   : > { %13922 = vmatmul.mubr.bf16.vlgmr.msra.gmra.mrb[16].mxu1 %v12635_v38  ;;  %v6661_v38 = vshll.u32 %v6609_v50, 16 }
 0x38d   : > { %13925 = vmatprep.mubr.bf16.mxu1 %v12636_v51  ;;  %13954 = vmatpush3.bf16.msra.mxu1 %v15187_v27  ;;  %v6701_v51 = vshll.u32 %v6614_v48, 16 }
 0x38e   : > { %13955 = vmatprep.subr.bf16.mxu1 %v15190_v30  ;;  %v6663_v45 = vrot.slane %v6661_v38, 5 }
 0x390   : > { %v6664_v13 = vor.u32 %v6663_v45, %v6660_v56  ;;  %v6621_v45 = vld [vmem:[#allocation2 + $0x44] sm:$0xf] }
 0x391   : > { %13956 = vmatpush3.bf16.msra.mxu1 %v15190_v30  ;;  %v6754_v43 = vshrl.u32 %v6621_v45, 16 }
 0x392   : > { %13957 = vmatprep.subr.bf16.mxu1 %v15193_v6  ;;  %v6665_v50 = vrot.slane %v6664_v13, 4 }
 0x394   : > { %13926 = vmatmul.mubr.bf16.gmra.mrb[20].mxu1 %v12637_v16  ;;  %v6623_v16 = vld [vmem:[#allocation2 + $0x4c] sm:$0x1]  ;;  %v6670_v8 = vsel %vm15640_vm2, %v6665_v50, %v17921_v41  ;;  %v6627_v50 = vld [vmem:[#allocation2 + $0x64] sm:$0xf] }
 0x395   : > { %13929 = vmatprep.mubr.bf16.mxu1 %v12638_v5  ;;  %13958 = vmatpush3.bf16.msra.mxu1 %v15193_v6  ;;  %v6620_v5 = vld [vmem:[#allocation2 + $0x3c] sm:$0x1]  ;;  %v6715_v6 = vshll.u32 %v6616_v55, 16 }
 0x396   : > { %13959 = vmatprep.subr.bf16.mxu1 %v15196_v18 }
 0x397   : > { %v17950_v62 = vrot.slane %v6715_v6, 5  ;;  %v17975_v6 = vrot.slane %v6763_v61, 5 }
 0x399   : > { %13960 = vmatpush3.bf16.msra.mxu1 %v15196_v18  ;;  %v6635_v18 = vld [vmem:[#allocation2 + $0x8c] sm:$0x1] }
 0x39a   : > { %13961 = vmatprep.subr.bf16.mxu1 %v15199_v49  ;;  %v6869_v20 = vshll.u32 %v6635_v18, 16  ;;  %v6624_v18 = vld [vmem:[#allocation2 + $0x54] sm:$0xf] }
 0x39c   : > { %13930 = vmatmul.mubr.bf16.gmra.mrb[24].mxu1 %v12639_v58  ;;  %v6629_v58 = vld [vmem:[#allocation2 + $0x6c] sm:$0x1]  ;;  %v17965_v41 = vrot.slane %v6869_v20, 5 }
 0x39d   : > { %13933 = vmatprep.mubr.bf16.mxu1 %v12640_v37  ;;  %13962 = vmatpush3.bf16.msra.mxu1 %v15199_v49  ;;  %v6695_v37 = vshrl.u32 %v6613_v46, 16  ;;  %v6821_v1 = vshll.u32 %v6629_v58, 16  ;;  %v6684_v49 = vrot.slane %v6682_v28, 4  ;;  %v6619_v46 = vld [vmem:[#allocation2 + $0x38] sm:$0xf] }
 0x39e   : > { %13963 = vmatprep.subr.bf16.mxu1 %v15202_v59  ;;  %v6743_v24 = vshrl.u32 %v6619_v46, 16 }
 0x39f   : > { %v6697_v40 = vrot.slane %v6695_v37, 4  ;;  %v17942_v60 = vrot.slane %v6821_v1, 5  ;;  %v17960_v37 = vld [vmem:[#allocation2 + $0x9c] sm:$0x1] }
 0x3a0   : > { %v6893_v1 = vshll.u32 %v17960_v37, 16  ;;  %v6745_v47 = vrot.slane %v6743_v24, 4 }
 0x3a1   : > { %13964 = vmatpush3.bf16.msra.mxu1 %v15202_v59  ;;  %v6687_v59 = vrot.slane %v6685_v63, 5  ;;  %v6698_v38 = vor.u32 %v6697_v40, %v17936_v9  ;;  %v6625_v63 = vld [vmem:[#allocation2 + $0x58] sm:$0xf] }
 0x3a2   : > { %13965 = vmatprep.subr.bf16.mxu1 %v15205_v7 }
 0x3a3   : > { %v6688_v56 = vor.u32 %v6687_v59, %v6684_v49  ;;  %v6699_v34 = vrot.slane %v6698_v38, 4 }
 0x3a4   : > { %13934 = vmatmul.mubr.bf16.gmra.mrb[28].mxu1 %v12641_v25  ;;  %v17926_v25 = vrot.slane %v6701_v51, 5  ;;  %v17945_v51 = vrot.slane %v6797_v3, 5  ;;  %v6628_v3 = vld [vmem:[#allocation2 + $0x68] sm:$0xf] }
 0x3a5   : > { %13937 = vmatprep.mubr.bf16.mxu1 %v12642_v32  ;;  %13966 = vmatpush3.bf16.msra.mxu1 %v15205_v7  ;;  %v6615_v32 = vld [vmem:[#allocation2 + $0x24] sm:$0xf]  ;;  %v6618_v7 = vld [vmem:[#allocation2 + $0x34] sm:$0xf]  ;;  %v6815_v38 = vshrl.u32 %v6628_v3, 16 }
 0x3a6   : > { %13967 = vmatprep.subr.bf16.mxu1 %v15208_v17  ;;  %v6706_v27 = vshrl.u32 %v6615_v32, 16  ;;  %v6709_v30 = vshll.u32 %v6615_v32, 16  ;;  %v6733_v58 = vshll.u32 %v6618_v7, 16 }
 0x3a8   : > { %v6708_v26 = vrot.slane %v6706_v27, 4  ;;  %v6711_v54 = vrot.slane %v6709_v30, 5  ;;  %v6689_v27 = vrot.slane %v6688_v56, 4  ;;  %v6704_v30 = vsel %vm15640_vm2, %v6699_v34, %v17926_v25 }
 0x3a9   : > { %13968 = vmatpush3.bf16.msra.mxu1 %v15208_v17  ;;  %v6632_v17 = vld [vmem:[#allocation2 + $0x7c] sm:$0x1] }
 0x3aa   : > { %14001 = vmatprep.subr.bf16.mxu1 %v17912_v0  ;;  %v6845_v36 = vshll.u32 %v6632_v17, 16  ;;  %v6712_v32 = vor.u32 %v6711_v54, %v6708_v26  ;;  %v6756_v17 = vrot.slane %v6754_v43, 4  ;;  %v6778_v54 = vshrl.u32 %v6624_v18, 16 }
 0x3ab   : > { %v6694_v10 = vsel %vm15640_vm2, %v6689_v27, %v17936_v9  ;;  %v17997_v43 = vrot.slane %v6893_v1, 5  ;;  %v6633_v27 = vld [vmem:[#allocation2 + $0x84] sm:$0xf] }
 0x3ac   : > { %13938 = vmatmul.mubr.bf16.gmra.mrb[0].mxu1 %v12643_v31  ;;  %v6749_v31 = vshll.u32 %v6620_v5, 16  ;;  %v6730_v5 = vshrl.u32 %v6618_v7, 16  ;;  %v17963_v55 = vrot.slane %v6845_v36, 5  ;;  %v6713_v49 = vrot.slane %v6712_v32, 4 }
 0x3ad   : > { %13941 = vmatprep.mubr.bf16.mxu1 %v12644_v14  ;;  %v6773_v14 = vshll.u32 %v6623_v16, 16  ;;  %v6721_v16 = vrot.slane %v6719_v52, 4  ;;  %v6769_v52 = vrot.slane %v6767_v35, 4  ;;  %v6780_v37 = vrot.slane %v6778_v54, 4 }
 0x3ae   : > { %v17938_v2 = vrot.slane %v6749_v31, 5  ;;  %v6732_v31 = vrot.slane %v6730_v5, 4  ;;  %v12659_v5 = vcombine.low %v6694_v10, %v6704_v30  ;;  %v15212_v10 = vld [vmem:[#allocation3 + $0xd8] sm:$0xff]  }
 0x3af   : > { %v6770_v33 = vor.u32 %v6769_v52, %v17975_v6 }
 0x3b1   : > { %v6771_v61 = vrot.slane %v6770_v33, 4  ;;  %v6636_v33 = vld [vmem:[#allocation2 + $0x94] sm:$0xf] }
 0x3b4   : > { %13942 = vmatmul.mubr.bf16.gmra.mrb[4].mxu1 %v12645_v22  ;;  %v6677_v22 = vshll.u32 %v6611_v12, 16  ;;  %v6917_v12 = vshll.u32 %v6641_v23, 16  ;;  %v6811_v23 = vshll.u32 %v6628_v3, 16 }
 0x3b5   : > { %13945 = vmatprep.mubr.bf16.mxu1 %v12646_v39  ;;  %v17940_v39 = vrot.slane %v6773_v14, 5  ;;  %v6735_v14 = vrot.slane %v6733_v58, 5  ;;  %v6718_v58 = vsel %vm15640_vm2, %v6713_v49, %v17950_v62  ;;  %v15211_v49 = vld [vmem:[#allocation3 + $0xd0] sm:$0xff]  }
 0x3b6   : > { %v6679_v48 = vrot.slane %v6677_v22, 5  ;;  %v6757_v22 = vshll.u32 %v6621_v45, 16  ;;  %v17970_v40 = vrot.slane %v6917_v12, 5  ;;  %v17991_v45 = vld [vmem:[#allocation2 + $0xcc] sm:$0x1]  ;;  %v17995_v9 = vrot.slane %v6811_v23, 5 }
 0x3b7   : > { %v6736_v7 = vor.u32 %v6735_v14, %v6732_v31  ;;  %v6817_v12 = vrot.slane %v6815_v38, 4  ;;  %v6634_v14 = vld [vmem:[#allocation2 + $0x88] sm:$0xf] }
 0x3b8   : > { %v6680_v15 = vsel %vm15640_vm2, %v6675_v42, %v6679_v48  ;;  %v6787_v42 = vshll.u32 %v6625_v63, 16  ;;  %v6791_v48 = vshrl.u32 %v6625_v63, 16  ;;  %v6759_v26 = vrot.slane %v6757_v22, 5 }
 0x3b9   : > { %v12658_v28 = vcombine.low %v6670_v8, %v6680_v15  ;;  %v6737_v56 = vrot.slane %v6736_v7, 4  ;;  %v6631_v8 = vld [vmem:[#allocation2 + $0x78] sm:$0xf]  ;;  %v6859_v7 = vshll.u32 %v6634_v14, 16 }
 0x3ba   : > { %v17993_v36 = vrot.slane %v6787_v42, 5  ;;  %v6793_v20 = vrot.slane %v6791_v48, 4  ;;  %v6760_v24 = vor.u32 %v6759_v26, %v6756_v17  ;;  %v6839_v31 = vshrl.u32 %v6631_v8, 16  ;;  %v18014_v26 = vld [vmem:[#allocation2 + $0xbc] sm:$0x1] }
 0x3bb   : > { %v6863_v17 = vshrl.u32 %v6634_v14, 16  ;;  %v6850_v48 = vshrl.u32 %v6633_v27, 16 }
 0x3bc   : > { %13946 = vmatmul.mubr.bf16.gmra.mrb[8].mxu1 %v12647_v11  ;;  %v6739_v11 = vshll.u32 %v6619_v46, 16  ;;  %v6781_v46 = vshll.u32 %v6624_v18, 16  ;;  %v6794_v63 = vor.u32 %v6793_v20, %v17993_v36  ;;  %v6761_v52 = vrot.slane %v6760_v24, 4 }
 0x3bd   : > { %13949 = vmatprep.mubr.bf16.mxu1 %v12648_v53  ;;  %v6722_v53 = vor.u32 %v6721_v16, %v17950_v62  ;;  %v6805_v16 = vshll.u32 %v6627_v50, 16  ;;  %v6630_v62 = vld [vmem:[#allocation2 + $0x74] sm:$0xf]  ;;  %v6841_v42 = vrot.slane %v6839_v31, 4  ;;  %v6877_v31 = vshll.u32 %v6636_v33, 16 }
 0x3be   : > { %v17968_v13 = vrot.slane %v6739_v11, 5  ;;  %v15210_v11 = vld [vmem:[#allocation3 + $0xc8] sm:$0xff]   ;;  %v6783_v34 = vrot.slane %v6781_v46, 5  ;;  %v6826_v22 = vshrl.u32 %v6630_v62, 16  ;;  %v6829_v3 = vshll.u32 %v6630_v62, 16 }
 0x3bf   : > { %v6723_v59 = vrot.slane %v6722_v53, 4  ;;  %v6835_v53 = vshll.u32 %v6631_v8, 16  ;;  %v6795_v23 = vrot.slane %v6794_v63, 4 }
 0x3c0   : > { %v6746_v25 = vor.u32 %v6745_v47, %v17968_v13  ;;  %v6818_v47 = vor.u32 %v6817_v12, %v17995_v9  ;;  %v6742_v30 = vsel %vm15640_vm2, %v6737_v56, %v17968_v13  ;;  %v6784_v18 = vor.u32 %v6783_v34, %v6780_v37  ;;  %v6640_v56 = vld [vmem:[#allocation2 + $0xa8] sm:$0xf]  ;;  %v6639_v34 = vld [vmem:[#allocation2 + $0xa4] sm:$0xf] }
 0x3c1   : > { %v6728_v21 = vsel %vm15640_vm2, %v6723_v59, %v17933_v19  ;;  %v6807_v19 = vrot.slane %v6805_v16, 5  ;;  %v6853_v13 = vshll.u32 %v6633_v27, 16  ;;  %v6852_v12 = vrot.slane %v6850_v48, 4 }
 0x3c2   : > { %v6747_v15 = vrot.slane %v6746_v25, 4  ;;  %v12660_v32 = vcombine.low %v6718_v58, %v6728_v21  ;;  %v6819_v38 = vrot.slane %v6818_v47, 4  ;;  %v6831_v25 = vrot.slane %v6829_v3, 5  ;;  %v6643_v3 = vld [vmem:[#allocation2 + $0xb8] sm:$0xf] }
 0x3c3   : > { %v6785_v46 = vrot.slane %v6784_v18, 4  ;;  %v18019_v58 = vrot.slane %v6859_v7, 5  ;;  %v6865_v21 = vrot.slane %v6863_v17, 4  ;;  %v6855_v8 = vrot.slane %v6853_v13, 5  ;;  %v6642_v18 = vld [vmem:[#allocation2 + $0xb4] sm:$0xf] }
 0x3c4   : > { %13950 = vmatmul.mubr.bf16.gmra.mrb[12].mxu1 %v12649_v44  ;;  %v6802_v44 = vshrl.u32 %v6627_v50, 16  ;;  %v6752_v1 = vsel %vm15640_vm2, %v6747_v15, %v17938_v2  ;;  %v18012_v50 = vrot.slane %v6835_v53, 5  ;;  %v6828_v2 = vrot.slane %v6826_v22, 4  ;;  %v15214_v7 = vld [vmem:[#allocation3 + $0xe8] sm:$0xff]  }
 0x3c5   : > { %13969 = vmatprep.mubr.bf16.mxu1 %v12658_v28  ;;  %v6965_v28 = vshll.u32 %v17991_v45, 16  ;;  %v12661_v54 = vcombine.low %v6742_v30, %v6752_v1  ;;  %v6941_v15 = vshll.u32 %v18014_v26, 16  ;;  %v6874_v37 = vshrl.u32 %v6636_v33, 16 }
 0x3c6   : > { %v6804_v35 = vrot.slane %v6802_v44, 4  ;;  %v6637_v44 = vld [vmem:[#allocation2 + $0x98] sm:$0xf]  ;;  %v6842_v20 = vor.u32 %v6841_v42, %v18012_v50  ;;  %v6832_v24 = vor.u32 %v6831_v25, %v6828_v2  ;;  %v6790_v53 = vsel %vm15640_vm2, %v6785_v46, %v17993_v36  ;;  %v6646_v36 = vld [vmem:[#allocation2 + $0xc8] sm:$0xf] }
 0x3c7   : > { %v6883_v62 = vshll.u32 %v6637_v44, 16  ;;  %v6856_v63 = vor.u32 %v6855_v8, %v6852_v12  ;;  %v6898_v47 = vshrl.u32 %v6639_v34, 16  ;;  %v6901_v22 = vshll.u32 %v6639_v34, 16 }
 0x3c8   : > { %v6808_v59 = vor.u32 %v6807_v19, %v6804_v35  ;;  %v6907_v35 = vshll.u32 %v6640_v56, 16  ;;  %v6911_v19 = vshrl.u32 %v6640_v56, 16  ;;  %v6843_v14 = vrot.slane %v6842_v20, 4 }
 0x3c9   : > { %v6833_v1 = vrot.slane %v6832_v24, 4  ;;  %v6879_v42 = vrot.slane %v6877_v31, 5  ;;  %v6931_v48 = vshll.u32 %v6643_v3, 16  ;;  %v6935_v13 = vshrl.u32 %v6643_v3, 16 }
 0x3ca   : > { %v6857_v2 = vrot.slane %v6856_v63, 4  ;;  %v6900_v25 = vrot.slane %v6898_v47, 4  ;;  %v6925_v46 = vshll.u32 %v6642_v18, 16  ;;  %v6959_v33 = vshrl.u32 %v6646_v36, 16  ;;  %v6651_v47 = vld [vmem:[#allocation2 + $0xe4] sm:$0xf] }
 0x3cb   : > { %v18053_v20 = vrot.slane %v6931_v48, 5  ;;  %v6937_v12 = vrot.slane %v6935_v13, 4  ;;  %v18068_v3 = vrot.slane %v6965_v28, 5  ;;  %v6653_v28 = vld [vmem:[#allocation2 + $0xec] sm:$0x1] }
 0x3cc   : > { %13970 = vmatmul.mubr.bf16.vlgmr.msra.gmra.mrb[16].mxu1 %v12659_v5  ;;  %v6809_v5 = vrot.slane %v6808_v59, 4  ;;  %v6913_v59 = vrot.slane %v6911_v19, 4 }
 0x3cd   : > { %13973 = vmatprep.mubr.bf16.mxu1 %v12660_v32  ;;  %14002 = vmatpush3.bf16.msra.mxu1 %v17912_v0  ;;  %v6776_v0 = vsel %vm15640_vm2, %v6771_v61, %v17940_v39  ;;  %v6766_v39 = vsel %vm15640_vm2, %v6761_v52, %v17975_v6  ;;  %v6800_v6 = vsel %vm15640_vm2, %v6795_v23, %v17945_v51  ;;  %v6887_v32 = vshrl.u32 %v6637_v44, 16  ;;  %v15213_v61 = vld [vmem:[#allocation3 + $0xe0] sm:$0xff]  }
 0x3ce   : > { %14003 = vmatprep.subr.bf16.mxu1 %v15210_v11  ;;  %v12662_v16 = vcombine.low %v6766_v39, %v6776_v0  ;;  %v6814_v51 = vsel %vm15640_vm2, %v6809_v5, %v17995_v9  ;;  %v12663_v27 = vcombine.low %v6790_v53, %v6800_v6  ;;  %v18036_v52 = vrot.slane %v6874_v37, 4  ;;  %v6645_v23 = vld [vmem:[#allocation2 + $0xc4] sm:$0xf]  ;;  %v6648_v37 = vld [vmem:[#allocation2 + $0xd4] sm:$0xf] }
 0x3cf   : > { %v6889_v0 = vrot.slane %v6887_v32, 4  ;;  %v18040_v9 = vrot.slane %v6907_v35, 5  ;;  %v6922_v39 = vshrl.u32 %v6642_v18, 16  ;;  %v6838_v44 = vsel %vm15640_vm2, %v6833_v1, %v18012_v50 }
 0x3d0   : > { %v6949_v8 = vshll.u32 %v6645_v23, 16  ;;  %v6862_v50 = vsel %vm15640_vm2, %v6857_v2, %v18019_v58  ;;  %v6938_v31 = vor.u32 %v6937_v12, %v18053_v20  ;;  %v6973_v63 = vshll.u32 %v6648_v37, 16  ;;  %v18088_v12 = vld [vmem:[#allocation2 + $0xf4] sm:$0xf] }
 0x3d1   : > { %14004 = vmatpush3.bf16.msra.mxu1 %v15210_v11  ;;  %v6824_v11 = vsel %vm15640_vm2, %v6819_v38, %v17942_v60  ;;  %v6866_v60 = vor.u32 %v6865_v21, %v18019_v58  ;;  %v6848_v38 = vsel %vm15640_vm2, %v6843_v14, %v17963_v55  ;;  %v6914_v5 = vor.u32 %v6913_v59, %v18040_v9  ;;  %v15215_v55 = vld [vmem:[#allocation3 + $0xf0] sm:$0xff]  }
 0x3d2   : > { %14005 = vmatprep.subr.bf16.mxu1 %v15211_v49  ;;  %v12664_v30 = vcombine.low %v6814_v51, %v6824_v11  ;;  %v6946_v21 = vshrl.u32 %v6645_v23, 16  ;;  %v12665_v6 = vcombine.low %v6838_v44, %v6848_v38  ;;  %v6880_v11 = vor.u32 %v6879_v42, %v18036_v52  ;;  %v6650_v23 = vld [vmem:[#allocation2 + $0xdc] sm:$0x1] }
 0x3d3   : > { %v6867_v17 = vrot.slane %v6866_v60, 4  ;;  %v6924_v34 = vrot.slane %v6922_v39, 4  ;;  %v6915_v53 = vrot.slane %v6914_v5, 4  ;;  %v15216_v60 = vld [vmem:[#allocation3 + $0xf8] sm:$0xff]   ;;  %v6951_v58 = vrot.slane %v6949_v8, 5 }
 0x3d4   : > { %13974 = vmatmul.mubr.bf16.gmra.mrb[20].mxu1 %v12661_v54  ;;  %v6903_v54 = vrot.slane %v6901_v22, 5  ;;  %v6948_v51 = vrot.slane %v6946_v21, 4  ;;  %v6970_v14 = vshrl.u32 %v6648_v37, 16  ;;  %v18064_v22 = vrot.slane %v6941_v15, 5  ;;  %v18102_v37 = vld [vmem:[#allocation2 + $0x14] sm:$0xf] }
 0x3d5   : > { %13977 = vmatprep.mubr.bf16.mxu1 %v12662_v16  ;;  %14006 = vmatpush3.bf16.msra.mxu1 %v15211_v49  ;;  %v18038_v49 = vrot.slane %v6883_v62, 5  ;;  %v6872_v56 = vsel %vm15640_vm2, %v6867_v17, %v17965_v41  ;;  %v6927_v62 = vrot.slane %v6925_v46, 5  ;;  %v6649_v41 = vld [vmem:[#allocation2 + $0xd8] sm:$0xf]  ;;  %v6881_v1 = vrot.slane %v6880_v11, 4 }
 0x3d6   : > { %14007 = vmatprep.subr.bf16.mxu1 %v15212_v10  ;;  %v6904_v24 = vor.u32 %v6903_v54, %v6900_v25  ;;  %v12666_v35 = vcombine.low %v6862_v50, %v6872_v56  ;;  %v6920_v45 = vsel %vm15640_vm2, %v6915_v53, %v17970_v40  ;;  %v6994_v15 = vshrl.u32 %v6651_v47, 16  ;;  %v18109_v53 = vld [vmem:[#allocation2 + $0x24] sm:$0xf] }
 0x3d7   : > { %v6890_v16 = vor.u32 %v6889_v0, %v18038_v49  ;;  %v6928_v18 = vor.u32 %v6927_v62, %v6924_v34  ;;  %v6652_v0 = vld [vmem:[#allocation2 + $0xe8] sm:$0xf]  ;;  %v6997_v59 = vshll.u32 %v6651_v47, 16  ;;  %v6939_v17 = vrot.slane %v6938_v31, 4  ;;  %v18104_v34 = vld [vmem:[#allocation2 + $0x18] sm:$0xf] }
 0x3d8   : > { %v6905_v52 = vrot.slane %v6904_v24, 4  ;;  %v6952_v42 = vor.u32 %v6951_v58, %v6948_v51  ;;  %v6972_v48 = vrot.slane %v6970_v14, 4  ;;  %v6975_v13 = vrot.slane %v6973_v63, 5  ;;  %v18106_v62 = vld [vmem:[#allocation2 + $0x28] sm:$0xf] }
 0x3d9   : > { %14008 = vmatpush3.bf16.msra.mxu1 %v15212_v10  ;;  %v6955_v10 = vshll.u32 %v6646_v36, 16  ;;  %v6891_v19 = vrot.slane %v6890_v16, 4  ;;  %v7003_v25 = vshll.u32 %v6652_v0, 16  ;;  %v6886_v40 = vsel %vm15640_vm2, %v6881_v1, %v18038_v49  ;;  %v6655_v49 = vld [vmem:[#allocation2 + $0xf8] sm:$0xf] }
 0x3da   : > { %14009 = vmatprep.subr.bf16.mxu1 %v15213_v61  ;;  %v6929_v54 = vrot.slane %v6928_v18, 4  ;;  %v7013_v46 = vshll.u32 %v6653_v28, 16  ;;  %v6996_v44 = vrot.slane %v6994_v15, 4  ;;  %v6999_v16 = vrot.slane %v6997_v59, 5  ;;  %v18111_v51 = vld [vmem:[#allocation2 + $0x38] sm:$0xf] }
 0x3db   : > { %v18059_v32 = vrot.slane %v6955_v10, 5  ;;  %v6896_v26 = vsel %vm15640_vm2, %v6891_v19, %v17997_v43  ;;  %v7007_v43 = vshrl.u32 %v6652_v0, 16  ;;  %v6953_v21 = vrot.slane %v6952_v42, 4  ;;  %v18124_v47 = vld [vmem:[#allocation2 + $0x68] sm:$0xf] }
 0x3dc   : > { %13978 = vmatmul.mubr.bf16.gmra.mrb[24].mxu1 %v12663_v27  ;;  %v6979_v27 = vshll.u32 %v6649_v41, 16  ;;  %v12667_v10 = vcombine.low %v6886_v40, %v6896_v26  ;;  %v6989_v56 = vshll.u32 %v6650_v23, 16  ;;  %v6944_v8 = vsel %vm15640_vm2, %v6939_v17, %v18064_v22  ;;  %v18126_v22 = vld [vmem:[#allocation2 + $0x78] sm:$0xf]  ;;  %v18135_v18 = vld [vmem:[#allocation2 + $0x44] sm:$0xf] }
 0x3dd   : > { %13981 = vmatprep.mubr.bf16.mxu1 %v12664_v30  ;;  %14010 = vmatpush3.bf16.msra.mxu1 %v15213_v61  ;;  %v6961_v61 = vrot.slane %v6959_v33, 4  ;;  %v6983_v30 = vshrl.u32 %v6649_v41, 16  ;;  %v6910_v33 = vsel %vm15640_vm2, %v6905_v52, %v18040_v9  ;;  %v18094_v50 = vrot.slane %v7003_v25, 5  ;;  %v18133_v52 = vld [vmem:[#allocation2 + $0x34] sm:$0xf] }
 0x3de   : > { %14011 = vmatprep.subr.bf16.mxu1 %v15214_v7  ;;  %v18079_v38 = vrot.slane %v6979_v27, 5  ;;  %v12668_v5 = vcombine.low %v6910_v33, %v6920_v45  ;;  %v7009_v9 = vrot.slane %v7007_v43, 4  ;;  %v6934_v11 = vsel %vm15640_vm2, %v6929_v54, %v18053_v20  ;;  %v18113_v20 = vld [vmem:[#allocation2 + $0x48] sm:$0xf]  ;;  %v18143_v26 = vld [vmem:[#allocation2 + $0x98] sm:$0xf] }
 0x3df   : > { %v6962_v36 = vor.u32 %v6961_v61, %v18059_v32  ;;  %v6985_v2 = vrot.slane %v6983_v30, 4  ;;  %v7000_v61 = vor.u32 %v6999_v16, %v6996_v44  ;;  %v7018_v41 = vshrl.u32 %v18088_v12, 16  ;;  %v18141_v0 = vld [vmem:[#allocation2 + $0x88] sm:$0xf]  ;;  %v18147_v15 = vld [vmem:[#allocation2 + $0x74] sm:$0xf] }
 0x3e0   : > { %v7031_v19 = vshrl.u32 %v6655_v49, 16  ;;  %v12669_v31 = vcombine.low %v6934_v11, %v6944_v8  ;;  %v6958_v58 = vsel %vm15640_vm2, %v6953_v21, %v18059_v32  ;;  %v18122_v63 = vrot.slane %v6989_v56, 5  ;;  %v18137_v32 = vld [vmem:[#allocation2 + $0x54] sm:$0xf]  ;;  %v18149_v59 = vld [vmem:[#allocation2 + $0x84] sm:$0xf] }
 0x3e1   : > { %14012 = vmatpush3.bf16.msra.mxu1 %v15214_v7  ;;  %v18077_v7 = vld [vmem:[#allocation3 + $0x100] sm:$0xff]   ;;  %v6963_v39 = vrot.slane %v6962_v36, 4  ;;  %v7010_v30 = vor.u32 %v7009_v9, %v18094_v50  ;;  %v18131_v1 = vrot.slane %v7013_v46, 5  ;;  %v7021_v45 = vshll.u32 %v18088_v12, 16  ;;  %v18151_v17 = vld [vmem:[#allocation2 + $0xa8] sm:$0xf] }
 0x3e2   : > { %14013 = vmatprep.subr.bf16.mxu1 %v15215_v55  ;;  %v18139_v36 = vld [vmem:[#allocation2 + $0x64] sm:$0xf]  ;;  %v7417_v28 = vshrl.u32 %v18102_v37, 16  ;;  %v18153_v42 = vld [vmem:[#allocation2 + $0xb8] sm:$0xf]  ;;  %v7001_v23 = vrot.slane %v7000_v61, 4 }
 0x3e3   : > { %v6968_v24 = vsel %vm15640_vm2, %v6963_v39, %v18068_v3  ;;  %v7033_v43 = vrot.slane %v7031_v19, 4  ;;  %v18161_v40 = vld [vmem:[#allocation2 + $0x94] sm:$0xf]  ;;  %v18163_v54 = vld [vmem:[#allocation2 + $0xa4] sm:$0xf]  ;;  %v7011_v8 = vrot.slane %v7010_v30, 4 }
 0x3e4   : > { %13982 = vmatmul.mubr.bf16.gmra.mrb[28].mxu1 %v12665_v6  ;;  %v6986_v6 = vor.u32 %v6985_v2, %v18079_v38  ;;  %v12670_v3 = vcombine.low %v6958_v58, %v6968_v24  ;;  %v7020_v2 = vrot.slane %v7018_v41, 4  ;;  %v18165_v39 = vld [vmem:[#allocation2 + $0xb4] sm:$0xf]  ;;  %v18167_v46 = vld [vmem:[#allocation2 + $0xc8] sm:$0xf]  ;;  %v7426_v9 = vshrl.u32 %v18104_v34, 16 }
 0x3e5   : > { %13985 = vmatprep.mubr.bf16.mxu1 %v12666_v35  ;;  %14014 = vmatpush3.bf16.msra.mxu1 %v15215_v55  ;;  %v6976_v55 = vor.u32 %v6975_v13, %v6972_v48  ;;  %v7027_v35 = vshll.u32 %v6655_v49, 16  ;;  %v18169_v33 = vld [vmem:[#allocation2 + $0xc4] sm:$0xf]  ;;  %v18171_v44 = vld [vmem:[#allocation2 + $0xd4] sm:$0xf]  ;;  %v7023_v41 = vrot.slane %v7021_v45, 5 }
 0x3e6   : > { %14015 = vmatprep.subr.bf16.mxu1 %v15216_v60  ;;  %v18128_v27 = vrot.slane %v6986_v6, 4  ;;  %v18173_v16 = vld [vmem:[#allocation2 + $0xd8] sm:$0xf]  ;;  %v6656_v6 = vld [vmem:[#allocation2 + $0xfc] sm:$0x1]  ;;  %v7419_v45 = vrot.slane %v7417_v28, 7 }
 0x3e7   : > { %v18120_v14 = vrot.slane %v6976_v55, 4  ;;  %v18159_v25 = vrot.slane %v7027_v35, 5  ;;  %v18177_v21 = vld [vmem:[#allocation2 + $0xf8] sm:$0xf]  ;;  %v18188_v11 = vld [vmem:[#allocation2 + $0x108] sm:$0xf]  ;;  %v7024_v55 = vor.u32 %v7023_v41, %v7020_v2 }
 0x3e8   : > { %v18194_v35 = vld [vmem:[#allocation2 + $0xe4] sm:$0xf]  ;;  %v18196_v19 = vld [vmem:[#allocation2 + $0xf4] sm:$0xf]  ;;  %v6992_v58 = vsel %vm15640_vm2, %v18128_v27, %v18122_v63  ;;  %v7037_v24 = vshll.u32 %v6656_v6, 16  ;;  %v7428_v56 = vrot.slane %v7426_v9, 7 }
 0x3e9   : > { %14016 = vmatpush3.bf16.msra.mxu1 %v15216_v60  ;;  %v18115_v60 = vld [vmem:[#allocation2 + $0x58] sm:$0xf]  ;;  %v18204_v49 = vld [vmem:[#allocation2 + $0x104] sm:$0xf]  ;;  %v7034_v30 = vor.u32 %v7033_v43, %v18159_v25  ;;  %v7448_v63 = vshrl.u32 %v18106_v62, 16  ;;  %v7006_v43 = vsel %vm15640_vm2, %v7001_v23, %v18094_v50  ;;  %v7420_v6 = vshll.u32 %v18102_v37, 16 }
 0x3ea   : > { %14049 = vmatprep.subr.bf16.mxu1 %v18077_v7  ;;  %v7439_v9 = vshrl.u32 %v18109_v53, 16  ;;  %v7366_v2 = vld [vmem:[#allocation2 + $0x20] sm:$0x8]  ;;  %v7470_v41 = vshrl.u32 %v18111_v51, 16  ;;  %v7424_v50 = vrot.slane %v7419_v45, 4  ;;  %v7461_v13 = vshrl.u32 %v18133_v52, 16 }
 0x3eb   : > { %v7035_v28 = vrot.slane %v7034_v30, 4  ;;  %v7369_v23 = vld [vmem:[#allocation2 + $0x30] sm:$0x8] }
 0x3ec   : > { %13986 = vmatmul.mubr.bf16.gmra.mrb[0].mxu1 %v12667_v10  ;;  %v7363_v10 = vld [vmem:[#allocation2 + $0x10] sm:$0x8] }
 0x3ed   : > { %13989 = vmatprep.mubr.bf16.mxu1 %v12668_v5  ;;  %v18175_v5 = vld [vmem:[#allocation2 + $0xe8] sm:$0xf]  ;;  %v7412_v12 = vshrl.u32 %v7363_v10, 16  ;;  %v15223_v48 = vld [vmem:[#allocation3 + $0x130] sm:$0xff]  }
 0x3ef   : > { %v12682_v61 = vrot.slane %v7412_v12, 11 }
 0x3f4   : > { %13990 = vmatmul.mubr.bf16.gmra.mrb[4].mxu1 %v12669_v31  ;;  %v6982_v31 = vsel %vm15640_vm2, %v18120_v14, %v18079_v38  ;;  %v7422_v38 = vor.u32 %v7420_v6, %v7419_v45  ;;  %v7442_v45 = vshll.u32 %v18109_v53, 16  ;;  %v7456_v6 = vshrl.u32 %v7369_v23, 16 }
 0x3f5   : > { %13993 = vmatprep.mubr.bf16.mxu1 %v12670_v3  ;;  %v7016_v3 = vsel %vm15640_vm2, %v7011_v8, %v18131_v1  ;;  %v12671_v27 = vcombine.low %v6982_v31, %v6992_v58  ;;  %v7429_v1 = vshll.u32 %v18104_v34, 16  ;;  %v7039_v8 = vrot.slane %v7037_v24, 5 }
 0x3f6   : > { %v12672_v10 = vcombine.low %v7006_v43, %v7016_v3  ;;  %v7025_v31 = vrot.slane %v7024_v55, 4  ;;  %v7450_v58 = vrot.slane %v7448_v63, 7  ;;  %v7434_v24 = vshrl.u32 %v7366_v2, 16 }
 0x3f7   : > { %v7431_v14 = vor.u32 %v7429_v1, %v7428_v56  ;;  %v7040_v30 = vsel %vm15640_vm2, %v7035_v28, %v7039_v8  ;;  %v7441_v3 = vrot.slane %v7439_v9, 7  ;;  %v7423_v56 = vsel %vm17567_vm8, %v12682_v61, %v7422_v38 }
 0x3f8   : > { %v7472_v43 = vrot.slane %v7470_v41, 7  ;;  %v7030_v55 = vsel %vm15640_vm2, %v7025_v31, %v18159_v25  ;;  %v7473_v28 = vshll.u32 %v18111_v51, 16  ;;  %v7492_v8 = vshrl.u32 %v18113_v20, 16 }
 0x3f9   : > { %v7432_v12 = vsel %vm17567_vm8, %v7424_v50, %v7431_v14  ;;  %v12673_v1 = vcombine.low %v7030_v55, %v7040_v30  ;;  %v12683_v61 = vrot.slane %v7434_v24, 11  ;;  %v7444_v38 = vor.u32 %v7442_v45, %v7441_v3  ;;  %v7372_v50 = vld [vmem:[#allocation2 + $0x40] sm:$0x8]  ;;  %v7375_v24 = vld [vmem:[#allocation2 + $0x50] sm:$0x8] }
 0x3fa   : > { %v12698_v9 = vcombine.low %v7423_v56, %v7432_v12  ;;  %v7446_v2 = vrot.slane %v7441_v3, 4  ;;  %v7464_v14 = vshll.u32 %v18133_v52, 16  ;;  %v7475_v41 = vor.u32 %v7473_v28, %v7472_v43 }
 0x3fb   : > { %v7483_v25 = vshrl.u32 %v18135_v18, 16  ;;  %v7514_v31 = vshrl.u32 %v18115_v60, 16  ;;  %v7505_v3 = vshrl.u32 %v18137_v32, 16  ;;  %v7445_v56 = vsel %vm17567_vm8, %v12683_v61, %v7444_v38 }
 0x3fc   : > { %13994 = vmatmul.mubr.bf16.gmra.mrb[8].mxu1 %v12671_v27  ;;  %v7451_v27 = vshll.u32 %v18106_v62, 16  ;;  %v7478_v12 = vshrl.u32 %v7372_v50, 16  ;;  %v7495_v45 = vshll.u32 %v18113_v20, 16  ;;  %v7517_v38 = vshll.u32 %v18115_v60, 16 }
 0x3fd   : > { %13997 = vmatprep.mubr.bf16.mxu1 %v12672_v10  ;;  %v7463_v10 = vrot.slane %v7461_v13, 7  ;;  %v7485_v55 = vrot.slane %v7483_v25, 7  ;;  %v7507_v61 = vrot.slane %v7505_v3, 7  ;;  %v7508_v50 = vshll.u32 %v18137_v32, 16 }
 0x3fe   : > { %v7453_v63 = vor.u32 %v7451_v27, %v7450_v58  ;;  %v12684_v58 = vrot.slane %v7456_v6, 11  ;;  %v7494_v27 = vrot.slane %v7492_v8, 7  ;;  %v7500_v6 = vshrl.u32 %v7375_v24, 16  ;;  %v7378_v24 = vld [vmem:[#allocation2 + $0x60] sm:$0x8] }
 0x3ff   : > { %v7466_v23 = vor.u32 %v7464_v14, %v7463_v10  ;;  %v7468_v30 = vrot.slane %v7463_v10, 4  ;;  %v7536_v10 = vshrl.u32 %v18124_v47, 16  ;;  %v7527_v25 = vshrl.u32 %v18139_v36, 16 }
 0x400   : > { %v7454_v13 = vsel %vm17567_vm8, %v7446_v2, %v7453_v63  ;;  %v7486_v63 = vshll.u32 %v18135_v18, 16  ;;  %v15218_v2 = vld [vmem:[#allocation3 + $0x108] sm:$0xff]   ;;  %v7510_v3 = vor.u32 %v7508_v50, %v7507_v61 }
 0x401   : > { %v7476_v43 = vsel %vm17567_vm8, %v7468_v30, %v7475_v41  ;;  %v12699_v28 = vcombine.low %v7445_v56, %v7454_v13  ;;  %v7467_v8 = vsel %vm17567_vm8, %v12684_v58, %v7466_v23  ;;  %v12685_v41 = vrot.slane %v7478_v12, 11 }
 0x402   : > { %v12700_v14 = vcombine.low %v7467_v8, %v7476_v43  ;;  %v7490_v13 = vrot.slane %v7485_v55, 4  ;;  %v7558_v56 = vshrl.u32 %v18126_v22, 16  ;;  %v12686_v58 = vrot.slane %v7500_v6, 11  ;;  %v15219_v43 = vld [vmem:[#allocation3 + $0x110] sm:$0xff]  }
 0x403   : > { %v7538_v23 = vrot.slane %v7536_v10, 7  ;;  %v7512_v12 = vrot.slane %v7507_v61, 4 }
 0x404   : > { %13998 = vmatmul.mubr.bf16.gmra.mrb[12].mxu1 %v12673_v1  ;;  %v7516_v1 = vrot.slane %v7514_v31, 7  ;;  %v7488_v31 = vor.u32 %v7486_v63, %v7485_v55  ;;  %v7522_v55 = vshrl.u32 %v7378_v24, 16  ;;  %v7539_v63 = vshll.u32 %v18124_v47, 16 }
 0x405   : > { %14017 = vmatprep.mubr.bf16.mxu1 %v12698_v9  ;;  %v7497_v9 = vor.u32 %v7495_v45, %v7494_v27  ;;  %v7381_v45 = vld [vmem:[#allocation2 + $0x70] sm:$0x8]  ;;  %v7560_v6 = vrot.slane %v7558_v56, 7  ;;  %v7571_v56 = vshrl.u32 %v18149_v59, 16 }
 0x406   : > { %v7519_v30 = vor.u32 %v7517_v38, %v7516_v1  ;;  %v7529_v1 = vrot.slane %v7527_v25, 7  ;;  %v7489_v8 = vsel %vm17567_vm8, %v12685_v41, %v7488_v31  ;;  %v7541_v61 = vor.u32 %v7539_v63, %v7538_v23  ;;  %v15220_v41 = vld [vmem:[#allocation3 + $0x118] sm:$0xff]  }
 0x407   : > { %v7498_v27 = vsel %vm17567_vm8, %v7490_v13, %v7497_v9  ;;  %v7530_v9 = vshll.u32 %v18139_v36, 16  ;;  %v7544_v38 = vshrl.u32 %v7381_v45, 16  ;;  %v7561_v25 = vshll.u32 %v18126_v22, 16 }
 0x408   : > { %v12701_v10 = vcombine.low %v7489_v8, %v7498_v27  ;;  %v7580_v13 = vshrl.u32 %v18141_v0, 16  ;;  %v12687_v24 = vrot.slane %v7522_v55, 11  ;;  %v7552_v23 = vshll.u32 %v18147_v15, 16  ;;  %v7387_v8 = vld [vmem:[#allocation2 + $0x90] sm:$0x8] }
 0x409   : > { %v7563_v27 = vor.u32 %v7561_v25, %v7560_v6  ;;  %v12688_v45 = vrot.slane %v7544_v38, 11  ;;  %v7588_v25 = vshrl.u32 %v7387_v8, 16 }
 0x40a   : > { %v7582_v55 = vrot.slane %v7580_v13, 7  ;;  %v7624_v13 = vshrl.u32 %v18151_v17, 16 }
 0x40c   : > { %14018 = vmatmul.mubr.bf16.vlgmr.msra.gmra.mrb[16].mxu1 %v12699_v28  ;;  %v7549_v28 = vshrl.u32 %v18147_v15, 16 }
 0x40d   : > { %14021 = vmatprep.mubr.bf16.mxu1 %v12700_v14  ;;  %14050 = vmatpush3.bf16.msra.mxu1 %v18077_v7  ;;  %v7520_v7 = vsel %vm17567_vm8, %v7512_v12, %v7519_v30  ;;  %v7511_v14 = vsel %vm17567_vm8, %v12686_v58, %v7510_v3  ;;  %v7534_v30 = vrot.slane %v7529_v1, 4  ;;  %v7384_v12 = vld [vmem:[#allocation2 + $0x80] sm:$0x8]  ;;  %v7602_v58 = vshrl.u32 %v18143_v26, 16 }
 0x40e   : > { %14051 = vmatprep.subr.bf16.mxu1 %v15218_v2  ;;  %v7551_v50 = vrot.slane %v7549_v28, 7  ;;  %v12702_v31 = vcombine.low %v7511_v14, %v7520_v7  ;;  %v7593_v7 = vshrl.u32 %v18161_v40, 16 }
 0x40f   : > { %v7542_v3 = vsel %vm17567_vm8, %v7534_v30, %v7541_v61  ;;  %v7583_v61 = vshll.u32 %v18141_v0, 16  ;;  %v7604_v38 = vrot.slane %v7602_v58, 7 }
 0x410   : > { %v7554_v28 = vor.u32 %v7552_v23, %v7551_v50  ;;  %v7556_v63 = vrot.slane %v7551_v50, 4  ;;  %v7574_v50 = vshll.u32 %v18149_v59, 16  ;;  %v15222_v23 = vld [vmem:[#allocation3 + $0x128] sm:$0xff]  }
 0x411   : > { %14052 = vmatpush3.bf16.msra.mxu1 %v15218_v2  ;;  %v7532_v2 = vor.u32 %v7530_v9, %v7529_v1  ;;  %v15221_v1 = vld [vmem:[#allocation3 + $0x120] sm:$0xff]   ;;  %v7573_v9 = vrot.slane %v7571_v56, 7  ;;  %v7585_v56 = vor.u32 %v7583_v61, %v7582_v55  ;;  %v7626_v61 = vrot.slane %v7624_v13, 7 }
 0x412   : > { %14053 = vmatprep.subr.bf16.mxu1 %v15219_v43  ;;  %v7564_v14 = vsel %vm17567_vm8, %v7556_v63, %v7563_v27  ;;  %v7390_v55 = vld [vmem:[#allocation2 + $0xa0] sm:$0x8] }
 0x413   : > { %v7533_v6 = vsel %vm17567_vm8, %v12687_v24, %v7532_v2  ;;  %v7595_v24 = vrot.slane %v7593_v7, 7  ;;  %v7605_v2 = vshll.u32 %v18143_v26, 16  ;;  %v7578_v8 = vrot.slane %v7573_v9, 4 }
 0x414   : > { %14022 = vmatmul.mubr.bf16.gmra.mrb[20].mxu1 %v12701_v10  ;;  %v7566_v10 = vshrl.u32 %v7384_v12, 16  ;;  %v7646_v7 = vshrl.u32 %v18153_v42, 16 }
 0x415   : > { %14025 = vmatprep.mubr.bf16.mxu1 %v12702_v31  ;;  %14054 = vmatpush3.bf16.msra.mxu1 %v15219_v43  ;;  %v12703_v43 = vcombine.low %v7533_v6, %v7542_v3  ;;  %v7555_v31 = vsel %vm17567_vm8, %v12688_v45, %v7554_v28  ;;  %v7576_v3 = vor.u32 %v7574_v50, %v7573_v9  ;;  %v7596_v45 = vshll.u32 %v18161_v40, 16 }
 0x416   : > { %14055 = vmatprep.subr.bf16.mxu1 %v15220_v41  ;;  %v12704_v27 = vcombine.low %v7555_v31, %v7564_v14  ;;  %v12689_v58 = vrot.slane %v7566_v10, 11  ;;  %v7607_v28 = vor.u32 %v7605_v2, %v7604_v38  ;;  %v12690_v14 = vrot.slane %v7588_v25, 11  ;;  %v7393_v31 = vld [vmem:[#allocation2 + $0xb0] sm:$0x8] }
 0x417   : > { %v7586_v10 = vsel %vm17567_vm8, %v7578_v8, %v7585_v56  ;;  %v7598_v50 = vor.u32 %v7596_v45, %v7595_v24  ;;  %v7637_v9 = vshrl.u32 %v18165_v39, 16  ;;  %v7610_v38 = vshrl.u32 %v7390_v55, 16 }
 0x418   : > { %v7648_v25 = vrot.slane %v7646_v7, 7  ;;  %v7618_v56 = vshll.u32 %v18163_v54, 16  ;;  %v7632_v8 = vshrl.u32 %v7393_v31, 16  ;;  %v7396_v31 = vld [vmem:[#allocation2 + $0xc0] sm:$0x8] }
 0x419   : > { %14056 = vmatpush3.bf16.msra.mxu1 %v15220_v41  ;;  %v7615_v41 = vshrl.u32 %v18163_v54, 16  ;;  %v7599_v45 = vsel %vm17567_vm8, %v12690_v14, %v7598_v50 }
 0x41a   : > { %v18298_v30 = vpop.f32.mrb[32].mxu0  ;;  %14057 = vmatprep.subr.bf16.mxu1 %v15221_v1 }
 0x41b   : > { %19677 = vst [vmem:[#allocation26_spill] sm:$0xff] %v18298_v30  ;;  %v18301_v12 = vpop.f32.mrb[33].mxu0  ;;  %v7617_v2 = vrot.slane %v7615_v41, 7  ;;  %v7639_v41 = vrot.slane %v7637_v9, 7  ;;  %v7690_v9 = vshrl.u32 %v18173_v16, 16 }
 0x41c   : > { %19678 = vst [vmem:[#allocation29_spill] sm:$0xff] %v18301_v12  ;;  %14026 = vmatmul.mubr.bf16.gmra.mrb[24].mxu1 %v12703_v43  ;;  %v18304_v63 = vpop.f32.mrb[34].mxu0  ;;  %v7600_v43 = vrot.slane %v7595_v24, 4  ;;  %v8447_v12 = vld [vmem:[#allocation2 + $0x3c] sm:$0x1] }
 0x41d   : > { %19679 = vst [vmem:[#allocation17_spill] sm:$0xff] %v18304_v63  ;;  %14029 = vmatprep.mubr.bf16.mxu1 %v12704_v27  ;;  %v18308_v6 = vpop.f32.mrb[35].mxu0  ;;  %14058 = vmatpush3.bf16.msra.mxu1 %v15221_v1  ;;  %v7627_v63 = vshll.u32 %v18151_v17, 16  ;;  %v7577_v27 = vsel %vm17567_vm8, %v12689_v58, %v7576_v3  ;;  %v7668_v58 = vshrl.u32 %v18167_v46, 16  ;;  %v15224_v3 = vld [vmem:[#allocation3 + $0x138] sm:$0xff]   ;;  %v7620_v14 = vor.u32 %v7618_v56, %v7617_v2  ;;  %v18337_v56 = vld [vmem:[#allocation3 + $0x140] sm:$0xff]  }
 0x41e   : > { %19680 = vst [vmem:[#allocation20_spill] sm:$0xff] %v18308_v6  ;;  %14059 = vmatprep.subr.bf16.mxu1 %v15222_v23  ;;  %v7608_v1 = vsel %vm17567_vm8, %v7600_v43, %v7607_v28  ;;  %v12705_v13 = vcombine.low %v7577_v27, %v7586_v10  ;;  %v7649_v6 = vshll.u32 %v18153_v42, 16  ;;  %v12691_v10 = vrot.slane %v7610_v38, 11 }
 0x41f   : > { %v7629_v24 = vor.u32 %v7627_v63, %v7626_v61  ;;  %v12706_v28 = vcombine.low %v7599_v45, %v7608_v1  ;;  %v7622_v43 = vrot.slane %v7617_v2, 4  ;;  %v7659_v63 = vshrl.u32 %v18169_v33, 16 }
 0x420   : > { %v7640_v61 = vshll.u32 %v18165_v39, 16  ;;  %v7651_v50 = vor.u32 %v7649_v6, %v7648_v25  ;;  %v12692_v38 = vrot.slane %v7632_v8, 11  ;;  %v7681_v2 = vshrl.u32 %v18171_v44, 16 }
 0x421   : > { %14060 = vmatpush3.bf16.msra.mxu1 %v15222_v23  ;;  %v7630_v1 = vsel %vm17567_vm8, %v7622_v43, %v7629_v24  ;;  %v7654_v6 = vshrl.u32 %v7396_v31, 16  ;;  %v7661_v25 = vrot.slane %v7659_v63, 7  ;;  %v7671_v24 = vshll.u32 %v18167_v46, 16 }
 0x422   : > { %v18321_v55 = vpop.f32.mrb[36].mxu0  ;;  %14061 = vmatprep.subr.bf16.mxu1 %v15223_v48  ;;  %v7642_v45 = vor.u32 %v7640_v61, %v7639_v41  ;;  %v7683_v31 = vrot.slane %v7681_v2, 7  ;;  %v7693_v63 = vshll.u32 %v18173_v16, 16 }
 0x423   : > { %19681 = vst [vmem:[#allocation21_spill] sm:$0xff] %v18321_v55  ;;  %v18325_v7 = vpop.f32.mrb[37].mxu0  ;;  %v7399_v55 = vld [vmem:[#allocation2 + $0xd0] sm:$0x8] }
 0x424   : > { %19682 = vst [vmem:[#allocation27_spill] sm:$0xff] %v18325_v7  ;;  %14030 = vmatmul.mubr.bf16.gmra.mrb[28].mxu1 %v12705_v13  ;;  %v18328_v23 = vpop.f32.mrb[38].mxu0  ;;  %v7644_v7 = vrot.slane %v7639_v41, 4  ;;  %v7670_v13 = vrot.slane %v7668_v58, 7  ;;  %v7662_v41 = vshll.u32 %v18169_v33, 16  ;;  %v7676_v58 = vshrl.u32 %v7399_v55, 16 }
 0x425   : > { %19683 = vst [vmem:[#allocation25_spill] sm:$0xff] %v18328_v23  ;;  %14033 = vmatprep.mubr.bf16.mxu1 %v12706_v28  ;;  %v18332_v27 = vpop.f32.mrb[39].mxu0  ;;  %14062 = vmatpush3.bf16.msra.mxu1 %v15223_v48  ;;  %v7621_v28 = vsel %vm17567_vm8, %v12691_v10, %v7620_v14  ;;  %v7692_v48 = vrot.slane %v7690_v9, 7  ;;  %v7643_v43 = vsel %vm17567_vm8, %v12692_v38, %v7642_v45  ;;  %v7712_v9 = vshrl.u32 %v18175_v5, 16  ;;  %v19749_v4 = vld [vmem:[#allocation17_spill] sm:$0xff] }
 0x426   : > { %19684 = vst [vmem:[#allocation28_spill] sm:$0xff] %v18332_v27  ;;  %14063 = vmatprep.subr.bf16.mxu1 %v15224_v3  ;;  %v7652_v27 = vsel %vm17567_vm8, %v7644_v7, %v7651_v50  ;;  %v12707_v8 = vcombine.low %v7621_v28, %v7630_v1  ;;  %v7673_v61 = vor.u32 %v7671_v24, %v7670_v13  ;;  %v12693_v7 = vrot.slane %v7654_v6, 11 }
 0x427   : > { %v12708_v10 = vcombine.low %v7643_v43, %v7652_v27  ;;  %v7664_v50 = vor.u32 %v7662_v41, %v7661_v25  ;;  %v7666_v55 = vrot.slane %v7661_v25, 4  ;;  %v7695_v38 = vor.u32 %v7693_v63, %v7692_v48  ;;  %v7402_v41 = vld [vmem:[#allocation2 + $0xe0] sm:$0x8]  ;;  %v7405_v48 = vld [vmem:[#allocation2 + $0xf0] sm:$0x8] }
 0x428   : > { %v7734_v45 = vshrl.u32 %v18177_v21, 16  ;;  %v12694_v2 = vrot.slane %v7676_v58, 11  ;;  %v7703_v27 = vshrl.u32 %v18194_v35, 16  ;;  %v7725_v25 = vshrl.u32 %v18196_v19, 16 }
 0x429   : > { %14064 = vmatpush3.bf16.msra.mxu1 %v15224_v3  ;;  %v7684_v3 = vshll.u32 %v18171_v44, 16  ;;  %v7674_v6 = vsel %vm17567_vm8, %v7666_v55, %v7673_v61  ;;  %v7714_v43 = vrot.slane %v7712_v9, 7  ;;  %v7665_v63 = vsel %vm17567_vm8, %v12693_v7, %v7664_v50 }
 0x42a   : > { %14097 = vmatprep.subr.bf16.mxu1 %v18337_v56  ;;  %v7727_v55 = vrot.slane %v7725_v25, 7  ;;  %v7737_v9 = vshll.u32 %v18177_v21, 16  ;;  %v7706_v23 = vshll.u32 %v18194_v35, 16  ;;  %v7756_v50 = vshrl.u32 %v18188_v11, 16 }
 0x42b   : > { %v18349_v14 = vpop.f32.mrb[40].mxu0  ;;  %v7686_v24 = vor.u32 %v7684_v3, %v7683_v31 }
 0x42c   : > { %19685 = vst [vmem:[#allocation15_spill] sm:$0xff] %v18349_v14  ;;  %14034 = vmatmul.mubr.bf16.gmra.mrb[0].mxu1 %v12707_v8  ;;  %v18352_v1 = vpop.f32.mrb[41].mxu0  ;;  %v7688_v8 = vrot.slane %v7683_v31, 4  ;;  %v7715_v14 = vshll.u32 %v18175_v5, 16  ;;  %v7720_v31 = vshrl.u32 %v7405_v48, 16  ;;  %v7732_v48 = vrot.slane %v7727_v55, 4 }
 0x42d   : > { %19686 = vst [vmem:[#allocation9_spill] sm:$0xff] %v18352_v1  ;;  %14037 = vmatprep.mubr.bf16.mxu1 %v12708_v10  ;;  %v18356_v13 = vpop.f32.mrb[42].mxu0  ;;  %v7736_v10 = vrot.slane %v7734_v45, 7  ;;  %v7698_v1 = vshrl.u32 %v7402_v41, 16  ;;  %v7687_v61 = vsel %vm17567_vm8, %v12694_v2, %v7686_v24  ;;  %v7728_v45 = vshll.u32 %v18196_v19, 16 }
 0x42e   : > { %19687 = vst [vmem:[#allocation10_spill] sm:$0xff] %v18356_v13  ;;  %v18359_v28 = vpop.f32.mrb[43].mxu0  ;;  %v7696_v58 = vsel %vm17567_vm8, %v7688_v8, %v7695_v38  ;;  %v12709_v13 = vcombine.low %v7665_v63, %v7674_v6  ;;  %v7717_v7 = vor.u32 %v7715_v14, %v7714_v43  ;;  %v5355_v38 = vld [vmem:[#allocation2 + $0x10c] sm:$0x1]  ;;  %v7747_v2 = vshrl.u32 %v18204_v49, 16 }
 0x42f   : > { %19688 = vst [vmem:[#allocation16_spill] sm:$0xff] %v18359_v28  ;;  %v7705_v28 = vrot.slane %v7703_v27, 7  ;;  %v12710_v3 = vcombine.low %v7687_v61, %v7696_v58  ;;  %v7739_v27 = vor.u32 %v7737_v9, %v7736_v10  ;;  %v12695_v6 = vrot.slane %v7698_v1, 11  ;;  %v7408_v63 = vld [vmem:[#allocation2 + $0x100] sm:$0x8] }
 0x430   : > { %v12696_v24 = vrot.slane %v7720_v31, 11  ;;  %v7730_v25 = vor.u32 %v7728_v45, %v7727_v55  ;;  %v5356_v14 = vsel %vm17579_vm10, 0, %v5355_v38  ;;  %v7742_v10 = vshrl.u32 %v7408_v63, 16 }
 0x431   : > { %v7708_v8 = vor.u32 %v7706_v23, %v7705_v28  ;;  %v7710_v41 = vrot.slane %v7705_v28, 4  ;;  %5357 = vst [vmem:[#allocation2 + $0x10c] sm:$0x1] %v5356_v14  ;;  %v7740_v23 = vsel %vm17567_vm8, %v7732_v48, %v7739_v27  ;;  %v7749_v61 = vrot.slane %v7747_v2, 7 }
 0x432   : > { %v7759_v31 = vshll.u32 %v18188_v11, 16  ;;  %v7750_v38 = vshll.u32 %v18204_v49, 16  ;;  %v12697_v27 = vrot.slane %v7742_v10, 11  ;;  %v19694_v63 = vcombine.low %v18109_v53, %v18106_v62  ;;  %v15239_v62 = vld [vmem:[#allocation3 + $0x160] sm:$0xff]   ;;  %v15242_v53 = vld [vmem:[#allocation3 + $0x168] sm:$0xff]  }
 0x433   : > { %v7718_v43 = vsel %vm17567_vm8, %v7710_v41, %v7717_v7  ;;  %v7709_v28 = vsel %vm17567_vm8, %v12695_v6, %v7708_v8  ;;  %v7754_v8 = vrot.slane %v7749_v61, 4  ;;  %v19695_v14 = vcombine.low %v18133_v52, %v18111_v51 }
 0x434   : > { %14038 = vmatmul.mubr.bf16.gmra.mrb[4].mxu1 %v12709_v13  ;;  %v7758_v13 = vrot.slane %v7756_v50, 7  ;;  %v12711_v9 = vcombine.low %v7709_v28, %v7718_v43  ;;  %v7752_v6 = vor.u32 %v7750_v38, %v7749_v61  ;;  %v15233_v43 = vld [vmem:[#allocation3 + $0x150] sm:$0xff]   ;;  %v19698_v51 = vcombine.low %v18139_v36, %v18124_v47  ;;  %v18428_v36 = vld [vmem:[#allocation3 + $0x180] sm:$0xff]   ;;  %v18445_v38 = vld [vmem:[#allocation2 + $0x28] sm:$0xf] }
 0x435   : > { %14041 = vmatprep.mubr.bf16.mxu1 %v12710_v3  ;;  %v7731_v3 = vsel %vm17567_vm8, %v12696_v24, %v7730_v25  ;;  %v19693_v24 = vcombine.low %v18102_v37, %v18104_v34  ;;  %v15230_v25 = vld [vmem:[#allocation3 + $0x148] sm:$0xff]   ;;  %v19696_v37 = vcombine.low %v18135_v18, %v18113_v20  ;;  %v19697_v34 = vcombine.low %v18137_v32, %v18115_v60  ;;  %v15245_v20 = vld [vmem:[#allocation3 + $0x170] sm:$0xff]   ;;  %v15248_v60 = vld [vmem:[#allocation3 + $0x178] sm:$0xff]  }
 0x436   : > { %v12712_v50 = vcombine.low %v7731_v3, %v7740_v23  ;;  %v7761_v45 = vor.u32 %v7759_v31, %v7758_v13  ;;  %v7753_v2 = vsel %vm17567_vm8, %v12697_v27, %v7752_v6  ;;  %v15236_v13 = vld [vmem:[#allocation3 + $0x158] sm:$0xff]   ;;  %v19699_v52 = vcombine.low %v18147_v15, %v18126_v22  ;;  %v8439_v47 = vld [vmem:[#allocation2 + $0x14] sm:$0xf]  ;;  %v8442_v23 = vld [vmem:[#allocation2 + $0x24] sm:$0xf] }
 0x437   : > { %v19700_v18 = vcombine.low %v18149_v59, %v18141_v0  ;;  %v19701_v32 = vcombine.low %v18161_v40, %v18143_v26  ;;  %v8440_v22 = vld [vmem:[#allocation2 + $0x18] sm:$0xf]  ;;  %v8488_v15 = vshrl.u32 %v8439_v47, 16  ;;  %v8443_v0 = vld [vmem:[#allocation2 + $0x28] sm:$0xf]  ;;  %v19702_v59 = vcombine.low %v18163_v54, %v18151_v17 }
 0x438   : > { %v18380_v58 = vpop.f32.mrb[44].mxu0  ;;  %v7762_v41 = vsel %vm17567_vm8, %v7754_v8, %v7761_v45  ;;  %v8497_v28 = vshll.u32 %v8440_v22, 16  ;;  %v8501_v10 = vshrl.u32 %v8440_v22, 16  ;;  %v18434_v26 = vld [vmem:[#allocation2 + $0x1c] sm:$0x1]  ;;  %v19703_v40 = vcombine.low %v18165_v39, %v18153_v42 }
 0x439   : > { %19689 = vst [vmem:[#allocation11_spill] sm:$0xff] %v18380_v58  ;;  %v18384_v1 = vpop.f32.mrb[45].mxu0  ;;  %v12713_v48 = vcombine.low %v7753_v2, %v7762_v41  ;;  %v18439_v61 = vrot.slane %v8488_v15, 4  ;;  %v8515_v3 = vshll.u32 %v8442_v23, 16  ;;  %v18447_v45 = vld [vmem:[#allocation2 + $0x38] sm:$0xf] }
 0x43a   : > { %19690 = vst [vmem:[#allocation13_spill] sm:$0xff] %v18384_v1  ;;  %v18389_v55 = vpop.f32.mrb[46].mxu0  ;;  %v8521_v17 = vshll.u32 %v8443_v0, 16  ;;  %v18449_v54 = vld [vmem:[#allocation2 + $0x48] sm:$0xf]  ;;  %v18453_v6 = vrot.slane %v8497_v28, 5 }
 0x43b   : > { %19691 = vst [vmem:[#allocation12_spill] sm:$0xff] %v18389_v55  ;;  %v18393_v7 = vpop.f32.mrb[47].mxu0  ;;  %v18451_v27 = vld [vmem:[#allocation2 + $0x58] sm:$0xf]  ;;  %v18455_v42 = vrot.slane %v8501_v10, 4  ;;  %v8555_v55 = vshll.u32 %v8447_v12, 16 }
 0x43c   : > { %19692 = vst [vmem:[#allocation18_spill] sm:$0xff] %v18393_v7  ;;  %14042 = vmatmul.mubr.bf16.gmra.mrb[8].mxu1 %v12711_v9  ;;  %v8512_v9 = vshrl.u32 %v8442_v23, 16  ;;  %v18457_v39 = vld [vmem:[#allocation2 + $0x34] sm:$0xf]  ;;  %v18459_v8 = vld [vmem:[#allocation2 + $0x24] sm:$0xf] }
 0x43d   : > { %14045 = vmatprep.mubr.bf16.mxu1 %v12712_v50  ;;  %v18443_v50 = vld [vmem:[#allocation2 + $0x38] sm:$0xf]  ;;  %v18461_v41 = vld [vmem:[#allocation2 + $0x34] sm:$0xf]  ;;  %v18463_v2 = vld [vmem:[#allocation2 + $0x68] sm:$0xf]  ;;  %v8504_v28 = vor.u32 %v18455_v42, %v18453_v6 }
 0x43e   : > { %v18497_v22 = vld [vmem:[#allocation2 + $0xb8] sm:$0xf]  ;;  %v18499_v15 = vld [vmem:[#allocation2 + $0xc8] sm:$0xf]  ;;  %v8549_v10 = vshrl.u32 %v18443_v50, 16  ;;  %v8536_v42 = vshrl.u32 %v18457_v39, 16 }
 0x43f   : > { %19704 = vst [vmem:[#allocation19_spill] sm:$0xff] %v18497_v22  ;;  %19705 = vst [vmem:[#allocation22_spill] sm:$0xff] %v18499_v15  ;;  %v8539_v23 = vshll.u32 %v18457_v39, 16  ;;  %v18527_v7 = vld [vmem:[#allocation2 + $0x108] sm:$0xf] }
 0x440   : > { %19712 = vst [vmem:[#allocation33_spill] sm:$0xff] %v18527_v7  ;;  %v8551_v39 = vrot.slane %v8549_v10, 4  ;;  %v8451_v1 = vld [vmem:[#allocation2 + $0x54] sm:$0xf]  ;;  %v8452_v7 = vld [vmem:[#allocation2 + $0x58] sm:$0xf] }
 0x444   : > { %14046 = vmatmul.mubr.bf16.gmra.mrb[12].mxu1 %v12713_v48  ;;  %v18465_v48 = vld [vmem:[#allocation2 + $0x78] sm:$0xf] }
 0x445   : > { %14065 = vmatprep.mubr.bf16.mxu1 %v19693_v24  ;;  %v8507_v24 = vshll.u32 %v18434_v26, 16  ;;  %v18508_v26 = vld [vmem:[#allocation2 + $0xb4] sm:$0xf] }
 0x446   : > { %19706 = vst [vmem:[#allocation23_spill] sm:$0xff] %v18508_v26 }
 0x447   : > { %v8509_v22 = vrot.slane %v8507_v24, 5 }
 0x44c   : > { %14066 = vmatmul.mubr.bf16.vlgmr.msra.gmra.mrb[16].mxu1 %v19694_v63  ;;  %v18470_v63 = vld [vmem:[#allocation2 + $0x54] sm:$0xf] }
 0x44d   : > { %14069 = vmatprep.mubr.bf16.mxu1 %v19695_v14  ;;  %14098 = vmatpush3.bf16.msra.mxu1 %v18337_v56  ;;  %v8491_v56 = vshll.u32 %v8439_v47, 16  ;;  %v18472_v14 = vld [vmem:[#allocation2 + $0x88] sm:$0xf]  ;;  %v18495_v47 = vld [vmem:[#allocation2 + $0xa4] sm:$0xf] }
 0x44e   : > { %14099 = vmatprep.subr.bf16.mxu1 %v15230_v25 }
 0x44f   : > { %v18441_v31 = vrot.slane %v8491_v56, 5  ;;  %v18525_v56 = vld [vmem:[#allocation2 + $0xf8] sm:$0xf] }
 0x450   : > { %19711 = vst [vmem:[#allocation32_spill] sm:$0xff] %v18525_v56 }
 0x451   : > { %14100 = vmatpush3.bf16.msra.mxu1 %v15230_v25  ;;  %v18468_v25 = vld [vmem:[#allocation2 + $0x44] sm:$0xf] }
 0x452   : > { %14101 = vmatprep.subr.bf16.mxu1 %v15233_v43  ;;  %v19725_v57 = vcombine.low %v18468_v25, %v18449_v54 }
 0x454   : > { %14070 = vmatmul.mubr.bf16.gmra.mrb[20].mxu1 %v19696_v37  ;;  %v18478_v37 = vrot.slane %v8512_v9, 4  ;;  %v18548_v9 = vld [vmem:[#allocation2 + $0xf4] sm:$0xf] }
 0x455   : > { %14073 = vmatprep.mubr.bf16.mxu1 %v19697_v34  ;;  %14102 = vmatpush3.bf16.msra.mxu1 %v15233_v43  ;;  %v18474_v43 = vld [vmem:[#allocation2 + $0x98] sm:$0xf]  ;;  %v18480_v34 = vrot.slane %v8515_v3, 5  ;;  %v19713_v3 = vcombine.low %v18171_v44, %v18173_v16  ;;  %19715 = vst [vmem:[#allocation35_spill] sm:$0xff] %v18548_v9  ;;  %v18550_v44 = vld [vmem:[#allocation2 + $0x104] sm:$0xf] }
 0x456   : > { %14103 = vmatprep.subr.bf16.mxu1 %v15236_v13  ;;  %19716 = vst [vmem:[#allocation36_spill] sm:$0xff] %v18550_v44 }
 0x457   : > { %v8518_v10 = vor.u32 %v18480_v34, %v18478_v37  ;;  %v19718_v37 = vcombine.low %v18196_v19, %v18177_v21  ;;  %v8454_v21 = vld [vmem:[#allocation2 + $0x64] sm:$0xf] }
 0x459   : > { %14104 = vmatpush3.bf16.msra.mxu1 %v15236_v13  ;;  %v8494_v13 = vor.u32 %v18441_v31, %v18439_v61  ;;  %v18512_v61 = vld [vmem:[#allocation2 + $0xd8] sm:$0xf]  ;;  %v18514_v31 = vld [vmem:[#allocation2 + $0xe8] sm:$0xf] }
 0x45a   : > { %14105 = vmatprep.subr.bf16.mxu1 %v15239_v62  ;;  %19708 = vst [vmem:[#allocation30_spill] sm:$0xff] %v18512_v61  ;;  %19709 = vst [vmem:[#allocation31_spill] sm:$0xff] %v18514_v31  ;;  %v8611_v61 = vshll.u32 %v8454_v21, 16 }
 0x45b   : > { %v8495_v15 = vrot.slane %v8494_v13, 4 }
 0x45c   : > { %14074 = vmatmul.mubr.bf16.gmra.mrb[24].mxu1 %v19698_v51  ;;  %v18484_v51 = vld [vmem:[#allocation2 + $0x74] sm:$0xf] }
 0x45d   : > { %14077 = vmatprep.mubr.bf16.mxu1 %v19699_v52  ;;  %14106 = vmatpush3.bf16.msra.mxu1 %v15239_v62  ;;  %v8525_v62 = vshrl.u32 %v8443_v0, 16  ;;  %v18486_v52 = vld [vmem:[#allocation2 + $0xa8] sm:$0xf]  ;;  %v8448_v0 = vld [vmem:[#allocation2 + $0x44] sm:$0xf]  ;;  %v8500_v12 = vsel %vm15640_vm2, %v8495_v15, %v18453_v6 }
 0x45e   : > { %14107 = vmatprep.subr.bf16.mxu1 %v15242_v53  ;;  %v8560_v30 = vshrl.u32 %v8448_v0, 16  ;;  %v8563_v29 = vshll.u32 %v8448_v0, 16  ;;  %v19717_v0 = vcombine.low %v18194_v35, %v18175_v5  ;;  %v8593_v5 = vshll.u32 %v8452_v7, 16  ;;  %v8453_v15 = vld [vmem:[#allocation2 + $0x5c] sm:$0x1] }
 0x45f   : > { %v8597_v35 = vshrl.u32 %v8452_v7, 16 }
 0x460   : > { %v8562_v24 = vrot.slane %v8560_v30, 4  ;;  %v8455_v30 = vld [vmem:[#allocation2 + $0x68] sm:$0xf] }
 0x461   : > { %14108 = vmatpush3.bf16.msra.mxu1 %v15242_v53  ;;  %v18482_v53 = vld [vmem:[#allocation2 + $0x64] sm:$0xf]  ;;  %v8617_v9 = vshll.u32 %v8455_v30, 16  ;;  %v8621_v6 = vshrl.u32 %v8455_v30, 16  ;;  %v8599_v7 = vrot.slane %v8597_v35, 4 }
 0x462   : > { %14109 = vmatprep.subr.bf16.mxu1 %v15245_v20 }
 0x464   : > { %14078 = vmatmul.mubr.bf16.gmra.mrb[28].mxu1 %v19700_v18  ;;  %v18491_v18 = vld [vmem:[#allocation2 + $0x84] sm:$0xf] }
 0x465   : > { %14081 = vmatprep.mubr.bf16.mxu1 %v19701_v32  ;;  %14110 = vmatpush3.bf16.msra.mxu1 %v15245_v20  ;;  %v18488_v20 = vrot.slane %v8521_v17, 5  ;;  %v18493_v32 = vld [vmem:[#allocation2 + $0x94] sm:$0xf]  ;;  %v19710_v17 = vcombine.low %v18169_v33, %v18167_v46  ;;  %v8527_v46 = vrot.slane %v8525_v62, 4 }
 0x466   : > { %14111 = vmatprep.subr.bf16.mxu1 %v15248_v60  ;;  %v18536_v33 = vld [vmem:[#allocation2 + $0xd4] sm:$0xf] }
 0x467   : > { %v8528_v31 = vor.u32 %v8527_v46, %v18488_v20  ;;  %v8519_v46 = vrot.slane %v8518_v10, 4  ;;  %v18582_v10 = vrot.slane %v8593_v5, 5  ;;  %v8613_v5 = vrot.slane %v8611_v61, 5 }
 0x469   : > { %14112 = vmatpush3.bf16.msra.mxu1 %v15248_v60  ;;  %v8545_v60 = vshll.u32 %v18443_v50, 16  ;;  %v8444_v50 = vld [vmem:[#allocation2 + $0x2c] sm:$0x1] }
 0x46a   : > { %14145 = vmatprep.subr.bf16.mxu1 %v18428_v36  ;;  %v8531_v62 = vshll.u32 %v8444_v50, 16  ;;  %v8450_v50 = vld [vmem:[#allocation2 + $0x4c] sm:$0x1] }
 0x46b   : > { %v18546_v58 = vrot.slane %v8545_v60, 5  ;;  %v8541_v60 = vrot.slane %v8539_v23, 5  ;;  %v8584_v23 = vshrl.u32 %v8451_v1, 16 }
 0x46c   : > { %14082 = vmatmul.mubr.bf16.gmra.mrb[0].mxu1 %v19702_v59  ;;  %v8449_v59 = vld [vmem:[#allocation2 + $0x48] sm:$0xf]  ;;  %v8533_v34 = vrot.slane %v8531_v62, 5 }
 0x46d   : > { %14085 = vmatprep.mubr.bf16.mxu1 %v19703_v40  ;;  %v18510_v40 = vld [vmem:[#allocation2 + $0xc4] sm:$0xf]  ;;  %v8569_v16 = vshll.u32 %v8449_v59, 16  ;;  %v8573_v26 = vshrl.u32 %v8449_v59, 16  ;;  %v8552_v56 = vor.u32 %v8551_v39, %v18546_v58  ;;  %v8565_v59 = vrot.slane %v8563_v29, 5 }
 0x46e   : > { %19707 = vst [vmem:[#allocation24_spill] sm:$0xff] %v18510_v40  ;;  %v8505_v40 = vrot.slane %v8504_v28, 4 }
 0x46f   : > { %v18571_v13 = vrot.slane %v8569_v16, 5  ;;  %v8575_v28 = vrot.slane %v8573_v26, 4  ;;  %v8529_v26 = vrot.slane %v8528_v31, 4  ;;  %v8557_v16 = vrot.slane %v8555_v55, 5 }
 0x470   : > { %v8510_v29 = vsel %vm15640_vm2, %v8505_v40, %v8509_v22  ;;  %v8553_v19 = vrot.slane %v8552_v56, 4  ;;  %v8566_v62 = vor.u32 %v8565_v59, %v8562_v24  ;;  %v8524_v55 = vsel %vm15640_vm2, %v8519_v46, %v18488_v20  ;;  %v8456_v40 = vld [vmem:[#allocation2 + $0x6c] sm:$0x1] }
 0x471   : > { %v12746_v22 = vcombine.low %v8500_v12, %v8510_v29  ;;  %v19719_v31 = vcombine.low %v18204_v49, %v18188_v11  ;;  %v18594_v20 = vrot.slane %v8617_v9, 5  ;;  %v8623_v12 = vrot.slane %v8621_v6, 4 }
 0x472   : > { %v8567_v24 = vrot.slane %v8566_v62, 4  ;;  %v8600_v49 = vor.u32 %v8599_v7, %v18582_v10  ;;  %v8627_v35 = vshll.u32 %v8456_v40, 16  ;;  %v15250_v62 = vld [vmem:[#allocation3 + $0x188] sm:$0xff]  }
 0x473   : > { %v8624_v61 = vor.u32 %v8623_v12, %v18594_v20  ;;  %v15251_v12 = vld [vmem:[#allocation3 + $0x190] sm:$0xff]  }
 0x474   : > { %14086 = vmatmul.mubr.bf16.gmra.mrb[4].mxu1 %v19710_v17  ;;  %v18538_v17 = vld [vmem:[#allocation2 + $0xe4] sm:$0xf]  ;;  %v8572_v9 = vsel %vm15640_vm2, %v8567_v24, %v18571_v13 }
 0x475   : > { %14089 = vmatprep.mubr.bf16.mxu1 %v19713_v3  ;;  %19714 = vst [vmem:[#allocation34_spill] sm:$0xff] %v18538_v17  ;;  %v8538_v3 = vrot.slane %v8536_v42, 4  ;;  %v8587_v42 = vshll.u32 %v8451_v1, 16  ;;  %v8579_v1 = vshll.u32 %v8450_v50, 16  ;;  %v8608_v17 = vshrl.u32 %v8454_v21, 16 }
 0x476   : > { %v8458_v50 = vld [vmem:[#allocation2 + $0x78] sm:$0xf]  ;;  %v8625_v24 = vrot.slane %v8624_v61, 4 }
 0x477   : > { %v8542_v39 = vor.u32 %v8541_v60, %v8538_v3  ;;  %v8589_v44 = vrot.slane %v8587_v42, 5  ;;  %v8534_v3 = vsel %vm15640_vm2, %v8529_v26, %v8533_v34  ;;  %v8558_v60 = vsel %vm15640_vm2, %v8553_v19, %v8557_v16  ;;  %v8461_v19 = vld [vmem:[#allocation2 + $0x88] sm:$0xf] }
 0x478   : > { %v8581_v59 = vrot.slane %v8579_v1, 5  ;;  %v8603_v42 = vshll.u32 %v8453_v15, 16  ;;  %v8610_v11 = vrot.slane %v8608_v17, 4  ;;  %v8641_v29 = vshll.u32 %v8458_v50, 16  ;;  %v8460_v17 = vld [vmem:[#allocation2 + $0x84] sm:$0xf] }
 0x479   : > { %v8543_v56 = vrot.slane %v8542_v39, 4  ;;  %v12747_v26 = vcombine.low %v8524_v55, %v8534_v3  ;;  %v8645_v16 = vshrl.u32 %v8458_v50, 16  ;;  %v8601_v1 = vrot.slane %v8600_v49, 4  ;;  %v8463_v15 = vld [vmem:[#allocation2 + $0x94] sm:$0xf] }
 0x47a   : > { %v8614_v6 = vor.u32 %v8613_v5, %v8610_v11  ;;  %v18606_v55 = vrot.slane %v8641_v29, 5  ;;  %v8659_v3 = vshll.u32 %v8460_v17, 16  ;;  %v8683_v50 = vshll.u32 %v8463_v15, 16  ;;  %v8462_v29 = vld [vmem:[#allocation2 + $0x8c] sm:$0x1] }
 0x47b   : > { %v8548_v39 = vsel %vm15640_vm2, %v8543_v56, %v18546_v58  ;;  %v8629_v58 = vrot.slane %v8627_v35, 5  ;;  %v8464_v56 = vld [vmem:[#allocation2 + $0x98] sm:$0xf]  ;;  %v8647_v40 = vrot.slane %v8645_v16, 4 }
 0x47c   : > { %14090 = vmatmul.mubr.bf16.gmra.mrb[8].mxu1 %v19717_v0  ;;  %v8576_v0 = vor.u32 %v8575_v28, %v18571_v13  ;;  %v8457_v28 = vld [vmem:[#allocation2 + $0x74] sm:$0xf]  ;;  %v12748_v21 = vcombine.low %v8548_v39, %v8558_v60  ;;  %v8459_v13 = vld [vmem:[#allocation2 + $0x7c] sm:$0x1]  ;;  %v8665_v60 = vshll.u32 %v8461_v19, 16  ;;  %v8693_v49 = vshrl.u32 %v8464_v56, 16 }
 0x47d   : > { %14093 = vmatprep.mubr.bf16.mxu1 %v19718_v37  ;;  %v8586_v37 = vrot.slane %v8584_v23, 4  ;;  %v8632_v34 = vshrl.u32 %v8457_v28, 16  ;;  %v8635_v30 = vshll.u32 %v8457_v28, 16  ;;  %v8680_v28 = vshrl.u32 %v8463_v15, 16 }
 0x47e   : > { %v8577_v23 = vrot.slane %v8576_v0, 4  ;;  %v8615_v5 = vrot.slane %v8614_v6, 4  ;;  %v8661_v39 = vrot.slane %v8659_v3, 5  ;;  %v18615_v16 = vrot.slane %v8665_v60, 5 }
 0x47f   : > { %v8590_v46 = vor.u32 %v8589_v44, %v8586_v37  ;;  %v8605_v37 = vrot.slane %v8603_v42, 5  ;;  %v8634_v7 = vrot.slane %v8632_v34, 4  ;;  %v8651_v34 = vshll.u32 %v8459_v13, 16 }
 0x480   : > { %v8582_v44 = vsel %vm15640_vm2, %v8577_v23, %v8581_v59  ;;  %v8669_v59 = vshrl.u32 %v8461_v19, 16  ;;  %v8682_v61 = vrot.slane %v8680_v28, 4  ;;  %v15252_v19 = vld [vmem:[#allocation3 + $0x198] sm:$0xff]  }
 0x481   : > { %v8591_v0 = vrot.slane %v8590_v46, 4  ;;  %v12749_v23 = vcombine.low %v8572_v9, %v8582_v44  ;;  %v8689_v46 = vshll.u32 %v8464_v56, 16  ;;  %v8606_v11 = vsel %vm15640_vm2, %v8601_v1, %v8605_v37  ;;  %v8465_v44 = vld [vmem:[#allocation2 + $0x9c] sm:$0x1]  ;;  %v8470_v28 = vld [vmem:[#allocation2 + $0xb8] sm:$0xf] }
 0x482   : > { %v8671_v9 = vrot.slane %v8669_v59, 4  ;;  %v8695_v1 = vrot.slane %v8693_v49, 4  ;;  %v8653_v13 = vrot.slane %v8651_v34, 5  ;;  %v8699_v59 = vshll.u32 %v8465_v44, 16  ;;  %v8468_v49 = vld [vmem:[#allocation2 + $0xac] sm:$0x1] }
 0x483   : > { %v8596_v42 = vsel %vm15640_vm2, %v8591_v0, %v18582_v10  ;;  %v8630_v10 = vsel %vm15640_vm2, %v8625_v24, %v8629_v58  ;;  %v18619_v0 = vrot.slane %v8689_v46, 5  ;;  %v8675_v24 = vshll.u32 %v8462_v29, 16 }
 0x484   : > { %14094 = vmatmul.mubr.bf16.gmra.mrb[12].mxu1 %v19719_v31  ;;  %v8656_v31 = vshrl.u32 %v8460_v17, 16  ;;  %v8685_v17 = vrot.slane %v8683_v50, 5  ;;  %v12750_v15 = vcombine.low %v8596_v42, %v8606_v11  ;;  %v8672_v60 = vor.u32 %v8671_v9, %v18615_v16  ;;  %v8473_v9 = vld [vmem:[#allocation2 + $0xc8] sm:$0xf] }
 0x485   : > { %14113 = vmatprep.mubr.bf16.mxu1 %v12746_v22  ;;  %v8637_v22 = vrot.slane %v8635_v30, 5  ;;  %v8648_v30 = vor.u32 %v8647_v40, %v18606_v55  ;;  %v8741_v29 = vshrl.u32 %v8470_v28, 16 }
 0x486   : > { %v8686_v50 = vor.u32 %v8685_v17, %v8682_v61 }
 0x487   : > { %v8638_v35 = vor.u32 %v8637_v22, %v8634_v7  ;;  %v8620_v7 = vsel %vm15640_vm2, %v8615_v5, %v18594_v20  ;;  %v8649_v56 = vrot.slane %v8648_v30, 4  ;;  %v8696_v20 = vor.u32 %v8695_v1, %v18619_v0 }
 0x488   : > { %v12751_v3 = vcombine.low %v8620_v7, %v8630_v10  ;;  %v8737_v30 = vshll.u32 %v8470_v28, 16  ;;  %v8701_v10 = vrot.slane %v8699_v59, 5  ;;  %v8687_v44 = vrot.slane %v8686_v50, 4 }
 0x489   : > { %v8639_v58 = vrot.slane %v8638_v35, 4  ;;  %v8697_v61 = vrot.slane %v8696_v20, 4  ;;  %v8723_v1 = vshll.u32 %v8468_v49, 16 }
 0x48b   : > { %v8725_v20 = vrot.slane %v8723_v1, 5 }
 0x48c   : > { %14114 = vmatmul.mubr.bf16.vlgmr.msra.gmra.mrb[16].mxu1 %v12747_v26  ;;  %v8658_v26 = vrot.slane %v8656_v31, 4  ;;  %v8469_v31 = vld [vmem:[#allocation2 + $0xb4] sm:$0xf] }
 0x48d   : > { %14117 = vmatprep.mubr.bf16.mxu1 %v12748_v21  ;;  %14146 = vmatpush3.bf16.msra.mxu1 %v18428_v36  ;;  %v8466_v36 = vld [vmem:[#allocation2 + $0xa4] sm:$0xf]  ;;  %v8467_v21 = vld [vmem:[#allocation2 + $0xa8] sm:$0xf]  ;;  %v8728_v35 = vshrl.u32 %v8469_v31, 16  ;;  %v8731_v34 = vshll.u32 %v8469_v31, 16 }
 0x48e   : > { %14147 = vmatprep.subr.bf16.mxu1 %v15250_v62  ;;  %v8704_v37 = vshrl.u32 %v8466_v36, 16  ;;  %v8707_v6 = vshll.u32 %v8466_v36, 16  ;;  %v8717_v22 = vshrl.u32 %v8467_v21, 16  ;;  %v8662_v40 = vor.u32 %v8661_v39, %v8658_v26 }
 0x48f   : > { %v8644_v26 = vsel %vm15640_vm2, %v8639_v58, %v18606_v55  ;;  %v8673_v39 = vrot.slane %v8672_v60, 4  ;;  %v18637_v58 = vrot.slane %v8737_v30, 5  ;;  %v8765_v60 = vshrl.u32 %v8473_v9, 16  ;;  %v8474_v30 = vld [vmem:[#allocation2 + $0xcc] sm:$0x1] }
 0x490   : > { %v8706_v42 = vrot.slane %v8704_v37, 4  ;;  %v8709_v46 = vrot.slane %v8707_v6, 5  ;;  %v8719_v5 = vrot.slane %v8717_v22, 4  ;;  %v8663_v36 = vrot.slane %v8662_v40, 4  ;;  %v15254_v37 = vld [vmem:[#allocation3 + $0x1a8] sm:$0xff]  }
 0x491   : > { %14148 = vmatpush3.bf16.msra.mxu1 %v15250_v62  ;;  %v8713_v62 = vshll.u32 %v8467_v21, 16  ;;  %v8677_v21 = vrot.slane %v8675_v24, 5  ;;  %v8476_v6 = vld [vmem:[#allocation2 + $0xd8] sm:$0xf]  ;;  %v8733_v22 = vrot.slane %v8731_v34, 5  ;;  %v8761_v40 = vshll.u32 %v8473_v9, 16 }
 0x492   : > { %14149 = vmatprep.subr.bf16.mxu1 %v15251_v12  ;;  %v8710_v17 = vor.u32 %v8709_v46, %v8706_v42  ;;  %v8668_v55 = vsel %vm15640_vm2, %v8663_v36, %v18615_v16  ;;  %v8475_v24 = vld [vmem:[#allocation2 + $0xd4] sm:$0xf]  ;;  %v8785_v59 = vshll.u32 %v8476_v6, 16  ;;  %v8789_v28 = vshrl.u32 %v8476_v6, 16 }
 0x493   : > { %v18626_v11 = vrot.slane %v8713_v62, 5  ;;  %v8730_v62 = vrot.slane %v8728_v35, 4  ;;  %v8678_v31 = vsel %vm15640_vm2, %v8673_v39, %v8677_v21  ;;  %v8702_v16 = vsel %vm15640_vm2, %v8697_v61, %v8701_v10  ;;  %v15255_v42 = vld [vmem:[#allocation3 + $0x1b0] sm:$0xff]   ;;  %v15256_v61 = vld [vmem:[#allocation3 + $0x1b8] sm:$0xff]  }
 0x494   : > { %14118 = vmatmul.mubr.bf16.gmra.mrb[20].mxu1 %v12749_v23  ;;  %v15253_v23 = vld [vmem:[#allocation3 + $0x1a0] sm:$0xff]   ;;  %v8711_v50 = vrot.slane %v8710_v17, 4  ;;  %v8776_v36 = vshrl.u32 %v8475_v24, 16  ;;  %v8791_v39 = vrot.slane %v8789_v28, 4  ;;  %v12753_v21 = vcombine.low %v8668_v55, %v8678_v31  ;;  %v8482_v31 = vld [vmem:[#allocation2 + $0xf8] sm:$0xf] }
 0x495   : > { %14121 = vmatprep.mubr.bf16.mxu1 %v12750_v15  ;;  %14150 = vmatpush3.bf16.msra.mxu1 %v15251_v12  ;;  %v8654_v12 = vsel %vm15640_vm2, %v8649_v56, %v8653_v13  ;;  %v8720_v7 = vor.u32 %v8719_v5, %v18626_v11  ;;  %v8472_v56 = vld [vmem:[#allocation2 + $0xc4] sm:$0xf]  ;;  %v8743_v13 = vrot.slane %v8741_v29, 4  ;;  %v8734_v49 = vor.u32 %v8733_v22, %v8730_v62 }
 0x496   : > { %14151 = vmatprep.subr.bf16.mxu1 %v15252_v19  ;;  %v12752_v15 = vcombine.low %v8644_v26, %v8654_v12  ;;  %v8752_v5 = vshrl.u32 %v8472_v56, 16  ;;  %v8755_v35 = vshll.u32 %v8472_v56, 16  ;;  %v18647_v12 = vrot.slane %v8761_v40, 5  ;;  %v8478_v55 = vld [vmem:[#allocation2 + $0xe4] sm:$0xf] }
 0x497   : > { %v8721_v46 = vrot.slane %v8720_v7, 4  ;;  %v8767_v29 = vrot.slane %v8765_v60, 4  ;;  %v18649_v26 = vrot.slane %v8785_v59, 5  ;;  %v8716_v9 = vsel %vm15640_vm2, %v8711_v50, %v18626_v11  ;;  %v8479_v7 = vld [vmem:[#allocation2 + $0xe8] sm:$0xf]  ;;  %v18658_v28 = vld [vmem:[#allocation3 + $0x1c0] sm:$0xff]  }
 0x498   : > { %v8735_v1 = vrot.slane %v8734_v49, 4  ;;  %v8754_v6 = vrot.slane %v8752_v5, 4  ;;  %v8778_v56 = vrot.slane %v8776_v36, 4  ;;  %v8813_v59 = vshrl.u32 %v8479_v7, 16 }
 0x499   : > { %14152 = vmatpush3.bf16.msra.mxu1 %v15252_v19  ;;  %v8471_v19 = vld [vmem:[#allocation2 + $0xbc] sm:$0x1]  ;;  %v8726_v17 = vsel %vm15640_vm2, %v8721_v46, %v8725_v20  ;;  %v8800_v50 = vshrl.u32 %v8478_v55, 16  ;;  %v8803_v20 = vshll.u32 %v8478_v55, 16  ;;  %v8481_v46 = vld [vmem:[#allocation2 + $0xf4] sm:$0xf] }
 0x49a   : > { %14153 = vmatprep.subr.bf16.mxu1 %v15253_v23  ;;  %v8747_v34 = vshll.u32 %v8471_v19, 16  ;;  %v8768_v19 = vor.u32 %v8767_v29, %v18647_v12  ;;  %v12755_v60 = vcombine.low %v8716_v9, %v8726_v17  ;;  %v8480_v29 = vld [vmem:[#allocation2 + $0xec] sm:$0x1]  ;;  %v8485_v17 = vld [vmem:[#allocation2 + $0x108] sm:$0xf] }
 0x49b   : > { %v8802_v9 = vrot.slane %v8800_v50, 4 }
 0x49c   : > { %14122 = vmatmul.mubr.bf16.gmra.mrb[24].mxu1 %v12751_v3  ;;  %v8692_v3 = vsel %vm15640_vm2, %v8687_v44, %v18619_v0  ;;  %v8779_v0 = vshll.u32 %v8475_v24, 16  ;;  %v8477_v44 = vld [vmem:[#allocation2 + $0xdc] sm:$0x1]  ;;  %v8749_v22 = vrot.slane %v8747_v34, 5  ;;  %v8809_v24 = vshll.u32 %v8479_v7, 16 }
 0x49d   : > { %14125 = vmatprep.mubr.bf16.mxu1 %v12752_v15  ;;  %14154 = vmatpush3.bf16.msra.mxu1 %v15253_v23  ;;  %v8744_v23 = vor.u32 %v8743_v13, %v18637_v58  ;;  %v12754_v10 = vcombine.low %v8692_v3, %v8702_v16  ;;  %v8757_v15 = vrot.slane %v8755_v35, 5  ;;  %v8792_v13 = vor.u32 %v8791_v39, %v18649_v26 }
 0x49e   : > { %14155 = vmatprep.subr.bf16.mxu1 %v15254_v37  ;;  %v8781_v11 = vrot.slane %v8779_v0, 5  ;;  %v8795_v40 = vshll.u32 %v8477_v44, 16  ;;  %v8740_v3 = vsel %vm15640_vm2, %v8735_v1, %v18637_v58  ;;  %v8833_v35 = vshll.u32 %v8482_v31, 16 }
 0x49f   : > { %v8745_v62 = vrot.slane %v8744_v23, 4  ;;  %v8758_v16 = vor.u32 %v8757_v15, %v8754_v6  ;;  %v8769_v23 = vrot.slane %v8768_v19, 4  ;;  %v8793_v36 = vrot.slane %v8792_v13, 4  ;;  %v8483_v6 = vld [vmem:[#allocation2 + $0xfc] sm:$0x1] }
 0x4a0   : > { %v8782_v34 = vor.u32 %v8781_v11, %v8778_v56  ;;  %v8811_v0 = vrot.slane %v8809_v24, 5  ;;  %v8815_v39 = vrot.slane %v8813_v59, 4  ;;  %v8827_v58 = vshll.u32 %v8481_v46, 16 }
 0x4a1   : > { %14156 = vmatpush3.bf16.msra.mxu1 %v15254_v37  ;;  %v8771_v37 = vshll.u32 %v8474_v30, 16  ;;  %v8750_v49 = vsel %vm15640_vm2, %v8745_v62, %v8749_v22  ;;  %v8797_v30 = vrot.slane %v8795_v40, 5  ;;  %v8805_v44 = vrot.slane %v8803_v20, 5 }
 0x4a2   : > { %14157 = vmatprep.subr.bf16.mxu1 %v15255_v42  ;;  %v8759_v1 = vrot.slane %v8758_v16, 4  ;;  %v8835_v15 = vrot.slane %v8833_v35, 5  ;;  %v8783_v62 = vrot.slane %v8782_v34, 4  ;;  %v8819_v22 = vshll.u32 %v8480_v29, 16  ;;  %v8486_v29 = vld [vmem:[#allocation2 + $0x10c] sm:$0x1] }
 0x4a3   : > { %v8773_v5 = vrot.slane %v8771_v37, 5  ;;  %v8484_v37 = vld [vmem:[#allocation2 + $0x104] sm:$0xf]  ;;  %v8798_v56 = vsel %vm15640_vm2, %v8793_v36, %v8797_v30  ;;  %v8816_v55 = vor.u32 %v8815_v39, %v8811_v0  ;;  %v8829_v11 = vrot.slane %v8827_v58, 5 }
 0x4a4   : > { %14126 = vmatmul.mubr.bf16.gmra.mrb[28].mxu1 %v12753_v21  ;;  %v8824_v21 = vshrl.u32 %v8481_v46, 16  ;;  %v8806_v13 = vor.u32 %v8805_v44, %v8802_v9  ;;  %v8843_v40 = vshll.u32 %v8483_v6, 16  ;;  %v8764_v24 = vsel %vm15640_vm2, %v8759_v1, %v18647_v12  ;;  %v9194_v9 = vld [vmem:[#allocation2 + $0x20] sm:$0x8] }
 0x4a5   : > { %14129 = vmatprep.mubr.bf16.mxu1 %v12754_v10  ;;  %14158 = vmatpush3.bf16.msra.mxu1 %v15255_v42  ;;  %v8837_v42 = vshrl.u32 %v8482_v31, 16  ;;  %v12756_v10 = vcombine.low %v8740_v3, %v8750_v49  ;;  %v8857_v31 = vshll.u32 %v8485_v17, 16  ;;  %v8848_v3 = vshrl.u32 %v8484_v37, 16 }
 0x4a6   : > { %14159 = vmatprep.subr.bf16.mxu1 %v15256_v61  ;;  %v8826_v19 = vrot.slane %v8824_v21, 4  ;;  %v8851_v16 = vshll.u32 %v8484_v37, 16  ;;  %v8788_v20 = vsel %vm15640_vm2, %v8783_v62, %v18649_v26  ;;  %v8817_v49 = vrot.slane %v8816_v55, 4 }
 0x4a7   : > { %v8839_v7 = vrot.slane %v8837_v42, 4  ;;  %v12758_v46 = vcombine.low %v8788_v20, %v8798_v56  ;;  %v8807_v42 = vrot.slane %v8806_v13, 4  ;;  %v8859_v34 = vrot.slane %v8857_v31, 5  ;;  %v9197_v31 = vld [vmem:[#allocation2 + $0x30] sm:$0x8] }
 0x4a8   : > { %v8830_v35 = vor.u32 %v8829_v11, %v8826_v19  ;;  %v8850_v12 = vrot.slane %v8848_v3, 4  ;;  %v8853_v39 = vrot.slane %v8851_v16, 5  ;;  %v9257_v21 = vshrl.u32 %v18445_v38, 16  ;;  %v18691_v16 = vld [vmem:[#allocation2 + $0x114] sm:$0xf] }
 0x4a9   : > { %14160 = vmatpush3.bf16.msra.mxu1 %v15256_v61  ;;  %v8774_v61 = vsel %vm15640_vm2, %v8769_v23, %v8773_v5  ;;  %v8840_v59 = vor.u32 %v8839_v7, %v8835_v15  ;;  %v8821_v5 = vrot.slane %v8819_v22, 5  ;;  %v8845_v23 = vrot.slane %v8843_v40, 5 }
 0x4aa   : > { %14193 = vmatprep.subr.bf16.mxu1 %v18658_v28  ;;  %v12757_v50 = vcombine.low %v8764_v24, %v8774_v61  ;;  %v9248_v58 = vshrl.u32 %v18459_v8, 16  ;;  %v8812_v1 = vsel %vm15640_vm2, %v8807_v42, %v8811_v0  ;;  %v8854_v7 = vor.u32 %v8853_v39, %v8850_v12 }
 0x4ab   : > { %v8841_v30 = vrot.slane %v8840_v59, 4  ;;  %v8822_v26 = vsel %vm15640_vm2, %v8817_v49, %v8821_v5  ;;  %v9259_v61 = vrot.slane %v9257_v21, 7  ;;  %v9243_v22 = vshrl.u32 %v9194_v9, 16 }
 0x4ac   : > { %14130 = vmatmul.mubr.bf16.gmra.mrb[0].mxu1 %v12755_v60  ;;  %v8861_v60 = vshrl.u32 %v8485_v17, 16  ;;  %v8867_v17 = vshll.u32 %v8486_v29, 16  ;;  %v12759_v62 = vcombine.low %v8812_v1, %v8822_v26  ;;  %v9250_v37 = vrot.slane %v9248_v58, 7 }
 0x4ad   : > { %14133 = vmatprep.mubr.bf16.mxu1 %v12756_v10  ;;  %v8831_v10 = vrot.slane %v8830_v35, 4  ;;  %v8846_v6 = vsel %vm15640_vm2, %v8841_v30, %v8845_v23  ;;  %v9251_v55 = vshll.u32 %v18459_v8, 16  ;;  %v9260_v19 = vshll.u32 %v18445_v38, 16  ;;  %v9200_v35 = vld [vmem:[#allocation2 + $0x40] sm:$0x8] }
 0x4ae   : > { %v8863_v36 = vrot.slane %v8861_v60, 4  ;;  %v9279_v11 = vshrl.u32 %v18447_v45, 16  ;;  %v8869_v0 = vrot.slane %v8867_v17, 5  ;;  %v9270_v60 = vshrl.u32 %v18461_v41, 16 }
 0x4af   : > { %v8836_v56 = vsel %vm15640_vm2, %v8831_v10, %v8835_v15  ;;  %v8855_v24 = vrot.slane %v8854_v7, 4  ;;  %v9262_v59 = vor.u32 %v9260_v19, %v9259_v61  ;;  %v9301_v3 = vshrl.u32 %v18449_v54, 16  ;;  %v18693_v15 = vld [vmem:[#allocation2 + $0x118] sm:$0xf] }
 0x4b0   : > { %v8864_v44 = vor.u32 %v8863_v36, %v8859_v34  ;;  %v12760_v13 = vcombine.low %v8836_v56, %v8846_v6  ;;  %v9253_v20 = vor.u32 %v9251_v55, %v9250_v37  ;;  %v9255_v49 = vrot.slane %v9250_v37, 4  ;;  %v9203_v55 = vld [vmem:[#allocation2 + $0x50] sm:$0x8] }
 0x4b1   : > { %v9281_v5 = vrot.slane %v9279_v11, 7  ;;  %v9292_v42 = vshrl.u32 %v18468_v25, 16  ;;  %v9265_v36 = vshrl.u32 %v9197_v31, 16  ;;  %v9272_v30 = vrot.slane %v9270_v60, 7  ;;  %v9206_v60 = vld [vmem:[#allocation2 + $0x60] sm:$0x8] }
 0x4b2   : > { %v8865_v40 = vrot.slane %v8864_v44, 4  ;;  %v8860_v29 = vsel %vm15640_vm2, %v8855_v24, %v8859_v34  ;;  %v9263_v12 = vsel %vm17567_vm8, %v9255_v49, %v9262_v59  ;;  %v9282_v39 = vshll.u32 %v18447_v45, 16 }
 0x4b3   : > { %v9303_v21 = vrot.slane %v9301_v3, 7  ;;  %v9273_v26 = vshll.u32 %v18461_v41, 16  ;;  %v9287_v10 = vshrl.u32 %v9200_v35, 16  ;;  %v9323_v9 = vshrl.u32 %v18451_v27, 16 }
 0x4b4   : > { %14134 = vmatmul.mubr.bf16.gmra.mrb[4].mxu1 %v12757_v50  ;;  %v12770_v50 = vrot.slane %v9243_v22, 11  ;;  %v8870_v23 = vsel %vm15640_vm2, %v8865_v40, %v8869_v0  ;;  %v9284_v17 = vor.u32 %v9282_v39, %v9281_v5  ;;  %v9294_v1 = vrot.slane %v9292_v42, 7 }
 0x4b5   : > { %14137 = vmatprep.mubr.bf16.mxu1 %v12758_v46  ;;  %v12825_v46 = vcombine.low %v18691_v16, %v18693_v15  ;;  %v12761_v44 = vcombine.low %v8860_v29, %v8870_v23  ;;  %v9304_v6 = vshll.u32 %v18449_v54, 16  ;;  %v12771_v7 = vrot.slane %v9265_v36, 11  ;;  %v15258_v29 = vld [vmem:[#allocation3 + $0x1c8] sm:$0xff]  }
 0x4b6   : > { %v9254_v58 = vsel %vm17567_vm8, %v12770_v50, %v9253_v20  ;;  %v9275_v61 = vor.u32 %v9273_v26, %v9272_v30  ;;  %v9277_v22 = vrot.slane %v9272_v30, 4  ;;  %v9295_v37 = vshll.u32 %v18468_v25, 16  ;;  %v15282_v54 = vld [vmem:[#allocation3 + $0x228] sm:$0xff]  }
 0x4b7   : > { %v12786_v34 = vcombine.low %v9254_v58, %v9263_v12  ;;  %v9306_v56 = vor.u32 %v9304_v6, %v9303_v21  ;;  %v9345_v19 = vshrl.u32 %v18463_v2, 16  ;;  %v12772_v11 = vrot.slane %v9287_v10, 11 }
 0x4b8   : > { %v9285_v40 = vsel %vm17567_vm8, %v9277_v22, %v9284_v17  ;;  %v9297_v0 = vor.u32 %v9295_v37, %v9294_v1  ;;  %v9299_v31 = vrot.slane %v9294_v1, 4  ;;  %v9336_v24 = vshrl.u32 %v18482_v53, 16  ;;  %v9209_v1 = vld [vmem:[#allocation2 + $0x70] sm:$0x8] }
 0x4b9   : > { %v9309_v59 = vshrl.u32 %v9203_v55, 16  ;;  %v9326_v50 = vshll.u32 %v18451_v27, 16  ;;  %v9276_v20 = vsel %vm17567_vm8, %v12771_v7, %v9275_v61  ;;  %v9347_v5 = vrot.slane %v9345_v19, 7  ;;  %v9212_v55 = vld [vmem:[#allocation2 + $0x80] sm:$0x8] }
 0x4ba   : > { %v9307_v49 = vsel %vm17567_vm8, %v9299_v31, %v9306_v56  ;;  %v12787_v35 = vcombine.low %v9276_v20, %v9285_v40  ;;  %v9317_v42 = vshll.u32 %v18470_v63, 16  ;;  %v9331_v36 = vshrl.u32 %v9206_v60, 16  ;;  %v15259_v56 = vld [vmem:[#allocation3 + $0x1d0] sm:$0xff]  }
 0x4bb   : > { %v9298_v30 = vsel %vm17567_vm8, %v12772_v11, %v9297_v0  ;;  %v9338_v12 = vrot.slane %v9336_v24, 7  ;;  %v9348_v39 = vshll.u32 %v18463_v2, 16  ;;  %v9367_v21 = vshrl.u32 %v18465_v48, 16 }
 0x4bc   : > { %14138 = vmatmul.mubr.bf16.gmra.mrb[8].mxu1 %v12759_v62  ;;  %v9314_v62 = vshrl.u32 %v18470_v63, 16  ;;  %v12788_v58 = vcombine.low %v9298_v30, %v9307_v49  ;;  %v12773_v26 = vrot.slane %v9309_v59, 11  ;;  %v9358_v6 = vshrl.u32 %v18484_v51, 16 }
 0x4bd   : > { %14141 = vmatprep.mubr.bf16.mxu1 %v12760_v13  ;;  %v9325_v13 = vrot.slane %v9323_v9, 7  ;;  %v9350_v17 = vor.u32 %v9348_v39, %v9347_v5  ;;  %v12774_v61 = vrot.slane %v9331_v36, 11  ;;  %v9343_v22 = vrot.slane %v9338_v12, 4 }
 0x4be   : > { %v9316_v3 = vrot.slane %v9314_v62, 7  ;;  %v9369_v37 = vrot.slane %v9367_v21, 7  ;;  %v9380_v19 = vshrl.u32 %v18491_v18, 16  ;;  %v9370_v0 = vshll.u32 %v18465_v48, 16  ;;  %v9215_v21 = vld [vmem:[#allocation2 + $0x90] sm:$0x8] }
 0x4bf   : > { %v9328_v23 = vor.u32 %v9326_v50, %v9325_v13  ;;  %v9353_v13 = vshrl.u32 %v9209_v1, 16  ;;  %v9351_v40 = vsel %vm17567_vm8, %v9343_v22, %v9350_v17  ;;  %v9361_v24 = vshll.u32 %v18484_v51, 16  ;;  %v9218_v1 = vld [vmem:[#allocation2 + $0xa0] sm:$0x8] }
 0x4c0   : > { %v9319_v10 = vor.u32 %v9317_v42, %v9316_v3  ;;  %v9321_v9 = vrot.slane %v9316_v3, 4  ;;  %v9375_v59 = vshrl.u32 %v9212_v55, 16  ;;  %v9411_v3 = vshrl.u32 %v18474_v43, 16 }
 0x4c1   : > { %v9372_v20 = vor.u32 %v9370_v0, %v9369_v37  ;;  %v9382_v49 = vrot.slane %v9380_v19, 7  ;;  %v9392_v5 = vshll.u32 %v18472_v14, 16  ;;  %v9383_v36 = vshll.u32 %v18491_v18, 16 }
 0x4c2   : > { %v9329_v7 = vsel %vm17567_vm8, %v9321_v9, %v9328_v23  ;;  %v9320_v11 = vsel %vm17567_vm8, %v12773_v26, %v9319_v10  ;;  %v12775_v23 = vrot.slane %v9353_v13, 11  ;;  %v9402_v30 = vshrl.u32 %v18493_v32, 16 }
 0x4c3   : > { %v12789_v60 = vcombine.low %v9320_v11, %v9329_v7  ;;  %v12776_v26 = vrot.slane %v9375_v59, 11  ;;  %v9413_v10 = vrot.slane %v9411_v3, 7  ;;  %v9387_v17 = vrot.slane %v9382_v49, 4 }
 0x4c4   : > { %14142 = vmatmul.mubr.bf16.gmra.mrb[12].mxu1 %v12761_v44  ;;  %v9339_v44 = vshll.u32 %v18482_v53, 16  ;;  %v9397_v7 = vshrl.u32 %v9215_v21, 16  ;;  %v9405_v19 = vshll.u32 %v18493_v32, 16  ;;  %v9419_v13 = vshrl.u32 %v9218_v1, 16 }
 0x4c5   : > { %14161 = vmatprep.mubr.bf16.mxu1 %v12786_v34  ;;  %v9389_v34 = vshrl.u32 %v18472_v14, 16  ;;  %v9436_v0 = vshll.u32 %v18486_v52, 16  ;;  %v19729_v25 = vcombine.low %v18491_v18, %v18472_v14  ;;  %v10273_v18 = vld [vmem:[#allocation2 + $0x34] sm:$0xf] }
 0x4c6   : > { %v9341_v62 = vor.u32 %v9339_v44, %v9338_v12  ;;  %v9385_v44 = vor.u32 %v9383_v36, %v9382_v49  ;;  %v12777_v3 = vrot.slane %v9397_v7, 11  ;;  %v15315_v49 = vld [vmem:[#allocation2 + $0xa4] sm:$0xf] }
 0x4c7   : > { %v9391_v31 = vrot.slane %v9389_v34, 7  ;;  %v15261_v34 = vld [vmem:[#allocation3 + $0x1e0] sm:$0xff]  }
 0x4c8   : > { %v9342_v50 = vsel %vm17567_vm8, %v12774_v61, %v9341_v62  ;;  %v9404_v61 = vrot.slane %v9402_v30, 7  ;;  %v9414_v62 = vshll.u32 %v18474_v43, 16  ;;  %v15316_v30 = vld [vmem:[#allocation2 + $0xc8] sm:$0xf] }
 0x4c9   : > { %v12790_v42 = vcombine.low %v9342_v50, %v9351_v40  ;;  %v9394_v39 = vor.u32 %v9392_v5, %v9391_v31  ;;  %v9386_v40 = vsel %vm17567_vm8, %v12776_v26, %v9385_v44  ;;  %v19720_v31 = vld [vmem:[#allocation19_spill] sm:$0xff]  ;;  %v9427_v5 = vshll.u32 %v15315_v49, 16 }
 0x4ca   : > { %v9416_v11 = vor.u32 %v9414_v62, %v9413_v10  ;;  %v9407_v50 = vor.u32 %v9405_v19, %v9404_v61  ;;  %v9224_v10 = vld [vmem:[#allocation2 + $0xc0] sm:$0x8]  ;;  %v15318_v62 = vld [vmem:[#allocation2 + $0xb8] sm:$0xf] }
 0x4cb   : > { %v9395_v37 = vsel %vm17567_vm8, %v9387_v17, %v9394_v39  ;;  %v12778_v39 = vrot.slane %v9419_v13, 11  ;;  %v15263_v17 = vld [vmem:[#allocation3 + $0x1f0] sm:$0xff]   ;;  %v9463_v19 = vshrl.u32 %v9224_v10, 16 }
 0x4cc   : > { %14162 = vmatmul.mubr.bf16.vlgmr.msra.gmra.mrb[16].mxu1 %v12787_v35  ;;  %v15260_v35 = vld [vmem:[#allocation3 + $0x1d8] sm:$0xff]   ;;  %v12792_v59 = vcombine.low %v9386_v40, %v9395_v37  ;;  %v9408_v1 = vsel %vm17567_vm8, %v12777_v3, %v9407_v50 }
 0x4cd   : > { %14165 = vmatprep.mubr.bf16.mxu1 %v12788_v58  ;;  %14194 = vmatpush3.bf16.msra.mxu1 %v18658_v28  ;;  %v9360_v28 = vrot.slane %v9358_v6, 7  ;;  %v9433_v58 = vshrl.u32 %v18486_v52, 16  ;;  %v9424_v6 = vshrl.u32 %v18495_v47, 16  ;;  %v15264_v3 = vld [vmem:[#allocation3 + $0x1f8] sm:$0xff]  }
 0x4ce   : > { %14195 = vmatprep.subr.bf16.mxu1 %v15258_v29 }
 0x4cf   : > { %v9365_v12 = vrot.slane %v9360_v28, 4 }
 0x4d1   : > { %14196 = vmatpush3.bf16.msra.mxu1 %v15258_v29  ;;  %v9363_v29 = vor.u32 %v9361_v24, %v9360_v28  ;;  %v9373_v9 = vsel %vm17567_vm8, %v9365_v12, %v9372_v20  ;;  %v9426_v28 = vrot.slane %v9424_v6, 7  ;;  %v15262_v24 = vld [vmem:[#allocation3 + $0x1e8] sm:$0xff]   ;;  %v9409_v20 = vrot.slane %v9404_v61, 4 }
 0x4d2   : > { %14197 = vmatprep.subr.bf16.mxu1 %v15259_v56 }
 0x4d3   : > { %v9364_v22 = vsel %vm17567_vm8, %v12775_v23, %v9363_v29  ;;  %v9221_v23 = vld [vmem:[#allocation2 + $0xb0] sm:$0x8]  ;;  %v9477_v29 = vshrl.u32 %v15316_v30, 16  ;;  %v9417_v12 = vsel %vm17567_vm8, %v9409_v20, %v9416_v11  ;;  %v9429_v21 = vor.u32 %v9427_v5, %v9426_v28  ;;  %v15320_v11 = vld [vmem:[#allocation2 + $0xd8] sm:$0xf] }
 0x4d4   : > { %14166 = vmatmul.mubr.bf16.gmra.mrb[20].mxu1 %v12789_v60  ;;  %v12791_v55 = vcombine.low %v9364_v22, %v9373_v9  ;;  %v9455_v60 = vshrl.u32 %v19720_v31, 16  ;;  %v15317_v9 = vld [vmem:[#allocation2 + $0xc4] sm:$0xf]  ;;  %v9441_v6 = vshrl.u32 %v9221_v23, 16  ;;  %v9458_v22 = vshll.u32 %v15318_v62, 16 }
 0x4d5   : > { %14169 = vmatprep.mubr.bf16.mxu1 %v12790_v42  ;;  %14198 = vmatpush3.bf16.msra.mxu1 %v15259_v56  ;;  %v9435_v56 = vrot.slane %v9433_v58, 7  ;;  %v9431_v58 = vrot.slane %v9426_v28, 4  ;;  %v9468_v44 = vshrl.u32 %v15317_v9, 16  ;;  %v9479_v37 = vrot.slane %v9477_v29, 7  ;;  %v15321_v5 = vld [vmem:[#allocation2 + $0xd4] sm:$0xf] }
 0x4d6   : > { %14199 = vmatprep.subr.bf16.mxu1 %v15260_v35  ;;  %v9457_v26 = vrot.slane %v9455_v60, 7  ;;  %v9499_v13 = vshrl.u32 %v15320_v11, 16  ;;  %v9430_v40 = vsel %vm17567_vm8, %v12778_v39, %v9429_v21  ;;  %v9480_v60 = vshll.u32 %v15316_v30, 16 }
 0x4d7   : > { %v9438_v42 = vor.u32 %v9436_v0, %v9435_v56  ;;  %v15319_v56 = vld [vmem:[#allocation2 + $0xb4] sm:$0xf]  ;;  %v9470_v0 = vrot.slane %v9468_v44, 7  ;;  %v12779_v20 = vrot.slane %v9441_v6, 11  ;;  %v9471_v49 = vshll.u32 %v15317_v9, 16 }
 0x4d8   : > { %v9460_v28 = vor.u32 %v9458_v22, %v9457_v26  ;;  %v9482_v29 = vor.u32 %v9480_v60, %v9479_v37  ;;  %v9501_v21 = vrot.slane %v9499_v13, 7  ;;  %v15323_v44 = vld [vmem:[#allocation2 + $0xe4] sm:$0xf] }
 0x4d9   : > { %14200 = vmatpush3.bf16.msra.mxu1 %v15260_v35  ;;  %v19721_v35 = vld [vmem:[#allocation23_spill] sm:$0xff]  ;;  %v9439_v7 = vsel %vm17567_vm8, %v9431_v58, %v9438_v42  ;;  %v9490_v42 = vshrl.u32 %v15321_v5, 16  ;;  %v12780_v58 = vrot.slane %v9463_v19, 11  ;;  %v9473_v26 = vor.u32 %v9471_v49, %v9470_v0 }
 0x4da   : > { %14201 = vmatprep.subr.bf16.mxu1 %v15261_v34  ;;  %v9446_v36 = vshrl.u32 %v19721_v35, 16  ;;  %v12794_v50 = vcombine.low %v9430_v40, %v9439_v7  ;;  %v9475_v10 = vrot.slane %v9470_v0, 4  ;;  %v9512_v9 = vshrl.u32 %v15323_v44, 16 }
 0x4db   : > { %v9492_v6 = vrot.slane %v9490_v42, 7  ;;  %v9502_v7 = vshll.u32 %v15320_v11, 16  ;;  %v9474_v19 = vsel %vm17567_vm8, %v12780_v58, %v9473_v26  ;;  %v9233_v42 = vld [vmem:[#allocation2 + $0xf0] sm:$0x8] }
 0x4dc   : > { %14170 = vmatmul.mubr.bf16.gmra.mrb[24].mxu1 %v12791_v55  ;;  %v9448_v61 = vrot.slane %v9446_v36, 7  ;;  %v9449_v55 = vshll.u32 %v15319_v56, 16  ;;  %v9483_v22 = vsel %vm17567_vm8, %v9475_v10, %v9482_v29  ;;  %v9493_v56 = vshll.u32 %v15321_v5, 16  ;;  %v15325_v5 = vld [vmem:[#allocation2 + $0xf4] sm:$0xf] }
 0x4dd   : > { %14173 = vmatprep.mubr.bf16.mxu1 %v12792_v59  ;;  %14202 = vmatpush3.bf16.msra.mxu1 %v15261_v34  ;;  %v12793_v34 = vcombine.low %v9408_v1, %v9417_v12  ;;  %v9227_v59 = vld [vmem:[#allocation2 + $0xd0] sm:$0x8]  ;;  %v15322_v12 = vld [vmem:[#allocation2 + $0xe8] sm:$0xf]  ;;  %v18770_v1 = vld [vmem:[#allocation3 + $0x200] sm:$0xff]   ;;  %v9514_v40 = vrot.slane %v9512_v9, 7  ;;  %v12796_v11 = vcombine.low %v9474_v19, %v9483_v22 }
 0x4de   : > { %14203 = vmatprep.subr.bf16.mxu1 %v15262_v24  ;;  %v9451_v23 = vor.u32 %v9449_v55, %v9448_v61  ;;  %v9453_v36 = vrot.slane %v9448_v61, 4  ;;  %v9485_v39 = vshrl.u32 %v9227_v59, 16  ;;  %v9230_v61 = vld [vmem:[#allocation2 + $0xe0] sm:$0x8]  ;;  %v9504_v55 = vor.u32 %v9502_v7, %v9501_v21  ;;  %v15324_v59 = vld [vmem:[#allocation2 + $0xf8] sm:$0xf] }
 0x4df   : > { %v9507_v13 = vshrl.u32 %v9230_v61, 16  ;;  %v9495_v0 = vor.u32 %v9493_v56, %v9492_v6  ;;  %v9497_v60 = vrot.slane %v9492_v6, 4  ;;  %v9519_v58 = vrot.slane %v9514_v40, 4 }
 0x4e0   : > { %v9461_v30 = vsel %vm17567_vm8, %v9453_v36, %v9460_v28  ;;  %v9452_v62 = vsel %vm17567_vm8, %v12779_v20, %v9451_v23  ;;  %v9524_v28 = vshll.u32 %v15322_v12, 16  ;;  %v9515_v20 = vshll.u32 %v15323_v44, 16  ;;  %v9236_v44 = vld [vmem:[#allocation2 + $0x100] sm:$0x8] }
 0x4e1   : > { %14204 = vmatpush3.bf16.msra.mxu1 %v15262_v24  ;;  %v9521_v24 = vshrl.u32 %v15322_v12, 16  ;;  %v12795_v37 = vcombine.low %v9452_v62, %v9461_v30  ;;  %v9534_v23 = vshrl.u32 %v15325_v5, 16  ;;  %v9505_v29 = vsel %vm17567_vm8, %v9497_v60, %v9504_v55 }
 0x4e2   : > { %14205 = vmatprep.subr.bf16.mxu1 %v15263_v17  ;;  %v12782_v12 = vrot.slane %v9507_v13, 11  ;;  %v9529_v26 = vshrl.u32 %v9233_v42, 16  ;;  %v9537_v62 = vshll.u32 %v15325_v5, 16  ;;  %v9546_v22 = vshll.u32 %v15324_v59, 16 }
 0x4e3   : > { %v9536_v7 = vrot.slane %v9534_v23, 7  ;;  %v9587_v56 = vshrl.u32 %v18693_v15, 16  ;;  %v9581_v42 = vshll.u32 %v18691_v16, 16  ;;  %v9590_v23 = vshll.u32 %v18693_v15, 16 }
 0x4e4   : > { %14174 = vmatmul.mubr.bf16.gmra.mrb[28].mxu1 %v12793_v34  ;;  %v12781_v34 = vrot.slane %v9485_v39, 11  ;;  %v15327_v39 = vld [vmem:[#allocation2 + $0x104] sm:$0xf] }
 0x4e5   : > { %14177 = vmatprep.mubr.bf16.mxu1 %v12794_v50  ;;  %14206 = vmatpush3.bf16.msra.mxu1 %v15263_v17  ;;  %v9523_v17 = vrot.slane %v9521_v24, 7  ;;  %v9543_v50 = vshrl.u32 %v15324_v59, 16  ;;  %v9517_v24 = vor.u32 %v9515_v20, %v9514_v40  ;;  %v9556_v21 = vshrl.u32 %v15327_v39, 16 }
 0x4e6   : > { %14207 = vmatprep.subr.bf16.mxu1 %v15264_v3  ;;  %v9496_v30 = vsel %vm17567_vm8, %v12781_v34, %v9495_v0  ;;  %v9551_v34 = vshrl.u32 %v9236_v44, 16  ;;  %v9559_v0 = vshll.u32 %v15327_v39, 16  ;;  %v9539_v60 = vor.u32 %v9537_v62, %v9536_v7  ;;  %v10278_v62 = vld [vmem:[#allocation2 + $0x4c] sm:$0x1] }
 0x4e7   : > { %v9526_v49 = vor.u32 %v9524_v28, %v9523_v17  ;;  %v9545_v10 = vrot.slane %v9543_v50, 7  ;;  %v12797_v9 = vcombine.low %v9496_v30, %v9505_v29  ;;  %v9239_v17 = vld [vmem:[#allocation2 + $0x110] sm:$0x8]  ;;  %v9518_v55 = vsel %vm17567_vm8, %v12782_v12, %v9517_v24 }
 0x4e8   : > { %v9558_v19 = vrot.slane %v9556_v21, 7  ;;  %v12783_v28 = vrot.slane %v9529_v26, 11  ;;  %v9541_v50 = vrot.slane %v9536_v7, 4  ;;  %v9573_v59 = vshrl.u32 %v9239_v17, 16 }
 0x4e9   : > { %14208 = vmatpush3.bf16.msra.mxu1 %v15264_v3  ;;  %v15326_v3 = vld [vmem:[#allocation2 + $0x108] sm:$0xf]  ;;  %v9527_v6 = vsel %vm17567_vm8, %v9519_v58, %v9526_v49  ;;  %v9589_v5 = vrot.slane %v9587_v56, 7 }
 0x4ea   : > { %14241 = vmatprep.subr.bf16.mxu1 %v18770_v1  ;;  %v9565_v36 = vshrl.u32 %v15326_v3, 16  ;;  %v9568_v13 = vshll.u32 %v15326_v3, 16  ;;  %v12798_v40 = vcombine.low %v9518_v55, %v9527_v6  ;;  %v9561_v29 = vor.u32 %v9559_v0, %v9558_v19  ;;  %v15270_v56 = vld [vmem:[#allocation3 + $0x208] sm:$0xff]   ;;  %v10276_v0 = vld [vmem:[#allocation2 + $0x44] sm:$0xf] }
 0x4eb   : > { %v9563_v12 = vrot.slane %v9558_v19, 4  ;;  %v9540_v24 = vsel %vm17567_vm8, %v12783_v28, %v9539_v60  ;;  %v12785_v39 = vrot.slane %v9573_v59, 11  ;;  %v9592_v26 = vor.u32 %v9590_v23, %v9589_v5  ;;  %v15276_v19 = vld [vmem:[#allocation3 + $0x218] sm:$0xff]  }
 0x4ec   : > { %14178 = vmatmul.mubr.bf16.gmra.mrb[0].mxu1 %v12795_v37  ;;  %v9567_v61 = vrot.slane %v9565_v36, 7  ;;  %v9578_v37 = vshrl.u32 %v18691_v16, 16  ;;  %v12784_v36 = vrot.slane %v9551_v34, 11  ;;  %v19724_v55 = vcombine.low %v18461_v41, %v18447_v45  ;;  %v15273_v34 = vld [vmem:[#allocation3 + $0x210] sm:$0xff]   ;;  %v15279_v45 = vld [vmem:[#allocation3 + $0x220] sm:$0xff]  }
 0x4ed   : > { %14181 = vmatprep.mubr.bf16.mxu1 %v12796_v11  ;;  %v9548_v11 = vor.u32 %v9546_v22, %v9545_v10  ;;  %v19728_v41 = vcombine.low %v18484_v51, %v18465_v48  ;;  %v19731_v48 = vcombine.low %v18495_v47, %v18486_v52  ;;  %v10346_v52 = vshll.u32 %v10273_v18, 16  ;;  %v10275_v5 = vld [vmem:[#allocation2 + $0x3c] sm:$0x1] }
 0x4ee   : > { %v9570_v20 = vor.u32 %v9568_v13, %v9567_v61  ;;  %v9580_v49 = vrot.slane %v9578_v37, 7  ;;  %v9562_v44 = vsel %vm17567_vm8, %v12784_v36, %v9561_v29  ;;  %v5361_v61 = vld [vmem:[#allocation2 + $0x11c] sm:$0x1]  ;;  %v19723_v37 = vcombine.low %v18459_v8, %v18445_v38  ;;  %v10270_v13 = vld [vmem:[#allocation2 + $0x24] sm:$0xf] }
 0x4ef   : > { %v9549_v3 = vsel %vm17567_vm8, %v9541_v50, %v9548_v11  ;;  %v5362_v22 = vsel %vm17579_vm10, 0, %v5361_v61  ;;  %v19726_v38 = vcombine.low %v18470_v63, %v18451_v27  ;;  %v19727_v8 = vcombine.low %v18482_v53, %v18463_v2  ;;  %v15285_v27 = vld [vmem:[#allocation3 + $0x230] sm:$0xff]   ;;  %v15288_v2 = vld [vmem:[#allocation3 + $0x238] sm:$0xff]   ;;  %v10271_v63 = vld [vmem:[#allocation2 + $0x28] sm:$0xf] }
 0x4f0   : > { %v9571_v58 = vsel %vm17567_vm8, %v9563_v12, %v9570_v20  ;;  %v9583_v21 = vor.u32 %v9581_v42, %v9580_v49  ;;  %v9585_v30 = vrot.slane %v9580_v49, 4  ;;  %v12799_v10 = vcombine.low %v9540_v24, %v9549_v3  ;;  %5363 = vst [vmem:[#allocation2 + $0x11c] sm:$0x1] %v5362_v22  ;;  %v10274_v53 = vld [vmem:[#allocation2 + $0x38] sm:$0xf]  ;;  %v18836_v11 = vld [vmem:[%s19444_s5] sm:$0xff]  }
 0x4f1   : > { %v10328_v14 = vshll.u32 %v10271_v63, 16  ;;  %v10332_v51 = vshrl.u32 %v10271_v63, 16  ;;  %v10356_v28 = vshrl.u32 %v10274_v53, 16  ;;  %v10319_v60 = vshrl.u32 %v10270_v13, 16  ;;  %v10293_v16 = vld [vmem:[#allocation2 + $0x9c] sm:$0x1] }
 0x4f2   : > { %v9584_v6 = vsel %vm17567_vm8, %v12785_v39, %v9583_v21  ;;  %v9593_v7 = vsel %vm17567_vm8, %v9585_v30, %v9592_v26  ;;  %v10322_v50 = vshll.u32 %v10270_v13, 16  ;;  %v10343_v20 = vshrl.u32 %v10273_v18, 16  ;;  %v10279_v26 = vld [vmem:[#allocation2 + $0x54] sm:$0xf]  ;;  %v19738_v18 = vld [vmem:[#allocation34_spill] sm:$0xff] }
 0x4f3   : > { %v12801_v17 = vcombine.low %v9584_v6, %v9593_v7  ;;  %v18838_v47 = vrot.slane %v10328_v14, 5  ;;  %v10334_v59 = vrot.slane %v10332_v51, 4  ;;  %v10358_v42 = vrot.slane %v10356_v28, 4  ;;  %v10283_v51 = vld [vmem:[#allocation2 + $0x68] sm:$0xf] }
 0x4f4   : > { %14182 = vmatmul.mubr.bf16.gmra.mrb[4].mxu1 %v12797_v9  ;;  %v12800_v9 = vcombine.low %v9562_v44, %v9571_v58  ;;  %v10367_v23 = vshrl.u32 %v10276_v0, 16  ;;  %v10370_v36 = vshll.u32 %v10276_v0, 16  ;;  %v19732_v24 = vcombine.low %v19721_v35, %v19720_v31  ;;  %v19734_v44 = vld [vmem:[#allocation22_spill] sm:$0xff]  ;;  %v10280_v35 = vld [vmem:[#allocation2 + $0x58] sm:$0xf] }
 0x4f5   : > { %14185 = vmatprep.mubr.bf16.mxu1 %v12798_v40  ;;  %v10352_v40 = vshll.u32 %v10274_v53, 16  ;;  %v10321_v58 = vrot.slane %v10319_v60, 4  ;;  %v10324_v39 = vrot.slane %v10322_v50, 5  ;;  %v10345_v21 = vrot.slane %v10343_v20, 4  ;;  %v10281_v60 = vld [vmem:[#allocation2 + $0x5c] sm:$0x1] }
 0x4f6   : > { %v10348_v30 = vrot.slane %v10346_v52, 5  ;;  %v10335_v6 = vor.u32 %v10334_v59, %v18838_v47  ;;  %v10362_v61 = vshll.u32 %v10275_v5, 16  ;;  %v10369_v22 = vrot.slane %v10367_v23, 4  ;;  %v10282_v59 = vld [vmem:[#allocation2 + $0x64] sm:$0xf] }
 0x4f7   : > { %v18840_v49 = vrot.slane %v10352_v40, 5  ;;  %v19739_v40 = vld [vmem:[#allocation31_spill] sm:$0xff]  ;;  %v10424_v5 = vshll.u32 %v10283_v51, 16  ;;  %v10428_v23 = vshrl.u32 %v10283_v51, 16 }
 0x4f8   : > { %v19740_v28 = vcombine.low %v19738_v18, %v19739_v40 }
 0x4f9   : > { %v10359_v7 = vor.u32 %v10358_v42, %v18840_v49 }
 0x4fc   : > { %14186 = vmatmul.mubr.bf16.gmra.mrb[8].mxu1 %v12799_v10  ;;  %v19733_v10 = vld [vmem:[#allocation24_spill] sm:$0xff] }
 0x4fd   : > { %14189 = vmatprep.mubr.bf16.mxu1 %v12800_v9  ;;  %v19735_v9 = vcombine.low %v19733_v10, %v19734_v44  ;;  %v10418_v10 = vshll.u32 %v10282_v59, 16  ;;  %v10288_v44 = vld [vmem:[#allocation2 + $0x84] sm:$0xf] }
 0x504   : > { %14190 = vmatmul.mubr.bf16.gmra.mrb[12].mxu1 %v12801_v17  ;;  %v10372_v17 = vrot.slane %v10370_v36, 5 }
 0x505   : > { %14209 = vmatprep.mubr.bf16.mxu1 %v19723_v37 }
 0x50c   : > { %14210 = vmatmul.mubr.bf16.vlgmr.msra.gmra.mrb[16].mxu1 %v19724_v55  ;;  %v10394_v55 = vshll.u32 %v10279_v26, 16 }
 0x50d   : > { %14213 = vmatprep.mubr.bf16.mxu1 %v19725_v57  ;;  %14242 = vmatpush3.bf16.msra.mxu1 %v18770_v1  ;;  %v19730_v1 = vcombine.low %v18493_v32, %v18474_v43  ;;  %v10277_v43 = vld [vmem:[#allocation2 + $0x48] sm:$0xf]  ;;  %v10272_v32 = vld [vmem:[#allocation2 + $0x2c] sm:$0x1]  ;;  %v10325_v57 = vor.u32 %v10324_v39, %v10321_v58  ;;  %v10415_v39 = vshrl.u32 %v10282_v59, 16 }
 0x50e   : > { %14243 = vmatprep.subr.bf16.mxu1 %v15270_v56  ;;  %v10376_v29 = vshll.u32 %v10277_v43, 16  ;;  %v10380_v12 = vshrl.u32 %v10277_v43, 16  ;;  %v10338_v3 = vshll.u32 %v10272_v32, 16  ;;  %v10396_v53 = vrot.slane %v10394_v55, 5 }
 0x510   : > { %v18851_v37 = vrot.slane %v10376_v29, 5  ;;  %v10382_v31 = vrot.slane %v10380_v12, 4  ;;  %v10410_v12 = vshll.u32 %v10281_v60, 16 }
 0x511   : > { %14244 = vmatpush3.bf16.msra.mxu1 %v15270_v56  ;;  %v10391_v56 = vshrl.u32 %v10279_v26, 16 }
 0x512   : > { %14245 = vmatprep.subr.bf16.mxu1 %v15273_v34 }
 0x513   : > { %v10393_v63 = vrot.slane %v10391_v56, 4 }
 0x514   : > { %14214 = vmatmul.mubr.bf16.gmra.mrb[20].mxu1 %v19726_v38  ;;  %v10336_v38 = vrot.slane %v10335_v6, 4  ;;  %v18882_v6 = vrot.slane %v10424_v5, 5 }
 0x515   : > { %14217 = vmatprep.mubr.bf16.mxu1 %v19727_v8  ;;  %14246 = vmatpush3.bf16.msra.mxu1 %v15273_v34  ;;  %v10340_v34 = vrot.slane %v10338_v3, 5  ;;  %v10360_v8 = vrot.slane %v10359_v7, 4  ;;  %v10397_v42 = vor.u32 %v10396_v53, %v10393_v63  ;;  %v10285_v3 = vld [vmem:[#allocation2 + $0x74] sm:$0xf]  ;;  %v10430_v7 = vrot.slane %v10428_v23, 4 }
 0x516   : > { %14247 = vmatprep.subr.bf16.mxu1 %v15276_v19  ;;  %v10420_v63 = vrot.slane %v10418_v10, 5  ;;  %v10297_v10 = vld [vmem:[#allocation2 + $0xb4] sm:$0xf] }
 0x517   : > { %v10341_v0 = vsel %vm15640_vm2, %v10336_v38, %v10340_v34  ;;  %v19745_v34 = vld [vmem:[#allocation33_spill] sm:$0xff]  ;;  %v10287_v38 = vld [vmem:[#allocation2 + $0x7c] sm:$0x1] }
 0x519   : > { %14248 = vmatpush3.bf16.msra.mxu1 %v15276_v19  ;;  %v10349_v19 = vor.u32 %v10348_v30, %v10345_v21  ;;  %v10286_v21 = vld [vmem:[#allocation2 + $0x78] sm:$0xf] }
 0x51a   : > { %14249 = vmatprep.subr.bf16.mxu1 %v15279_v45  ;;  %v10448_v56 = vshll.u32 %v10286_v21, 16  ;;  %v10452_v55 = vshrl.u32 %v10286_v21, 16 }
 0x51b   : > { %v10350_v14 = vrot.slane %v10349_v19, 4 }
 0x51c   : > { %14218 = vmatmul.mubr.bf16.gmra.mrb[24].mxu1 %v19728_v41  ;;  %v10373_v41 = vor.u32 %v10372_v17, %v10369_v22  ;;  %v19742_v22 = vld [vmem:[#allocation32_spill] sm:$0xff]  ;;  %v18905_v18 = vrot.slane %v10448_v56, 5  ;;  %v10454_v40 = vrot.slane %v10452_v55, 4  ;;  %v10535_v55 = vshrl.u32 %v10297_v10, 16 }
 0x51d   : > { %14221 = vmatprep.mubr.bf16.mxu1 %v19729_v25  ;;  %14250 = vmatpush3.bf16.msra.mxu1 %v15279_v45  ;;  %v10364_v45 = vrot.slane %v10362_v61, 5  ;;  %v10383_v25 = vor.u32 %v10382_v31, %v18851_v37  ;;  %v10355_v29 = vsel %vm15640_vm2, %v10350_v14, %v18840_v49  ;;  %v18880_v49 = vrot.slane %v10397_v42, 4  ;;  %v10292_v14 = vld [vmem:[#allocation2 + $0x98] sm:$0xf]  ;;  %v10291_v42 = vld [vmem:[#allocation2 + $0x94] sm:$0xf] }
 0x51e   : > { %14251 = vmatprep.subr.bf16.mxu1 %v15282_v54  ;;  %v10374_v50 = vrot.slane %v10373_v41, 4  ;;  %v10439_v61 = vshrl.u32 %v10285_v3, 16  ;;  %v18887_v31 = vrot.slane %v10410_v12, 5  ;;  %v10496_v5 = vshll.u32 %v10292_v14, 16  ;;  %v10294_v12 = vld [vmem:[#allocation2 + $0xa4] sm:$0xf] }
 0x51f   : > { %v10365_v43 = vsel %vm15640_vm2, %v10360_v8, %v10364_v45  ;;  %v10384_v20 = vrot.slane %v10383_v25, 4  ;;  %v10463_v8 = vshrl.u32 %v10288_v44, 16  ;;  %v10466_v45 = vshll.u32 %v10288_v44, 16 }
 0x520   : > { %v18872_v58 = vcombine.low %v10355_v29, %v10365_v43  ;;  %v10379_v30 = vsel %vm15640_vm2, %v10374_v50, %v18851_v37  ;;  %v10284_v37 = vld [vmem:[#allocation2 + $0x6c] sm:$0x1]  ;;  %v10500_v23 = vshrl.u32 %v10292_v14, 16  ;;  %v18932_v15 = vrot.slane %v10496_v5, 5 }
 0x521   : > { %14252 = vmatpush3.bf16.msra.mxu1 %v15282_v54  ;;  %v10386_v54 = vshll.u32 %v10278_v62, 16  ;;  %v19741_v62 = vld [vmem:[#allocation35_spill] sm:$0xff]  ;;  %v10290_v43 = vld [vmem:[#allocation2 + $0x8c] sm:$0x1]  ;;  %v18909_v60 = vrot.slane %v10466_v45, 5 }
 0x522   : > { %14253 = vmatprep.subr.bf16.mxu1 %v15285_v27  ;;  %v19743_v17 = vcombine.low %v19741_v62, %v19742_v22  ;;  %v10298_v62 = vld [vmem:[#allocation2 + $0xb8] sm:$0xf]  ;;  %v10511_v22 = vshrl.u32 %v10294_v12, 16 }
 0x523   : > { %v10388_v32 = vrot.slane %v10386_v54, 5 }
 0x524   : > { %14222 = vmatmul.mubr.bf16.gmra.mrb[28].mxu1 %v19730_v1  ;;  %v19736_v1 = vld [vmem:[#allocation30_spill] sm:$0xff] }
 0x525   : > { %14225 = vmatprep.mubr.bf16.mxu1 %v19731_v48  ;;  %14254 = vmatpush3.bf16.msra.mxu1 %v15285_v27  ;;  %v10400_v27 = vshll.u32 %v10280_v35, 16  ;;  %v19737_v13 = vcombine.low %v18536_v33, %v19736_v1  ;;  %v10326_v48 = vrot.slane %v10325_v57, 4  ;;  %v10389_v26 = vsel %vm15640_vm2, %v10384_v20, %v10388_v32  ;;  %v19744_v57 = vld [vmem:[#allocation36_spill] sm:$0xff] }
 0x526   : > { %14255 = vmatprep.subr.bf16.mxu1 %v15288_v2  ;;  %v19746_v19 = vcombine.low %v19744_v57, %v19745_v34  ;;  %v18892_v25 = vcombine.low %v10379_v30, %v10389_v26  ;;  %v10431_v1 = vor.u32 %v10430_v7, %v18882_v6  ;;  %v18907_v32 = vrot.slane %v10463_v8, 4 }
 0x527   : > { %v18864_v52 = vrot.slane %v10400_v27, 5  ;;  %v10331_v36 = vsel %vm15640_vm2, %v10326_v48, %v18838_v47  ;;  %v18901_v48 = vrot.slane %v10439_v61, 4  ;;  %v10455_v30 = vor.u32 %v10454_v40, %v18905_v18 }
 0x528   : > { %v10469_v44 = vor.u32 %v18909_v60, %v18907_v32  ;;  %v10487_v7 = vshrl.u32 %v10291_v42, 16  ;;  %v10490_v61 = vshll.u32 %v10291_v42, 16  ;;  %v10537_v40 = vrot.slane %v10535_v55, 4  ;;  %v10299_v60 = vld [vmem:[#allocation2 + $0xbc] sm:$0x1] }
 0x529   : > { %14256 = vmatpush3.bf16.msra.mxu1 %v15288_v2  ;;  %v10404_v2 = vshrl.u32 %v10280_v35, 16  ;;  %v10442_v35 = vshll.u32 %v10285_v3, 16  ;;  %v10403_v53 = vsel %vm15640_vm2, %v18880_v49, %v18864_v52  ;;  %v10456_v57 = vrot.slane %v10455_v30, 4  ;;  %v10302_v49 = vld [vmem:[#allocation2 + $0xcc] sm:$0x1] }
 0x52a   : > { %14289 = vmatprep.subr.bf16.mxu1 %v18836_v11  ;;  %v10489_v45 = vrot.slane %v10487_v7, 4  ;;  %v10470_v5 = vrot.slane %v10469_v44, 4 }
 0x52b   : > { %v10406_v33 = vrot.slane %v10404_v2, 4  ;;  %v10417_v2 = vrot.slane %v10415_v39, 4  ;;  %v18903_v51 = vrot.slane %v10442_v35, 5 }
 0x52c   : > { %14226 = vmatmul.mubr.bf16.gmra.mrb[0].mxu1 %v19732_v24  ;;  %v12834_v24 = vcombine.low %v10331_v36, %v10341_v0  ;;  %v10295_v0 = vld [vmem:[#allocation2 + $0xa8] sm:$0xf]  ;;  %v18917_v36 = vrot.slane %v10431_v1, 4  ;;  %v10513_v1 = vrot.slane %v10511_v22, 4 }
 0x52d   : > { %14229 = vmatprep.mubr.bf16.mxu1 %v19735_v9  ;;  %v10407_v47 = vor.u32 %v10406_v33, %v18864_v52  ;;  %v10289_v9 = vld [vmem:[#allocation2 + $0x88] sm:$0xf]  ;;  %v10421_v59 = vor.u32 %v10420_v63, %v10417_v2  ;;  %v10520_v3 = vshll.u32 %v10295_v0, 16  ;;  %v10524_v39 = vshrl.u32 %v10295_v0, 16  ;;  %v10300_v0 = vld [vmem:[#allocation2 + $0xc4] sm:$0xf] }
 0x52e   : > { %v10472_v54 = vshll.u32 %v10289_v9, 16  ;;  %v10476_v41 = vshrl.u32 %v10289_v9, 16  ;;  %v10445_v21 = vor.u32 %v18903_v51, %v18901_v48  ;;  %v15290_v2 = vld [vmem:[%s19444_s5 + $0x8] sm:$0xff]   ;;  %v10559_v30 = vshrl.u32 %v10300_v0, 16 }
 0x52f   : > { %v18894_v27 = vrot.slane %v10407_v47, 4  ;;  %v10482_v47 = vshll.u32 %v10290_v43, 16  ;;  %v18934_v35 = vrot.slane %v10520_v3, 5  ;;  %v10526_v56 = vrot.slane %v10524_v39, 4  ;;  %v10301_v52 = vld [vmem:[#allocation2 + $0xc8] sm:$0xf] }
 0x530   : > { %v18911_v50 = vrot.slane %v10472_v54, 5  ;;  %v10478_v20 = vrot.slane %v10476_v41, 4  ;;  %v10492_v54 = vrot.slane %v10490_v61, 5  ;;  %v10506_v41 = vshll.u32 %v10293_v16, 16  ;;  %v15292_v61 = vld [vmem:[%s19444_s5 + $0x18] sm:$0xff]  }
 0x531   : > { %v10413_v33 = vsel %vm15640_vm2, %v18894_v27, %v18887_v31  ;;  %v10484_v34 = vrot.slane %v10482_v47, 5  ;;  %v10422_v14 = vrot.slane %v10421_v59, 4  ;;  %v10527_v51 = vor.u32 %v10526_v56, %v18934_v35  ;;  %v10303_v16 = vld [vmem:[#allocation2 + $0xd4] sm:$0xf] }
 0x532   : > { %v10479_v9 = vor.u32 %v10478_v20, %v18911_v50  ;;  %v10446_v32 = vrot.slane %v10445_v21, 4  ;;  %v10554_v21 = vshll.u32 %v10299_v60, 16  ;;  %v10562_v44 = vshll.u32 %v10300_v0, 16  ;;  %v10310_v60 = vld [vmem:[#allocation2 + $0xf8] sm:$0xf] }
 0x533   : > { %v10528_v39 = vrot.slane %v10527_v51, 4  ;;  %v10427_v47 = vsel %vm15640_vm2, %v10422_v14, %v18882_v6  ;;  %v10475_v31 = vsel %vm15640_vm2, %v10470_v5, %v18911_v50  ;;  %v10586_v14 = vshll.u32 %v10303_v16, 16  ;;  %v10312_v51 = vld [vmem:[#allocation2 + $0x104] sm:$0xf] }
 0x534   : > { %14230 = vmatmul.mubr.bf16.gmra.mrb[4].mxu1 %v19737_v13  ;;  %v10434_v13 = vshll.u32 %v10284_v37, 16  ;;  %v10296_v37 = vld [vmem:[#allocation2 + $0xac] sm:$0x1]  ;;  %v10480_v8 = vrot.slane %v10479_v9, 4  ;;  %v10451_v7 = vsel %vm15640_vm2, %v10446_v32, %v18905_v18  ;;  %v10304_v18 = vld [vmem:[#allocation2 + $0xd8] sm:$0xf] }
 0x535   : > { %14233 = vmatprep.mubr.bf16.mxu1 %v19740_v28  ;;  %v10458_v28 = vshll.u32 %v10287_v38, 16  ;;  %v10548_v38 = vshrl.u32 %v10298_v62, 16  ;;  %v10530_v48 = vshll.u32 %v10296_v37, 16  ;;  %v18987_v22 = vrot.slane %v10554_v21, 5  ;;  %v10307_v37 = vld [vmem:[#allocation2 + $0xe8] sm:$0xf] }
 0x536   : > { %v18919_v29 = vrot.slane %v10434_v13, 5  ;;  %v18993_v55 = vrot.slane %v10562_v44, 5  ;;  %v10309_v32 = vld [vmem:[#allocation2 + $0xf4] sm:$0xf] }
 0x537   : > { %v18927_v26 = vrot.slane %v10458_v28, 5  ;;  %v10550_v42 = vrot.slane %v10548_v38, 4  ;;  %v10583_v38 = vshrl.u32 %v10303_v16, 16  ;;  %v10634_v21 = vshll.u32 %v10309_v32, 16  ;;  %v10311_v16 = vld [vmem:[#allocation2 + $0xfc] sm:$0x1] }
 0x538   : > { %v10437_v43 = vsel %vm15640_vm2, %v18917_v36, %v18919_v29  ;;  %v15291_v36 = vld [vmem:[%s19444_s5 + $0x10] sm:$0xff]  }
 0x539   : > { %v10461_v59 = vsel %vm15640_vm2, %v10456_v57, %v18927_v26  ;;  %v12837_v26 = vcombine.low %v10403_v53, %v10413_v33  ;;  %v12838_v9 = vcombine.low %v10427_v47, %v10437_v43  ;;  %v10572_v57 = vshrl.u32 %v10301_v52, 16  ;;  %v10305_v43 = vld [vmem:[#allocation2 + $0xdc] sm:$0x1] }
 0x53a   : > { %v12839_v53 = vcombine.low %v10451_v7, %v10461_v59  ;;  %v19022_v59 = vrot.slane %v10583_v38, 4  ;;  %v10655_v47 = vshrl.u32 %v10312_v51, 16 }
 0x53b   : > { %v10574_v0 = vrot.slane %v10572_v57, 4 }
 0x53c   : > { %14234 = vmatmul.mubr.bf16.gmra.mrb[8].mxu1 %v19743_v17  ;;  %v10514_v17 = vshll.u32 %v10294_v12, 16  ;;  %v10508_v12 = vrot.slane %v10506_v41, 5  ;;  %v10596_v41 = vshrl.u32 %v10304_v18, 16 }
 0x53d   : > { %14237 = vmatprep.mubr.bf16.mxu1 %v19746_v19  ;;  %v10544_v19 = vshll.u32 %v10298_v62, 16 }
 0x53e   : > { %v10516_v13 = vrot.slane %v10514_v17, 5  ;;  %v18989_v17 = vrot.slane %v10559_v30, 4  ;;  %v10640_v30 = vshll.u32 %v10310_v60, 16 }
 0x53f   : > { %v18946_v20 = vrot.slane %v10544_v19, 5  ;;  %v10578_v19 = vshll.u32 %v10302_v49, 16 }
 0x540   : > { %v10517_v3 = vor.u32 %v10516_v13, %v10513_v1  ;;  %v10620_v1 = vshrl.u32 %v10307_v37, 16 }
 0x542   : > { %v10518_v62 = vrot.slane %v10517_v3, 4 }
 0x544   : > { %14238 = vmatmul.mubr.bf16.gmra.mrb[12].mxu1 %v12825_v46  ;;  %v10502_v46 = vrot.slane %v10500_v23, 4  ;;  %v10493_v23 = vor.u32 %v10492_v54, %v10489_v45  ;;  %v10523_v45 = vsel %vm15640_vm2, %v10518_v62, %v18934_v35  ;;  %v15293_v54 = vld [vmem:[%s19444_s5 + $0x20] sm:$0xff]  }
 0x545   : > { %14257 = vmatprep.mubr.bf16.mxu1 %v12834_v24  ;;  %v10538_v24 = vshll.u32 %v10297_v10, 16  ;;  %v10551_v10 = vor.u32 %v10550_v42, %v18946_v20  ;;  %v19020_v42 = vrot.slane %v10578_v19, 5 }
 0x546   : > { %v10503_v63 = vor.u32 %v10502_v46, %v18932_v15  ;;  %v10494_v27 = vrot.slane %v10493_v23, 4  ;;  %v10313_v23 = vld [vmem:[#allocation2 + $0x108] sm:$0xf] }
 0x547   : > { %v10540_v28 = vrot.slane %v10538_v24, 5  ;;  %v18991_v56 = vrot.slane %v10551_v10, 4  ;;  %v10568_v24 = vshll.u32 %v10301_v52, 16  ;;  %v10658_v10 = vshll.u32 %v10312_v51, 16 }
 0x548   : > { %v10504_v29 = vrot.slane %v10503_v63, 4  ;;  %v10616_v63 = vshll.u32 %v10307_v37, 16  ;;  %v10664_v44 = vshll.u32 %v10313_v23, 16  ;;  %v10314_v37 = vld [vmem:[#allocation2 + $0x10c] sm:$0x1] }
 0x549   : > { %v10557_v35 = vsel %vm15640_vm2, %v18991_v56, %v18987_v22  ;;  %v10316_v22 = vld [vmem:[#allocation2 + $0x118] sm:$0xf] }
 0x54a   : > { %v10509_v6 = vsel %vm15640_vm2, %v10504_v29, %v10508_v12  ;;  %v15294_v29 = vld [vmem:[%s19444_s5 + $0x28] sm:$0xff]   ;;  %v19029_v3 = vrot.slane %v10616_v63, 5  ;;  %v19039_v57 = vrot.slane %v10664_v44, 5  ;;  %v10650_v63 = vshll.u32 %v10311_v16, 16  ;;  %v12863_v16 = vld [vmem:[%s15568_s8 + $0x1c] sm:$0xf] }
 0x54c   : > { %14258 = vmatmul.mubr.bf16.vlgmr.msra.gmra.mrb[16].mxu1 %v18872_v58  ;;  %v10485_v58 = vsel %vm15640_vm2, %v10480_v8, %v10484_v34  ;;  %v10499_v34 = vsel %vm15640_vm2, %v10494_v27, %v18932_v15  ;;  %v10592_v8 = vshll.u32 %v10304_v18, 16  ;;  %v10602_v27 = vshll.u32 %v10305_v43, 16 }
 0x54d   : > { %14261 = vmatprep.mubr.bf16.mxu1 %v18892_v25  ;;  %14290 = vmatpush3.bf16.msra.mxu1 %v18836_v11  ;;  %v10532_v25 = vrot.slane %v10530_v48, 5  ;;  %v10541_v11 = vor.u32 %v10540_v28, %v10537_v40  ;;  %v12840_v33 = vcombine.low %v10475_v31, %v10485_v58  ;;  %v19004_v13 = vcombine.low %v10499_v34, %v10509_v6 }
 0x54e   : > { %14291 = vmatprep.subr.bf16.mxu1 %v15290_v2  ;;  %v10565_v40 = vor.u32 %v18993_v55, %v18989_v17  ;;  %v19018_v28 = vrot.slane %v10568_v24, 5  ;;  %v19024_v5 = vrot.slane %v10592_v8, 5  ;;  %v10588_v31 = vrot.slane %v10586_v14, 5  ;;  %v15296_v14 = vld [vmem:[%s19444_s5 + $0x38] sm:$0xff]  }
 0x54f   : > { %v10533_v46 = vsel %vm15640_vm2, %v10528_v39, %v10532_v25  ;;  %v18985_v50 = vrot.slane %v10541_v11, 4  ;;  %v10622_v25 = vrot.slane %v10620_v1, 4  ;;  %v10308_v39 = vld [vmem:[#allocation2 + $0xec] sm:$0x1]  ;;  %v10631_v11 = vshrl.u32 %v10309_v32, 16 }
 0x550   : > { %v19006_v48 = vcombine.low %v10523_v45, %v10533_v46  ;;  %v10575_v7 = vor.u32 %v10574_v0, %v19018_v28  ;;  %v10626_v62 = vshll.u32 %v10308_v39, 16  ;;  %v19037_v46 = vrot.slane %v10640_v30, 5  ;;  %v10315_v1 = vld [vmem:[#allocation2 + $0x114] sm:$0xf] }
 0x551   : > { %14292 = vmatpush3.bf16.msra.mxu1 %v15290_v2  ;;  %v10306_v2 = vld [vmem:[#allocation2 + $0xe4] sm:$0xf]  ;;  %v10547_v15 = vsel %vm15640_vm2, %v18985_v50, %v18946_v20  ;;  %v10633_v18 = vrot.slane %v10631_v11, 4  ;;  %v10657_v55 = vrot.slane %v10655_v47, 4  ;;  %v10660_v24 = vrot.slane %v10658_v10, 5 }
 0x552   : > { %14293 = vmatprep.subr.bf16.mxu1 %v15291_v36  ;;  %v10607_v58 = vshrl.u32 %v10306_v2, 16  ;;  %v10610_v12 = vshll.u32 %v10306_v2, 16  ;;  %v10566_v19 = vrot.slane %v10565_v40, 4  ;;  %v10576_v38 = vrot.slane %v10575_v7, 4 }
 0x553   : > { %v10589_v8 = vor.u32 %v10588_v31, %v19022_v59  ;;  %v10604_v45 = vrot.slane %v10602_v27, 5  ;;  %v10628_v2 = vrot.slane %v10626_v62, 5  ;;  %v10674_v40 = vshll.u32 %v10314_v37, 16 }
 0x554   : > { %14262 = vmatmul.mubr.bf16.gmra.mrb[20].mxu1 %v12837_v26  ;;  %v10644_v26 = vshrl.u32 %v10310_v60, 16  ;;  %v10609_v52 = vrot.slane %v10607_v58, 4  ;;  %v10612_v6 = vrot.slane %v10610_v12, 5  ;;  %v12843_v32 = vcombine.low %v10547_v15, %v10557_v35 }
 0x555   : > { %14265 = vmatprep.mubr.bf16.mxu1 %v12838_v9  ;;  %14294 = vmatpush3.bf16.msra.mxu1 %v15291_v36  ;;  %v10598_v36 = vrot.slane %v10596_v41, 4  ;;  %v10668_v9 = vshrl.u32 %v10313_v23, 16  ;;  %v10661_v60 = vor.u32 %v10660_v24, %v10657_v55  ;;  %v10590_v58 = vrot.slane %v10589_v8, 4  ;;  %v12866_v24 = vld [vmem:[%s15568_s8 + $0x28] sm:$0xf] }
 0x556   : > { %14295 = vmatprep.subr.bf16.mxu1 %v15292_v61  ;;  %v10646_v17 = vrot.slane %v10644_v26, 4  ;;  %v10613_v41 = vor.u32 %v10612_v6, %v10609_v52  ;;  %v10679_v56 = vshrl.u32 %v10315_v1, 16  ;;  %v10682_v23 = vshll.u32 %v10315_v1, 16 }
 0x557   : > { %v10599_v49 = vor.u32 %v10598_v36, %v19024_v5  ;;  %v10670_v34 = vrot.slane %v10668_v9, 4  ;;  %v10581_v20 = vsel %vm15640_vm2, %v10576_v38, %v19020_v42  ;;  %v10652_v35 = vrot.slane %v10650_v63, 5 }
 0x558   : > { %v10647_v43 = vor.u32 %v10646_v17, %v19037_v46  ;;  %v10614_v15 = vrot.slane %v10613_v41, 4  ;;  %v10676_v12 = vrot.slane %v10674_v40, 5  ;;  %v10662_v39 = vrot.slane %v10661_v60, 4  ;;  %v12868_v60 = vld [vmem:[%s15568_s8 + $0x30] sm:$0xf] }
 0x559   : > { %14296 = vmatpush3.bf16.msra.mxu1 %v15292_v61  ;;  %v10623_v61 = vor.u32 %v10622_v25, %v19029_v3  ;;  %v10671_v59 = vor.u32 %v10670_v34, %v19039_v57  ;;  %v12860_v25 = vld [vmem:[%s15568_s8 + $0x10] sm:$0xf]  ;;  %v10692_v30 = vshrl.u32 %v10316_v22, 16  ;;  %v10681_v42 = vrot.slane %v10679_v56, 4  ;;  %v10317_v34 = vld [vmem:[#allocation2 + $0x11c] sm:$0x1] }
 0x55a   : > { %14297 = vmatprep.subr.bf16.mxu1 %v15293_v54  ;;  %v10684_v26 = vrot.slane %v10682_v23, 5  ;;  %v10595_v44 = vsel %vm15640_vm2, %v10590_v58, %v19024_v5  ;;  %v10619_v9 = vsel %vm15640_vm2, %v10614_v15, %v19029_v3  ;;  %v11089_v7 = vshll.u32 %v12860_v25, 16  ;;  %v12869_v56 = vld [vmem:[%s15568_s8 + $0x34] sm:$0xf]  ;;  %v12864_v23 = vld [vmem:[%s15568_s8 + $0x20] sm:$0x1] }
 0x55b   : > { %v10624_v51 = vrot.slane %v10623_v61, 4  ;;  %v10672_v11 = vrot.slane %v10671_v59, 4  ;;  %v11093_v31 = vshrl.u32 %v12860_v25, 16  ;;  %v12862_v61 = vld [vmem:[%s15568_s8 + $0x18] sm:$0xf]  ;;  %v10667_v3 = vsel %vm15640_vm2, %v10662_v39, %v19039_v57 }
 0x55c   : > { %14266 = vmatmul.mubr.bf16.gmra.mrb[24].mxu1 %v12839_v53  ;;  %v15295_v53 = vld [vmem:[%s19444_s5 + $0x30] sm:$0xff]   ;;  %v10685_v17 = vor.u32 %v10684_v26, %v10681_v42  ;;  %v11104_v57 = vshrl.u32 %v12862_v61, 16  ;;  %v11107_v8 = vshll.u32 %v12862_v61, 16  ;;  %v10698_v40 = vshll.u32 %v10317_v34, 16 }
 0x55d   : > { %14269 = vmatprep.mubr.bf16.mxu1 %v12840_v33  ;;  %14298 = vmatpush3.bf16.msra.mxu1 %v15293_v54  ;;  %v10636_v33 = vrot.slane %v10634_v21, 5  ;;  %v10600_v54 = vrot.slane %v10599_v49, 4  ;;  %v10688_v21 = vshll.u32 %v10316_v22, 16  ;;  %v11095_v38 = vrot.slane %v11093_v31, 4 }
 0x55e   : > { %14299 = vmatprep.subr.bf16.mxu1 %v15294_v29  ;;  %v11106_v58 = vrot.slane %v11104_v57, 4  ;;  %v11109_v22 = vrot.slane %v11107_v8, 5 }
 0x55f   : > { %v10637_v0 = vor.u32 %v10636_v33, %v10633_v18  ;;  %v10605_v50 = vsel %vm15640_vm2, %v10600_v54, %v10604_v45  ;;  %v19086_v62 = vrot.slane %v10688_v21, 5  ;;  %v12865_v18 = vld [vmem:[%s15568_s8 + $0x24] sm:$0xf]  ;;  %v10677_v33 = vsel %vm15640_vm2, %v10672_v11, %v10676_v12 }
 0x560   : > { %v12845_v52 = vcombine.low %v10595_v44, %v10605_v50  ;;  %v11113_v45 = vshll.u32 %v12863_v16, 16  ;;  %v11117_v54 = vshrl.u32 %v12863_v16, 16  ;;  %v11128_v41 = vshrl.u32 %v12865_v18, 16 }
 0x561   : > { %14300 = vmatpush3.bf16.msra.mxu1 %v15294_v29  ;;  %v10638_v36 = vrot.slane %v10637_v0, 4  ;;  %v10648_v29 = vrot.slane %v10647_v43, 4  ;;  %v12848_v1 = vcombine.low %v10667_v3, %v10677_v33  ;;  %v19096_v0 = vrot.slane %v10685_v17, 4 }
 0x562   : > { %14301 = vmatprep.subr.bf16.mxu1 %v15295_v53  ;;  %v11119_v50 = vrot.slane %v11117_v54, 4  ;;  %v11130_v15 = vrot.slane %v11128_v41, 4  ;;  %v11155_v12 = vshll.u32 %v12868_v60, 16  ;;  %v11161_v11 = vshll.u32 %v12869_v56, 16 }
 0x563   : > { %v10643_v6 = vsel %vm15640_vm2, %v10638_v36, %v19037_v46  ;;  %v10653_v5 = vsel %vm15640_vm2, %v10648_v29, %v10652_v35  ;;  %v12861_v46 = vld [vmem:[%s15568_s8 + $0x14] sm:$0x1]  ;;  %v11152_v29 = vshrl.u32 %v12868_v60, 16  ;;  %v10691_v25 = vsel %vm15640_vm2, %v19096_v0, %v19086_v62  ;;  %v12873_v0 = vld [vmem:[%s15568_s8 + $0x44] sm:$0x1] }
 0x564   : > { %14270 = vmatmul.mubr.bf16.gmra.mrb[28].mxu1 %v19004_v13  ;;  %v10571_v13 = vsel %vm15640_vm2, %v10566_v19, %v19018_v28  ;;  %v10629_v28 = vsel %vm15640_vm2, %v10624_v51, %v10628_v2  ;;  %v19094_v19 = vrot.slane %v11089_v7, 5  ;;  %v11131_v2 = vshll.u32 %v12865_v18, 16 }
 0x565   : > { %14273 = vmatprep.mubr.bf16.mxu1 %v19006_v48  ;;  %14302 = vmatpush3.bf16.msra.mxu1 %v15295_v53  ;;  %v12859_v48 = vld [vmem:[%s15568_s8 + $0xc] sm:$0xf]  ;;  %v12844_v27 = vcombine.low %v10571_v13, %v10581_v20  ;;  %v12846_v49 = vcombine.low %v10619_v9, %v10629_v28  ;;  %v10694_v53 = vrot.slane %v10692_v30, 4  ;;  %v12847_v63 = vcombine.low %v10643_v6, %v10653_v5  ;;  %v12870_v5 = vld [vmem:[%s15568_s8 + $0x38] sm:$0x1] }
 0x566   : > { %14303 = vmatprep.subr.bf16.mxu1 %v15296_v14  ;;  %v11080_v47 = vshrl.u32 %v12859_v48, 16  ;;  %v11083_v10 = vshll.u32 %v12859_v48, 16  ;;  %v11141_v51 = vshrl.u32 %v12866_v24, 16  ;;  %v11096_v13 = vor.u32 %v11095_v38, %v19094_v19  ;;  %v12867_v48 = vld [vmem:[%s15568_s8 + $0x2c] sm:$0x1] }
 0x567   : > { %v10695_v43 = vor.u32 %v10694_v53, %v19086_v62  ;;  %v19103_v20 = vrot.slane %v11113_v45, 5  ;;  %v11133_v35 = vrot.slane %v11131_v2, 5  ;;  %v11165_v21 = vshrl.u32 %v12869_v56, 16  ;;  %v12874_v38 = vld [vmem:[%s15568_s8 + $0x48] sm:$0xf] }
 0x568   : > { %v11082_v37 = vrot.slane %v11080_v47, 4  ;;  %v11085_v55 = vrot.slane %v11083_v10, 5  ;;  %v11143_v36 = vrot.slane %v11141_v51, 4  ;;  %v10700_v30 = vrot.slane %v10698_v40, 5  ;;  %v12871_v10 = vld [vmem:[%s15568_s8 + $0x3c] sm:$0xf] }
 0x569   : > { %14304 = vmatpush3.bf16.msra.mxu1 %v15296_v14  ;;  %v11137_v14 = vshll.u32 %v12866_v24, 16  ;;  %v10696_v39 = vrot.slane %v10695_v43, 4  ;;  %v11123_v47 = vshll.u32 %v12864_v23, 16  ;;  %v11097_v44 = vrot.slane %v11096_v13, 4 }
 0x56a   : > { %v11086_v59 = vor.u32 %v11085_v55, %v11082_v37  ;;  %v11110_v9 = vor.u32 %v11109_v22, %v11106_v58  ;;  %v11120_v7 = vor.u32 %v11119_v50, %v19103_v20  ;;  %v11147_v31 = vshll.u32 %v12867_v48, 16  ;;  %v12877_v50 = vld [vmem:[%s15568_s8 + $0x54] sm:$0xf] }
 0x56b   : > { %v19106_v28 = vrot.slane %v11137_v14, 5  ;;  %v11154_v6 = vrot.slane %v11152_v29, 4  ;;  %v11157_v61 = vrot.slane %v11155_v12, 5  ;;  %v19117_v3 = vrot.slane %v11161_v11, 5 }
 0x56c   : > { %14274 = vmatmul.mubr.bf16.gmra.mrb[0].mxu1 %v12843_v32  ;;  %v11099_v32 = vshll.u32 %v12861_v46, 16  ;;  %v11087_v42 = vrot.slane %v11086_v59, 4  ;;  %v11167_v62 = vrot.slane %v11165_v21, 4  ;;  %v11176_v53 = vshrl.u32 %v12871_v10, 16 }
 0x56d   : > { %14277 = vmatprep.mubr.bf16.mxu1 %v12844_v27  ;;  %v12872_v27 = vld [vmem:[%s15568_s8 + $0x40] sm:$0xf]  ;;  %v11179_v16 = vshll.u32 %v12871_v10, 16  ;;  %v10701_v18 = vsel %vm15640_vm2, %v10696_v39, %v10700_v30  ;;  %v11125_v33 = vrot.slane %v11123_v47, 5  ;;  %v11111_v24 = vrot.slane %v11110_v9, 4 }
 0x56e   : > { %v11101_v26 = vrot.slane %v11099_v32, 5  ;;  %v11185_v17 = vshll.u32 %v12872_v27, 16  ;;  %v11189_v46 = vshrl.u32 %v12872_v27, 16  ;;  %v11092_v37 = vsel %vm15640_vm2, %v11087_v42, %v19094_v19  ;;  %v12875_v19 = vld [vmem:[%s15568_s8 + $0x4c] sm:$0xf] }
 0x56f   : > { %v11121_v34 = vrot.slane %v11120_v7, 4  ;;  %v11149_v45 = vrot.slane %v11147_v31, 5  ;;  %v11171_v54 = vshll.u32 %v12870_v5, 16  ;;  %v11158_v41 = vor.u32 %v11157_v61, %v11154_v6  ;;  %v12876_v39 = vld [vmem:[%s15568_s8 + $0x50] sm:$0x1] }
 0x570   : > { %v11102_v55 = vsel %vm15640_vm2, %v11097_v44, %v11101_v26  ;;  %v11168_v2 = vor.u32 %v11167_v62, %v19117_v3  ;;  %v11178_v14 = vrot.slane %v11176_v53, 4  ;;  %v11181_v51 = vrot.slane %v11179_v16, 5  ;;  %v12879_v27 = vld [vmem:[%s15568_s8 + $0x5c] sm:$0x1]  ;;  %v12881_v62 = vld [vmem:[%s15568_s8 + $0x64] sm:$0xf] }
 0x571   : > { %v19130_v43 = vrot.slane %v11185_v17, 5  ;;  %v11191_v40 = vrot.slane %v11189_v46, 4  ;;  %v11200_v32 = vshrl.u32 %v12874_v38, 16  ;;  %v11203_v60 = vshll.u32 %v12874_v38, 16  ;;  %v12883_v53 = vld [vmem:[%s15568_s8 + $0x6c] sm:$0xf] }
 0x572   : > { %v12907_v59 = vcombine.low %v11092_v37, %v11102_v55  ;;  %v11126_v13 = vsel %vm15640_vm2, %v11121_v34, %v11125_v33  ;;  %v11209_v56 = vshll.u32 %v12875_v19, 16  ;;  %v11213_v23 = vshrl.u32 %v12875_v19, 16 }
 0x573   : > { %v19146_v48 = vrot.slane %v11171_v54, 5  ;;  %v19148_v29 = vrot.slane %v11168_v2, 4  ;;  %v11192_v12 = vor.u32 %v11191_v40, %v19130_v43  ;;  %v11224_v11 = vshrl.u32 %v12877_v50, 16  ;;  %v12886_v40 = vld [vmem:[%s15568_s8 + $0x78] sm:$0xf] }
 0x574   : > { %14278 = vmatmul.mubr.bf16.gmra.mrb[4].mxu1 %v12845_v52  ;;  %v11134_v52 = vor.u32 %v11133_v35, %v11130_v15  ;;  %v12878_v15 = vld [vmem:[%s15568_s8 + $0x58] sm:$0xf]  ;;  %v19144_v35 = vrot.slane %v11158_v41, 4  ;;  %v11227_v21 = vshll.u32 %v12877_v50, 16  ;;  %v19152_v47 = vrot.slane %v11209_v56, 5 }
 0x575   : > { %14281 = vmatprep.mubr.bf16.mxu1 %v12846_v49  ;;  %v11144_v49 = vor.u32 %v11143_v36, %v19106_v28  ;;  %v11195_v36 = vshll.u32 %v12873_v0, 16  ;;  %v11233_v30 = vshll.u32 %v12878_v15, 16  ;;  %v11237_v42 = vshrl.u32 %v12878_v15, 16  ;;  %v12882_v56 = vld [vmem:[%s15568_s8 + $0x68] sm:$0x1] }
 0x576   : > { %v11135_v57 = vrot.slane %v11134_v52, 4  ;;  %v11215_v10 = vrot.slane %v11213_v23, 4  ;;  %v11164_v9 = vsel %vm15640_vm2, %v19144_v35, %v19117_v3  ;;  %v12880_v52 = vld [vmem:[%s15568_s8 + $0x60] sm:$0xf]  ;;  %v11193_v6 = vrot.slane %v11192_v12, 4 }
 0x577   : > { %v11145_v8 = vrot.slane %v11144_v49, 4  ;;  %v11197_v31 = vrot.slane %v11195_v36, 5  ;;  %v11174_v49 = vsel %vm15640_vm2, %v19148_v29, %v19146_v48  ;;  %v11219_v5 = vshll.u32 %v12876_v39, 16  ;;  %v12884_v3 = vld [vmem:[%s15568_s8 + $0x70] sm:$0xf] }
 0x578   : > { %v11140_v58 = vsel %vm15640_vm2, %v11135_v57, %v19106_v28  ;;  %v11205_v28 = vrot.slane %v11203_v60, 5  ;;  %v11226_v16 = vrot.slane %v11224_v11, 4  ;;  %v19166_v33 = vrot.slane %v11233_v30, 5  ;;  %v12885_v36 = vld [vmem:[%s15568_s8 + $0x74] sm:$0x1] }
 0x579   : > { %v11150_v22 = vsel %vm15640_vm2, %v11145_v8, %v11149_v45  ;;  %v11239_v17 = vrot.slane %v11237_v42, 4  ;;  %v11216_v46 = vor.u32 %v11215_v10, %v19152_v47  ;;  %v11243_v37 = vshll.u32 %v12879_v27, 16  ;;  %v12889_v10 = vld [vmem:[%s15568_s8 + $0x84] sm:$0xf] }
 0x57a   : > { %v12909_v44 = vcombine.low %v11140_v58, %v11150_v22  ;;  %v11248_v55 = vshrl.u32 %v12880_v52, 16  ;;  %v11257_v34 = vshll.u32 %v12881_v62, 16  ;;  %v11261_v38 = vshrl.u32 %v12881_v62, 16 }
 0x57b   : > { %v11272_v57 = vshrl.u32 %v12883_v53, 16  ;;  %v11275_v8 = vshll.u32 %v12883_v53, 16  ;;  %v11281_v41 = vshll.u32 %v12884_v3, 16  ;;  %v11285_v2 = vshrl.u32 %v12884_v3, 16 }
 0x57c   : > { %14282 = vmatmul.mubr.bf16.gmra.mrb[8].mxu1 %v12847_v63  ;;  %v12849_v63 = vcombine.low %v10691_v25, %v10701_v18  ;;  %v11202_v25 = vrot.slane %v11200_v32, 4  ;;  %v11229_v18 = vrot.slane %v11227_v21, 5  ;;  %v11240_v0 = vor.u32 %v11239_v17, %v19166_v33 }
 0x57d   : > { %14285 = vmatprep.mubr.bf16.mxu1 %v12848_v1  ;;  %v11116_v1 = vsel %vm15640_vm2, %v11111_v24, %v19103_v20  ;;  %v11182_v20 = vor.u32 %v11181_v51, %v11178_v14  ;;  %v11251_v24 = vshll.u32 %v12880_v52, 16  ;;  %v11198_v14 = vsel %vm15640_vm2, %v11193_v6, %v11197_v31 }
 0x57e   : > { %v12908_v26 = vcombine.low %v11116_v1, %v11126_v13  ;;  %v11206_v61 = vor.u32 %v11205_v28, %v11202_v25  ;;  %v11221_v51 = vrot.slane %v11219_v5, 5  ;;  %v11230_v19 = vor.u32 %v11229_v18, %v11226_v16 }
 0x57f   : > { %v11183_v7 = vrot.slane %v11182_v20, 4  ;;  %v11217_v32 = vrot.slane %v11216_v46, 4  ;;  %v11245_v60 = vrot.slane %v11243_v37, 5  ;;  %v19180_v1 = vrot.slane %v11257_v34, 5  ;;  %v12892_v34 = vld [vmem:[%s15568_s8 + $0x90] sm:$0xf] }
 0x580   : > { %v19173_v54 = vrot.slane %v11206_v61, 4  ;;  %v11263_v13 = vrot.slane %v11261_v38, 4  ;;  %v11274_v58 = vrot.slane %v11272_v57, 4  ;;  %v11277_v22 = vrot.slane %v11275_v8, 5 }
 0x581   : > { %v11188_v45 = vsel %vm15640_vm2, %v11183_v7, %v19130_v43  ;;  %v12887_v43 = vld [vmem:[%s15568_s8 + $0x7c] sm:$0xf]  ;;  %v19183_v23 = vrot.slane %v11281_v41, 5  ;;  %v11287_v50 = vrot.slane %v11285_v2, 4  ;;  %v11296_v15 = vshrl.u32 %v12886_v40, 16 }
 0x582   : > { %v11299_v35 = vshll.u32 %v12886_v40, 16  ;;  %v11231_v48 = vrot.slane %v11230_v19, 4  ;;  %v11241_v20 = vrot.slane %v11240_v0, 4  ;;  %v11305_v29 = vshll.u32 %v12887_v43, 16 }
 0x583   : > { %v11309_v12 = vshrl.u32 %v12887_v43, 16  ;;  %v12910_v25 = vcombine.low %v11164_v9, %v11174_v49  ;;  %v12911_v28 = vcombine.low %v11188_v45, %v11198_v14  ;;  %v11212_v39 = vsel %vm15640_vm2, %v19173_v54, %v19152_v47  ;;  %v12888_v49 = vld [vmem:[%s15568_s8 + $0x80] sm:$0x1]  ;;  %v12891_v45 = vld [vmem:[%s15568_s8 + $0x8c] sm:$0x1] }
 0x584   : > { %14286 = vmatmul.mubr.bf16.gmra.mrb[12].mxu1 %v12849_v63  ;;  %v11250_v63 = vrot.slane %v11248_v55, 4  ;;  %v11222_v11 = vsel %vm15640_vm2, %v11217_v32, %v11221_v51  ;;  %v11264_v30 = vor.u32 %v11263_v13, %v19180_v1  ;;  %v11267_v42 = vshll.u32 %v12882_v56, 16  ;;  %v12893_v51 = vld [vmem:[%s15568_s8 + $0x94] sm:$0xf] }
 0x585   : > { %14305 = vmatprep.mubr.bf16.mxu1 %v12907_v59  ;;  %v11253_v59 = vrot.slane %v11251_v24, 5  ;;  %v11288_v7 = vor.u32 %v11287_v50, %v19183_v23  ;;  %v11291_v9 = vshll.u32 %v12885_v36, 16  ;;  %v11298_v31 = vrot.slane %v11296_v15, 4 }
 0x586   : > { %v11301_v27 = vrot.slane %v11299_v35, 5  ;;  %v11236_v52 = vsel %vm15640_vm2, %v11231_v48, %v19166_v33  ;;  %v11246_v47 = vsel %vm15640_vm2, %v11241_v20, %v11245_v60  ;;  %v19202_v6 = vrot.slane %v11305_v29, 5  ;;  %v12895_v60 = vld [vmem:[%s15568_s8 + $0x9c] sm:$0xf] }
 0x587   : > { %v11254_v21 = vor.u32 %v11253_v59, %v11250_v63  ;;  %v11311_v61 = vrot.slane %v11309_v12, 4  ;;  %v11320_v5 = vshrl.u32 %v12889_v10, 16  ;;  %v11323_v62 = vshll.u32 %v12889_v10, 16  ;;  %v12896_v63 = vld [vmem:[%s15568_s8 + $0xa0] sm:$0xf] }
 0x588   : > { %v11265_v17 = vrot.slane %v11264_v30, 4  ;;  %v11269_v3 = vrot.slane %v11267_v42, 5  ;;  %v11289_v46 = vrot.slane %v11288_v7, 4  ;;  %v11293_v37 = vrot.slane %v11291_v9, 5  ;;  %v12897_v10 = vld [vmem:[%s15568_s8 + $0xa4] sm:$0x1] }
 0x589   : > { %v11255_v18 = vrot.slane %v11254_v21, 4  ;;  %v11302_v55 = vor.u32 %v11301_v27, %v11298_v31  ;;  %v11315_v24 = vshll.u32 %v12888_v49, 16  ;;  %v12912_v38 = vcombine.low %v11212_v39, %v11222_v11  ;;  %v12894_v11 = vld [vmem:[%s15568_s8 + $0x98] sm:$0x1]  ;;  %v12898_v27 = vld [vmem:[%s15568_s8 + $0xa8] sm:$0xf] }
 0x58a   : > { %v12913_v57 = vcombine.low %v11236_v52, %v11246_v47  ;;  %v11312_v8 = vor.u32 %v11311_v61, %v19202_v6  ;;  %v11322_v54 = vrot.slane %v11320_v5, 4  ;;  %v11325_v41 = vrot.slane %v11323_v62, 5  ;;  %v12899_v61 = vld [vmem:[%s15568_s8 + $0xac] sm:$0xf] }
 0x58b   : > { %v11260_v19 = vsel %vm15640_vm2, %v11255_v18, %v19180_v1  ;;  %v11270_v0 = vsel %vm15640_vm2, %v11265_v17, %v11269_v3  ;;  %v11344_v40 = vshrl.u32 %v12892_v34, 16  ;;  %v11347_v32 = vshll.u32 %v12892_v34, 16  ;;  %v12901_v17 = vld [vmem:[%s15568_s8 + $0xb4] sm:$0xf]  ;;  %v12902_v3 = vld [vmem:[%s15568_s8 + $0xb8] sm:$0xf] }
 0x58c   : > { %14306 = vmatmul.mubr.bf16.vlgmr.msra.gmra.mrb[16].mxu1 %v12908_v26  ;;  %v11278_v26 = vor.u32 %v11277_v22, %v11274_v58  ;;  %v11294_v43 = vsel %vm15640_vm2, %v11289_v46, %v11293_v37  ;;  %v11303_v13 = vrot.slane %v11302_v55, 4  ;;  %v11317_v58 = vrot.slane %v11315_v24, 5 }
 0x58d   : > { %14309 = vmatprep.mubr.bf16.mxu1 %v12909_v44  ;;  %v12890_v44 = vld [vmem:[%s15568_s8 + $0x88] sm:$0xf]  ;;  %v11313_v22 = vrot.slane %v11312_v8, 4  ;;  %v11339_v56 = vshll.u32 %v12891_v45, 16  ;;  %v11353_v1 = vshll.u32 %v12893_v51, 16  ;;  %v11357_v50 = vshrl.u32 %v12893_v51, 16 }
 0x58e   : > { %v11329_v53 = vshll.u32 %v12890_v44, 16  ;;  %v11333_v16 = vshrl.u32 %v12890_v44, 16  ;;  %v11279_v33 = vrot.slane %v11278_v26, 4  ;;  %v11368_v15 = vshrl.u32 %v12895_v60, 16 }
 0x58f   : > { %v11371_v35 = vshll.u32 %v12895_v60, 16  ;;  %v11377_v48 = vshll.u32 %v12896_v63, 16  ;;  %v11381_v20 = vshrl.u32 %v12896_v63, 16  ;;  %v11326_v36 = vor.u32 %v11325_v41, %v11322_v54 }
 0x590   : > { %v19207_v2 = vrot.slane %v11329_v53, 5  ;;  %v11335_v14 = vrot.slane %v11333_v16, 4  ;;  %v11284_v59 = vsel %vm15640_vm2, %v11279_v33, %v19183_v23  ;;  %v11346_v29 = vrot.slane %v11344_v40, 4 }
 0x591   : > { %v11349_v12 = vrot.slane %v11347_v32, 5  ;;  %v11308_v39 = vsel %vm15640_vm2, %v11303_v13, %v19202_v6  ;;  %v11318_v21 = vsel %vm15640_vm2, %v11313_v22, %v11317_v58  ;;  %v11341_v30 = vrot.slane %v11339_v56, 5 }
 0x592   : > { %v11336_v23 = vor.u32 %v11335_v14, %v19207_v2  ;;  %v19229_v42 = vrot.slane %v11353_v1, 5  ;;  %v11359_v26 = vrot.slane %v11357_v50, 4  ;;  %v11370_v44 = vrot.slane %v11368_v15, 4  ;;  %v12905_v1 = vld [vmem:[%s15568_s8 + $0xc4] sm:$0xf] }
 0x593   : > { %v11373_v7 = vrot.slane %v11371_v35, 5  ;;  %v19232_v9 = vrot.slane %v11377_v48, 5  ;;  %v11383_v31 = vrot.slane %v11381_v20, 4  ;;  %v11327_v52 = vrot.slane %v11326_v36, 4  ;;  %v12903_v48 = vld [vmem:[%s15568_s8 + $0xbc] sm:$0x1] }
 0x594   : > { %14310 = vmatmul.mubr.bf16.gmra.mrb[20].mxu1 %v12910_v25  ;;  %v12914_v25 = vcombine.low %v11260_v19, %v11270_v0  ;;  %v11337_v47 = vrot.slane %v11336_v23, 4  ;;  %v11350_v49 = vor.u32 %v11349_v12, %v11346_v29  ;;  %v11363_v6 = vshll.u32 %v12894_v11, 16 }
 0x595   : > { %14313 = vmatprep.mubr.bf16.mxu1 %v12911_v28  ;;  %v12915_v28 = vcombine.low %v11284_v59, %v11294_v43  ;;  %v11387_v5 = vshll.u32 %v12897_v10, 16  ;;  %v12916_v62 = vcombine.low %v11308_v39, %v11318_v21  ;;  %v11360_v53 = vor.u32 %v11359_v26, %v19229_v42  ;;  %v12900_v59 = vld [vmem:[%s15568_s8 + $0xb0] sm:$0x1]  ;;  %v12904_v43 = vld [vmem:[%s15568_s8 + $0xc0] sm:$0xf] }
 0x596   : > { %v11392_v16 = vshrl.u32 %v12898_v27, 16  ;;  %v11395_v18 = vshll.u32 %v12898_v27, 16  ;;  %v11374_v33 = vor.u32 %v11373_v7, %v11370_v44  ;;  %v11384_v46 = vor.u32 %v11383_v31, %v19232_v9 }
 0x597   : > { %v11401_v37 = vshll.u32 %v12899_v61, 16  ;;  %v11405_v55 = vshrl.u32 %v12899_v61, 16  ;;  %v11332_v24 = vsel %vm15640_vm2, %v11327_v52, %v19207_v2  ;;  %v11342_v34 = vsel %vm15640_vm2, %v11337_v47, %v11341_v30  ;;  %v12906_v61 = vld [vmem:[%s15568_s8 + $0xc8] sm:$0x1]  ;;  %s15360_s8 = sshll.u32 %s15428_s29, 4  ;;  %s15361_s8 = int_to_ptr.vmem [resolvable:$false] %s15360_s8 }
 0x598   : > { %v11416_v8 = vshrl.u32 %v12901_v17, 16  ;;  %v11419_v45 = vshll.u32 %v12901_v17, 16  ;;  %v11425_v54 = vshll.u32 %v12902_v3, 16  ;;  %v11429_v41 = vshrl.u32 %v12902_v3, 16  ;;  %s15362_s9 = scalar_lea.vmem %s15361_s8, 8192  ;;  %p15363_p2 = scmp.lt.s32.totalorder %s19391_s21, %s15361_s8 }
 0x599   : > { %v11361_v14 = vrot.slane %v11360_v53, 4  ;;  %v11389_v51 = vrot.slane %v11387_v5, 5  ;;  %v11394_v19 = vrot.slane %v11392_v16, 4  ;;  %v11397_v0 = vrot.slane %v11395_v18, 5  ;;  %p15364_p3 = scmp.lt.s32.totalorder %s15362_s9, %s15356_s23 }
 0x59a   : > { %v11375_v40 = vrot.slane %v11374_v33, 4  ;;  %v11385_v32 = vrot.slane %v11384_v46, 4  ;;  %v11403_v2 = vrot.slane %v11401_v37, 5  ;;  %v11407_v60 = vrot.slane %v11405_v55, 4 }
 0x59b   : > { %v12917_v63 = vcombine.low %v11332_v24, %v11342_v34  ;;  %v11418_v13 = vrot.slane %v11416_v8, 4  ;;  %v11421_v58 = vrot.slane %v11419_v45, 5  ;;  %v11427_v22 = vrot.slane %v11425_v54, 5  ;;  %v19275_v8 = vld [vmem:[%s19443_s4] ss:$0 sm:$0xff]  ;;  %v19747_v45 = vld [vmem:[#allocation26_spill] sm:$0xff]  ;;  %p15365_p4 = por %p15364_p3, %p15363_p2 }
 0x59c   : > { %14314 = vmatmul.mubr.bf16.gmra.mrb[24].mxu1 %v12912_v38  ;;  %v11351_v38 = vrot.slane %v11350_v49, 4  ;;  %v11431_v56 = vrot.slane %v11429_v41, 4  ;;  %v11398_v35 = vor.u32 %v11397_v0, %v11394_v19  ;;  %v11380_v20 = vsel %vm15640_vm2, %v11375_v40, %v19232_v9  ;;  %v19748_v41 = vld [vmem:[#allocation29_spill] sm:$0xff]  ;;  %v19750_v0 = vld [vmem:[#allocation20_spill] sm:$0xff] }
 0x59d   : > { %14317 = vmatprep.mubr.bf16.mxu1 %v12913_v57  ;;  %v11365_v57 = vrot.slane %v11363_v6, 5  ;;  %v11390_v36 = vsel %vm15640_vm2, %v11385_v32, %v11389_v51  ;;  %v11408_v23 = vor.u32 %v11407_v60, %v11403_v2  ;;  %v11411_v29 = vshll.u32 %v12900_v59, 16  ;;  %v19285_v51 = vld [vmem:[%s19445_s6] ss:$0 sm:$0xff]  ;;  %p15366_p7 = pnand %p15365_p4, %p15359_p12 }
 0x59e   : > { %v11356_v50 = vsel %vm15640_vm2, %v11351_v38, %v19229_v42  ;;  %v11440_v12 = vshrl.u32 %v12904_v43, 16  ;;  %v11453_v39 = vshrl.u32 %v12905_v1, 16  ;;  %v11422_v11 = vor.u32 %v11421_v58, %v11418_v13 }
 0x59f   : > { %v11366_v15 = vsel %vm15640_vm2, %v11361_v14, %v11365_v57  ;;  %v11432_v21 = vor.u32 %v11431_v56, %v11427_v22  ;;  %v11435_v30 = vshll.u32 %v12903_v48, 16  ;;  %v12919_v26 = vcombine.low %v11380_v20, %v11390_v36  ;;  %v19751_v56 = vld [vmem:[#allocation21_spill] sm:$0xff]  ;;  %v19752_v48 = vld [vmem:[#allocation27_spill] sm:$0xff] }
 0x5a0   : > { %v12918_v42 = vcombine.low %v11356_v50, %v11366_v15  ;;  %v11399_v10 = vrot.slane %v11398_v35, 4  ;;  %v11409_v44 = vrot.slane %v11408_v23, 4  ;;  %v11413_v7 = vrot.slane %v11411_v29, 5  ;;  %v19753_v29 = vld [vmem:[#allocation25_spill] sm:$0xff] }
 0x5a1   : > { %v11442_v9 = vrot.slane %v11440_v12, 4  ;;  %v11455_v52 = vrot.slane %v11453_v39, 4  ;;  %v11423_v47 = vrot.slane %v11422_v11, 4  ;;  %v11433_v49 = vrot.slane %v11432_v21, 4 }
 0x5a2   : > { %v11437_v6 = vrot.slane %v11435_v30, 5  ;;  %v11404_v5 = vsel %vm15640_vm2, %v11399_v10, %v11403_v2  ;;  %v11459_v18 = vshll.u32 %v12906_v61, 16  ;;  %v6225_v54 = vadd.f32 %v19747_v45, %v19275_v8  ;;  %v19756_v61 = vld [vmem:[#allocation9_spill] sm:$0xff] }
 0x5a3   : > { %v11428_v17 = vsel %vm15640_vm2, %v11423_v47, %v11427_v22  ;;  %v6223_v14 = vadd.f32 %v19275_v8, %v19748_v41  ;;  %v6226_v19 = vadd.f32 %v19749_v4, %v19275_v8  ;;  %v6224_v40 = vadd.f32 %v19275_v8, %v19750_v0 }
 0x5a4   : > { %14318 = vmatmul.mubr.bf16.gmra.mrb[28].mxu1 %v12914_v25  ;;  %v11443_v25 = vshll.u32 %v12904_v43, 16  ;;  %v11438_v3 = vsel %vm15640_vm2, %v11433_v49, %v11437_v6  ;;  %v11461_v24 = vrot.slane %v11459_v18, 5  ;;  %v14386_v32 = vadd.f32 %v19285_v51, %v6225_v54 }
 0x5a5   : > { %14321 = vmatprep.mubr.bf16.mxu1 %v12915_v28  ;;  %v11449_v28 = vshll.u32 %v12905_v1, 16  ;;  %v12921_v46 = vcombine.low %v11428_v17, %v11438_v3  ;;  %v14389_v60 = vadd.f32 %v19285_v51, %v6223_v14  ;;  %v14392_v43 = vadd.f32 %v19285_v51, %v6226_v19  ;;  %v19758_v3 = vld [vmem:[#allocation16_spill] sm:$0xff]  ;;  %v19759_v14 = vld [vmem:[#allocation11_spill] sm:$0xff] }
 0x5a6   : > { %v11445_v31 = vrot.slane %v11443_v25, 5  ;;  %v14395_v22 = vadd.f32 %v19285_v51, %v6224_v40  ;;  %v6229_v1 = vadd.f32 %v19751_v56, %v19275_v8  ;;  %v6227_v20 = vadd.f32 %v19275_v8, %v19752_v48 }
 0x5a7   : > { %v11451_v27 = vrot.slane %v11449_v28, 5  ;;  %v6230_v12 = vadd.f32 %v19753_v29, %v19275_v8  ;;  %v19754_v28 = vld [vmem:[#allocation28_spill] sm:$0xff]  ;;  %v6237_v4 = vadd.f32 %v19759_v14, %v19275_v8 }
 0x5a8   : > { %v11446_v53 = vor.u32 %v11445_v31, %v11442_v9  ;;  %v6228_v39 = vadd.f32 %v19275_v8, %v19754_v28  ;;  %v14398_v21 = vadd.f32 %v19285_v51, %v6229_v1 }
 0x5a9   : > { %v11456_v16 = vor.u32 %v11455_v52, %v11451_v27  ;;  %v14422_v1 = vadd.f32 %v19285_v51, %v6237_v4 }
 0x5aa   : > { %v11447_v37 = vrot.slane %v11446_v53, 4  ;;  %v14407_v31 = vadd.f32 %v19285_v51, %v6228_v39 }
 0x5ab   : > { %v11457_v55 = vrot.slane %v11456_v16, 4  ;;  %v19757_v16 = vld [vmem:[#allocation10_spill] sm:$0xff] }
 0x5ac   : > { %14322 = vmatmul.mubr.bf16.gmra.mrb[0].mxu1 %v12916_v62  ;;  %v11414_v62 = vsel %vm15640_vm2, %v11409_v44, %v11413_v7  ;;  %v11452_v34 = vsel %vm15640_vm2, %v11447_v37, %v11451_v27  ;;  %v14404_v44 = vadd.f32 %v19285_v51, %v6230_v12  ;;  %v19755_v27 = vld [vmem:[#allocation15_spill] sm:$0xff]  ;;  %v6234_v18 = vadd.f32 %v19757_v16, %v19275_v8 }
 0x5ad   : > { %14325 = vmatprep.mubr.bf16.mxu1 %v12917_v63  ;;  %v12920_v33 = vcombine.low %v11404_v5, %v11414_v62  ;;  %v11462_v38 = vsel %vm15640_vm2, %v11457_v55, %v11461_v24  ;;  %v6233_v52 = vadd.f32 %v19755_v27, %v19275_v8  ;;  %v6231_v5 = vadd.f32 %v19275_v8, %v19756_v61 }
 0x5ae   : > { %v12922_v57 = vcombine.low %v11452_v34, %v11462_v38 }
 0x5af   : > { %v14410_v37 = vadd.f32 %v19285_v51, %v6233_v52  ;;  %v14413_v24 = vadd.f32 %v19285_v51, %v6231_v5 }
 0x5b4   : > { %14326 = vmatmul.mubr.bf16.gmra.mrb[4].mxu1 %v12918_v42  ;;  %v14401_v42 = vadd.f32 %v19285_v51, %v6227_v20 }
 0x5b5   : > { %14329 = vmatprep.mubr.bf16.mxu1 %v12919_v26 }
 0x5bc   : > { %14330 = vmatmul.mubr.bf16.gmra.mrb[8].mxu1 %v12920_v33  ;;  %v6232_v33 = vadd.f32 %v19275_v8, %v19758_v3 }
 0x5bd   : > { %14333 = vmatprep.mubr.bf16.mxu1 %v12921_v46 }
 0x5be   : > { %v14419_v41 = vadd.f32 %v19285_v51, %v6232_v33 }
 0x5c4   : > { %14334 = vmatmul.mubr.bf16.gmra.mrb[12].mxu1 %v12922_v57  ;;  %v14416_v57 = vadd.f32 %v19285_v51, %v6234_v18 }
 0x65f   : > { %v14307_v2 = vpop.f32.mrb[16].mxu1 }
 0x660   : > { %v14387_v63 = vadd.f32 %v14386_v32, %v14307_v2  ;;  %v11625_v59 = vpop.f32.mrb[17].mxu1  ;;  %v19760_v32 = vld [vmem:[#allocation13_spill] sm:$0xff] }
 0x661   : > { %v14390_v13 = vadd.f32 %v14389_v60, %v11625_v59  ;;  %v14308_v58 = vpop.f32.mrb[18].mxu1  ;;  %v6235_v2 = vadd.f32 %v19275_v8, %v19760_v32  ;;  %v19761_v59 = vld [vmem:[#allocation12_spill] sm:$0xff] }
 0x662   : > { %v11818_v50 = vmax.f32 %v14387_v63, 0.0  ;;  %v14393_v15 = vadd.f32 %v14392_v43, %v14308_v58  ;;  %v11628_v35 = vpop.f32.mrb[19].mxu1  ;;  %v6238_v43 = vadd.f32 %v19761_v59, %v19275_v8  ;;  %v19762_v58 = vld [vmem:[#allocation18_spill] sm:$0xff] }
 0x663   : > { %v11816_v36 = vmax.f32 %v14390_v13, 0.0  ;;  %v14396_v23 = vadd.f32 %v14395_v22, %v11628_v35  ;;  %v6236_v22 = vadd.f32 %v19275_v8, %v19762_v58 }
 0x664   : > { %11850 = vst [vmem:[%s19303_s20 + $0x10] sm:$0xff] %v11818_v50  ;;  %v11819_v25 = vmax.f32 %v14393_v15, 0.0  ;;  %v14425_v15 = vadd.f32 %v19285_v51, %v6235_v2  ;;  %v14428_v20 = vadd.f32 %v19285_v51, %v6238_v43 }
 0x665   : > { %11848 = vst [vmem:[%s19303_s20] sm:$0xff] %v11816_v36  ;;  %v11817_v11 = vmax.f32 %v14396_v23, 0.0  ;;  %v14431_v29 = vadd.f32 %v19285_v51, %v6236_v22 }
 0x666   : > { %11851 = vst [vmem:[%s19303_s20 + $0x18] sm:$0xff] %v11819_v25 }
 0x667   : > { %11849 = vst [vmem:[%s19303_s20 + $0x8] sm:$0xff] %v11817_v11  ;;  %v14311_v30 = vpop.f32.mrb[20].mxu1 }
 0x668   : > { %v14399_v26 = vadd.f32 %v14398_v21, %v14311_v30  ;;  %v11641_v10 = vpop.f32.mrb[21].mxu1  ;;  %v19350_v30 = vadd.f32 %v19285_v51, %v19275_v8 }
 0x669   : > { %v14402_v7 = vadd.f32 %v14401_v42, %v11641_v10  ;;  %v14312_v9 = vpop.f32.mrb[22].mxu1 }
 0x66a   : > { %v11822_v47 = vmax.f32 %v14399_v26, 0.0  ;;  %v14405_v49 = vadd.f32 %v14404_v44, %v14312_v9  ;;  %v11644_v6 = vpop.f32.mrb[23].mxu1 }
 0x66b   : > { %v11820_v62 = vmax.f32 %v14402_v7, 0.0  ;;  %v14408_v53 = vadd.f32 %v14407_v31, %v11644_v6 }
 0x66c   : > { %11854 = vst [vmem:[%s19303_s20 + $0x30] sm:$0xff] %v11822_v47  ;;  %v11823_v17 = vmax.f32 %v14405_v49, 0.0 }
 0x66d   : > { %11852 = vst [vmem:[%s19303_s20 + $0x20] sm:$0xff] %v11820_v62  ;;  %v11821_v46 = vmax.f32 %v14408_v53, 0.0 }
 0x66e   : > { %11855 = vst [vmem:[%s19303_s20 + $0x38] sm:$0xff] %v11823_v17 }
 0x66f   : > { %11853 = vst [vmem:[%s19303_s20 + $0x28] sm:$0xff] %v11821_v46  ;;  %v14315_v55 = vpop.f32.mrb[24].mxu1 }
 0x670   : > { %v14411_v34 = vadd.f32 %v14410_v37, %v14315_v55  ;;  %v11657_v38 = vpop.f32.mrb[25].mxu1 }
 0x671   : > { %v14414_v45 = vadd.f32 %v14413_v24, %v11657_v38  ;;  %v14316_v54 = vpop.f32.mrb[26].mxu1 }
 0x672   : > { %v11826_v19 = vmax.f32 %v14411_v34, 0.0  ;;  %v14417_v0 = vadd.f32 %v14416_v57, %v14316_v54  ;;  %v11660_v40 = vpop.f32.mrb[27].mxu1 }
 0x673   : > { %v11824_v60 = vmax.f32 %v14414_v45, 0.0  ;;  %v14420_v63 = vadd.f32 %v14419_v41, %v11660_v40 }
 0x674   : > { %11858 = vst [vmem:[%s19303_s20 + $0x50] sm:$0xff] %v11826_v19  ;;  %v11827_v13 = vmax.f32 %v14417_v0, 0.0 }
 0x675   : > { %11856 = vst [vmem:[%s19303_s20 + $0x40] sm:$0xff] %v11824_v60  ;;  %v11825_v56 = vmax.f32 %v14420_v63, 0.0 }
 0x676   : > { %11859 = vst [vmem:[%s19303_s20 + $0x58] sm:$0xff] %v11827_v13 }
 0x677   : > { %11857 = vst [vmem:[%s19303_s20 + $0x48] sm:$0xff] %v11825_v56  ;;  %v14319_v50 = vpop.f32.mrb[28].mxu1 }
 0x678   : > { %v14423_v35 = vadd.f32 %v14422_v1, %v14319_v50  ;;  %v11673_v48 = vpop.f32.mrb[29].mxu1 }
 0x679   : > { %v14426_v36 = vadd.f32 %v14425_v15, %v11673_v48  ;;  %v14320_v23 = vpop.f32.mrb[30].mxu1 }
 0x67a   : > { %v11830_v12 = vmax.f32 %v14423_v35, 0.0  ;;  %v14429_v25 = vadd.f32 %v14428_v20, %v14320_v23  ;;  %v11676_v28 = vpop.f32.mrb[31].mxu1 }
 0x67b   : > { %v11828_v39 = vmax.f32 %v14426_v36, 0.0  ;;  %v14432_v11 = vadd.f32 %v14431_v29, %v11676_v28 }
 0x67c   : > { %11862 = vst [vmem:[%s19303_s20 + $0x70] sm:$0xff] %v11830_v12  ;;  %v11831_v21 = vmax.f32 %v14429_v25, 0.0 }
 0x67d   : > { %11860 = vst [vmem:[%s19303_s20 + $0x60] sm:$0xff] %v11828_v39  ;;  %v11829_v42 = vmax.f32 %v14432_v11, 0.0 }
 0x67e   : > { %11863 = vst [vmem:[%s19303_s20 + $0x78] sm:$0xff] %v11831_v21 }
 0x67f   : > { %11861 = vst [vmem:[%s19303_s20 + $0x68] sm:$0xff] %v11829_v42  ;;  %v14323_v26 = vpop.f32.mrb[0].mxu1 }
 0x680   : > { %v14434_v10 = vadd.f32 %v19350_v30, %v14323_v26  ;;  %v11689_v44 = vpop.f32.mrb[1].mxu1 }
 0x681   : > { %v14436_v7 = vadd.f32 %v19350_v30, %v11689_v44  ;;  %v14324_v9 = vpop.f32.mrb[2].mxu1 }
 0x682   : > { %v11834_v31 = vmax.f32 %v14434_v10, 0.0  ;;  %v14438_v27 = vadd.f32 %v19350_v30, %v14324_v9  ;;  %v11692_v52 = vpop.f32.mrb[3].mxu1 }
 0x683   : > { %v11832_v8 = vmax.f32 %v14436_v7, 0.0  ;;  %v14440_v51 = vadd.f32 %v19350_v30, %v11692_v52 }
 0x684   : > { %11866 = vst [vmem:[%s19303_s20 + $0x90] sm:$0xff] %v11834_v31  ;;  %v11835_v47 = vmax.f32 %v14438_v27, 0.0 }
 0x685   : > { %11864 = vst [vmem:[%s19303_s20 + $0x80] sm:$0xff] %v11832_v8  ;;  %v11833_v49 = vmax.f32 %v14440_v51, 0.0 }
 0x686   : > { %11867 = vst [vmem:[%s19303_s20 + $0x98] sm:$0xff] %v11835_v47 }
 0x687   : > { %11865 = vst [vmem:[%s19303_s20 + $0x88] sm:$0xff] %v11833_v49  ;;  %v14327_v6 = vpop.f32.mrb[4].mxu1 }
 0x688   : > { %v14442_v61 = vadd.f32 %v19350_v30, %v14327_v6  ;;  %v11705_v5 = vpop.f32.mrb[5].mxu1 }
 0x689   : > { %v14444_v62 = vadd.f32 %v19350_v30, %v11705_v5  ;;  %v14328_v53 = vpop.f32.mrb[6].mxu1 }
 0x68a   : > { %v11838_v16 = vmax.f32 %v14442_v61, 0.0  ;;  %v14446_v18 = vadd.f32 %v19350_v30, %v14328_v53  ;;  %v11708_v17 = vpop.f32.mrb[7].mxu1 }
 0x68b   : > { %v11836_v3 = vmax.f32 %v14444_v62, 0.0  ;;  %v14448_v33 = vadd.f32 %v19350_v30, %v11708_v17 }
 0x68c   : > { %11870 = vst [vmem:[%s19303_s20 + $0xb0] sm:$0xff] %v11838_v16  ;;  %v11839_v46 = vmax.f32 %v14446_v18, 0.0 }
 0x68d   : > { %11868 = vst [vmem:[%s19303_s20 + $0xa0] sm:$0xff] %v11836_v3  ;;  %v11837_v37 = vmax.f32 %v14448_v33, 0.0 }
 0x68e   : > { %11871 = vst [vmem:[%s19303_s20 + $0xb8] sm:$0xff] %v11839_v46 }
 0x68f   : > { %11869 = vst [vmem:[%s19303_s20 + $0xa8] sm:$0xff] %v11837_v37  ;;  %v14331_v55 = vpop.f32.mrb[8].mxu1 }
 0x690   : > { %v14450_v24 = vadd.f32 %v19350_v30, %v14331_v55  ;;  %v11721_v34 = vpop.f32.mrb[9].mxu1 }
 0x691   : > { %v14452_v38 = vadd.f32 %v19350_v30, %v11721_v34  ;;  %v14332_v57 = vpop.f32.mrb[10].mxu1 }
 0x692   : > { %v11842_v45 = vmax.f32 %v14450_v24, 0.0  ;;  %v14454_v54 = vadd.f32 %v19350_v30, %v14332_v57  ;;  %v11724_v41 = vpop.f32.mrb[11].mxu1 }
 0x693   : > { %v11840_v14 = vmax.f32 %v14452_v38, 0.0  ;;  %v14456_v4 = vadd.f32 %v19350_v30, %v11724_v41 }
 0x694   : > { %11874 = vst [vmem:[%s19303_s20 + $0xd0] sm:$0xff] %v11842_v45  ;;  %v11843_v19 = vmax.f32 %v14454_v54, 0.0 }
 0x695   : > { %11872 = vst [vmem:[%s19303_s20 + $0xc0] sm:$0xff] %v11840_v14  ;;  %v11841_v0 = vmax.f32 %v14456_v4, 0.0 }
 0x696   : > { %11875 = vst [vmem:[%s19303_s20 + $0xd8] sm:$0xff] %v11843_v19 }
 0x697   : > { %11873 = vst [vmem:[%s19303_s20 + $0xc8] sm:$0xff] %v11841_v0  ;;  %v14335_v40 = vpop.f32.mrb[12].mxu1 }
 0x698   : > { %v14458_v32 = vadd.f32 %v19350_v30, %v14335_v40  ;;  %v11737_v2 = vpop.f32.mrb[13].mxu1 }
 0x699   : > { %v14460_v60 = vadd.f32 %v19350_v30, %v11737_v2  ;;  %v14336_v63 = vpop.f32.mrb[14].mxu1 }
 0x69a   : > { %v11846_v59 = vmax.f32 %v14458_v32, 0.0  ;;  %v14462_v43 = vadd.f32 %v19350_v30, %v14336_v63  ;;  %v11740_v13 = vpop.f32.mrb[15].mxu1 }
 0x69b   : > { %v11844_v58 = vmax.f32 %v14460_v60, 0.0  ;;  %v14464_v22 = vadd.f32 %v19350_v30, %v11740_v13 }
 0x69c   : > { %11878 = vst [vmem:[%s19303_s20 + $0xf0] sm:$0xff] %v11846_v59  ;;  %v11847_v56 = vmax.f32 %v14462_v43, 0.0 }
 0x69d   : > { %11876 = vst [vmem:[%s19303_s20 + $0xe0] sm:$0xff] %v11844_v58  ;;  %v11845_v1 = vmax.f32 %v14464_v22, 0.0 }
 0x69e   : > { %11879 = vst [vmem:[%s19303_s20 + $0xf8] sm:$0xff] %v11847_v56 }
 0x69f   : > { %11877 = vst [vmem:[%s19303_s20 + $0xe8] sm:$0xff] %v11845_v1 }
 0x6a0   : > { %15369 = shalt.err (!%p15366_p7)
}
 0x6a1   : > { %s15370_s14 = scalar_lea.hbm %s19389_s22, 4096  ;;  %s15374_s19 = scalar_lea.hbm %s19446_s7, 8192 }
 0x6a2   : > { %p15371_p8 = scmp.ne.s32.totalorder %s19389_s22, %s15370_s14  ;;  %p15375_p1 = scmp.lt.u32.totalorder %s19389_s22, %s19446_s7 }
 0x6a3   : > { %p15376_p0 = scmp.lt.u32.totalorder %s15374_s19, %s15370_s14  ;;  %p15378_p6 = scmp.lt.u32.totalorder %s15370_s14, %s19389_s22 }
 0x6a4   : > { %p15372_p11 = pnand %p15371_p8, %p19763_p9 }
 0x6a5   : > { %p15377_p5 = por %p15376_p0, %p15375_p1 }
 0x6a6   : > { %p15373_p13 = pneg %p15372_p11 }
 0x6a7   : > { %p15379_p10 = por %p15378_p6, %p15377_p5 }
 0x6a9   : > { %p15380_p12 = pnand %p15379_p10, %p15373_p13 }
 0x6ab   : > { %15383 = shalt.err (!%p15380_p12)
}
 0x6ac   : > { %s15429_s13 = smov 128   ;;  %s15430_s15 = smov 8  }
 0x6ad   : > { %14998 = dma.vmem_to_hbm [thread:$0]  (%p19763_p9), %s19391_s21, 4096, %s19389_s22, %s19398_s28, %s15429_s13, %s15429_s13, %s15430_s15  }
 0x6ae PF: > { %p15010_p2 = scmp.ge.s32.totalorder %s15422_s27, 2  ;;  %s11909_s23 = sand.u32 1, %s15410_s24  }
 0x6af   : > { %p19764_p3 = scmp.ne.s32.totalorder %s19519_s12, 0  ;;  %s11910_s29 = scalar_lea.sflag [#allocation5], %s11909_s23 }
 0x6b1   : > { %p15005_p4 = pnand %p15010_p2, %p19764_p3 }
 0x6b3   : > { %15405 = dma.done.wait (!%p15005_p4), %s11910_s29, 4096  }
 0x6b4   : > { %15407 = vsyncadd (!%p15005_p4), %s11910_s29, 4294963200  ;;  %p18_p7 = scmp.ge.s32.totalorder %s15496_s30, 4   ;;  %s19765_s24 = smov %s15414_s25 }
 0x6b5   : > { %s19766_s25 = smov %s15418_s26  ;;  %s19767_s26 = smov %s15507_s10 }
 0x6b6   : > { %s19768_s27 = smov %s15496_s30  ;;  %20 = sbr.rel (!%p18_p7) target bundleno = 4 (0x4), region = 108 }
 0x6bd   :  { %11915 = vsyncpa [#allocation4], 1 }
 0x6be   :  { %11917 = vsyncpa [#allocation4 + $0x1], 1 }
 0x6bf   :  { %11918 = vsyncpa [#allocation5], 1 }
 0x6c0   :  { %11920 = vsyncpa [#allocation5 + $0x1], 1 }

</bundles_post_ra>
